<compile_context>
chip_gen: v6e
topology: v6e:2x2x1
jax: 0.10.0
libtpu: 0.0.40
codegen_flags: <defaults>
</compile_context>

<pallas_src>
import functools

import jax
import jax.numpy as jnp
from jax import lax
from jax.experimental import pallas as pl
from jax.experimental.pallas import tpu as pltpu

EPS = 1e-5       # nn.GroupNorm default
GROUPS = 32      # norm_layer(32, planes)
LPAD = 8         # sublane-alignment left pad for the conv2 scratch interior


def _gn_scale_shift(acc, gamma, beta, cg):
    """GroupNorm of a (HW, PC) f32 slab; stats per packed sample / group.

    Packed columns are sample-major (index = p*C + c), so a (PC,) -> (P*G, cg)
    reshape of the per-column sums groups channels correctly per sample.
    Variance uses E[x^2] - E[x]^2 kept strictly in f32.
    """
    hw, pc = acc.shape
    s = jnp.sum(acc, axis=0, keepdims=True)           # (1, PC), f32
    ss = jnp.sum(acc * acc, axis=0, keepdims=True)    # (1, PC), f32
    if cg == 1:                                       # groups == channels (this instance)
        inv_n = 1.0 / hw
        mean = s * inv_n
        var = ss * inv_n - mean * mean
    else:                                             # general cg > 1 path
        inv_n = 1.0 / (hw * cg)
        gs = jnp.sum(s.reshape(pc // cg, cg), axis=1, keepdims=True)
        gss = jnp.sum(ss.reshape(pc // cg, cg), axis=1, keepdims=True)
        mean_g = gs * inv_n
        var_g = gss * inv_n - mean_g * mean_g
        mean = jnp.broadcast_to(mean_g, (pc // cg, cg)).reshape(1, pc)
        var = jnp.broadcast_to(var_g, (pc // cg, cg)).reshape(1, pc)
    scale = lax.rsqrt(var + EPS) * gamma              # fold gamma into one multiply
    return (acc - mean) * scale + beta


def basic_block_kernel(xpad_ref, w1_ref, g1_ref, b1_ref, w2_ref, g2_ref, b2_ref,
                       o_ref, slab_scr, pad_scr, *, cg):
    # xpad_ref: (H+2, W+2, PC) zero-padded, batch-packed input (f32)
    # w*_ref:   (9*PC, PC) bf16 block-diagonal im2col weights
    # g*/b*:    (1, PC) f32 GroupNorm affine params (tiled over packed samples)
    # o_ref:    (H*W, PC) output (lane-dense)
    # slab_scr: (H*W, 9*PC) bf16 im2col patch slab (reused by both convs)
    # pad_scr:  (H+2, LPAD+W+1, PC) bf16 zero-padded intermediate for conv2
    Hp2, Wp2, PC = xpad_ref.shape
    H, W = Hp2 - 2, Wp2 - 2
    HW = H * W

    def im2col(read_tap):
        # One aligned 128-lane column block per tap; no value-level concat.
        for dy in range(3):
            for dx in range(3):
                tap = dy * 3 + dx
                slab_scr[:, tap * PC:(tap + 1) * PC] = (
                    read_tap(dy, dx).astype(jnp.bfloat16).reshape(HW, PC))

    # ---- conv1: taps read straight from the padded-input ref ----
    im2col(lambda dy, dx: xpad_ref[dy:dy + H, dx:dx + W, :])
    acc1 = jnp.dot(slab_scr[...], w1_ref[...],
                   preferred_element_type=jnp.float32)            # (HW, PC) f32
    out1 = jnp.maximum(_gn_scale_shift(acc1, g1_ref[...], b1_ref[...], cg), 0.0)

    # ---- zero-padded intermediate for conv2: border-only zeroing ----
    zrow = jnp.zeros((1, W + 2, PC), jnp.bfloat16)
    zcol = jnp.zeros((H, 1, PC), jnp.bfloat16)
    pad_scr[0:1, LPAD - 1:LPAD + W + 1, :] = zrow
    pad_scr[H + 1:H + 2, LPAD - 1:LPAD + W + 1, :] = zrow
    pad_scr[1:H + 1, LPAD - 1:LPAD, :] = zcol
    pad_scr[1:H + 1, LPAD + W:LPAD + W + 1, :] = zcol
    # interior store starts at sublane LPAD=8 -> fully aligned, unmasked
    pad_scr[1:H + 1, LPAD:LPAD + W, :] = out1.astype(jnp.bfloat16).reshape(H, W, PC)

    # ---- conv2 ----
    im2col(lambda dy, dx: pad_scr[dy:dy + H, LPAD - 1 + dx:LPAD - 1 + dx + W, :])
    acc2 = jnp.dot(slab_scr[...], w2_ref[...],
                   preferred_element_type=jnp.float32)
    out2 = _gn_scale_shift(acc2, g2_ref[...], b2_ref[...], cg)

    # residual identity read from the ref only here; add + ReLU fused
    identity = xpad_ref[1:H + 1, 1:W + 1, :].reshape(HW, PC).astype(jnp.float32)
    o_ref[...] = jnp.maximum(out2 + identity, 0.0).astype(o_ref.dtype)


def basic_block(x_nhwc, w1, g1, b1, w2, g2, b2):
    """x_nhwc: (N,H,W,C) f32; w*: (3,3,C,C) HWIO; g*/b*: (C,). Returns NHWC."""
    N, H, W, C = x_nhwc.shape
    if C % GROUPS != 0:
        raise ValueError("planes must be a multiple of 32 for GroupNorm(32, planes)")
    cg = C // GROUPS

    P = max(1, 128 // C)                 # samples packed into the lane dim
    NB = -(-N // P)                      # packed blocks (grid size)
    Np = NB * P
    if Np != N:                          # pad batch to a multiple of P
        x_nhwc = jnp.pad(x_nhwc, ((0, Np - N), (0, 0), (0, 0), (0, 0)))
    PC = P * C

    # pack batch into channels (packed channel = p*C + c), then spatial pad
    xp = (x_nhwc.reshape(NB, P, H, W, C)
          .transpose(0, 2, 3, 1, 4).reshape(NB, H, W, PC))
    xpad = jnp.pad(xp, ((0, 0), (1, 1), (1, 1), (0, 0)))

    eye = jnp.eye(P, dtype=jnp.float32)

    def pack_w(w):   # (3,3,C,C) HWIO -> block-diagonal im2col weight (9*PC, PC)
        wp = jnp.einsum("pq,yxio->yxpiqo", eye, w.astype(jnp.float32))
        return wp.reshape(9 * PC, PC).astype(jnp.bfloat16)

    def pack_v(v):   # (C,) -> (1, PC), tiled over packed samples
        return jnp.tile(v.astype(jnp.float32), P).reshape(1, PC)

    grid_spec = pltpu.PrefetchScalarGridSpec(
        num_scalar_prefetch=0,
        grid=(NB,),
        in_specs=[
            pl.BlockSpec((None, H + 2, W + 2, PC), lambda b: (b, 0, 0, 0)),
            pl.BlockSpec((9 * PC, PC), lambda b: (0, 0)),
            pl.BlockSpec((1, PC), lambda b: (0, 0)),
            pl.BlockSpec((1, PC), lambda b: (0, 0)),
            pl.BlockSpec((9 * PC, PC), lambda b: (0, 0)),
            pl.BlockSpec((1, PC), lambda b: (0, 0)),
            pl.BlockSpec((1, PC), lambda b: (0, 0)),
        ],
        out_specs=pl.BlockSpec((None, H * W, PC), lambda b: (b, 0, 0)),
        scratch_shapes=[
            pltpu.VMEM((H * W, 9 * PC), jnp.bfloat16),              # im2col slab
            pltpu.VMEM((H + 2, LPAD + W + 1, PC), jnp.bfloat16),    # conv2 pad scratch
        ],
    )
    out = pl.pallas_call(
        functools.partial(basic_block_kernel, cg=cg),
        out_shape=jax.ShapeDtypeStruct((NB, H * W, PC), x_nhwc.dtype),
        grid_spec=grid_spec,
        compiler_params=pltpu.CompilerParams(dimension_semantics=("parallel",)),
    )(xpad, pack_w(w1), pack_v(g1), pack_v(b1), pack_w(w2), pack_v(g2), pack_v(b2))

    out = (out.reshape(NB, H, W, P, C)
           .transpose(0, 3, 1, 2, 4).reshape(Np, H, W, C))[:N]
    return out


def ref_basic_block(x_nhwc, w1, g1, b1, w2, g2, b2):
    """Pure-JAX f32 reference matching the PyTorch forward semantics."""
    dn = lax.conv_dimension_numbers(x_nhwc.shape, w1.shape, ("NHWC", "HWIO", "NHWC"))

    def conv(x, w):
        return lax.conv_general_dilated(x, w, (1, 1), ((1, 1), (1, 1)),
                                        dimension_numbers=dn)

    def gn(y, gamma, beta):
        n, h, w, c = y.shape
        cg = c // GROUPS
        yr = y.reshape(n, h, w, GROUPS, cg)
        mean = yr.mean(axis=(1, 2, 4), keepdims=True)
        var = ((yr - mean) ** 2).mean(axis=(1, 2, 4), keepdims=True)
        yn = ((yr - mean) / jnp.sqrt(var + EPS)).reshape(n, h, w, c)
        return yn * gamma + beta

    out = jax.nn.relu(gn(conv(x_nhwc, w1), g1, b1))
    out = gn(conv(out, w2), g2, b2)
    return jax.nn.relu(out + x_nhwc)


if __name__ == "__main__":
    # inplanes = planes = 32 (GroupNorm(32, planes) requires multiples of 32);
    # N = 8 -> 2 packed grid steps (also exercises megacore batch sharding).
    N, C, H, W = 8, 32, 16, 16
    key = jax.random.PRNGKey(0)
    ks = jax.random.split(key, 7)

    x_nchw = jax.random.normal(ks[0], (N, C, H, W), jnp.float32)   # PyTorch layout
    fan_in = 3 * 3 * C
    w1 = jax.random.normal(ks[1], (3, 3, C, C), jnp.float32) / jnp.sqrt(fan_in)
    w2 = jax.random.normal(ks[2], (3, 3, C, C), jnp.float32) / jnp.sqrt(fan_in)
    g1 = 1.0 + 0.1 * jax.random.normal(ks[3], (C,), jnp.float32)
    b1 = 0.1 * jax.random.normal(ks[4], (C,), jnp.float32)
    g2 = 1.0 + 0.1 * jax.random.normal(ks[5], (C,), jnp.float32)
    b2 = 0.1 * jax.random.normal(ks[6], (C,), jnp.float32)

    x_nhwc = jnp.transpose(x_nchw, (0, 2, 3, 1))                   # NCHW -> NHWC
    out = jax.block_until_ready(basic_block(x_nhwc, w1, g1, b1, w2, g2, b2))

    ref = ref_basic_block(x_nhwc, w1, g1, b1, w2, g2, b2)
    err = float(jnp.max(jnp.abs(out - ref)))
    # bf16 MXU conv operands (with f32 accumulation and f32 GN stats) vs. a
    # pure-f32 reference -> relaxed absolute tolerance.
    assert err < 8e-2, f"max abs err {err}"

    out_nchw = jnp.transpose(out, (0, 3, 1, 2))                    # back to NCHW
    assert out_nchw.shape == (N, C, H, W)
    print("KERNEL_OK")
</pallas_src>

<mosaic_0001>
module attributes {stable_mosaic.version = 11 : i64} {
  func.func @basic_block_kernel(%arg0: i32, %arg1: memref<1x18x18x128xf32, #tpu.memory_space<vmem>>, %arg2: memref<1152x128xbf16, #tpu.memory_space<vmem>>, %arg3: memref<1x128xf32, #tpu.memory_space<vmem>>, %arg4: memref<1x128xf32, #tpu.memory_space<vmem>>, %arg5: memref<1152x128xbf16, #tpu.memory_space<vmem>>, %arg6: memref<1x128xf32, #tpu.memory_space<vmem>>, %arg7: memref<1x128xf32, #tpu.memory_space<vmem>>, %arg8: memref<1x256x128xf32, #tpu.memory_space<vmem>>, %arg9: memref<256x1152xbf16, #tpu.memory_space<vmem>>, %arg10: memref<18x25x128xbf16, #tpu.memory_space<vmem>>) attributes {dimension_semantics = [#tpu.dimension_semantics<parallel>], iteration_bounds = array<i64: 2>, scalar_prefetch = 0 : i64, scratch_operands = 2 : i64, tpu.core_type = #tpu.core_type<tc>, window_params = [{transform_indices = @transform_0, window_bounds = array<i64: 1, 18, 18, 128>}, {pipeline_mode = #tpu.pipeline_mode<synchronous>, transform_indices = @transform_1, window_bounds = array<i64: 1152, 128>}, {pipeline_mode = #tpu.pipeline_mode<synchronous>, transform_indices = @transform_2, window_bounds = array<i64: 1, 128>}, {pipeline_mode = #tpu.pipeline_mode<synchronous>, transform_indices = @transform_3, window_bounds = array<i64: 1, 128>}, {pipeline_mode = #tpu.pipeline_mode<synchronous>, transform_indices = @transform_4, window_bounds = array<i64: 1152, 128>}, {pipeline_mode = #tpu.pipeline_mode<synchronous>, transform_indices = @transform_5, window_bounds = array<i64: 1, 128>}, {pipeline_mode = #tpu.pipeline_mode<synchronous>, transform_indices = @transform_6, window_bounds = array<i64: 1, 128>}, {transform_indices = @transform_7, window_bounds = array<i64: 1, 256, 128>}]} {
    %c0 = arith.constant 0 : index
    %c0_0 = arith.constant 0 : index
    %c0_1 = arith.constant 0 : index
    %c0_2 = arith.constant 0 : index
    %0 = vector.load %arg1[%c0, %c0_0, %c0_1, %c0_2] : memref<1x18x18x128xf32, #tpu.memory_space<vmem>>, vector<1x16x16x128xf32>
    %1 = vector.shape_cast %0 : vector<1x16x16x128xf32> to vector<16x16x128xf32>
    %2 = arith.truncf %1 : vector<16x16x128xf32> to vector<16x16x128xbf16>
    %3 = vector.shape_cast %2 : vector<16x16x128xbf16> to vector<256x128xbf16>
    %c0_3 = arith.constant 0 : index
    %c0_4 = arith.constant 0 : index
    %4 = vector.load %arg9[%c0_3, %c0_4] : memref<256x1152xbf16, #tpu.memory_space<vmem>>, vector<256x128xbf16>
    tpu.vector_store %arg9[%c0_3, %c0_4], %3 {strides = array<i32>} : memref<256x1152xbf16, #tpu.memory_space<vmem>>, vector<256x128xbf16>,
    %c0_5 = arith.constant 0 : index
    %c0_6 = arith.constant 0 : index
    %c1 = arith.constant 1 : index
    %c0_7 = arith.constant 0 : index
    %5 = vector.load %arg1[%c0_5, %c0_6, %c1, %c0_7] : memref<1x18x18x128xf32, #tpu.memory_space<vmem>>, vector<1x16x16x128xf32>
    %6 = vector.shape_cast %5 : vector<1x16x16x128xf32> to vector<16x16x128xf32>
    %7 = arith.truncf %6 : vector<16x16x128xf32> to vector<16x16x128xbf16>
    %8 = vector.shape_cast %7 : vector<16x16x128xbf16> to vector<256x128xbf16>
    %c0_8 = arith.constant 0 : index
    %c128 = arith.constant 128 : index
    %9 = vector.load %arg9[%c0_8, %c128] : memref<256x1152xbf16, #tpu.memory_space<vmem>>, vector<256x128xbf16>
    tpu.vector_store %arg9[%c0_8, %c128], %8 {strides = array<i32>} : memref<256x1152xbf16, #tpu.memory_space<vmem>>, vector<256x128xbf16>,
    %c0_9 = arith.constant 0 : index
    %c0_10 = arith.constant 0 : index
    %c2 = arith.constant 2 : index
    %c0_11 = arith.constant 0 : index
    %10 = vector.load %arg1[%c0_9, %c0_10, %c2, %c0_11] : memref<1x18x18x128xf32, #tpu.memory_space<vmem>>, vector<1x16x16x128xf32>
    %11 = vector.shape_cast %10 : vector<1x16x16x128xf32> to vector<16x16x128xf32>
    %12 = arith.truncf %11 : vector<16x16x128xf32> to vector<16x16x128xbf16>
    %13 = vector.shape_cast %12 : vector<16x16x128xbf16> to vector<256x128xbf16>
    %c0_12 = arith.constant 0 : index
    %c256 = arith.constant 256 : index
    %14 = vector.load %arg9[%c0_12, %c256] : memref<256x1152xbf16, #tpu.memory_space<vmem>>, vector<256x128xbf16>
    tpu.vector_store %arg9[%c0_12, %c256], %13 {strides = array<i32>} : memref<256x1152xbf16, #tpu.memory_space<vmem>>, vector<256x128xbf16>,
    %c0_13 = arith.constant 0 : index
    %c1_14 = arith.constant 1 : index
    %c0_15 = arith.constant 0 : index
    %c0_16 = arith.constant 0 : index
    %15 = vector.load %arg1[%c0_13, %c1_14, %c0_15, %c0_16] : memref<1x18x18x128xf32, #tpu.memory_space<vmem>>, vector<1x16x16x128xf32>
    %16 = vector.shape_cast %15 : vector<1x16x16x128xf32> to vector<16x16x128xf32>
    %17 = arith.truncf %16 : vector<16x16x128xf32> to vector<16x16x128xbf16>
    %18 = vector.shape_cast %17 : vector<16x16x128xbf16> to vector<256x128xbf16>
    %c0_17 = arith.constant 0 : index
    %c384 = arith.constant 384 : index
    %19 = vector.load %arg9[%c0_17, %c384] : memref<256x1152xbf16, #tpu.memory_space<vmem>>, vector<256x128xbf16>
    tpu.vector_store %arg9[%c0_17, %c384], %18 {strides = array<i32>} : memref<256x1152xbf16, #tpu.memory_space<vmem>>, vector<256x128xbf16>,
    %c0_18 = arith.constant 0 : index
    %c1_19 = arith.constant 1 : index
    %c1_20 = arith.constant 1 : index
    %c0_21 = arith.constant 0 : index
    %20 = vector.load %arg1[%c0_18, %c1_19, %c1_20, %c0_21] : memref<1x18x18x128xf32, #tpu.memory_space<vmem>>, vector<1x16x16x128xf32>
    %21 = vector.shape_cast %20 : vector<1x16x16x128xf32> to vector<16x16x128xf32>
    %22 = arith.truncf %21 : vector<16x16x128xf32> to vector<16x16x128xbf16>
    %23 = vector.shape_cast %22 : vector<16x16x128xbf16> to vector<256x128xbf16>
    %c0_22 = arith.constant 0 : index
    %c512 = arith.constant 512 : index
    %24 = vector.load %arg9[%c0_22, %c512] : memref<256x1152xbf16, #tpu.memory_space<vmem>>, vector<256x128xbf16>
    tpu.vector_store %arg9[%c0_22, %c512], %23 {strides = array<i32>} : memref<256x1152xbf16, #tpu.memory_space<vmem>>, vector<256x128xbf16>,
    %c0_23 = arith.constant 0 : index
    %c1_24 = arith.constant 1 : index
    %c2_25 = arith.constant 2 : index
    %c0_26 = arith.constant 0 : index
    %25 = vector.load %arg1[%c0_23, %c1_24, %c2_25, %c0_26] : memref<1x18x18x128xf32, #tpu.memory_space<vmem>>, vector<1x16x16x128xf32>
    %26 = vector.shape_cast %25 : vector<1x16x16x128xf32> to vector<16x16x128xf32>
    %27 = arith.truncf %26 : vector<16x16x128xf32> to vector<16x16x128xbf16>
    %28 = vector.shape_cast %27 : vector<16x16x128xbf16> to vector<256x128xbf16>
    %c0_27 = arith.constant 0 : index
    %c640 = arith.constant 640 : index
    %29 = vector.load %arg9[%c0_27, %c640] : memref<256x1152xbf16, #tpu.memory_space<vmem>>, vector<256x128xbf16>
    tpu.vector_store %arg9[%c0_27, %c640], %28 {strides = array<i32>} : memref<256x1152xbf16, #tpu.memory_space<vmem>>, vector<256x128xbf16>,
    %c0_28 = arith.constant 0 : index
    %c2_29 = arith.constant 2 : index
    %c0_30 = arith.constant 0 : index
    %c0_31 = arith.constant 0 : index
    %30 = vector.load %arg1[%c0_28, %c2_29, %c0_30, %c0_31] : memref<1x18x18x128xf32, #tpu.memory_space<vmem>>, vector<1x16x16x128xf32>
    %31 = vector.shape_cast %30 : vector<1x16x16x128xf32> to vector<16x16x128xf32>
    %32 = arith.truncf %31 : vector<16x16x128xf32> to vector<16x16x128xbf16>
    %33 = vector.shape_cast %32 : vector<16x16x128xbf16> to vector<256x128xbf16>
    %c0_32 = arith.constant 0 : index
    %c768 = arith.constant 768 : index
    %34 = vector.load %arg9[%c0_32, %c768] : memref<256x1152xbf16, #tpu.memory_space<vmem>>, vector<256x128xbf16>
    tpu.vector_store %arg9[%c0_32, %c768], %33 {strides = array<i32>} : memref<256x1152xbf16, #tpu.memory_space<vmem>>, vector<256x128xbf16>,
    %c0_33 = arith.constant 0 : index
    %c2_34 = arith.constant 2 : index
    %c1_35 = arith.constant 1 : index
    %c0_36 = arith.constant 0 : index
    %35 = vector.load %arg1[%c0_33, %c2_34, %c1_35, %c0_36] : memref<1x18x18x128xf32, #tpu.memory_space<vmem>>, vector<1x16x16x128xf32>
    %36 = vector.shape_cast %35 : vector<1x16x16x128xf32> to vector<16x16x128xf32>
    %37 = arith.truncf %36 : vector<16x16x128xf32> to vector<16x16x128xbf16>
    %38 = vector.shape_cast %37 : vector<16x16x128xbf16> to vector<256x128xbf16>
    %c0_37 = arith.constant 0 : index
    %c896 = arith.constant 896 : index
    %39 = vector.load %arg9[%c0_37, %c896] : memref<256x1152xbf16, #tpu.memory_space<vmem>>, vector<256x128xbf16>
    tpu.vector_store %arg9[%c0_37, %c896], %38 {strides = array<i32>} : memref<256x1152xbf16, #tpu.memory_space<vmem>>, vector<256x128xbf16>,
    %c0_38 = arith.constant 0 : index
    %c2_39 = arith.constant 2 : index
    %c2_40 = arith.constant 2 : index
    %c0_41 = arith.constant 0 : index
    %40 = vector.load %arg1[%c0_38, %c2_39, %c2_40, %c0_41] : memref<1x18x18x128xf32, #tpu.memory_space<vmem>>, vector<1x16x16x128xf32>
    %41 = vector.shape_cast %40 : vector<1x16x16x128xf32> to vector<16x16x128xf32>
    %42 = arith.truncf %41 : vector<16x16x128xf32> to vector<16x16x128xbf16>
    %43 = vector.shape_cast %42 : vector<16x16x128xbf16> to vector<256x128xbf16>
    %c0_42 = arith.constant 0 : index
    %c1024 = arith.constant 1024 : index
    %44 = vector.load %arg9[%c0_42, %c1024] : memref<256x1152xbf16, #tpu.memory_space<vmem>>, vector<256x128xbf16>
    tpu.vector_store %arg9[%c0_42, %c1024], %43 {strides = array<i32>} : memref<256x1152xbf16, #tpu.memory_space<vmem>>, vector<256x128xbf16>,
    %c0_43 = arith.constant 0 : index
    %c0_44 = arith.constant 0 : index
    %45 = vector.load %arg9[%c0_43, %c0_44] : memref<256x1152xbf16, #tpu.memory_space<vmem>>, vector<256x1152xbf16>
    %c0_45 = arith.constant 0 : index
    %c0_46 = arith.constant 0 : index
    %46 = vector.load %arg2[%c0_45, %c0_46] : memref<1152x128xbf16, #tpu.memory_space<vmem>>, vector<1152x128xbf16>
    %cst = arith.constant dense<0.000000e+00> : vector<256x128xf32>
    %47 = tpu.matmul %45, %46, %cst {dimension_numbers = #tpu.dot_dimension_numbers<[1], [0], [0], [1], [0, 0, 1, 1], [], []>} : vector<256x1152xbf16>, vector<1152x128xbf16>, vector<256x128xf32> -> vector<256x128xf32>
    %c0_47 = arith.constant 0 : index
    %c0_48 = arith.constant 0 : index
    %48 = vector.load %arg3[%c0_47, %c0_48] : memref<1x128xf32, #tpu.memory_space<vmem>>, vector<1x128xf32>
    %c0_49 = arith.constant 0 : index
    %c0_50 = arith.constant 0 : index
    %49 = vector.load %arg4[%c0_49, %c0_50] : memref<1x128xf32, #tpu.memory_space<vmem>>, vector<1x128xf32>
    %cst_51 = arith.constant dense<0.000000e+00> : vector<128xf32>
    %50 = vector.multi_reduction <add>, %47, %cst_51 [0] : vector<256x128xf32> to vector<128xf32>
    %51 = vector.shape_cast %50 : vector<128xf32> to vector<1x128xf32>
    %52 = arith.mulf %47, %47 : vector<256x128xf32>
    %cst_52 = arith.constant dense<0.000000e+00> : vector<128xf32>
    %53 = vector.multi_reduction <add>, %52, %cst_52 [0] : vector<256x128xf32> to vector<128xf32>
    %54 = vector.shape_cast %53 : vector<128xf32> to vector<1x128xf32>
    %cst_53 = arith.constant 3.906250e-03 : f32
    %55 = vector.broadcast %cst_53 : f32 to vector<1x128xf32>
    %56 = arith.mulf %51, %55 : vector<1x128xf32>
    %cst_54 = arith.constant 3.906250e-03 : f32
    %57 = vector.broadcast %cst_54 : f32 to vector<1x128xf32>
    %58 = arith.mulf %54, %57 : vector<1x128xf32>
    %59 = arith.mulf %56, %56 : vector<1x128xf32>
    %60 = arith.subf %58, %59 : vector<1x128xf32>
    %cst_55 = arith.constant 9.99999974E-6 : f32
    %61 = vector.broadcast %cst_55 : f32 to vector<1x128xf32>
    %62 = arith.addf %60, %61 : vector<1x128xf32>
    %63 = math.rsqrt %62 : vector<1x128xf32>
    %64 = arith.mulf %63, %48 : vector<1x128xf32>
    %65 = vector.broadcast %56 : vector<1x128xf32> to vector<256x128xf32>
    %66 = arith.subf %47, %65 : vector<256x128xf32>
    %67 = vector.broadcast %64 : vector<1x128xf32> to vector<256x128xf32>
    %68 = arith.mulf %66, %67 : vector<256x128xf32>
    %69 = vector.broadcast %49 : vector<1x128xf32> to vector<256x128xf32>
    %70 = arith.addf %68, %69 : vector<256x128xf32>
    %cst_56 = arith.constant 0.000000e+00 : f32
    %71 = vector.broadcast %cst_56 : f32 to vector<256x128xf32>
    %72 = arith.maximumf %70, %71 : vector<256x128xf32>
    %cst_57 = arith.constant 0.000000e+00 : bf16
    %73 = vector.broadcast %cst_57 : bf16 to vector<1x18x128xbf16>
    %cst_58 = arith.constant 0.000000e+00 : bf16
    %74 = vector.broadcast %cst_58 : bf16 to vector<16x1x128xbf16>
    %c0_59 = arith.constant 0 : index
    %c7 = arith.constant 7 : index
    %c0_60 = arith.constant 0 : index
    %75 = vector.load %arg10[%c0_59, %c7, %c0_60] : memref<18x25x128xbf16, #tpu.memory_space<vmem>>, vector<1x18x128xbf16>
    tpu.vector_store %arg10[%c0_59, %c7, %c0_60], %73 {strides = array<i32>} : memref<18x25x128xbf16, #tpu.memory_space<vmem>>, vector<1x18x128xbf16>,
    %c17 = arith.constant 17 : index
    %c7_61 = arith.constant 7 : index
    %c0_62 = arith.constant 0 : index
    %76 = vector.load %arg10[%c17, %c7_61, %c0_62] : memref<18x25x128xbf16, #tpu.memory_space<vmem>>, vector<1x18x128xbf16>
    tpu.vector_store %arg10[%c17, %c7_61, %c0_62], %73 {strides = array<i32>} : memref<18x25x128xbf16, #tpu.memory_space<vmem>>, vector<1x18x128xbf16>,
    %c1_63 = arith.constant 1 : index
    %c7_64 = arith.constant 7 : index
    %c0_65 = arith.constant 0 : index
    %77 = vector.load %arg10[%c1_63, %c7_64, %c0_65] : memref<18x25x128xbf16, #tpu.memory_space<vmem>>, vector<16x1x128xbf16>
    tpu.vector_store %arg10[%c1_63, %c7_64, %c0_65], %74 {strides = array<i32>} : memref<18x25x128xbf16, #tpu.memory_space<vmem>>, vector<16x1x128xbf16>,
    %c1_66 = arith.constant 1 : index
    %c24 = arith.constant 24 : index
    %c0_67 = arith.constant 0 : index
    %78 = vector.load %arg10[%c1_66, %c24, %c0_67] : memref<18x25x128xbf16, #tpu.memory_space<vmem>>, vector<16x1x128xbf16>
    tpu.vector_store %arg10[%c1_66, %c24, %c0_67], %74 {strides = array<i32>} : memref<18x25x128xbf16, #tpu.memory_space<vmem>>, vector<16x1x128xbf16>,
    %79 = arith.truncf %72 : vector<256x128xf32> to vector<256x128xbf16>
    %80 = vector.shape_cast %79 : vector<256x128xbf16> to vector<16x16x128xbf16>
    %c1_68 = arith.constant 1 : index
    %c8 = arith.constant 8 : index
    %c0_69 = arith.constant 0 : index
    %81 = vector.load %arg10[%c1_68, %c8, %c0_69] : memref<18x25x128xbf16, #tpu.memory_space<vmem>>, vector<16x16x128xbf16>
    tpu.vector_store %arg10[%c1_68, %c8, %c0_69], %80 {strides = array<i32>} : memref<18x25x128xbf16, #tpu.memory_space<vmem>>, vector<16x16x128xbf16>,
    %c0_70 = arith.constant 0 : index
    %c7_71 = arith.constant 7 : index
    %c0_72 = arith.constant 0 : index
    %82 = vector.load %arg10[%c0_70, %c7_71, %c0_72] : memref<18x25x128xbf16, #tpu.memory_space<vmem>>, vector<16x16x128xbf16>
    %83 = vector.shape_cast %82 : vector<16x16x128xbf16> to vector<256x128xbf16>
    %c0_73 = arith.constant 0 : index
    %c0_74 = arith.constant 0 : index
    %84 = vector.load %arg9[%c0_73, %c0_74] : memref<256x1152xbf16, #tpu.memory_space<vmem>>, vector<256x128xbf16>
    tpu.vector_store %arg9[%c0_73, %c0_74], %83 {strides = array<i32>} : memref<256x1152xbf16, #tpu.memory_space<vmem>>, vector<256x128xbf16>,
    %c0_75 = arith.constant 0 : index
    %c8_76 = arith.constant 8 : index
    %c0_77 = arith.constant 0 : index
    %85 = vector.load %arg10[%c0_75, %c8_76, %c0_77] : memref<18x25x128xbf16, #tpu.memory_space<vmem>>, vector<16x16x128xbf16>
    %86 = vector.shape_cast %85 : vector<16x16x128xbf16> to vector<256x128xbf16>
    %c0_78 = arith.constant 0 : index
    %c128_79 = arith.constant 128 : index
    %87 = vector.load %arg9[%c0_78, %c128_79] : memref<256x1152xbf16, #tpu.memory_space<vmem>>, vector<256x128xbf16>
    tpu.vector_store %arg9[%c0_78, %c128_79], %86 {strides = array<i32>} : memref<256x1152xbf16, #tpu.memory_space<vmem>>, vector<256x128xbf16>,
    %c0_80 = arith.constant 0 : index
    %c9 = arith.constant 9 : index
    %c0_81 = arith.constant 0 : index
    %88 = vector.load %arg10[%c0_80, %c9, %c0_81] : memref<18x25x128xbf16, #tpu.memory_space<vmem>>, vector<16x16x128xbf16>
    %89 = vector.shape_cast %88 : vector<16x16x128xbf16> to vector<256x128xbf16>
    %c0_82 = arith.constant 0 : index
    %c256_83 = arith.constant 256 : index
    %90 = vector.load %arg9[%c0_82, %c256_83] : memref<256x1152xbf16, #tpu.memory_space<vmem>>, vector<256x128xbf16>
    tpu.vector_store %arg9[%c0_82, %c256_83], %89 {strides = array<i32>} : memref<256x1152xbf16, #tpu.memory_space<vmem>>, vector<256x128xbf16>,
    %c1_84 = arith.constant 1 : index
    %c7_85 = arith.constant 7 : index
    %c0_86 = arith.constant 0 : index
    %91 = vector.load %arg10[%c1_84, %c7_85, %c0_86] : memref<18x25x128xbf16, #tpu.memory_space<vmem>>, vector<16x16x128xbf16>
    %92 = vector.shape_cast %91 : vector<16x16x128xbf16> to vector<256x128xbf16>
    %c0_87 = arith.constant 0 : index
    %c384_88 = arith.constant 384 : index
    %93 = vector.load %arg9[%c0_87, %c384_88] : memref<256x1152xbf16, #tpu.memory_space<vmem>>, vector<256x128xbf16>
    tpu.vector_store %arg9[%c0_87, %c384_88], %92 {strides = array<i32>} : memref<256x1152xbf16, #tpu.memory_space<vmem>>, vector<256x128xbf16>,
    %c1_89 = arith.constant 1 : index
    %c8_90 = arith.constant 8 : index
    %c0_91 = arith.constant 0 : index
    %94 = vector.load %arg10[%c1_89, %c8_90, %c0_91] : memref<18x25x128xbf16, #tpu.memory_space<vmem>>, vector<16x16x128xbf16>
    %95 = vector.shape_cast %94 : vector<16x16x128xbf16> to vector<256x128xbf16>
    %c0_92 = arith.constant 0 : index
    %c512_93 = arith.constant 512 : index
    %96 = vector.load %arg9[%c0_92, %c512_93] : memref<256x1152xbf16, #tpu.memory_space<vmem>>, vector<256x128xbf16>
    tpu.vector_store %arg9[%c0_92, %c512_93], %95 {strides = array<i32>} : memref<256x1152xbf16, #tpu.memory_space<vmem>>, vector<256x128xbf16>,
    %c1_94 = arith.constant 1 : index
    %c9_95 = arith.constant 9 : index
    %c0_96 = arith.constant 0 : index
    %97 = vector.load %arg10[%c1_94, %c9_95, %c0_96] : memref<18x25x128xbf16, #tpu.memory_space<vmem>>, vector<16x16x128xbf16>
    %98 = vector.shape_cast %97 : vector<16x16x128xbf16> to vector<256x128xbf16>
    %c0_97 = arith.constant 0 : index
    %c640_98 = arith.constant 640 : index
    %99 = vector.load %arg9[%c0_97, %c640_98] : memref<256x1152xbf16, #tpu.memory_space<vmem>>, vector<256x128xbf16>
    tpu.vector_store %arg9[%c0_97, %c640_98], %98 {strides = array<i32>} : memref<256x1152xbf16, #tpu.memory_space<vmem>>, vector<256x128xbf16>,
    %c2_99 = arith.constant 2 : index
    %c7_100 = arith.constant 7 : index
    %c0_101 = arith.constant 0 : index
    %100 = vector.load %arg10[%c2_99, %c7_100, %c0_101] : memref<18x25x128xbf16, #tpu.memory_space<vmem>>, vector<16x16x128xbf16>
    %101 = vector.shape_cast %100 : vector<16x16x128xbf16> to vector<256x128xbf16>
    %c0_102 = arith.constant 0 : index
    %c768_103 = arith.constant 768 : index
    %102 = vector.load %arg9[%c0_102, %c768_103] : memref<256x1152xbf16, #tpu.memory_space<vmem>>, vector<256x128xbf16>
    tpu.vector_store %arg9[%c0_102, %c768_103], %101 {strides = array<i32>} : memref<256x1152xbf16, #tpu.memory_space<vmem>>, vector<256x128xbf16>,
    %c2_104 = arith.constant 2 : index
    %c8_105 = arith.constant 8 : index
    %c0_106 = arith.constant 0 : index
    %103 = vector.load %arg10[%c2_104, %c8_105, %c0_106] : memref<18x25x128xbf16, #tpu.memory_space<vmem>>, vector<16x16x128xbf16>
    %104 = vector.shape_cast %103 : vector<16x16x128xbf16> to vector<256x128xbf16>
    %c0_107 = arith.constant 0 : index
    %c896_108 = arith.constant 896 : index
    %105 = vector.load %arg9[%c0_107, %c896_108] : memref<256x1152xbf16, #tpu.memory_space<vmem>>, vector<256x128xbf16>
    tpu.vector_store %arg9[%c0_107, %c896_108], %104 {strides = array<i32>} : memref<256x1152xbf16, #tpu.memory_space<vmem>>, vector<256x128xbf16>,
    %c2_109 = arith.constant 2 : index
    %c9_110 = arith.constant 9 : index
    %c0_111 = arith.constant 0 : index
    %106 = vector.load %arg10[%c2_109, %c9_110, %c0_111] : memref<18x25x128xbf16, #tpu.memory_space<vmem>>, vector<16x16x128xbf16>
    %107 = vector.shape_cast %106 : vector<16x16x128xbf16> to vector<256x128xbf16>
    %c0_112 = arith.constant 0 : index
    %c1024_113 = arith.constant 1024 : index
    %108 = vector.load %arg9[%c0_112, %c1024_113] : memref<256x1152xbf16, #tpu.memory_space<vmem>>, vector<256x128xbf16>
    tpu.vector_store %arg9[%c0_112, %c1024_113], %107 {strides = array<i32>} : memref<256x1152xbf16, #tpu.memory_space<vmem>>, vector<256x128xbf16>,
    %c0_114 = arith.constant 0 : index
    %c0_115 = arith.constant 0 : index
    %109 = vector.load %arg9[%c0_114, %c0_115] : memref<256x1152xbf16, #tpu.memory_space<vmem>>, vector<256x1152xbf16>
    %c0_116 = arith.constant 0 : index
    %c0_117 = arith.constant 0 : index
    %110 = vector.load %arg5[%c0_116, %c0_117] : memref<1152x128xbf16, #tpu.memory_space<vmem>>, vector<1152x128xbf16>
    %cst_118 = arith.constant dense<0.000000e+00> : vector<256x128xf32>
    %111 = tpu.matmul %109, %110, %cst_118 {dimension_numbers = #tpu.dot_dimension_numbers<[1], [0], [0], [1], [0, 0, 1, 1], [], []>} : vector<256x1152xbf16>, vector<1152x128xbf16>, vector<256x128xf32> -> vector<256x128xf32>
    %c0_119 = arith.constant 0 : index
    %c0_120 = arith.constant 0 : index
    %112 = vector.load %arg6[%c0_119, %c0_120] : memref<1x128xf32, #tpu.memory_space<vmem>>, vector<1x128xf32>
    %c0_121 = arith.constant 0 : index
    %c0_122 = arith.constant 0 : index
    %113 = vector.load %arg7[%c0_121, %c0_122] : memref<1x128xf32, #tpu.memory_space<vmem>>, vector<1x128xf32>
    %cst_123 = arith.constant dense<0.000000e+00> : vector<128xf32>
    %114 = vector.multi_reduction <add>, %111, %cst_123 [0] : vector<256x128xf32> to vector<128xf32>
    %115 = vector.shape_cast %114 : vector<128xf32> to vector<1x128xf32>
    %116 = arith.mulf %111, %111 : vector<256x128xf32>
    %cst_124 = arith.constant dense<0.000000e+00> : vector<128xf32>
    %117 = vector.multi_reduction <add>, %116, %cst_124 [0] : vector<256x128xf32> to vector<128xf32>
    %118 = vector.shape_cast %117 : vector<128xf32> to vector<1x128xf32>
    %cst_125 = arith.constant 3.906250e-03 : f32
    %119 = vector.broadcast %cst_125 : f32 to vector<1x128xf32>
    %120 = arith.mulf %115, %119 : vector<1x128xf32>
    %cst_126 = arith.constant 3.906250e-03 : f32
    %121 = vector.broadcast %cst_126 : f32 to vector<1x128xf32>
    %122 = arith.mulf %118, %121 : vector<1x128xf32>
    %123 = arith.mulf %120, %120 : vector<1x128xf32>
    %124 = arith.subf %122, %123 : vector<1x128xf32>
    %cst_127 = arith.constant 9.99999974E-6 : f32
    %125 = vector.broadcast %cst_127 : f32 to vector<1x128xf32>
    %126 = arith.addf %124, %125 : vector<1x128xf32>
    %127 = math.rsqrt %126 : vector<1x128xf32>
    %128 = arith.mulf %127, %112 : vector<1x128xf32>
    %129 = vector.broadcast %120 : vector<1x128xf32> to vector<256x128xf32>
    %130 = arith.subf %111, %129 : vector<256x128xf32>
    %131 = vector.broadcast %128 : vector<1x128xf32> to vector<256x128xf32>
    %132 = arith.mulf %130, %131 : vector<256x128xf32>
    %133 = vector.broadcast %113 : vector<1x128xf32> to vector<256x128xf32>
    %134 = arith.addf %132, %133 : vector<256x128xf32>
    %c0_128 = arith.constant 0 : index
    %c1_129 = arith.constant 1 : index
    %c1_130 = arith.constant 1 : index
    %c0_131 = arith.constant 0 : index
    %135 = vector.load %arg1[%c0_128, %c1_129, %c1_130, %c0_131] : memref<1x18x18x128xf32, #tpu.memory_space<vmem>>, vector<1x16x16x128xf32>
    %136 = vector.shape_cast %135 : vector<1x16x16x128xf32> to vector<16x16x128xf32>
    %137 = vector.shape_cast %136 : vector<16x16x128xf32> to vector<256x128xf32>
    %138 = arith.addf %134, %137 : vector<256x128xf32>
    %cst_132 = arith.constant 0.000000e+00 : f32
    %139 = vector.broadcast %cst_132 : f32 to vector<256x128xf32>
    %140 = arith.maximumf %138, %139 : vector<256x128xf32>
    %c0_133 = arith.constant 0 : index
    %c0_134 = arith.constant 0 : index
    %c0_135 = arith.constant 0 : index
    %141 = vector.load %arg8[%c0_133, %c0_134, %c0_135] : memref<1x256x128xf32, #tpu.memory_space<vmem>>, vector<1x256x128xf32>
    %142 = vector.shape_cast %141 : vector<1x256x128xf32> to vector<256x128xf32>
    %143 = vector.shape_cast %140 : vector<256x128xf32> to vector<1x256x128xf32>
    tpu.vector_store %arg8[%c0_133, %c0_134, %c0_135], %143 {strides = array<i32>} : memref<1x256x128xf32, #tpu.memory_space<vmem>>, vector<1x256x128xf32>,
    return
  }
  func.func @transform_0(%arg0: i32) -> (i32, i32, i32, i32) {
    %c0_i32 = arith.constant 0 : i32
    %c0_i32_0 = arith.constant 0 : i32
    %c0_i32_1 = arith.constant 0 : i32
    %c0_i32_2 = arith.constant 0 : i32
    return %arg0, %c0_i32, %c0_i32_0, %c0_i32_1 : i32, i32, i32, i32
  }
  func.func @transform_1(%arg0: i32) -> (i32, i32) {
    %c0_i32 = arith.constant 0 : i32
    %c0_i32_0 = arith.constant 0 : i32
    %c0_i32_1 = arith.constant 0 : i32
    return %c0_i32, %c0_i32_0 : i32, i32
  }
  func.func @transform_2(%arg0: i32) -> (i32, i32) {
    %c0_i32 = arith.constant 0 : i32
    %c0_i32_0 = arith.constant 0 : i32
    %c0_i32_1 = arith.constant 0 : i32
    return %c0_i32, %c0_i32_0 : i32, i32
  }
  func.func @transform_3(%arg0: i32) -> (i32, i32) {
    %c0_i32 = arith.constant 0 : i32
    %c0_i32_0 = arith.constant 0 : i32
    %c0_i32_1 = arith.constant 0 : i32
    return %c0_i32, %c0_i32_0 : i32, i32
  }
  func.func @transform_4(%arg0: i32) -> (i32, i32) {
    %c0_i32 = arith.constant 0 : i32
    %c0_i32_0 = arith.constant 0 : i32
    %c0_i32_1 = arith.constant 0 : i32
    return %c0_i32, %c0_i32_0 : i32, i32
  }
  func.func @transform_5(%arg0: i32) -> (i32, i32) {
    %c0_i32 = arith.constant 0 : i32
    %c0_i32_0 = arith.constant 0 : i32
    %c0_i32_1 = arith.constant 0 : i32
    return %c0_i32, %c0_i32_0 : i32, i32
  }
  func.func @transform_6(%arg0: i32) -> (i32, i32) {
    %c0_i32 = arith.constant 0 : i32
    %c0_i32_0 = arith.constant 0 : i32
    %c0_i32_1 = arith.constant 0 : i32
    return %c0_i32, %c0_i32_0 : i32, i32
  }
  func.func @transform_7(%arg0: i32) -> (i32, i32, i32) {
    %c0_i32 = arith.constant 0 : i32
    %c0_i32_0 = arith.constant 0 : i32
    %c0_i32_1 = arith.constant 0 : i32
    return %arg0, %c0_i32, %c0_i32_0 : i32, i32, i32
  }
}

</mosaic_0001>

<bundles_post_ra>
// kernel: tpu_custom_call.1
= control target key start
LH: loop header
LB: loop body
LE: loop exit
PB: predicated region body
PF: predicated region fallthrough
CT: control target
= control target key end

     0   :  { %12 = vsyncpa [#allocation5], 0  ;;  %s18189_s0 = inlined_call_operand.vmem [shape: f32[2,18,18,128], index: 0, kind: input, shape index: {}]   ;;  %s18190_s1 = inlined_call_operand.vmem [shape: bf16[1152,128], index: 1, kind: input, shape index: {}]   ;;  %s18191_s2 = inlined_call_operand.vmem [shape: f32[1,128], index: 2, kind: input, shape index: {}]   ;;  %s18192_s3 = inlined_call_operand.vmem [shape: f32[1,128], index: 3, kind: input, shape index: {}]   ;;  %s18193_s4 = inlined_call_operand.vmem [shape: bf16[1152,128], index: 4, kind: input, shape index: {}]   ;;  %s18194_s5 = inlined_call_operand.vmem [shape: f32[1,128], index: 5, kind: input, shape index: {}]   ;;  %s18195_s6 = inlined_call_operand.vmem [shape: f32[1,128], index: 6, kind: input, shape index: {}]   ;;  %s18196_s7 = inlined_call_operand.hbm [shape: f32[2,256,128], index: 7, kind: output, shape index: {}]  }
   0x1   :  { %14 = vsyncpa [#allocation5 + $0x1], 0  ;;  %s13709_s24 = smov 0   ;;  %s13711_s25 = smov 0  }
   0x2   :  { %s13713_s26 = smov 0   ;;  %s13715_s27 = smov 0  }
   0x3 LB: > { %s13730_s28 = sadd.s32 4294967295, %s13663_s27   ;;  %s10598_s29 = sadd.s32 4294967294, %s13663_s27   ;;  %s13663_s27 = sphi %s13715_s27, %s19156_s27   ;;  %s13659_s26 = sphi %s13713_s26, %s19155_s26   ;;  %s13655_s25 = sphi %s13711_s25, %s19154_s25   ;;  %s13651_s24 = sphi %s13709_s24, %s19153_s24  }
   0x4   : > { %s13734_s30 = sadd.s32 1, %s13663_s27   ;;  %s179_s8 = sadd.s32 1, %s13659_s26 }
   0x5   : > { %s176_s9 = ssub.s32 %s13663_s27, %s13734_s30  ;;  %p189_p0 = scmp.ne.s32.totalorder %s13659_s26, %s13655_s25 }
   0x6   : > { %p177_p1 = scmp.eq.s32.totalorder %s176_s9, 0  ;;  %p190_p2 = scmp.eq.s32.totalorder %s13730_s28, 1 }
   0x7   : > { %p195_p3 = scmp.ne.s32.totalorder %s13655_s25, %s13651_s24  ;;  %p196_p4 = scmp.eq.s32.totalorder %s10598_s29, 1 }
   0x8   : > { %s13745_s10 = scalar_select %p177_p1, %s13659_s26, %s179_s8  }
   0x9   : > { %p13747_p5 = por %p190_p2, %p189_p0  ;;  %p13751_p6 = por %p196_p4, %p195_p3 }
   0xa   : > { %p10601_p7 = scmp.ge.s32.totalorder %s13663_s27, 1  ;;  %p240_p8 = scmp.lt.s32.totalorder %s13663_s27, 3 }
   0xc   : > { %p241_p9 = pnand %p10601_p7, %p240_p8 }
   0xe   : > { %244 = sbr.rel (%p241_p9) target bundleno = 1605 (0x645), region = 48 }
  0x13   : > { %v13039_v0 = vld [vmem:[%s18190_s1 + $0x78] sm:$0xff]   ;;  %v13043_v4 = vld [vmem:[%s18190_s1 + $0x70] sm:$0xff]   ;;  %v13665_v5 = vmov 0   ;;  %v13047_v9 = vld [vmem:[%s18190_s1 + $0x68] sm:$0xff]   ;;  %p272_p10 = scmp.lt.s32.totalorder %s13730_s28, 1  ;;  %vm4538_vm0 = vcmask 1043459  }
  0x14   : > { %v13040_v1 = vld [vmem:[%s18190_s1 + $0xf8] sm:$0xff]   ;;  %11956 = vmatprep.subr.bf16.mxu0 %v13039_v0  ;;  %4544 = vst [vmem:[#allocation3 + $0x4] sm:$0xf] %v13665_v5  ;;  %4545 = vst [vmem:[#allocation3 + $0x8] sm:$0xf] %v13665_v5  ;;  %v13044_v6 = vld [vmem:[%s18190_s1 + $0xf0] sm:$0xff]  }
  0x15   : > { %v13041_v2 = vld [vmem:[%s18190_s1 + $0x38] sm:$0xff]   ;;  %12068 = vmatprep.subr.bf16.mxu1 %v13040_v1  ;;  %4556 = vst [vmem:[#allocation3 + $0x114] sm:$0xf] %v13665_v5  ;;  %4557 = vst [vmem:[#allocation3 + $0x118] sm:$0xf] %v13665_v5  ;;  %v13045_v7 = vld [vmem:[%s18190_s1 + $0x30] sm:$0xff]  }
  0x16   : > { %v13042_v3 = vld [vmem:[%s18190_s1 + $0xb8] sm:$0xff]   ;;  %11957 = vmatpush3.bf16.msra.mxu0 %v13041_v2  ;;  %v13046_v8 = vld [vmem:[%s18190_s1 + $0xb0] sm:$0xff]   ;;  %v13048_v10 = vld [vmem:[%s18190_s1 + $0xe8] sm:$0xff]   ;;  %s273_s15 = scalar_select %p272_p10, %s13730_s28, 1  ;;  %vm4539_vm1 = vsmask.f32 7950 }
  0x17   : > { %12069 = vmatpush3.bf16.msra.mxu1 %v13042_v3  ;;  %11958 = vmatprep.subr.bf16.mxu0 %v13043_v4  ;;  %v13049_v11 = vld [vmem:[%s18190_s1 + $0x28] sm:$0xff]   ;;  %v13051_v13 = vld [vmem:[%s18190_s1 + $0x60] sm:$0xff]   ;;  %v13055_v17 = vld [vmem:[%s18190_s1 + $0x58] sm:$0xff]   ;;  %vm4546_vm2 = vcmask 1040384   ;;  %v18355_v40 = vmov 0  ;;  %v18358_v50 = vmov 0 }
  0x18   : > { %12070 = vmatprep.subr.bf16.mxu1 %v13044_v6  ;;  %v13050_v12 = vld [vmem:[%s18190_s1 + $0xa8] sm:$0xff]   ;;  %v13052_v14 = vld [vmem:[%s18190_s1 + $0xe0] sm:$0xff]   ;;  %v13056_v18 = vld [vmem:[%s18190_s1 + $0xd8] sm:$0xff]   ;;  %s12996_s29 = smul.u32 432, %s273_s15  ;;  %vm4547_vm4 = vsmask.f32 256 }
  0x19   : > { %v13053_v15 = vld [vmem:[%s18190_s1 + $0x20] sm:$0xff]   ;;  %v13057_v19 = vld [vmem:[%s18190_s1 + $0x18] sm:$0xff]   ;;  %v13059_v21 = vld [vmem:[%s18190_s1 + $0x50] sm:$0xff]   ;;  %vm4866_vm5 = vsmask.f32 4368  ;;  %v18361_v51 = vmov 0 }
  0x1a   : > { %11959 = vmatpush3.bf16.msra.mxu0 %v13045_v7  ;;  %v13054_v16 = vld [vmem:[%s18190_s1 + $0xa0] sm:$0xff]   ;;  %v13058_v20 = vld [vmem:[%s18190_s1 + $0x98] sm:$0xff]   ;;  %v13060_v22 = vld [vmem:[%s18190_s1 + $0xd0] sm:$0xff]   ;;  %s13852_s21 = scalar_lea.vmem %s18189_s0, %s12996_s29  ;;  %vm5396_vm8 = vsmask.f32 3328  ;;  %s269_s22 = sand.u32 1, %s13655_s25  }
  0x1b   : > { %12071 = vmatpush3.bf16.msra.mxu1 %v13046_v8  ;;  %11960 = vmatprep.subr.bf16.mxu0 %v13047_v9  ;;  %v13061_v23 = vld [vmem:[%s18190_s1 + $0x10] sm:$0xff]   ;;  %v13063_v25 = vld [vmem:[%s18190_s1 + $0x48] sm:$0xff]   ;;  %v13067_v29 = vld [vmem:[%s18190_s1 + $0x40] sm:$0xff]   ;;  %vm5397_vm9 = vsmask.f32 7440  ;;  %s10602_s9 = sshll.u32 %s269_s22, 8 }
  0x1c   : > { %12072 = vmatprep.subr.bf16.mxu1 %v13048_v10  ;;  %v13062_v24 = vld [vmem:[%s18190_s1 + $0x90] sm:$0xff]   ;;  %v13064_v26 = vld [vmem:[%s18190_s1 + $0xc8] sm:$0xff]   ;;  %v13068_v30 = vld [vmem:[%s18190_s1 + $0xc0] sm:$0xff]   ;;  %s18006_s29 = scalar_lea.vmem [#allocation4], %s10602_s9  ;;  %s18149_s17 = scalar_lea.sflag [#allocation5], %s269_s22 }
  0x1d   : > { %v13065_v27 = vld [vmem:[%s18190_s1 + $0x8] sm:$0xff]   ;;  %v13069_v31 = vld [vmem:[%s18190_s1] sm:$0xff]   ;;  %vm13864_vm3 = vmand %vm4538_vm0, %vm4539_vm1  ;;  %s10536_s13 = sshll.u32 %s18006_s29, 4  ;;  %s13666_s19 = smov [#allocation4]   ;;  %s18129_s13 = int_to_ptr.vmem [resolvable:$true] %s10536_s13 }
  0x1e   : > { %11961 = vmatpush3.bf16.msra.mxu0 %v13049_v11  ;;  %v13066_v28 = vld [vmem:[%s18190_s1 + $0x88] sm:$0xff]   ;;  %v13070_v32 = vld [vmem:[%s18190_s1 + $0x80] sm:$0xff]   ;;  %v18356_v40 = vsel %vm13864_vm3, 4294967295, %v18355_v40  ;;  %vm13874_vm6 = vmand %vm4546_vm2, %vm4547_vm4  ;;  %s13603_s18 = scalar_lea.vmem %s18129_s13, 4096  ;;  %s13607_s15 = sshll.u32 %s13666_s19, 4  ;;  %s13608_s15 = int_to_ptr.vmem [resolvable:$false] %s13607_s15 }
  0x1f   : > { %12073 = vmatpush3.bf16.msra.mxu1 %v13050_v12  ;;  %11962 = vmatprep.subr.bf16.mxu0 %v13051_v13  ;;  %v278_v33 = vld [vmem:[%s13852_s21] sm:$0xff]  ;;  %v279_v34 = vld [vmem:[%s13852_s21 + $0x8] sm:$0xff]  ;;  %18357 = vst [vmem:[#allocation7_spill] sm:$0xff] %v18356_v40  ;;  %v18359_v50 = vsel %vm13874_vm6, 4294967295, %v18358_v50  ;;  %vm13879_vm7 = vmor %vm4547_vm4, %vm4866_vm5  ;;  %p13604_p11 = scmp.ne.s32.totalorder %s18129_s13, %s13603_s18  ;;  %s13609_s20 = scalar_lea.vmem %s13608_s15, 8192 }
  0x20   : > { %12074 = vmatprep.subr.bf16.mxu1 %v13052_v14  ;;  %v470_v35 = vld [vmem:[%s13852_s21 + $0x1] sm:$0xff]  ;;  %v11635_v36 = vpack.c.bf16 %v278_v33, %v278_v33  ;;  %v11636_v37 = vpack.c.bf16 %v279_v34, %v279_v34  ;;  %v471_v38 = vld [vmem:[%s13852_s21 + $0x9] sm:$0xff]  ;;  %18360 = vst [vmem:[#allocation8_spill] sm:$0xff] %v18359_v50  ;;  %v18362_v51 = vsel %vm13879_vm7, 4294967295, %v18361_v51  ;;  %v10700_v57 = vld [vmem:[%s13852_s21 + $0x18] sm:$0xff]  ;;  %p13610_p0 = scmp.lt.s32.totalorder %s18129_s13, %s13608_s15  ;;  %p13611_p1 = scmp.lt.s32.totalorder %s13609_s20, %s13603_s18 }
  0x21   : > { %v11667_v39 = vpack.c.bf16 %v470_v35, %v470_v35  ;;  %v4541_v41 = vld [vmem:[#allocation3] sm:$0x8]  ;;  %v11668_v42 = vpack.c.bf16 %v471_v38, %v471_v38  ;;  %v4819_v44 = vld [vmem:[#allocation3 + $0x4] sm:$0xf]  ;;  %v4820_v45 = vld [vmem:[#allocation3 + $0x8] sm:$0xf]  ;;  %v11731_v60 = vpack.c.bf16 %v10700_v57, %v10700_v57  ;;  %p13605_p12 = pnand %p13604_p11, %p13747_p5 }
  0x22   : > { %11963 = vmatpush3.bf16.msra.mxu0 %v13053_v15  ;;  %v4542_v43 = vsel %vm13864_vm3, 0, %v4541_v41  ;;  %v662_v46 = vld [vmem:[%s13852_s21 + $0x2] sm:$0xff]  ;;  %438 = vst [vmem:[#allocation2] sm:$0xf] %v11635_v36  ;;  %439 = vst [vmem:[#allocation2 + $0x24] sm:$0xf] %v11636_v37  ;;  %p13612_p2 = por %p13611_p1, %p13610_p0 }
  0x23   : > { %12075 = vmatpush3.bf16.msra.mxu1 %v13054_v16  ;;  %11964 = vmatprep.subr.bf16.mxu0 %v13055_v17  ;;  %630 = vst [vmem:[#allocation2 + $0x4] sm:$0xf] %v11667_v39  ;;  %4543 = vst [vmem:[#allocation3] sm:$0x8] %v4542_v43  ;;  %v4874_v47 = vshrl.u32 %v4819_v44, 16  ;;  %v4883_v48 = vshrl.u32 %v4820_v45, 16  ;;  %v11699_v53 = vpack.c.bf16 %v662_v46, %v662_v46  ;;  %p13606_p13 = pneg %p13605_p12 }
  0x24   : > { %12076 = vmatprep.subr.bf16.mxu1 %v13056_v18  ;;  %v663_v49 = vld [vmem:[%s13852_s21 + $0xa] sm:$0xff]  ;;  %631 = vst [vmem:[#allocation2 + $0x28] sm:$0xf] %v11668_v42  ;;  %18363 = vst [vmem:[#allocation9_spill] sm:$0xff] %v18362_v51  ;;  %v4886_v52 = vshll.u32 %v4820_v45, 16  ;;  %v10701_v58 = vld [vmem:[%s13852_s21 + $0x20] sm:$0xff] }
  0x25   : > { %v11700_v54 = vpack.c.bf16 %v663_v49, %v663_v49  ;;  %v4876_v55 = vrot.slane %v4874_v47, 7  ;;  %v4885_v56 = vrot.slane %v4883_v48, 7  ;;  %v4549_v59 = vld [vmem:[#allocation3 + $0xc] sm:$0x1]  ;;  %822 = vst [vmem:[#allocation2 + $0x8] sm:$0xf] %v11699_v53  ;;  %v11732_v61 = vpack.c.bf16 %v10701_v58, %v10701_v58  ;;  %vm13897_vm10 = vmor %vm5396_vm8, %vm5397_vm9  ;;  %p13613_p3 = pnand %p13612_p2, %p13606_p13 }
  0x26   : > { %11965 = vmatpush3.bf16.msra.mxu0 %v13057_v19  ;;  %v4550_v62 = vsel %vm13874_vm6, 0, %v4549_v59  ;;  %v5348_v63 = vld [vmem:[#allocation3 + $0x4] sm:$0xf]  ;;  %v5349_v0 = vld [vmem:[#allocation3 + $0x8] sm:$0xf]  ;;  %v13075_v1 = vld [vmem:[%s18190_s1 + $0x178] sm:$0xff]  }
  0x27   : > { %12077 = vmatpush3.bf16.msra.mxu1 %v13058_v20  ;;  %11966 = vmatprep.subr.bf16.mxu0 %v13059_v21  ;;  %823 = vst [vmem:[#allocation2 + $0x2c] sm:$0xf] %v11700_v54  ;;  %v4877_v2 = vshll.u32 %v4819_v44, 16  ;;  %v4881_v3 = vrot.slane %v4876_v55, 4  ;;  %v4888_v4 = vor.u32 %v4886_v52, %v4885_v56  ;;  %v5284_v5 = vld [vmem:[#allocation3 + $0x4] sm:$0xf] }
  0x28   : > { %12078 = vmatprep.subr.bf16.mxu1 %v13060_v22  ;;  %v5285_v6 = vld [vmem:[#allocation3 + $0x8] sm:$0xf]  ;;  %4551 = vst [vmem:[#allocation3 + $0xc] sm:$0x1] %v4550_v62  ;;  %1015 = vst [vmem:[#allocation2 + $0xc] sm:$0xf] %v11731_v60 }
  0x29   : > { %1016 = vst [vmem:[#allocation2 + $0x30] sm:$0xf] %v11732_v61  ;;  %v5400_v7 = vshrl.u32 %v5348_v63, 16  ;;  %v5403_v8 = vshll.u32 %v5348_v63, 16  ;;  %v5409_v9 = vshll.u32 %v5349_v0, 16  ;;  %v472_v10 = vld [vmem:[%s13852_s21 + $0x19] sm:$0xff]  ;;  %v4889_v11 = vsel %vm13879_vm7, %v4881_v3, %v4888_v4 }
  0x2a   : > { %11967 = vmatpush3.bf16.msra.mxu0 %v13061_v23  ;;  %440 = vst [vmem:[#allocation2 + $0x48] sm:$0xf] %v11731_v60  ;;  %441 = vst [vmem:[#allocation2 + $0x6c] sm:$0xf] %v11732_v61  ;;  %v5413_v12 = vshrl.u32 %v5349_v0, 16  ;;  %v13076_v13 = vld [vmem:[%s18190_s1 + $0x138] sm:$0xff]   ;;  %v11669_v14 = vpack.c.bf16 %v472_v10, %v472_v10 }
  0x2b   : > { %12079 = vmatpush3.bf16.msra.mxu1 %v13062_v24  ;;  %11968 = vmatprep.subr.bf16.mxu0 %v13063_v25  ;;  %v2008_v15 = vld [vmem:[#allocation2] sm:$0xff]  ;;  %v18364_v17 = vmov 0  ;;  %v5402_v18 = vrot.slane %v5400_v7, 4  ;;  %v5405_v19 = vrot.slane %v5403_v8, 5  ;;  %v5411_v20 = vrot.slane %v5409_v9, 5  ;;  %v10702_v36 = vld [vmem:[%s13852_s21 + $0x30] sm:$0xff] }
  0x2c   : > { %12080 = vmatprep.subr.bf16.mxu1 %v13064_v26  ;;  %v4818_v16 = vld [vmem:[#allocation3] sm:$0x8]  ;;  %v18365_v17 = vsel %vm13897_vm10, 4294967295, %v18364_v17  ;;  %v2013_v21 = vld [vmem:[#allocation2 + $0x24] sm:$0xff]  ;;  %v4879_v24 = vor.u32 %v4877_v2, %v4876_v55  ;;  %v5415_v25 = vrot.slane %v5413_v12, 4  ;;  %v10703_v37 = vld [vmem:[%s13852_s21 + $0x38] sm:$0xff]  ;;  %v11733_v42 = vpack.c.bf16 %v10702_v36, %v10702_v36 }
  0x2d   : > { %18366 = vst [vmem:[#allocation10_spill] sm:$0xff] %v18365_v17  ;;  %v13071_v22 = vld [vmem:[#allocation2 + $0x4] ss:$36 sps:$4 sm:$0xff]   ;;  %v4869_v23 = vshrl.u32 %v4818_v16, 16  ;;  %632 = vst [vmem:[#allocation2 + $0x4c] sm:$0xf] %v11669_v14  ;;  %v11734_v43 = vpack.c.bf16 %v10703_v37, %v10703_v37 }
  0x2e   : > { %11969 = vmatpush3.bf16.msra.mxu0 %v13065_v27  ;;  %v473_v26 = vld [vmem:[%s13852_s21 + $0x21] sm:$0xff]  ;;  %5253 = vst [vmem:[#allocation2 + $0x24] sm:$0xf] %v4889_v11  ;;  %5316 = vst [vmem:[#allocation2 + $0x4] sm:$0xf] %v5284_v5  ;;  %v5406_v27 = vor.u32 %v5405_v19, %v5402_v18  ;;  %3512 = vmatprep.mubr.bf16.mxu0 %v13071_v22  ;;  %v5416_v33 = vor.u32 %v5415_v25, %v5411_v20  ;;  %v474_v38 = vld [vmem:[%s13852_s21 + $0x31] sm:$0xff] }
  0x2f   : > { %12081 = vmatpush3.bf16.msra.mxu1 %v13066_v28  ;;  %11970 = vmatprep.subr.bf16.mxu0 %v13067_v29  ;;  %5317 = vst [vmem:[#allocation2 + $0x28] sm:$0xf] %v5285_v6  ;;  %v11084_v28 = vcombine.low %v2008_v15, %v2013_v21  ;;  %v11670_v29 = vpack.c.bf16 %v473_v26, %v473_v26  ;;  %v5350_v39 = vld [vmem:[#allocation3 + $0xc] sm:$0x1]  ;;  %v475_v44 = vld [vmem:[%s13852_s21 + $0x39] sm:$0xff]  ;;  %v10705_v61 = vld [vmem:[%s13852_s21 + $0x50] sm:$0xff] }
  0x30   : > { %12082 = vmatprep.subr.bf16.mxu1 %v13068_v30  ;;  %v664_v30 = vld [vmem:[%s13852_s21 + $0x1a] sm:$0xff]  ;;  %v5407_v41 = vrot.slane %v5406_v27, 4  ;;  %v11671_v45 = vpack.c.bf16 %v474_v38, %v474_v38  ;;  %v666_v46 = vld [vmem:[%s13852_s21 + $0x32] sm:$0xff]  ;;  %v2009_v48 = vld [vmem:[#allocation2 + $0x8] sm:$0xff]  ;;  %v5417_v53 = vrot.slane %v5416_v33, 4  ;;  %v5419_v54 = vshll.u32 %v5350_v39, 16 }
  0x31   : > { %v11701_v34 = vpack.c.bf16 %v664_v30, %v664_v30  ;;  %633 = vst [vmem:[#allocation2 + $0x70] sm:$0xf] %v11670_v29  ;;  %v2014_v49 = vld [vmem:[#allocation2 + $0x2c] sm:$0xff]  ;;  %v11672_v55 = vpack.c.bf16 %v475_v44, %v475_v44  ;;  %1017 = vst [vmem:[#allocation2 + $0x54] sm:$0xf] %v11733_v42  ;;  %v667_v58 = vld [vmem:[%s13852_s21 + $0x3a] sm:$0xff]  ;;  %v11703_v59 = vpack.c.bf16 %v666_v46, %v666_v46 }
  0x32   : > { %11971 = vmatpush3.bf16.msra.mxu0 %v13069_v31  ;;  %v665_v31 = vld [vmem:[%s13852_s21 + $0x22] sm:$0xff]  ;;  %v13073_v52 = vld [vmem:[#allocation2 + $0xc] ss:$36 sps:$4 sm:$0xff]   ;;  %v5412_v56 = vsel %vm13897_vm10, %v5407_v41, %v5411_v20  ;;  %v11086_v57 = vcombine.low %v2009_v48, %v2014_v49  ;;  %1018 = vst [vmem:[#allocation2 + $0x78] sm:$0xf] %v11734_v43  ;;  %v5421_v62 = vrot.slane %v5419_v54, 5  ;;  %v11704_v63 = vpack.c.bf16 %v667_v58, %v667_v58 }
  0x33   : > { %12083 = vmatpush3.bf16.msra.mxu1 %v13070_v32  ;;  %12180 = vmatprep.subr.bf16.mxu0 %v13075_v1  ;;  %v11333_v32 = vrot.slane %v4869_v23, 11  ;;  %v11702_v35 = vpack.c.bf16 %v665_v31, %v665_v31  ;;  %824 = vst [vmem:[#allocation2 + $0x50] sm:$0xf] %v11701_v34  ;;  %442 = vst [vmem:[#allocation2 + $0x90] sm:$0xf] %v11733_v42  ;;  %v10704_v60 = vld [vmem:[%s13852_s21 + $0x48] sm:$0xff]  ;;  %v11736_v1 = vpack.c.bf16 %v10705_v61, %v10705_v61 }
  0x34   : > { %443 = vst [vmem:[#allocation2 + $0xb4] sm:$0xf] %v11734_v43  ;;  %634 = vst [vmem:[#allocation2 + $0x94] sm:$0xf] %v11671_v45  ;;  %3673 = vmatprep.mubr.bf16.mxu1 %v13073_v52  ;;  %v11735_v0 = vpack.c.bf16 %v10704_v60, %v10704_v60  ;;  %v13087_v2 = vld [vmem:[%s18190_s1 + $0x170] sm:$0xff]   ;;  %v2018_v3 = vld [vmem:[#allocation2 + $0x48] sm:$0xff]  ;;  %v5422_v4 = vsel %vm13897_vm10, %v5417_v53, %v5421_v62 }
  0x35   : > { %3513 = vmatmul.mubr.bf16.vlgmr.msra.gmra.mxu0 %v11084_v28  ;;  %v4880_v47 = vsel %vm13879_vm7, %v11333_v32, %v4879_v24  ;;  %825 = vst [vmem:[#allocation2 + $0x74] sm:$0xf] %v11702_v35  ;;  %5815 = vst [vmem:[#allocation2 + $0x8] sm:$0xf] %v5412_v56  ;;  %v13088_v5 = vld [vmem:[%s18190_s1 + $0x130] sm:$0xff]   ;;  %v10706_v12 = vld [vmem:[%s13852_s21 + $0x60] sm:$0xff] }
  0x36   : > { %12181 = vmatpush3.bf16.msra.mxu0 %v13076_v13  ;;  %5252 = vst [vmem:[#allocation2] sm:$0xf] %v4880_v47  ;;  %635 = vst [vmem:[#allocation2 + $0xb8] sm:$0xf] %v11672_v55  ;;  %3674 = vmatmul.mubr.bf16.vlgmr.msra.gmra.mxu1 %v11086_v57  ;;  %v476_v6 = vld [vmem:[%s13852_s21 + $0x49] sm:$0xff]  ;;  %v477_v7 = vld [vmem:[%s13852_s21 + $0x51] sm:$0xff]  ;;  %v11737_v19 = vpack.c.bf16 %v10706_v12, %v10706_v12 }
  0x37   : > { %826 = vst [vmem:[#allocation2 + $0x98] sm:$0xf] %v11703_v59  ;;  %827 = vst [vmem:[#allocation2 + $0xbc] sm:$0xf] %v11704_v63  ;;  %12182 = vmatprep.subr.bf16.mxu0 %v13087_v2  ;;  %v11673_v8 = vpack.c.bf16 %v476_v6, %v476_v6  ;;  %v11674_v9 = vpack.c.bf16 %v477_v7, %v477_v7  ;;  %v668_v10 = vld [vmem:[%s13852_s21 + $0x4a] sm:$0xff]  ;;  %v669_v11 = vld [vmem:[%s13852_s21 + $0x52] sm:$0xff] }
  0x38   : > { %1019 = vst [vmem:[#allocation2 + $0x9c] sm:$0xf] %v11735_v0  ;;  %1020 = vst [vmem:[#allocation2 + $0xc0] sm:$0xf] %v11736_v1  ;;  %v2023_v13 = vld [vmem:[#allocation2 + $0x6c] sm:$0xff]  ;;  %v11705_v15 = vpack.c.bf16 %v668_v10, %v668_v10  ;;  %v11706_v16 = vpack.c.bf16 %v669_v11, %v669_v11  ;;  %v478_v22 = vld [vmem:[%s13852_s21 + $0x61] sm:$0xff] }
  0x39   : > { %444 = vst [vmem:[#allocation2 + $0xd8] sm:$0xf] %v11735_v0  ;;  %445 = vst [vmem:[#allocation2 + $0xfc] sm:$0xf] %v11736_v1  ;;  %v13077_v14 = vld [vmem:[#allocation2 + $0x4c] ss:$36 sps:$4 sm:$0xff]   ;;  %v11093_v20 = vcombine.low %v2018_v3, %v2023_v13  ;;  %v11675_v26 = vpack.c.bf16 %v478_v22, %v478_v22 }
  0x3a   : > { %5816 = vst [vmem:[#allocation2 + $0x2c] sm:$0xf] %v5422_v4  ;;  %12183 = vmatpush3.bf16.msra.mxu0 %v13088_v5  ;;  %v10707_v18 = vld [vmem:[%s13852_s21 + $0x68] sm:$0xff]  ;;  %636 = vst [vmem:[#allocation2 + $0xdc] sm:$0xf] %v11673_v8  ;;  %3520 = vmatprep.mubr.bf16.mxu0 %v13077_v14  ;;  %v10708_v34 = vld [vmem:[%s13852_s21 + $0x78] sm:$0xff] }
  0x3b   : > { %637 = vst [vmem:[#allocation2 + $0x100] sm:$0xf] %v11674_v9  ;;  %v11738_v21 = vpack.c.bf16 %v10707_v18, %v10707_v18  ;;  %v479_v23 = vld [vmem:[%s13852_s21 + $0x69] sm:$0xff]  ;;  %v13079_v25 = vld [vmem:[#allocation2 + $0x54] ss:$36 sps:$4 sm:$0xff]   ;;  %v11739_v37 = vpack.c.bf16 %v10708_v34, %v10708_v34  ;;  %v10709_v38 = vld [vmem:[%s13852_s21 + $0x80] sm:$0xff] }
  0x3c   : > { %v670_v24 = vld [vmem:[%s13852_s21 + $0x62] sm:$0xff]  ;;  %828 = vst [vmem:[#allocation2 + $0xe0] sm:$0xf] %v11705_v15  ;;  %829 = vst [vmem:[#allocation2 + $0x104] sm:$0xf] %v11706_v16  ;;  %v11676_v27 = vpack.c.bf16 %v479_v23, %v479_v23  ;;  %v2028_v30 = vld [vmem:[#allocation2 + $0x90] sm:$0xff]  ;;  %3681 = vmatprep.mubr.bf16.mxu1 %v13079_v25  ;;  %v11740_v41 = vpack.c.bf16 %v10709_v38, %v10709_v38 }
  0x3d   : > { %1021 = vst [vmem:[#allocation2 + $0xe4] sm:$0xf] %v11737_v19  ;;  %446 = vst [vmem:[#allocation2 + $0x120] sm:$0xf] %v11737_v19  ;;  %v11707_v28 = vpack.c.bf16 %v670_v24, %v670_v24  ;;  %3521 = vmatmul.mubr.bf16.gmra.mxu0 %v11093_v20  ;;  %v13081_v29 = vld [vmem:[#allocation2 + $0x50] ss:$36 sps:$4 sm:$0xff]  }
  0x3e   : > { %v2033_v31 = vld [vmem:[#allocation2 + $0xb4] sm:$0xff]  ;;  %1022 = vst [vmem:[#allocation2 + $0x108] sm:$0xf] %v11738_v21  ;;  %447 = vst [vmem:[#allocation2 + $0x144] sm:$0xf] %v11738_v21  ;;  %v671_v33 = vld [vmem:[%s13852_s21 + $0x6a] sm:$0xff]  ;;  %3682 = vmatmul.mubr.bf16.gmra.mxu1 %v13081_v29 }
  0x3f   : > { %v13082_v32 = vld [vmem:[#allocation2 + $0x94] ss:$36 sps:$4 sm:$0xff]   ;;  %638 = vst [vmem:[#allocation2 + $0x124] sm:$0xf] %v11675_v26  ;;  %639 = vst [vmem:[#allocation2 + $0x148] sm:$0xf] %v11676_v27  ;;  %v11708_v36 = vpack.c.bf16 %v671_v33, %v671_v33  ;;  %v11102_v39 = vcombine.low %v2028_v30, %v2033_v31 }
  0x40   : > { %830 = vst [vmem:[#allocation2 + $0x128] sm:$0xf] %v11707_v28  ;;  %v13084_v35 = vld [vmem:[#allocation2 + $0x9c] ss:$36 sps:$4 sm:$0xff]   ;;  %3528 = vmatprep.mubr.bf16.mxu0 %v13082_v32  ;;  %1023 = vst [vmem:[#allocation2 + $0x12c] sm:$0xf] %v11739_v37 }
  0x41   : > { %3689 = vmatprep.mubr.bf16.mxu1 %v13084_v35  ;;  %831 = vst [vmem:[#allocation2 + $0x14c] sm:$0xf] %v11708_v36  ;;  %v13099_v42 = vld [vmem:[%s18190_s1 + $0x168] sm:$0xff]   ;;  %448 = vst [vmem:[#allocation2 + $0x168] sm:$0xf] %v11739_v37  ;;  %v2038_v47 = vld [vmem:[#allocation2 + $0xd8] sm:$0xff] }
  0x42   : > { %v13086_v43 = vld [vmem:[#allocation2 + $0x98] ss:$36 sps:$4 sm:$0xff]   ;;  %1024 = vst [vmem:[#allocation2 + $0x150] sm:$0xf] %v11740_v41  ;;  %12184 = vmatprep.subr.bf16.mxu0 %v13099_v42  ;;  %v13100_v45 = vld [vmem:[%s18190_s1 + $0x128] sm:$0xff]   ;;  %v10710_v58 = vld [vmem:[%s13852_s21 + $0x90] sm:$0xff] }
  0x43   : > { %v13089_v44 = vld [vmem:[#allocation2 + $0xdc] ss:$36 sps:$4 sm:$0xff]   ;;  %449 = vst [vmem:[#allocation2 + $0x18c] sm:$0xf] %v11740_v41  ;;  %12185 = vmatpush3.bf16.msra.mxu0 %v13100_v45  ;;  %v11741_v61 = vpack.c.bf16 %v10710_v58, %v10710_v58  ;;  %v482_v63 = vld [vmem:[%s13852_s21 + $0x91] sm:$0xff]  ;;  %v10712_v7 = vld [vmem:[%s13852_s21 + $0xa8] sm:$0xff] }
  0x44   : > { %v2043_v48 = vld [vmem:[#allocation2 + $0xfc] sm:$0xff]  ;;  %v11679_v3 = vpack.c.bf16 %v482_v63, %v482_v63  ;;  %v674_v5 = vld [vmem:[%s13852_s21 + $0x92] sm:$0xff]  ;;  %v11743_v12 = vpack.c.bf16 %v10712_v7, %v10712_v7  ;;  %v484_v20 = vld [vmem:[%s13852_s21 + $0xa9] sm:$0xff] }
  0x45   : > { %v13091_v46 = vld [vmem:[#allocation2 + $0xe4] ss:$36 sps:$4 sm:$0xff]   ;;  %3529 = vmatmul.mubr.bf16.gmra.mxu0 %v11102_v39  ;;  %v480_v49 = vld [vmem:[%s13852_s21 + $0x79] sm:$0xff]  ;;  %v11111_v1 = vcombine.low %v2038_v47, %v2043_v48  ;;  %1025 = vst [vmem:[#allocation2 + $0x174] sm:$0xf] %v11741_v61  ;;  %v11711_v10 = vpack.c.bf16 %v674_v5, %v674_v5  ;;  %v10713_v13 = vld [vmem:[%s13852_s21 + $0xb0] sm:$0xff]  ;;  %v11681_v22 = vpack.c.bf16 %v484_v20, %v484_v20 }
  0x46   : > { %3536 = vmatprep.mubr.bf16.mxu0 %v13089_v44  ;;  %v481_v52 = vld [vmem:[%s13852_s21 + $0x81] sm:$0xff]  ;;  %3690 = vmatmul.mubr.bf16.gmra.mxu1 %v13086_v43  ;;  %v11677_v54 = vpack.c.bf16 %v480_v49, %v480_v49  ;;  %v10711_v59 = vld [vmem:[%s13852_s21 + $0x98] sm:$0xff]  ;;  %450 = vst [vmem:[#allocation2 + $0x1b0] sm:$0xf] %v11741_v61  ;;  %642 = vst [vmem:[#allocation2 + $0x1b4] sm:$0xf] %v11679_v3  ;;  %v11744_v16 = vpack.c.bf16 %v10713_v13, %v10713_v13 }
  0x47   : > { %v672_v53 = vld [vmem:[%s13852_s21 + $0x7a] sm:$0xff]  ;;  %v11678_v55 = vpack.c.bf16 %v481_v52, %v481_v52  ;;  %v673_v56 = vld [vmem:[%s13852_s21 + $0x82] sm:$0xff]  ;;  %3697 = vmatprep.mubr.bf16.mxu1 %v13091_v46  ;;  %v11742_v62 = vpack.c.bf16 %v10711_v59, %v10711_v59  ;;  %834 = vst [vmem:[#allocation2 + $0x1b8] sm:$0xf] %v11711_v10  ;;  %1027 = vst [vmem:[#allocation2 + $0x1bc] sm:$0xf] %v11743_v12 }
  0x48   : > { %v11709_v57 = vpack.c.bf16 %v672_v53, %v672_v53  ;;  %v11710_v60 = vpack.c.bf16 %v673_v56, %v673_v56  ;;  %v483_v0 = vld [vmem:[%s13852_s21 + $0x99] sm:$0xff]  ;;  %640 = vst [vmem:[#allocation2 + $0x16c] sm:$0xf] %v11677_v54  ;;  %v13094_v8 = vld [vmem:[#allocation2 + $0x124] ss:$36 sps:$4 sm:$0xff]   ;;  %v485_v21 = vld [vmem:[%s13852_s21 + $0xb1] sm:$0xff] }
  0x49   : > { %v13093_v2 = vld [vmem:[#allocation2 + $0xe0] ss:$36 sps:$4 sm:$0xff]   ;;  %641 = vst [vmem:[#allocation2 + $0x190] sm:$0xf] %v11678_v55  ;;  %v11680_v4 = vpack.c.bf16 %v483_v0, %v483_v0  ;;  %v13096_v9 = vld [vmem:[#allocation2 + $0x12c] ss:$36 sps:$4 sm:$0xff]   ;;  %v11682_v23 = vpack.c.bf16 %v485_v21, %v485_v21 }
  0x4a   : > { %832 = vst [vmem:[#allocation2 + $0x170] sm:$0xf] %v11709_v57  ;;  %v675_v6 = vld [vmem:[%s13852_s21 + $0x9a] sm:$0xff]  ;;  %833 = vst [vmem:[#allocation2 + $0x194] sm:$0xf] %v11710_v60  ;;  %v2053_v15 = vld [vmem:[#allocation2 + $0x144] sm:$0xff] }
  0x4b   : > { %1026 = vst [vmem:[#allocation2 + $0x198] sm:$0xf] %v11742_v62  ;;  %451 = vst [vmem:[#allocation2 + $0x1d4] sm:$0xf] %v11742_v62  ;;  %v11712_v11 = vpack.c.bf16 %v675_v6, %v675_v6  ;;  %v2048_v14 = vld [vmem:[#allocation2 + $0x120] sm:$0xff]  ;;  %v676_v24 = vld [vmem:[%s13852_s21 + $0xaa] sm:$0xff] }
  0x4c   : > { %643 = vst [vmem:[#allocation2 + $0x1d8] sm:$0xf] %v11680_v4  ;;  %v13111_v18 = vld [vmem:[%s18190_s1 + $0x160] sm:$0xff]   ;;  %452 = vst [vmem:[#allocation2 + $0x1f8] sm:$0xf] %v11743_v12  ;;  %v677_v25 = vld [vmem:[%s13852_s21 + $0xb2] sm:$0xff]  ;;  %v11713_v27 = vpack.c.bf16 %v676_v24, %v676_v24  ;;  %v11120_v36 = vcombine.low %v2048_v14, %v2053_v15 }
  0x4d   : > { %835 = vst [vmem:[#allocation2 + $0x1dc] sm:$0xf] %v11712_v11  ;;  %3537 = vmatmul.mubr.bf16.gmra.mxu0 %v11111_v1  ;;  %v13112_v19 = vld [vmem:[%s18190_s1 + $0x120] sm:$0xff]   ;;  %1028 = vst [vmem:[#allocation2 + $0x1e0] sm:$0xf] %v11744_v16  ;;  %12186 = vmatprep.subr.bf16.mxu0 %v13111_v18  ;;  %v11714_v28 = vpack.c.bf16 %v677_v25, %v677_v25  ;;  %v10715_v29 = vld [vmem:[%s13852_s21 + $0xc8] sm:$0xff] }
  0x4e   : > { %3544 = vmatprep.mubr.bf16.mxu0 %v13094_v8  ;;  %453 = vst [vmem:[#allocation2 + $0x21c] sm:$0xf] %v11744_v16  ;;  %v10714_v26 = vld [vmem:[%s13852_s21 + $0xc0] sm:$0xff]  ;;  %3698 = vmatmul.mubr.bf16.gmra.mxu1 %v13093_v2  ;;  %v487_v32 = vld [vmem:[%s13852_s21 + $0xc9] sm:$0xff]  ;;  %644 = vst [vmem:[#allocation2 + $0x1fc] sm:$0xf] %v11681_v22  ;;  %v11746_v33 = vpack.c.bf16 %v10715_v29, %v10715_v29 }
  0x4f   : > { %12187 = vmatpush3.bf16.msra.mxu0 %v13112_v19  ;;  %v11745_v30 = vpack.c.bf16 %v10714_v26, %v10714_v26  ;;  %v486_v31 = vld [vmem:[%s13852_s21 + $0xc1] sm:$0xff]  ;;  %3705 = vmatprep.mubr.bf16.mxu1 %v13096_v9  ;;  %645 = vst [vmem:[#allocation2 + $0x220] sm:$0xf] %v11682_v23  ;;  %v11684_v35 = vpack.c.bf16 %v487_v32, %v487_v32  ;;  %836 = vst [vmem:[#allocation2 + $0x200] sm:$0xf] %v11713_v27  ;;  %v679_v42 = vld [vmem:[%s13852_s21 + $0xca] sm:$0xff] }
  0x50   : > { %v11683_v34 = vpack.c.bf16 %v486_v31, %v486_v31  ;;  %837 = vst [vmem:[#allocation2 + $0x224] sm:$0xf] %v11714_v28  ;;  %v13098_v37 = vld [vmem:[#allocation2 + $0x128] ss:$36 sps:$4 sm:$0xff]   ;;  %1030 = vst [vmem:[#allocation2 + $0x228] sm:$0xf] %v11746_v33  ;;  %v11716_v48 = vpack.c.bf16 %v679_v42, %v679_v42 }
  0x51   : > { %1029 = vst [vmem:[#allocation2 + $0x204] sm:$0xf] %v11745_v30  ;;  %454 = vst [vmem:[#allocation2 + $0x240] sm:$0xf] %v11745_v30  ;;  %v13101_v38 = vld [vmem:[#allocation2 + $0x16c] ss:$36 sps:$4 sm:$0xff]  }
  0x52   : > { %455 = vst [vmem:[#allocation2 + $0x264] sm:$0xf] %v11746_v33  ;;  %646 = vst [vmem:[#allocation2 + $0x244] sm:$0xf] %v11683_v34  ;;  %v13103_v39 = vld [vmem:[#allocation2 + $0x174] ss:$36 sps:$4 sm:$0xff]  }
  0x53   : > { %647 = vst [vmem:[#allocation2 + $0x268] sm:$0xf] %v11684_v35  ;;  %v678_v41 = vld [vmem:[%s13852_s21 + $0xc2] sm:$0xff]  ;;  %v10716_v44 = vld [vmem:[%s13852_s21 + $0xd8] sm:$0xff]  ;;  %v2063_v47 = vld [vmem:[#allocation2 + $0x18c] sm:$0xff] }
  0x54   : > { %v11715_v43 = vpack.c.bf16 %v678_v41, %v678_v41  ;;  %v10717_v45 = vld [vmem:[%s13852_s21 + $0xe0] sm:$0xff]  ;;  %v2058_v46 = vld [vmem:[#allocation2 + $0x168] sm:$0xff]  ;;  %v11747_v49 = vpack.c.bf16 %v10716_v44, %v10716_v44  ;;  %v13123_v53 = vld [vmem:[%s18190_s1 + $0x158] sm:$0xff]   ;;  %839 = vst [vmem:[#allocation2 + $0x26c] sm:$0xf] %v11716_v48 }
  0x55   : > { %3545 = vmatmul.mubr.bf16.gmra.mxu0 %v11120_v36  ;;  %v11748_v52 = vpack.c.bf16 %v10717_v45, %v10717_v45  ;;  %12188 = vmatprep.subr.bf16.mxu0 %v13123_v53  ;;  %v11129_v54 = vcombine.low %v2058_v46, %v2063_v47  ;;  %v13105_v55 = vld [vmem:[#allocation2 + $0x170] ss:$36 sps:$4 sm:$0xff]   ;;  %v13108_v57 = vld [vmem:[#allocation2 + $0x1bc] ss:$36 sps:$4 sm:$0xff]   ;;  %v10720_v24 = vld [vmem:[%s13852_s21 + $0x108] sm:$0xff] }
  0x56   : > { %3552 = vmatprep.mubr.bf16.mxu0 %v13101_v38  ;;  %838 = vst [vmem:[#allocation2 + $0x248] sm:$0xf] %v11715_v43  ;;  %3706 = vmatmul.mubr.bf16.gmra.mxu1 %v13098_v37  ;;  %1031 = vst [vmem:[#allocation2 + $0x24c] sm:$0xf] %v11747_v49  ;;  %v13106_v56 = vld [vmem:[#allocation2 + $0x1b4] ss:$36 sps:$4 sm:$0xff]   ;;  %v11751_v26 = vpack.c.bf16 %v10720_v24, %v10720_v24 }
  0x57   : > { %1032 = vst [vmem:[#allocation2 + $0x270] sm:$0xf] %v11748_v52  ;;  %456 = vst [vmem:[#allocation2 + $0x288] sm:$0xf] %v11747_v49  ;;  %3713 = vmatprep.mubr.bf16.mxu1 %v13103_v39  ;;  %v13124_v58 = vld [vmem:[%s18190_s1 + $0x1f8] sm:$0xff]   ;;  %v2068_v59 = vld [vmem:[#allocation2 + $0x1b0] sm:$0xff] }
  0x58   : > { %457 = vst [vmem:[#allocation2 + $0x2ac] sm:$0xf] %v11748_v52  ;;  %v13125_v60 = vld [vmem:[%s18190_s1 + $0x118] sm:$0xff]   ;;  %12292 = vmatprep.subr.bf16.mxu1 %v13124_v58  ;;  %v489_v63 = vld [vmem:[%s13852_s21 + $0xe1] sm:$0xff]  ;;  %v10718_v8 = vld [vmem:[%s13852_s21 + $0xf0] sm:$0xff] }
  0x59   : > { %v13126_v61 = vld [vmem:[%s18190_s1 + $0x1b8] sm:$0xff]   ;;  %12189 = vmatpush3.bf16.msra.mxu0 %v13125_v60  ;;  %v11686_v2 = vpack.c.bf16 %v489_v63, %v489_v63  ;;  %v681_v4 = vld [vmem:[%s13852_s21 + $0xe2] sm:$0xff]  ;;  %v11749_v13 = vpack.c.bf16 %v10718_v8, %v10718_v8  ;;  %v10721_v25 = vld [vmem:[%s13852_s21 + $0x110] sm:$0xff]  ;;  %1035 = vst [vmem:[#allocation2 + $0x2dc] sm:$0xf] %v11751_v26 }
  0x5a   : > { %v488_v62 = vld [vmem:[%s13852_s21 + $0xd9] sm:$0xff]  ;;  %12293 = vmatpush3.bf16.msra.mxu1 %v13126_v61  ;;  %v11718_v7 = vpack.c.bf16 %v681_v4, %v681_v4  ;;  %v490_v10 = vld [vmem:[%s13852_s21 + $0xf1] sm:$0xff]  ;;  %v13115_v20 = vld [vmem:[#allocation2 + $0x204] ss:$36 sps:$4 sm:$0xff]   ;;  %v11752_v27 = vpack.c.bf16 %v10721_v25, %v10721_v25  ;;  %460 = vst [vmem:[#allocation2 + $0x318] sm:$0xf] %v11751_v26 }
  0x5b   : > { %v2073_v0 = vld [vmem:[#allocation2 + $0x1d4] sm:$0xff]  ;;  %v11685_v1 = vpack.c.bf16 %v488_v62, %v488_v62  ;;  %v13113_v5 = vld [vmem:[#allocation2 + $0x1fc] ss:$36 sps:$4 sm:$0xff]   ;;  %649 = vst [vmem:[#allocation2 + $0x2b0] sm:$0xf] %v11686_v2  ;;  %v11687_v16 = vpack.c.bf16 %v490_v10, %v490_v10  ;;  %v492_v34 = vld [vmem:[%s13852_s21 + $0x109] sm:$0xff] }
  0x5c   : > { %v680_v3 = vld [vmem:[%s13852_s21 + $0xda] sm:$0xff]  ;;  %v11138_v11 = vcombine.low %v2068_v59, %v2073_v0  ;;  %v682_v18 = vld [vmem:[%s13852_s21 + $0xf2] sm:$0xff]  ;;  %841 = vst [vmem:[#allocation2 + $0x2b4] sm:$0xf] %v11718_v7  ;;  %1033 = vst [vmem:[#allocation2 + $0x294] sm:$0xf] %v11749_v13  ;;  %v11689_v35 = vpack.c.bf16 %v492_v34, %v492_v34 }
  0x5d   : > { %3553 = vmatmul.mubr.bf16.gmra.mxu0 %v11129_v54  ;;  %648 = vst [vmem:[#allocation2 + $0x28c] sm:$0xf] %v11685_v1  ;;  %v11717_v6 = vpack.c.bf16 %v680_v3, %v680_v3  ;;  %v10719_v9 = vld [vmem:[%s13852_s21 + $0xf8] sm:$0xff]  ;;  %v11719_v22 = vpack.c.bf16 %v682_v18, %v682_v18  ;;  %458 = vst [vmem:[#allocation2 + $0x2d0] sm:$0xf] %v11749_v13  ;;  %v13137_v28 = vld [vmem:[%s18190_s1 + $0x150] sm:$0xff]  }
  0x5e   : > { %3560 = vmatprep.mubr.bf16.mxu0 %v13106_v56  ;;  %3714 = vmatmul.mubr.bf16.gmra.mxu1 %v13105_v55  ;;  %v13110_v12 = vld [vmem:[#allocation2 + $0x1b8] ss:$36 sps:$4 sm:$0xff]   ;;  %v11750_v14 = vpack.c.bf16 %v10719_v9, %v10719_v9  ;;  %650 = vst [vmem:[#allocation2 + $0x2d4] sm:$0xf] %v11687_v16  ;;  %v13138_v31 = vld [vmem:[%s18190_s1 + $0x1f0] sm:$0xff]   ;;  %v10722_v44 = vld [vmem:[%s13852_s21 + $0x120] sm:$0xff] }
  0x5f   : > { %3721 = vmatprep.mubr.bf16.mxu1 %v13108_v57  ;;  %v491_v15 = vld [vmem:[%s13852_s21 + $0xf9] sm:$0xff]  ;;  %840 = vst [vmem:[#allocation2 + $0x290] sm:$0xf] %v11717_v6  ;;  %842 = vst [vmem:[#allocation2 + $0x2d8] sm:$0xf] %v11719_v22  ;;  %12190 = vmatprep.subr.bf16.mxu0 %v13137_v28  ;;  %v13139_v32 = vld [vmem:[%s18190_s1 + $0x110] sm:$0xff]   ;;  %v11753_v48 = vpack.c.bf16 %v10722_v44, %v10722_v44 }
  0x60   : > { %v683_v19 = vld [vmem:[%s13852_s21 + $0xfa] sm:$0xff]  ;;  %v11688_v21 = vpack.c.bf16 %v491_v15, %v491_v15  ;;  %1034 = vst [vmem:[#allocation2 + $0x2b8] sm:$0xf] %v11750_v14  ;;  %459 = vst [vmem:[#allocation2 + $0x2f4] sm:$0xf] %v11750_v14  ;;  %12294 = vmatprep.subr.bf16.mxu1 %v13138_v31  ;;  %v13140_v33 = vld [vmem:[%s18190_s1 + $0x1b0] sm:$0xff]   ;;  %12191 = vmatpush3.bf16.msra.mxu0 %v13139_v32 }
  0x61   : > { %v11720_v23 = vpack.c.bf16 %v683_v19, %v683_v19  ;;  %v2078_v29 = vld [vmem:[#allocation2 + $0x1f8] sm:$0xff]  ;;  %1036 = vst [vmem:[#allocation2 + $0x300] sm:$0xf] %v11752_v27  ;;  %461 = vst [vmem:[#allocation2 + $0x33c] sm:$0xf] %v11752_v27  ;;  %12295 = vmatpush3.bf16.msra.mxu1 %v13140_v33  ;;  %v684_v37 = vld [vmem:[%s13852_s21 + $0x10a] sm:$0xff] }
  0x62   : > { %v2083_v30 = vld [vmem:[#allocation2 + $0x21c] sm:$0xff]  ;;  %651 = vst [vmem:[#allocation2 + $0x2f8] sm:$0xf] %v11688_v21  ;;  %v493_v36 = vld [vmem:[%s13852_s21 + $0x111] sm:$0xff]  ;;  %652 = vst [vmem:[#allocation2 + $0x31c] sm:$0xf] %v11689_v35  ;;  %v11721_v42 = vpack.c.bf16 %v684_v37, %v684_v37 }
  0x63   : > { %843 = vst [vmem:[#allocation2 + $0x2fc] sm:$0xf] %v11720_v23  ;;  %v685_v38 = vld [vmem:[%s13852_s21 + $0x112] sm:$0xff]  ;;  %v11147_v39 = vcombine.low %v2078_v29, %v2083_v30  ;;  %v11690_v41 = vpack.c.bf16 %v493_v36, %v493_v36  ;;  %v10723_v45 = vld [vmem:[%s13852_s21 + $0x128] sm:$0xff]  ;;  %v13117_v53 = vld [vmem:[#allocation2 + $0x200] ss:$36 sps:$4 sm:$0xff]  }
  0x64   : > { %v11722_v43 = vpack.c.bf16 %v685_v38, %v685_v38  ;;  %v494_v46 = vld [vmem:[%s13852_s21 + $0x121] sm:$0xff]  ;;  %v11754_v49 = vpack.c.bf16 %v10723_v45, %v10723_v45  ;;  %844 = vst [vmem:[#allocation2 + $0x320] sm:$0xf] %v11721_v42  ;;  %v13120_v54 = vld [vmem:[#allocation2 + $0x24c] ss:$36 sps:$4 sm:$0xff]   ;;  %v10724_v61 = vld [vmem:[%s13852_s21 + $0x138] sm:$0xff] }
  0x65   : > { %3561 = vmatmul.mubr.bf16.gmra.mxu0 %v11138_v11  ;;  %v13118_v47 = vld [vmem:[#allocation2 + $0x244] ss:$36 sps:$4 sm:$0xff]   ;;  %v11691_v52 = vpack.c.bf16 %v494_v46, %v494_v46  ;;  %653 = vst [vmem:[#allocation2 + $0x340] sm:$0xf] %v11690_v41  ;;  %1037 = vst [vmem:[#allocation2 + $0x324] sm:$0xf] %v11753_v48  ;;  %v11755_v1 = vpack.c.bf16 %v10724_v61, %v10724_v61 }
  0x66   : > { %3568 = vmatprep.mubr.bf16.mxu0 %v13113_v5  ;;  %3722 = vmatmul.mubr.bf16.gmra.mxu1 %v13110_v12  ;;  %845 = vst [vmem:[#allocation2 + $0x344] sm:$0xf] %v11722_v43  ;;  %1038 = vst [vmem:[#allocation2 + $0x348] sm:$0xf] %v11754_v49  ;;  %v2088_v55 = vld [vmem:[#allocation2 + $0x240] sm:$0xff]  ;;  %v495_v57 = vld [vmem:[%s13852_s21 + $0x129] sm:$0xff] }
  0x67   : > { %3729 = vmatprep.mubr.bf16.mxu1 %v13115_v20  ;;  %462 = vst [vmem:[#allocation2 + $0x360] sm:$0xf] %v11753_v48  ;;  %463 = vst [vmem:[#allocation2 + $0x384] sm:$0xf] %v11754_v49  ;;  %v2093_v56 = vld [vmem:[#allocation2 + $0x264] sm:$0xff]  ;;  %v11692_v58 = vpack.c.bf16 %v495_v57, %v495_v57  ;;  %v2103_v9 = vld [vmem:[#allocation2 + $0x2ac] sm:$0xff] }
  0x68   : > { %654 = vst [vmem:[#allocation2 + $0x364] sm:$0xf] %v11691_v52  ;;  %v686_v59 = vld [vmem:[%s13852_s21 + $0x122] sm:$0xff]  ;;  %v687_v60 = vld [vmem:[%s13852_s21 + $0x12a] sm:$0xff]  ;;  %v11156_v4 = vcombine.low %v2088_v55, %v2093_v56  ;;  %1039 = vst [vmem:[#allocation2 + $0x36c] sm:$0xf] %v11755_v1 }
  0x69   : > { %v11723_v62 = vpack.c.bf16 %v686_v59, %v686_v59  ;;  %v11724_v63 = vpack.c.bf16 %v687_v60, %v687_v60  ;;  %v10725_v0 = vld [vmem:[%s13852_s21 + $0x140] sm:$0xff]  ;;  %655 = vst [vmem:[#allocation2 + $0x388] sm:$0xf] %v11692_v58  ;;  %v13151_v3 = vld [vmem:[%s18190_s1 + $0x148] sm:$0xff]   ;;  %464 = vst [vmem:[#allocation2 + $0x3a8] sm:$0xf] %v11755_v1 }
  0x6a   : > { %v11756_v2 = vpack.c.bf16 %v10725_v0, %v10725_v0  ;;  %v13152_v5 = vld [vmem:[%s18190_s1 + $0x1e8] sm:$0xff]   ;;  %12192 = vmatprep.subr.bf16.mxu0 %v13151_v3  ;;  %v13129_v10 = vld [vmem:[#allocation2 + $0x294] ss:$36 sps:$4 sm:$0xff]   ;;  %v13134_v29 = vld [vmem:[#allocation2 + $0x2dc] ss:$36 sps:$4 sm:$0xff]  }
  0x6b   : > { %846 = vst [vmem:[#allocation2 + $0x368] sm:$0xf] %v11723_v62  ;;  %847 = vst [vmem:[#allocation2 + $0x38c] sm:$0xf] %v11724_v63  ;;  %v13127_v6 = vld [vmem:[#allocation2 + $0x28c] ss:$36 sps:$4 sm:$0xff]   ;;  %12296 = vmatprep.subr.bf16.mxu1 %v13152_v5 }
  0x6c   : > { %1040 = vst [vmem:[#allocation2 + $0x390] sm:$0xf] %v11756_v2  ;;  %465 = vst [vmem:[#allocation2 + $0x3cc] sm:$0xf] %v11756_v2  ;;  %v13122_v7 = vld [vmem:[#allocation2 + $0x248] ss:$36 sps:$4 sm:$0xff]  }
  0x6d   : > { %3569 = vmatmul.mubr.bf16.gmra.mxu0 %v11147_v39  ;;  %v2098_v8 = vld [vmem:[#allocation2 + $0x288] sm:$0xff]  ;;  %v496_v13 = vld [vmem:[%s13852_s21 + $0x139] sm:$0xff]  ;;  %v10726_v22 = vld [vmem:[%s13852_s21 + $0x150] sm:$0xff] }
  0x6e   : > { %3576 = vmatprep.mubr.bf16.mxu0 %v13118_v47  ;;  %3730 = vmatmul.mubr.bf16.gmra.mxu1 %v13117_v53  ;;  %v13153_v11 = vld [vmem:[%s18190_s1 + $0x108] sm:$0xff]   ;;  %v688_v15 = vld [vmem:[%s13852_s21 + $0x13a] sm:$0xff]  ;;  %v11693_v16 = vpack.c.bf16 %v496_v13, %v496_v13  ;;  %v11165_v24 = vcombine.low %v2098_v8, %v2103_v9  ;;  %v13131_v25 = vld [vmem:[#allocation2 + $0x290] ss:$36 sps:$4 sm:$0xff]   ;;  %v11757_v27 = vpack.c.bf16 %v10726_v22, %v10726_v22 }
  0x6f   : > { %3737 = vmatprep.mubr.bf16.mxu1 %v13120_v54  ;;  %v13154_v12 = vld [vmem:[%s18190_s1 + $0x1a8] sm:$0xff]   ;;  %12193 = vmatpush3.bf16.msra.mxu0 %v13153_v11  ;;  %v11725_v20 = vpack.c.bf16 %v688_v15, %v688_v15  ;;  %v10727_v23 = vld [vmem:[%s13852_s21 + $0x158] sm:$0xff]  ;;  %v13160_v30 = vld [vmem:[%s18190_s1 + $0x1e0] sm:$0xff]  }
  0x70   : > { %v497_v14 = vld [vmem:[%s13852_s21 + $0x141] sm:$0xff]  ;;  %12297 = vmatpush3.bf16.msra.mxu1 %v13154_v12  ;;  %v13132_v26 = vld [vmem:[#allocation2 + $0x2d4] ss:$36 sps:$4 sm:$0xff]   ;;  %656 = vst [vmem:[#allocation2 + $0x3ac] sm:$0xf] %v11693_v16  ;;  %v11758_v28 = vpack.c.bf16 %v10727_v23, %v10727_v23  ;;  %v500_v60 = vld [vmem:[%s13852_s21 + $0x169] sm:$0xff] }
  0x71   : > { %v11694_v18 = vpack.c.bf16 %v497_v14, %v497_v14  ;;  %v689_v19 = vld [vmem:[%s13852_s21 + $0x142] sm:$0xff]  ;;  %848 = vst [vmem:[#allocation2 + $0x3b0] sm:$0xf] %v11725_v20  ;;  %1041 = vst [vmem:[#allocation2 + $0x3b4] sm:$0xf] %v11757_v27  ;;  %v498_v31 = vld [vmem:[%s13852_s21 + $0x151] sm:$0xff]  ;;  %12298 = vmatprep.subr.bf16.mxu1 %v13160_v30  ;;  %v11697_v63 = vpack.c.bf16 %v500_v60, %v500_v60 }
  0x72   : > { %v11726_v21 = vpack.c.bf16 %v689_v19, %v689_v19  ;;  %1042 = vst [vmem:[#allocation2 + $0x3d8] sm:$0xf] %v11758_v28  ;;  %466 = vst [vmem:[#allocation2 + $0x3f0] sm:$0xf] %v11757_v27  ;;  %v499_v32 = vld [vmem:[%s13852_s21 + $0x159] sm:$0xff]  ;;  %v2108_v34 = vld [vmem:[#allocation2 + $0x2d0] sm:$0xff]  ;;  %v11695_v36 = vpack.c.bf16 %v498_v31, %v498_v31 }
  0x73   : > { %657 = vst [vmem:[#allocation2 + $0x3d0] sm:$0xf] %v11694_v18  ;;  %467 = vst [vmem:[#allocation2 + $0x414] sm:$0xf] %v11758_v28  ;;  %v690_v33 = vld [vmem:[%s13852_s21 + $0x152] sm:$0xff]  ;;  %v11696_v37 = vpack.c.bf16 %v499_v32, %v499_v32  ;;  %v691_v38 = vld [vmem:[%s13852_s21 + $0x15a] sm:$0xff] }
  0x74   : > { %849 = vst [vmem:[#allocation2 + $0x3d4] sm:$0xf] %v11726_v21  ;;  %v2113_v35 = vld [vmem:[#allocation2 + $0x2f4] sm:$0xff]  ;;  %v11727_v39 = vpack.c.bf16 %v690_v33, %v690_v33  ;;  %v10728_v41 = vld [vmem:[%s13852_s21 + $0x168] sm:$0xff]  ;;  %v11728_v43 = vpack.c.bf16 %v691_v38, %v691_v38  ;;  %v13165_v46 = vld [vmem:[%s18190_s1 + $0x1a0] sm:$0xff]  }
  0x75   : > { %3577 = vmatmul.mubr.bf16.gmra.mxu0 %v11156_v4  ;;  %v10729_v42 = vld [vmem:[%s13852_s21 + $0x170] sm:$0xff]  ;;  %v11759_v44 = vpack.c.bf16 %v10728_v41, %v10728_v41  ;;  %658 = vst [vmem:[#allocation2 + $0x3f4] sm:$0xf] %v11695_v36  ;;  %659 = vst [vmem:[#allocation2 + $0x418] sm:$0xf] %v11696_v37  ;;  %v13167_v47 = vld [vmem:[%s18190_s1 + $0x140] sm:$0xff]   ;;  %12299 = vmatpush3.bf16.msra.mxu1 %v13165_v46  ;;  %v11174_v49 = vcombine.low %v2108_v34, %v2113_v35 }
  0x76   : > { %3584 = vmatprep.mubr.bf16.mxu0 %v13127_v6  ;;  %3738 = vmatmul.mubr.bf16.gmra.mxu1 %v13122_v7  ;;  %v11760_v45 = vpack.c.bf16 %v10729_v42, %v10729_v42  ;;  %850 = vst [vmem:[#allocation2 + $0x3f8] sm:$0xf] %v11727_v39  ;;  %851 = vst [vmem:[#allocation2 + $0x41c] sm:$0xf] %v11728_v43  ;;  %v13168_v48 = vld [vmem:[%s18190_s1 + $0x100] sm:$0xff]   ;;  %v13169_v53 = vld [vmem:[%s18190_s1 + $0x1d8] sm:$0xff]  }
  0x77   : > { %3745 = vmatprep.mubr.bf16.mxu1 %v13129_v10  ;;  %1043 = vst [vmem:[#allocation2 + $0x3fc] sm:$0xf] %v11759_v44  ;;  %468 = vst [vmem:[#allocation2 + $0x438] sm:$0xf] %v11759_v44  ;;  %v13136_v52 = vld [vmem:[#allocation2 + $0x2d8] ss:$36 sps:$4 sm:$0xff]   ;;  %12194 = vmatprep.subr.bf16.mxu0 %v13167_v47 }
  0x78   : > { %1044 = vst [vmem:[#allocation2 + $0x420] sm:$0xf] %v11760_v45  ;;  %469 = vst [vmem:[#allocation2 + $0x45c] sm:$0xf] %v11760_v45  ;;  %v13141_v54 = vld [vmem:[#allocation2 + $0x31c] ss:$36 sps:$4 sm:$0xff]   ;;  %12195 = vmatpush3.bf16.msra.mxu0 %v13168_v48  ;;  %12300 = vmatprep.subr.bf16.mxu1 %v13169_v53 }
  0x79   : > { %v13143_v55 = vld [vmem:[#allocation2 + $0x324] ss:$36 sps:$4 sm:$0xff]   ;;  %v13170_v56 = vld [vmem:[%s18190_s1 + $0x198] sm:$0xff]   ;;  %v13171_v59 = vld [vmem:[%s18190_s1 + $0x1d0] sm:$0xff]   ;;  %660 = vst [vmem:[#allocation2 + $0x43c] sm:$0xf] %v11697_v63 }
  0x7a   : > { %v2118_v57 = vld [vmem:[#allocation2 + $0x318] sm:$0xff]  ;;  %12301 = vmatpush3.bf16.msra.mxu1 %v13170_v56  ;;  %v13146_v61 = vld [vmem:[#allocation2 + $0x364] ss:$36 sps:$4 sm:$0xff]   ;;  %v13148_v9 = vld [vmem:[#allocation2 + $0x36c] ss:$36 sps:$4 sm:$0xff]  }
  0x7b   : > { %v2123_v58 = vld [vmem:[#allocation2 + $0x33c] sm:$0xff]  ;;  %v501_v62 = vld [vmem:[%s13852_s21 + $0x171] sm:$0xff]  ;;  %12302 = vmatprep.subr.bf16.mxu1 %v13171_v59  ;;  %v10731_v8 = vld [vmem:[%s13852_s21 + $0x188] sm:$0xff] }
  0x7c   : > { %v692_v0 = vld [vmem:[%s13852_s21 + $0x16a] sm:$0xff]  ;;  %v693_v1 = vld [vmem:[%s13852_s21 + $0x172] sm:$0xff]  ;;  %v11183_v2 = vcombine.low %v2118_v57, %v2123_v58  ;;  %v13145_v3 = vld [vmem:[#allocation2 + $0x320] ss:$36 sps:$4 sm:$0xff]   ;;  %v11698_v4 = vpack.c.bf16 %v501_v62, %v501_v62  ;;  %v11762_v11 = vpack.c.bf16 %v10731_v8, %v10731_v8 }
  0x7d   : > { %3585 = vmatmul.mubr.bf16.gmra.mxu0 %v11165_v24  ;;  %v11729_v5 = vpack.c.bf16 %v692_v0, %v692_v0  ;;  %v11730_v6 = vpack.c.bf16 %v693_v1, %v693_v1  ;;  %v10730_v7 = vld [vmem:[%s13852_s21 + $0x180] sm:$0xff]  ;;  %v13176_v12 = vld [vmem:[%s18190_s1 + $0x190] sm:$0xff]   ;;  %v13178_v13 = vld [vmem:[%s18190_s1 + $0x1c8] sm:$0xff]  }
  0x7e   : > { %3592 = vmatprep.mubr.bf16.mxu0 %v13132_v26  ;;  %3746 = vmatmul.mubr.bf16.gmra.mxu1 %v13131_v25  ;;  %v11761_v10 = vpack.c.bf16 %v10730_v7, %v10730_v7  ;;  %661 = vst [vmem:[#allocation2 + $0x460] sm:$0xf] %v11698_v4  ;;  %v2128_v14 = vld [vmem:[#allocation2 + $0x360] sm:$0xff]  ;;  %1046 = vst [vmem:[#allocation2 + $0x468] sm:$0xf] %v11762_v11  ;;  %v13179_v16 = vld [vmem:[%s18190_s1 + $0x188] sm:$0xff]  }
  0x7f   : > { %3753 = vmatprep.mubr.bf16.mxu1 %v13134_v29  ;;  %852 = vst [vmem:[#allocation2 + $0x440] sm:$0xf] %v11729_v5  ;;  %853 = vst [vmem:[#allocation2 + $0x464] sm:$0xf] %v11730_v6  ;;  %v2133_v15 = vld [vmem:[#allocation2 + $0x384] sm:$0xff]  ;;  %12303 = vmatpush3.bf16.msra.mxu1 %v13176_v12  ;;  %v10764_v19 = vld [vmem:[%s13852_s21 + $0x19] sm:$0xff] }
  0x80   : > { %1045 = vst [vmem:[#allocation2 + $0x444] sm:$0xf] %v11761_v10  ;;  %12304 = vmatprep.subr.bf16.mxu1 %v13178_v13  ;;  %v13180_v18 = vld [vmem:[%s18190_s1 + $0x1c0] sm:$0xff]   ;;  %v11763_v21 = vpack.c.bf16 %v10764_v19, %v10764_v19  ;;  %v14093_v28 = vld [vmem:[%s18190_s1 + $0x238] sm:$0xff]   ;;  %v11192_v29 = vcombine.low %v2128_v14, %v2133_v15  ;;  %v10892_v30 = vld [vmem:[%s13852_s21 + $0x30] sm:$0xff] }
  0x81   : > { %v10765_v20 = vld [vmem:[%s13852_s21 + $0x21] sm:$0xff]  ;;  %v10893_v31 = vld [vmem:[%s13852_s21 + $0x38] sm:$0xff]  ;;  %v13155_v32 = vld [vmem:[#allocation2 + $0x3ac] ss:$36 sps:$4 sm:$0xff]   ;;  %12900 = vmatprep.subr.bf16.mxu0 %v14093_v28  ;;  %v11827_v33 = vpack.c.bf16 %v10892_v30, %v10892_v30 }
  0x82   : > { %v10828_v22 = vld [vmem:[%s13852_s21 + $0x1a] sm:$0xff]  ;;  %v10829_v23 = vld [vmem:[%s13852_s21 + $0x22] sm:$0xff]  ;;  %v11764_v24 = vpack.c.bf16 %v10765_v20, %v10765_v20  ;;  %1207 = vst [vmem:[#allocation2 + $0x10] sm:$0xf] %v11763_v21  ;;  %v11828_v34 = vpack.c.bf16 %v10893_v31, %v10893_v31  ;;  %v10956_v35 = vld [vmem:[%s13852_s21 + $0x31] sm:$0xff] }
  0x83   : > { %v11795_v25 = vpack.c.bf16 %v10828_v22, %v10828_v22  ;;  %v11796_v26 = vpack.c.bf16 %v10829_v23, %v10829_v23  ;;  %v13183_v27 = vld [vmem:[%s18190_s1 + $0x180] sm:$0xff]   ;;  %12305 = vmatpush3.bf16.msra.mxu1 %v13179_v16  ;;  %v13150_v36 = vld [vmem:[#allocation2 + $0x368] ss:$36 sps:$4 sm:$0xff]   ;;  %v11859_v37 = vpack.c.bf16 %v10956_v35, %v10956_v35  ;;  %v13157_v41 = vld [vmem:[#allocation2 + $0x3b4] ss:$36 sps:$4 sm:$0xff]  }
  0x84   : > { %12306 = vmatprep.subr.bf16.mxu1 %v13180_v18  ;;  %1208 = vst [vmem:[#allocation2 + $0x34] sm:$0xf] %v11764_v24  ;;  %v14099_v38 = vld [vmem:[#allocation2 + $0x3a8] sm:$0xff]  ;;  %1592 = vst [vmem:[#allocation2 + $0x18] sm:$0xf] %v11827_v33  ;;  %v10957_v42 = vld [vmem:[%s13852_s21 + $0x39] sm:$0xff] }
  0x85   : > { %3593 = vmatmul.mubr.bf16.gmra.mxu0 %v11174_v49  ;;  %1399 = vst [vmem:[#allocation2 + $0x14] sm:$0xf] %v11795_v25  ;;  %1400 = vst [vmem:[#allocation2 + $0x38] sm:$0xf] %v11796_v26  ;;  %v2143_v39 = vld [vmem:[#allocation2 + $0x3cc] sm:$0xff]  ;;  %v11860_v44 = vpack.c.bf16 %v10957_v42, %v10957_v42  ;;  %v10831_v45 = vld [vmem:[%s13852_s21 + $0x3a] sm:$0xff] }
  0x86   : > { %3600 = vmatprep.mubr.bf16.mxu0 %v13141_v54  ;;  %3754 = vmatmul.mubr.bf16.gmra.mxu1 %v13136_v52  ;;  %1593 = vst [vmem:[#allocation2 + $0x3c] sm:$0xf] %v11828_v34  ;;  %v10830_v43 = vld [vmem:[%s13852_s21 + $0x32] sm:$0xff]  ;;  %1784 = vst [vmem:[#allocation2 + $0x1c] sm:$0xf] %v11859_v37  ;;  %v10894_v47 = vld [vmem:[%s13852_s21 + $0x48] sm:$0xff]  ;;  %v11798_v49 = vpack.c.bf16 %v10831_v45, %v10831_v45  ;;  %v11201_v62 = vcombine.low %v14099_v38, %v2143_v39 }
  0x87   : > { %3761 = vmatprep.mubr.bf16.mxu1 %v13143_v55  ;;  %12307 = vmatpush3.bf16.msra.mxu1 %v13183_v27  ;;  %1209 = vst [vmem:[#allocation2 + $0x58] sm:$0xf] %v11859_v37  ;;  %v11797_v46 = vpack.c.bf16 %v10830_v43, %v10830_v43  ;;  %v10895_v48 = vld [vmem:[%s13852_s21 + $0x50] sm:$0xff]  ;;  %v11829_v52 = vpack.c.bf16 %v10894_v47, %v10894_v47  ;;  %1785 = vst [vmem:[#allocation2 + $0x40] sm:$0xf] %v11860_v44  ;;  %v10896_v1 = vld [vmem:[%s13852_s21 + $0x60] sm:$0xff] }
  0x88   : > { %v11830_v53 = vpack.c.bf16 %v10895_v48, %v10895_v48  ;;  %v10958_v54 = vld [vmem:[%s13852_s21 + $0x49] sm:$0xff]  ;;  %v10959_v55 = vld [vmem:[%s13852_s21 + $0x51] sm:$0xff]  ;;  %1210 = vst [vmem:[#allocation2 + $0x7c] sm:$0xf] %v11860_v44  ;;  %1402 = vst [vmem:[#allocation2 + $0x80] sm:$0xf] %v11798_v49  ;;  %v11831_v4 = vpack.c.bf16 %v10896_v1, %v10896_v1 }
  0x89   : > { %v10832_v56 = vld [vmem:[%s13852_s21 + $0x4a] sm:$0xff]  ;;  %1401 = vst [vmem:[#allocation2 + $0x5c] sm:$0xf] %v11797_v46  ;;  %v11861_v57 = vpack.c.bf16 %v10958_v54, %v10958_v54  ;;  %v11862_v58 = vpack.c.bf16 %v10959_v55, %v10959_v55  ;;  %v10833_v59 = vld [vmem:[%s13852_s21 + $0x52] sm:$0xff]  ;;  %1594 = vst [vmem:[#allocation2 + $0x60] sm:$0xf] %v11829_v52 }
  0x8a   : > { %v11799_v60 = vpack.c.bf16 %v10832_v56, %v10832_v56  ;;  %1595 = vst [vmem:[#allocation2 + $0x84] sm:$0xf] %v11830_v53  ;;  %v13159_v63 = vld [vmem:[#allocation2 + $0x3b0] ss:$36 sps:$4 sm:$0xff]   ;;  %v10960_v5 = vld [vmem:[%s13852_s21 + $0x61] sm:$0xff]  ;;  %v10898_v12 = vld [vmem:[%s13852_s21 + $0x78] sm:$0xff] }
  0x8b   : > { %v13161_v0 = vld [vmem:[#allocation2 + $0x3f4] ss:$36 sps:$4 sm:$0xff]   ;;  %1786 = vst [vmem:[#allocation2 + $0x64] sm:$0xf] %v11861_v57  ;;  %1787 = vst [vmem:[#allocation2 + $0x88] sm:$0xf] %v11862_v58  ;;  %v11863_v8 = vpack.c.bf16 %v10960_v5, %v10960_v5  ;;  %v11833_v16 = vpack.c.bf16 %v10898_v12, %v10898_v12 }
  0x8c   : > { %1211 = vst [vmem:[#allocation2 + $0xa0] sm:$0xf] %v11861_v57  ;;  %1212 = vst [vmem:[#allocation2 + $0xc4] sm:$0xf] %v11862_v58  ;;  %v10961_v6 = vld [vmem:[%s13852_s21 + $0x69] sm:$0xff]  ;;  %v10899_v15 = vld [vmem:[%s13852_s21 + $0x80] sm:$0xff] }
  0x8d   : > { %3601 = vmatmul.mubr.bf16.gmra.mxu0 %v11183_v2  ;;  %1403 = vst [vmem:[#allocation2 + $0xa4] sm:$0xf] %v11799_v60  ;;  %v13163_v2 = vld [vmem:[#allocation2 + $0x3fc] ss:$36 sps:$4 sm:$0xff]   ;;  %v10835_v11 = vld [vmem:[%s13852_s21 + $0x6a] sm:$0xff]  ;;  %v11834_v19 = vpack.c.bf16 %v10899_v15, %v10899_v15  ;;  %v2153_v25 = vld [vmem:[#allocation2 + $0x414] sm:$0xff] }
  0x8e   : > { %3608 = vmatprep.mubr.bf16.mxu0 %v13146_v61  ;;  %3762 = vmatmul.mubr.bf16.gmra.mxu1 %v13145_v3  ;;  %v11800_v61 = vpack.c.bf16 %v10833_v59, %v10833_v59  ;;  %v10897_v3 = vld [vmem:[%s13852_s21 + $0x68] sm:$0xff]  ;;  %1596 = vst [vmem:[#allocation2 + $0xa8] sm:$0xf] %v11831_v4  ;;  %v11802_v14 = vpack.c.bf16 %v10835_v11, %v10835_v11  ;;  %v10962_v18 = vld [vmem:[%s13852_s21 + $0x79] sm:$0xff]  ;;  %1788 = vst [vmem:[#allocation2 + $0xac] sm:$0xf] %v11863_v8 }
  0x8f   : > { %3769 = vmatprep.mubr.bf16.mxu1 %v13148_v9  ;;  %v11832_v7 = vpack.c.bf16 %v10897_v3, %v10897_v3  ;;  %v11864_v9 = vpack.c.bf16 %v10961_v6, %v10961_v6  ;;  %v10834_v10 = vld [vmem:[%s13852_s21 + $0x62] sm:$0xff]  ;;  %1213 = vst [vmem:[#allocation2 + $0xe8] sm:$0xf] %v11863_v8  ;;  %v11865_v21 = vpack.c.bf16 %v10962_v18, %v10962_v18  ;;  %v10836_v22 = vld [vmem:[%s13852_s21 + $0x7a] sm:$0xff]  ;;  %v2148_v24 = vld [vmem:[#allocation2 + $0x3f0] sm:$0xff] }
  0x90   : > { %1404 = vst [vmem:[#allocation2 + $0xc8] sm:$0xf] %v11800_v61  ;;  %v11801_v13 = vpack.c.bf16 %v10834_v10, %v10834_v10  ;;  %v10963_v20 = vld [vmem:[%s13852_s21 + $0x81] sm:$0xff]  ;;  %1406 = vst [vmem:[#allocation2 + $0x110] sm:$0xf] %v11802_v14  ;;  %v11803_v27 = vpack.c.bf16 %v10836_v22, %v10836_v22  ;;  %v11210_v30 = vcombine.low %v2148_v24, %v2153_v25  ;;  %v2158_v34 = vld [vmem:[#allocation2 + $0x438] sm:$0xff] }
  0x91   : > { %1597 = vst [vmem:[#allocation2 + $0xcc] sm:$0xf] %v11832_v7  ;;  %1789 = vst [vmem:[#allocation2 + $0xd0] sm:$0xf] %v11864_v9  ;;  %v10837_v23 = vld [vmem:[%s13852_s21 + $0x82] sm:$0xff]  ;;  %v11866_v26 = vpack.c.bf16 %v10963_v20, %v10963_v20  ;;  %v10900_v39 = vld [vmem:[%s13852_s21 + $0x90] sm:$0xff] }
  0x92   : > { %1214 = vst [vmem:[#allocation2 + $0x10c] sm:$0xf] %v11864_v9  ;;  %1405 = vst [vmem:[#allocation2 + $0xec] sm:$0xf] %v11801_v13  ;;  %v13172_v31 = vld [vmem:[#allocation2 + $0x43c] ss:$36 sps:$4 sm:$0xff]   ;;  %v11835_v43 = vpack.c.bf16 %v10900_v39, %v10900_v39 }
  0x93   : > { %1598 = vst [vmem:[#allocation2 + $0xf0] sm:$0xf] %v11833_v16  ;;  %1599 = vst [vmem:[#allocation2 + $0x114] sm:$0xf] %v11834_v19  ;;  %v13174_v33 = vld [vmem:[#allocation2 + $0x444] ss:$36 sps:$4 sm:$0xff]  }
  0x94   : > { %1790 = vst [vmem:[#allocation2 + $0xf4] sm:$0xf] %v11865_v21  ;;  %1215 = vst [vmem:[#allocation2 + $0x130] sm:$0xf] %v11865_v21  ;;  %v2163_v35 = vld [vmem:[#allocation2 + $0x45c] sm:$0xff]  ;;  %v10964_v45 = vld [vmem:[%s13852_s21 + $0x91] sm:$0xff] }
  0x95   : > { %3609 = vmatmul.mubr.bf16.gmra.mxu0 %v11192_v29  ;;  %v11804_v29 = vpack.c.bf16 %v10837_v23, %v10837_v23  ;;  %1791 = vst [vmem:[#allocation2 + $0x118] sm:$0xf] %v11866_v26  ;;  %1216 = vst [vmem:[#allocation2 + $0x154] sm:$0xf] %v11866_v26  ;;  %v13177_v37 = vld [vmem:[#allocation2 + $0x440] ss:$36 sps:$4 sm:$0xff]   ;;  %v11867_v48 = vpack.c.bf16 %v10964_v45, %v10964_v45 }
  0x96   : > { %3616 = vmatprep.mubr.bf16.mxu0 %v13155_v32  ;;  %3770 = vmatmul.mubr.bf16.gmra.mxu1 %v13150_v36  ;;  %1407 = vst [vmem:[#allocation2 + $0x134] sm:$0xf] %v11803_v27  ;;  %v13166_v32 = vld [vmem:[#allocation2 + $0x3f8] ss:$36 sps:$4 sm:$0xff]   ;;  %v11219_v36 = vcombine.low %v2158_v34, %v2163_v35  ;;  %v10902_v54 = vld [vmem:[%s13852_s21 + $0xa8] sm:$0xff]  ;;  %v10903_v55 = vld [vmem:[%s13852_s21 + $0xb0] sm:$0xff] }
  0x97   : > { %3777 = vmatprep.mubr.bf16.mxu1 %v13157_v41  ;;  %1408 = vst [vmem:[#allocation2 + $0x158] sm:$0xf] %v11804_v29  ;;  %v13181_v38 = vld [vmem:[#allocation2 + $0x14] ss:$36 sps:$4 sm:$0xff]   ;;  %v13186_v42 = vld [vmem:[#allocation2 + $0x1c] ss:$36 sps:$4 sm:$0xff]   ;;  %v11837_v57 = vpack.c.bf16 %v10902_v54, %v10902_v54  ;;  %v11838_v58 = vpack.c.bf16 %v10903_v55, %v10903_v55 }
  0x98   : > { %v10901_v41 = vld [vmem:[%s13852_s21 + $0x98] sm:$0xff]  ;;  %1600 = vst [vmem:[#allocation2 + $0x138] sm:$0xf] %v11835_v43  ;;  %v10966_v59 = vld [vmem:[%s13852_s21 + $0xa9] sm:$0xff]  ;;  %1792 = vst [vmem:[#allocation2 + $0x13c] sm:$0xf] %v11867_v48 }
  0x99   : > { %v11836_v44 = vpack.c.bf16 %v10901_v41, %v10901_v41  ;;  %v10965_v46 = vld [vmem:[%s13852_s21 + $0x99] sm:$0xff]  ;;  %v10967_v60 = vld [vmem:[%s13852_s21 + $0xb1] sm:$0xff]  ;;  %1217 = vst [vmem:[#allocation2 + $0x178] sm:$0xf] %v11867_v48  ;;  %1602 = vst [vmem:[#allocation2 + $0x180] sm:$0xf] %v11837_v57 }
  0x9a   : > { %v10838_v47 = vld [vmem:[%s13852_s21 + $0x92] sm:$0xff]  ;;  %v11868_v49 = vpack.c.bf16 %v10965_v46, %v10965_v46  ;;  %v10839_v52 = vld [vmem:[%s13852_s21 + $0x9a] sm:$0xff]  ;;  %v10840_v61 = vld [vmem:[%s13852_s21 + $0xaa] sm:$0xff]  ;;  %1603 = vst [vmem:[#allocation2 + $0x1a4] sm:$0xf] %v11838_v58 }
  0x9b   : > { %v11805_v53 = vpack.c.bf16 %v10838_v47, %v10838_v47  ;;  %1601 = vst [vmem:[#allocation2 + $0x15c] sm:$0xf] %v11836_v44  ;;  %v11806_v56 = vpack.c.bf16 %v10839_v52, %v10839_v52  ;;  %v11807_v1 = vpack.c.bf16 %v10840_v61, %v10840_v61  ;;  %v10904_v3 = vld [vmem:[%s13852_s21 + $0xc0] sm:$0xff]  ;;  %v10905_v4 = vld [vmem:[%s13852_s21 + $0xc8] sm:$0xff]  ;;  %v13184_v5 = vld [vmem:[#allocation2 + $0x10] ss:$36 sps:$4 sm:$0xff]  }
  0x9c   : > { %1793 = vst [vmem:[#allocation2 + $0x160] sm:$0xf] %v11868_v49  ;;  %1218 = vst [vmem:[#allocation2 + $0x19c] sm:$0xf] %v11868_v49  ;;  %v11839_v6 = vpack.c.bf16 %v10904_v3, %v10904_v3  ;;  %v11840_v7 = vpack.c.bf16 %v10905_v4, %v10905_v4  ;;  %v10968_v8 = vld [vmem:[%s13852_s21 + $0xc1] sm:$0xff]  ;;  %v10969_v9 = vld [vmem:[%s13852_s21 + $0xc9] sm:$0xff] }
  0x9d   : > { %3617 = vmatmul.mubr.bf16.gmra.mxu0 %v11201_v62  ;;  %1409 = vst [vmem:[#allocation2 + $0x17c] sm:$0xf] %v11805_v53  ;;  %v11869_v62 = vpack.c.bf16 %v10966_v59, %v10966_v59  ;;  %1410 = vst [vmem:[#allocation2 + $0x1a0] sm:$0xf] %v11806_v56  ;;  %v10842_v10 = vld [vmem:[%s13852_s21 + $0xc2] sm:$0xff]  ;;  %v11871_v12 = vpack.c.bf16 %v10968_v8, %v10968_v8  ;;  %v11872_v13 = vpack.c.bf16 %v10969_v9, %v10969_v9  ;;  %v10843_v14 = vld [vmem:[%s13852_s21 + $0xca] sm:$0xff] }
  0x9e   : > { %3624 = vmatprep.mubr.bf16.mxu0 %v13161_v0  ;;  %3778 = vmatmul.mubr.bf16.gmra.mxu1 %v13159_v63  ;;  %v11870_v63 = vpack.c.bf16 %v10967_v60, %v10967_v60  ;;  %v10841_v0 = vld [vmem:[%s13852_s21 + $0xb2] sm:$0xff]  ;;  %1411 = vst [vmem:[#allocation2 + $0x1c4] sm:$0xf] %v11807_v1  ;;  %v13189_v11 = vld [vmem:[#allocation2 + $0x5c] ss:$36 sps:$4 sm:$0xff]   ;;  %v11809_v15 = vpack.c.bf16 %v10842_v10, %v10842_v10  ;;  %v10910_v57 = vld [vmem:[%s13852_s21 + $0x108] sm:$0xff] }
  0x9f   : > { %3785 = vmatprep.mubr.bf16.mxu1 %v13163_v2  ;;  %v11808_v2 = vpack.c.bf16 %v10841_v0, %v10841_v0  ;;  %1794 = vst [vmem:[#allocation2 + $0x184] sm:$0xf] %v11869_v62  ;;  %1219 = vst [vmem:[#allocation2 + $0x1c0] sm:$0xf] %v11869_v62  ;;  %v10906_v16 = vld [vmem:[%s13852_s21 + $0xd8] sm:$0xff]  ;;  %v10907_v18 = vld [vmem:[%s13852_s21 + $0xe0] sm:$0xff]  ;;  %v11810_v20 = vpack.c.bf16 %v10843_v14, %v10843_v14  ;;  %v11845_v61 = vpack.c.bf16 %v10910_v57, %v10910_v57 }
  0xa0   : > { %1795 = vst [vmem:[#allocation2 + $0x1a8] sm:$0xf] %v11870_v63  ;;  %1220 = vst [vmem:[#allocation2 + $0x1e4] sm:$0xf] %v11870_v63  ;;  %v13198_v19 = vld [vmem:[%s18190_s1 + $0x230] sm:$0xff]   ;;  %v11841_v21 = vpack.c.bf16 %v10906_v16, %v10906_v16  ;;  %v11842_v22 = vpack.c.bf16 %v10907_v18, %v10907_v18  ;;  %v10970_v23 = vld [vmem:[%s13852_s21 + $0xd9] sm:$0xff] }
  0xa1   : > { %1412 = vst [vmem:[#allocation2 + $0x1e8] sm:$0xf] %v11808_v2  ;;  %1604 = vst [vmem:[#allocation2 + $0x1c8] sm:$0xf] %v11839_v6  ;;  %v10971_v24 = vld [vmem:[%s13852_s21 + $0xe1] sm:$0xff]  ;;  %v11873_v26 = vpack.c.bf16 %v10970_v23, %v10970_v23  ;;  %v10909_v34 = vld [vmem:[%s13852_s21 + $0xf8] sm:$0xff] }
  0xa2   : > { %1605 = vst [vmem:[#allocation2 + $0x1ec] sm:$0xf] %v11840_v7  ;;  %v10844_v25 = vld [vmem:[%s13852_s21 + $0xda] sm:$0xff]  ;;  %1796 = vst [vmem:[#allocation2 + $0x1cc] sm:$0xf] %v11871_v12  ;;  %v11874_v27 = vpack.c.bf16 %v10971_v24, %v10971_v24  ;;  %v10845_v29 = vld [vmem:[%s13852_s21 + $0xe2] sm:$0xff] }
  0xa3   : > { %1797 = vst [vmem:[#allocation2 + $0x1f0] sm:$0xf] %v11872_v13  ;;  %1221 = vst [vmem:[#allocation2 + $0x208] sm:$0xf] %v11871_v12  ;;  %v13192_v35 = vld [vmem:[#allocation2 + $0x64] ss:$36 sps:$4 sm:$0xff]  }
  0xa4   : > { %1222 = vst [vmem:[#allocation2 + $0x22c] sm:$0xf] %v11872_v13  ;;  %1413 = vst [vmem:[#allocation2 + $0x20c] sm:$0xf] %v11809_v15  ;;  %v13191_v39 = vld [vmem:[#allocation2 + $0x58] ss:$36 sps:$4 sm:$0xff]  }
  0xa5   : > { %3625 = vmatmul.mubr.bf16.gmra.mxu0 %v11210_v30  ;;  %v11811_v30 = vpack.c.bf16 %v10844_v25, %v10844_v25  ;;  %1414 = vst [vmem:[#allocation2 + $0x230] sm:$0xf] %v11810_v20  ;;  %1606 = vst [vmem:[#allocation2 + $0x210] sm:$0xf] %v11841_v21  ;;  %v13195_v41 = vld [vmem:[#allocation2 + $0xa4] ss:$36 sps:$4 sm:$0xff]  }
  0xa6   : > { %3632 = vmatprep.mubr.bf16.mxu0 %v13172_v31  ;;  %3786 = vmatmul.mubr.bf16.gmra.mxu1 %v13166_v32  ;;  %v13188_v31 = vld [vmem:[#allocation2 + $0x18] ss:$36 sps:$4 sm:$0xff]   ;;  %1607 = vst [vmem:[#allocation2 + $0x234] sm:$0xf] %v11842_v22  ;;  %v11812_v32 = vpack.c.bf16 %v10845_v29, %v10845_v29  ;;  %1798 = vst [vmem:[#allocation2 + $0x214] sm:$0xf] %v11873_v26 }
  0xa7   : > { %3793 = vmatprep.mubr.bf16.mxu1 %v13174_v33  ;;  %v10908_v33 = vld [vmem:[%s13852_s21 + $0xf0] sm:$0xff]  ;;  %1799 = vst [vmem:[#allocation2 + $0x238] sm:$0xf] %v11874_v27  ;;  %1223 = vst [vmem:[#allocation2 + $0x250] sm:$0xf] %v11873_v26  ;;  %v14162_v44 = vld [vmem:[%s18190_s1 + $0x218] sm:$0xff]  }
  0xa8   : > { %1224 = vst [vmem:[#allocation2 + $0x274] sm:$0xf] %v11874_v27  ;;  %1415 = vst [vmem:[#allocation2 + $0x254] sm:$0xf] %v11811_v30  ;;  %v13199_v43 = vld [vmem:[#allocation2 + $0xac] ss:$36 sps:$4 sm:$0xff]  }
  0xa9   : > { %1416 = vst [vmem:[#allocation2 + $0x278] sm:$0xf] %v11812_v32  ;;  %v10972_v45 = vld [vmem:[%s13852_s21 + $0xf1] sm:$0xff]  ;;  %v13197_v46 = vld [vmem:[#allocation2 + $0xa0] ss:$36 sps:$4 sm:$0xff]   ;;  %v10974_v59 = vld [vmem:[%s13852_s21 + $0x109] sm:$0xff] }
  0xaa   : > { %v10973_v47 = vld [vmem:[%s13852_s21 + $0xf9] sm:$0xff]  ;;  %v11875_v48 = vpack.c.bf16 %v10972_v45, %v10972_v45  ;;  %v13202_v53 = vld [vmem:[#allocation2 + $0xec] ss:$36 sps:$4 sm:$0xff]   ;;  %v11877_v0 = vpack.c.bf16 %v10974_v59, %v10974_v59  ;;  %1610 = vst [vmem:[#allocation2 + $0x2a0] sm:$0xf] %v11845_v61  ;;  %v10976_v10 = vld [vmem:[%s13852_s21 + $0x121] sm:$0xff] }
  0xab   : > { %v10846_v49 = vld [vmem:[%s13852_s21 + $0xf2] sm:$0xff]  ;;  %v10847_v52 = vld [vmem:[%s13852_s21 + $0xfa] sm:$0xff]  ;;  %v11876_v54 = vpack.c.bf16 %v10973_v47, %v10973_v47  ;;  %v13201_v60 = vld [vmem:[#allocation2 + $0xa8] ss:$36 sps:$4 sm:$0xff]   ;;  %v11879_v14 = vpack.c.bf16 %v10976_v10, %v10976_v10 }
  0xac   : > { %v11813_v55 = vpack.c.bf16 %v10846_v49, %v10846_v49  ;;  %v11814_v56 = vpack.c.bf16 %v10847_v52, %v10847_v52  ;;  %v10911_v58 = vld [vmem:[%s13852_s21 + $0x110] sm:$0xff]  ;;  %1800 = vst [vmem:[#allocation2 + $0x25c] sm:$0xf] %v11875_v48  ;;  %1225 = vst [vmem:[#allocation2 + $0x298] sm:$0xf] %v11875_v48  ;;  %v10912_v8 = vld [vmem:[%s13852_s21 + $0x120] sm:$0xff] }
  0xad   : > { %3633 = vmatmul.mubr.bf16.gmra.mxu0 %v11219_v36  ;;  %v11843_v36 = vpack.c.bf16 %v10908_v33, %v10908_v33  ;;  %v11846_v62 = vpack.c.bf16 %v10911_v58, %v10911_v58  ;;  %v10975_v63 = vld [vmem:[%s13852_s21 + $0x111] sm:$0xff]  ;;  %1801 = vst [vmem:[#allocation2 + $0x280] sm:$0xf] %v11876_v54  ;;  %1226 = vst [vmem:[#allocation2 + $0x2bc] sm:$0xf] %v11876_v54  ;;  %v10913_v9 = vld [vmem:[%s13852_s21 + $0x128] sm:$0xff] }
  0xae   : > { %3834 = vmatprep.mubr.bf16.mxu0 %v13181_v38  ;;  %3794 = vmatmul.mubr.bf16.gmra.mxu1 %v13177_v37  ;;  %v11844_v37 = vpack.c.bf16 %v10909_v34, %v10909_v34  ;;  %v13211_v38 = vld [vmem:[%s18190_s1 + $0x228] sm:$0xff]   ;;  %v10849_v2 = vld [vmem:[%s13852_s21 + $0x112] sm:$0xff]  ;;  %1417 = vst [vmem:[#allocation2 + $0x29c] sm:$0xf] %v11813_v55  ;;  %1418 = vst [vmem:[#allocation2 + $0x2c0] sm:$0xf] %v11814_v56  ;;  %v11878_v4 = vpack.c.bf16 %v10975_v63, %v10975_v63 }
  0xaf   : > { %3995 = vmatprep.mubr.bf16.mxu1 %v13186_v42  ;;  %1608 = vst [vmem:[#allocation2 + $0x258] sm:$0xf] %v11843_v36  ;;  %v13194_v42 = vld [vmem:[#allocation2 + $0x60] ss:$36 sps:$4 sm:$0xff]   ;;  %v10848_v1 = vld [vmem:[%s13852_s21 + $0x10a] sm:$0xff]  ;;  %v11816_v6 = vpack.c.bf16 %v10849_v2, %v10849_v2  ;;  %v11848_v12 = vpack.c.bf16 %v10913_v9, %v10913_v9  ;;  %v10914_v21 = vld [vmem:[%s13852_s21 + $0x138] sm:$0xff] }
  0xb0   : > { %1609 = vst [vmem:[#allocation2 + $0x27c] sm:$0xf] %v11844_v37  ;;  %v13205_v3 = vld [vmem:[#allocation2 + $0xf4] ss:$36 sps:$4 sm:$0xff]   ;;  %1611 = vst [vmem:[#allocation2 + $0x2c4] sm:$0xf] %v11846_v62  ;;  %v11849_v24 = vpack.c.bf16 %v10914_v21, %v10914_v21 }
  0xb1   : > { %v14177_v7 = vld [vmem:[%s18190_s1 + $0x210] sm:$0xff]   ;;  %1802 = vst [vmem:[#allocation2 + $0x2a4] sm:$0xf] %v11877_v0  ;;  %1227 = vst [vmem:[#allocation2 + $0x2e0] sm:$0xf] %v11877_v0  ;;  %v10850_v15 = vld [vmem:[%s13852_s21 + $0x122] sm:$0xff] }
  0xb2   : > { %1803 = vst [vmem:[#allocation2 + $0x2c8] sm:$0xf] %v11878_v4  ;;  %1228 = vst [vmem:[#allocation2 + $0x304] sm:$0xf] %v11878_v4  ;;  %v10977_v13 = vld [vmem:[%s13852_s21 + $0x129] sm:$0xff]  ;;  %v10915_v22 = vld [vmem:[%s13852_s21 + $0x140] sm:$0xff] }
  0xb3   : > { %1420 = vst [vmem:[#allocation2 + $0x308] sm:$0xf] %v11816_v6  ;;  %v10851_v16 = vld [vmem:[%s13852_s21 + $0x12a] sm:$0xff]  ;;  %1995 = vst [vmem:[#allocation2 + $0x2cc] sm:$0xf] %v11816_v6  ;;  %v11880_v18 = vpack.c.bf16 %v10977_v13, %v10977_v13  ;;  %v10978_v23 = vld [vmem:[%s13852_s21 + $0x139] sm:$0xff]  ;;  %v11850_v25 = vpack.c.bf16 %v10915_v22, %v10915_v22 }
  0xb4   : > { %v11818_v20 = vpack.c.bf16 %v10851_v16, %v10851_v16  ;;  %1613 = vst [vmem:[#allocation2 + $0x30c] sm:$0xf] %v11848_v12  ;;  %1804 = vst [vmem:[#allocation2 + $0x2ec] sm:$0xf] %v11879_v14  ;;  %v10979_v26 = vld [vmem:[%s13852_s21 + $0x141] sm:$0xff]  ;;  %v11881_v27 = vpack.c.bf16 %v10978_v23, %v10978_v23  ;;  %v10917_v36 = vld [vmem:[%s13852_s21 + $0x158] sm:$0xff] }
  0xb5   : > { %3835 = vmatmul.mubr.bf16.vlgmr.msra.gmra.mxu0 %v13184_v5  ;;  %v11815_v5 = vpack.c.bf16 %v10848_v1, %v10848_v1  ;;  %1229 = vst [vmem:[#allocation2 + $0x328] sm:$0xf] %v11879_v14  ;;  %v10852_v29 = vld [vmem:[%s13852_s21 + $0x13a] sm:$0xff]  ;;  %v10853_v30 = vld [vmem:[%s13852_s21 + $0x142] sm:$0xff]  ;;  %1805 = vst [vmem:[#allocation2 + $0x310] sm:$0xf] %v11880_v18 }
  0xb6   : > { %12901 = vmatpush3.bf16.msra.mxu0 %v14093_v28  ;;  %3842 = vmatprep.mubr.bf16.mxu0 %v13189_v11  ;;  %v13224_v28 = vld [vmem:[%s18190_s1 + $0x220] sm:$0xff]   ;;  %v11847_v11 = vpack.c.bf16 %v10912_v8, %v10912_v8  ;;  %1230 = vst [vmem:[#allocation2 + $0x34c] sm:$0xf] %v11880_v18  ;;  %1422 = vst [vmem:[#allocation2 + $0x350] sm:$0xf] %v11818_v20  ;;  %v11819_v32 = vpack.c.bf16 %v10852_v29, %v10852_v29  ;;  %v13263_v34 = vld [vmem:[%s18190_s1 + $0x208] sm:$0xff]  }
  0xb7   : > { %3996 = vmatmul.mubr.bf16.vlgmr.msra.gmra.mxu1 %v13188_v31  ;;  %12902 = vmatprep.subr.bf16.mxu0 %v13198_v19  ;;  %1419 = vst [vmem:[#allocation2 + $0x2e4] sm:$0xf] %v11815_v5  ;;  %1994 = vst [vmem:[#allocation2 + $0x2a8] sm:$0xf] %v11815_v5  ;;  %v11882_v31 = vpack.c.bf16 %v10979_v26, %v10979_v26  ;;  %v11820_v33 = vpack.c.bf16 %v10853_v30, %v10853_v30  ;;  %v13204_v37 = vld [vmem:[#allocation2 + $0xe8] ss:$36 sps:$4 sm:$0xff]  }
  0xb8   : > { %4003 = vmatprep.mubr.bf16.mxu1 %v13192_v35  ;;  %1612 = vst [vmem:[#allocation2 + $0x2e8] sm:$0xf] %v11847_v11  ;;  %1997 = vst [vmem:[#allocation2 + $0x314] sm:$0xf] %v11818_v20  ;;  %v10916_v35 = vld [vmem:[%s13852_s21 + $0x150] sm:$0xff]  ;;  %v10981_v48 = vld [vmem:[%s13852_s21 + $0x159] sm:$0xff] }
  0xb9   : > { %1614 = vst [vmem:[#allocation2 + $0x330] sm:$0xf] %v11849_v24  ;;  %1615 = vst [vmem:[#allocation2 + $0x354] sm:$0xf] %v11850_v25  ;;  %v13215_v45 = vld [vmem:[#allocation2 + $0x17c] ss:$36 sps:$4 sm:$0xff]   ;;  %v11884_v52 = vpack.c.bf16 %v10981_v48, %v10981_v48 }
  0xba   : > { %12903 = vmatpush3.bf16.msra.mxu0 %v13198_v19  ;;  %v11817_v19 = vpack.c.bf16 %v10850_v15, %v10850_v15  ;;  %1806 = vst [vmem:[#allocation2 + $0x334] sm:$0xf] %v11881_v27  ;;  %1231 = vst [vmem:[#allocation2 + $0x370] sm:$0xf] %v11881_v27  ;;  %v10980_v47 = vld [vmem:[%s13852_s21 + $0x151] sm:$0xff]  ;;  %v10855_v54 = vld [vmem:[%s13852_s21 + $0x15a] sm:$0xff] }
  0xbb   : > { %12904 = vmatprep.subr.bf16.mxu0 %v13211_v38  ;;  %1807 = vst [vmem:[#allocation2 + $0x358] sm:$0xf] %v11882_v31  ;;  %1232 = vst [vmem:[#allocation2 + $0x394] sm:$0xf] %v11882_v31  ;;  %v11883_v49 = vpack.c.bf16 %v10980_v47, %v10980_v47  ;;  %v10918_v55 = vld [vmem:[%s13852_s21 + $0x168] sm:$0xff]  ;;  %v11822_v57 = vpack.c.bf16 %v10855_v54, %v10855_v54  ;;  %v10919_v58 = vld [vmem:[%s13852_s21 + $0x170] sm:$0xff] }
  0xbc   : > { %1421 = vst [vmem:[#allocation2 + $0x32c] sm:$0xf] %v11817_v19  ;;  %1996 = vst [vmem:[#allocation2 + $0x2f0] sm:$0xf] %v11817_v19  ;;  %v11853_v59 = vpack.c.bf16 %v10918_v55, %v10918_v55  ;;  %v10983_v61 = vld [vmem:[%s13852_s21 + $0x171] sm:$0xff]  ;;  %v11854_v62 = vpack.c.bf16 %v10919_v58, %v10919_v58  ;;  %v13276_v6 = vld [vmem:[%s18190_s1 + $0x200] sm:$0xff]  }
  0xbd   : > { %3843 = vmatmul.mubr.bf16.gmra.mxu0 %v13191_v39  ;;  %1423 = vst [vmem:[#allocation2 + $0x374] sm:$0xf] %v11819_v32  ;;  %1424 = vst [vmem:[#allocation2 + $0x398] sm:$0xf] %v11820_v33  ;;  %v11852_v39 = vpack.c.bf16 %v10917_v36, %v10917_v36  ;;  %v11886_v0 = vpack.c.bf16 %v10983_v61, %v10983_v61  ;;  %v10856_v1 = vld [vmem:[%s13852_s21 + $0x16a] sm:$0xff]  ;;  %v10857_v2 = vld [vmem:[%s13852_s21 + $0x172] sm:$0xff] }
  0xbe   : > { %3850 = vmatprep.mubr.bf16.mxu0 %v13195_v41  ;;  %12905 = vmatpush3.bf16.msra.mxu0 %v13211_v38  ;;  %v11851_v38 = vpack.c.bf16 %v10916_v35, %v10916_v35  ;;  %1998 = vst [vmem:[#allocation2 + $0x338] sm:$0xf] %v11819_v32  ;;  %1999 = vst [vmem:[#allocation2 + $0x35c] sm:$0xf] %v11820_v33  ;;  %v13208_v41 = vld [vmem:[#allocation2 + $0x134] ss:$36 sps:$4 sm:$0xff]   ;;  %v11823_v4 = vpack.c.bf16 %v10856_v1, %v10856_v1 }
  0xbf   : > { %4004 = vmatmul.mubr.bf16.gmra.mxu1 %v13194_v42  ;;  %12906 = vmatprep.subr.bf16.mxu0 %v13224_v28  ;;  %v13207_v42 = vld [vmem:[#allocation2 + $0xf0] ss:$36 sps:$4 sm:$0xff]   ;;  %1617 = vst [vmem:[#allocation2 + $0x39c] sm:$0xf] %v11852_v39  ;;  %1808 = vst [vmem:[#allocation2 + $0x37c] sm:$0xf] %v11883_v49  ;;  %v11824_v5 = vpack.c.bf16 %v10857_v2, %v10857_v2 }
  0xc0   : > { %4011 = vmatprep.mubr.bf16.mxu1 %v13199_v43  ;;  %1616 = vst [vmem:[#allocation2 + $0x378] sm:$0xf] %v11851_v38  ;;  %v13210_v43 = vld [vmem:[#allocation2 + $0x130] ss:$36 sps:$4 sm:$0xff]   ;;  %1809 = vst [vmem:[#allocation2 + $0x3a0] sm:$0xf] %v11884_v52 }
  0xc1   : > { %1233 = vst [vmem:[#allocation2 + $0x3b8] sm:$0xf] %v11883_v49  ;;  %1234 = vst [vmem:[#allocation2 + $0x3dc] sm:$0xf] %v11884_v52  ;;  %v13221_v8 = vld [vmem:[#allocation2 + $0x1c4] ss:$36 sps:$4 sm:$0xff]  }
  0xc2   : > { %12907 = vmatpush3.bf16.msra.mxu0 %v13224_v28  ;;  %v13212_v28 = vld [vmem:[#allocation2 + $0x13c] ss:$36 sps:$4 sm:$0xff]   ;;  %1426 = vst [vmem:[#allocation2 + $0x3e0] sm:$0xf] %v11822_v57  ;;  %1618 = vst [vmem:[#allocation2 + $0x3c0] sm:$0xf] %v11853_v59 }
  0xc3   : > { %12908 = vmatprep.subr.bf16.mxu0 %v14162_v44  ;;  %2001 = vst [vmem:[#allocation2 + $0x3a4] sm:$0xf] %v11822_v57  ;;  %1619 = vst [vmem:[#allocation2 + $0x3e4] sm:$0xf] %v11854_v62  ;;  %v10921_v9 = vld [vmem:[%s13852_s21 + $0x188] sm:$0xff]  ;;  %v10922_v20 = vld [vmem:[%s13852_s21 + $0x198] sm:$0xff] }
  0xc4   : > { %1811 = vst [vmem:[#allocation2 + $0x3e8] sm:$0xf] %v11886_v0  ;;  %1236 = vst [vmem:[#allocation2 + $0x424] sm:$0xf] %v11886_v0  ;;  %v10984_v11 = vld [vmem:[%s13852_s21 + $0x181] sm:$0xff]  ;;  %v10985_v12 = vld [vmem:[%s13852_s21 + $0x189] sm:$0xff]  ;;  %v11856_v14 = vpack.c.bf16 %v10921_v9, %v10921_v9  ;;  %v11857_v24 = vpack.c.bf16 %v10922_v20, %v10922_v20 }
  0xc5   : > { %3851 = vmatmul.mubr.bf16.gmra.mxu0 %v13197_v46  ;;  %v13218_v46 = vld [vmem:[#allocation2 + $0x184] ss:$36 sps:$4 sm:$0xff]   ;;  %1427 = vst [vmem:[#allocation2 + $0x404] sm:$0xf] %v11823_v4  ;;  %1428 = vst [vmem:[#allocation2 + $0x428] sm:$0xf] %v11824_v5  ;;  %v11887_v15 = vpack.c.bf16 %v10984_v11, %v10984_v11  ;;  %v11888_v16 = vpack.c.bf16 %v10985_v12, %v10985_v12 }
  0xc6   : > { %3858 = vmatprep.mubr.bf16.mxu0 %v13202_v53  ;;  %12909 = vmatpush3.bf16.msra.mxu0 %v14162_v44  ;;  %v13214_v44 = vld [vmem:[#allocation2 + $0x138] ss:$36 sps:$4 sm:$0xff]   ;;  %v13220_v13 = vld [vmem:[#allocation2 + $0x180] ss:$36 sps:$4 sm:$0xff]   ;;  %v10859_v19 = vld [vmem:[%s13852_s21 + $0x18a] sm:$0xff] }
  0xc7   : > { %4012 = vmatmul.mubr.bf16.gmra.mxu1 %v13201_v60  ;;  %12910 = vmatprep.subr.bf16.mxu0 %v14177_v7  ;;  %v10854_v53 = vld [vmem:[%s13852_s21 + $0x152] sm:$0xff]  ;;  %v10982_v60 = vld [vmem:[%s13852_s21 + $0x169] sm:$0xff]  ;;  %2002 = vst [vmem:[#allocation2 + $0x3c8] sm:$0xf] %v11823_v4  ;;  %2003 = vst [vmem:[#allocation2 + $0x3ec] sm:$0xf] %v11824_v5  ;;  %v11826_v22 = vpack.c.bf16 %v10859_v19, %v10859_v19 }
  0xc8   : > { %4019 = vmatprep.mubr.bf16.mxu1 %v13205_v3  ;;  %v11821_v56 = vpack.c.bf16 %v10854_v53, %v10854_v53  ;;  %v11885_v63 = vpack.c.bf16 %v10982_v60, %v10982_v60  ;;  %v13217_v3 = vld [vmem:[#allocation2 + $0x178] ss:$36 sps:$4 sm:$0xff]   ;;  %v10858_v18 = vld [vmem:[%s13852_s21 + $0x182] sm:$0xff]  ;;  %1621 = vst [vmem:[#allocation2 + $0x42c] sm:$0xf] %v11856_v14  ;;  %v11022_v61 = vld [vmem:[%s13852_s21 + $0x4a] sm:$0xff] }
  0xc9   : > { %v11825_v21 = vpack.c.bf16 %v10858_v18, %v10858_v18  ;;  %v10923_v23 = vld [vmem:[%s13852_s21 + $0x1a0] sm:$0xff]  ;;  %1812 = vst [vmem:[#allocation2 + $0x40c] sm:$0xf] %v11887_v15  ;;  %1813 = vst [vmem:[#allocation2 + $0x430] sm:$0xf] %v11888_v16  ;;  %v11020_v55 = vld [vmem:[%s13852_s21 + $0x32] sm:$0xff]  ;;  %v11893_v1 = vpack.c.bf16 %v11022_v61, %v11022_v61 }
  0xca   : > { %12911 = vmatpush3.bf16.msra.mxu0 %v14177_v7  ;;  %1425 = vst [vmem:[#allocation2 + $0x3bc] sm:$0xf] %v11821_v56  ;;  %v10920_v7 = vld [vmem:[%s13852_s21 + $0x180] sm:$0xff]  ;;  %2000 = vst [vmem:[#allocation2 + $0x380] sm:$0xf] %v11821_v56  ;;  %v11858_v27 = vpack.c.bf16 %v10923_v23, %v10923_v23  ;;  %v11891_v60 = vpack.c.bf16 %v11020_v55, %v11020_v55  ;;  %v11023_v62 = vld [vmem:[%s13852_s21 + $0x52] sm:$0xff] }
  0xcb   : > { %12912 = vmatprep.subr.bf16.mxu0 %v13263_v34  ;;  %1810 = vst [vmem:[#allocation2 + $0x3c4] sm:$0xf] %v11885_v63  ;;  %1235 = vst [vmem:[#allocation2 + $0x400] sm:$0xf] %v11885_v63  ;;  %v11855_v10 = vpack.c.bf16 %v10920_v7, %v10920_v7  ;;  %v10986_v25 = vld [vmem:[%s13852_s21 + $0x199] sm:$0xff]  ;;  %v10987_v26 = vld [vmem:[%s13852_s21 + $0x1a1] sm:$0xff]  ;;  %v11894_v2 = vpack.c.bf16 %v11023_v62, %v11023_v62 }
  0xcc   : > { %1237 = vst [vmem:[#allocation2 + $0x448] sm:$0xf] %v11887_v15  ;;  %1238 = vst [vmem:[#allocation2 + $0x46c] sm:$0xf] %v11888_v16  ;;  %v11889_v29 = vpack.c.bf16 %v10986_v25, %v10986_v25  ;;  %v11890_v30 = vpack.c.bf16 %v10987_v26, %v10987_v26  ;;  %v4553_v31 = vld [vmem:[#allocation3 + $0x110] sm:$0x8] }
  0xcd   : > { %3859 = vmatmul.mubr.bf16.gmra.mxu0 %v13204_v37  ;;  %1620 = vst [vmem:[#allocation2 + $0x408] sm:$0xf] %v11855_v10  ;;  %v6918_v32 = vld [vmem:[#allocation3 + $0x114] sm:$0xf]  ;;  %v6919_v33 = vld [vmem:[#allocation3 + $0x118] sm:$0xf] }
  0xce   : > { %3866 = vmatprep.mubr.bf16.mxu0 %v13208_v41  ;;  %12913 = vmatpush3.bf16.msra.mxu0 %v13263_v34  ;;  %v13225_v34 = vld [vmem:[#allocation2 + $0x1cc] ss:$36 sps:$4 sm:$0xff]   ;;  %1429 = vst [vmem:[#allocation2 + $0x44c] sm:$0xf] %v11825_v21  ;;  %1430 = vst [vmem:[#allocation2 + $0x470] sm:$0xf] %v11826_v22 }
  0xcf   : > { %4020 = vmatmul.mubr.bf16.gmra.mxu1 %v13207_v42  ;;  %12914 = vmatprep.subr.bf16.mxu0 %v13276_v6  ;;  %1622 = vst [vmem:[#allocation2 + $0x450] sm:$0xf] %v11857_v24  ;;  %v4554_v35 = vsel %vm13864_vm3, 0, %v4553_v31  ;;  %v7256_v36 = vshrl.u32 %v6918_v32, 16  ;;  %v7265_v37 = vshrl.u32 %v6919_v33, 16  ;;  %v7268_v38 = vshll.u32 %v6919_v33, 16 }
  0xd0   : > { %4027 = vmatprep.mubr.bf16.mxu1 %v13212_v28  ;;  %2004 = vst [vmem:[#allocation2 + $0x410] sm:$0xf] %v11825_v21  ;;  %2005 = vst [vmem:[#allocation2 + $0x434] sm:$0xf] %v11826_v22  ;;  %v7366_v48 = vld [vmem:[#allocation3 + $0x114] sm:$0xf] }
  0xd1   : > { %1623 = vst [vmem:[#allocation2 + $0x474] sm:$0xf] %v11858_v27  ;;  %1814 = vst [vmem:[#allocation2 + $0x454] sm:$0xf] %v11889_v29  ;;  %v7258_v39 = vrot.slane %v7256_v36, 7  ;;  %v7267_v41 = vrot.slane %v7265_v37, 7 }
  0xd2   : > { %12915 = vmatpush3.bf16.msra.mxu0 %v13276_v6  ;;  %1815 = vst [vmem:[#allocation2 + $0x478] sm:$0xf] %v11890_v30  ;;  %4555 = vst [vmem:[#allocation3 + $0x110] sm:$0x8] %v4554_v35  ;;  %v13231_v49 = vld [vmem:[#allocation2 + $0x214] ss:$36 sps:$4 sm:$0xff]  }
  0xd3   : > { %v7263_v42 = vrot.slane %v7258_v39, 4  ;;  %v7270_v28 = vor.u32 %v7268_v38, %v7267_v41  ;;  %v7367_v54 = vld [vmem:[#allocation3 + $0x118] sm:$0xf]  ;;  %v13230_v56 = vld [vmem:[#allocation2 + $0x208] ss:$36 sps:$4 sm:$0xff]  }
  0xd4   : > { %v11021_v59 = vld [vmem:[%s13852_s21 + $0x3a] sm:$0xff]  ;;  %v11025_v4 = vld [vmem:[%s13852_s21 + $0x6a] sm:$0xff]  ;;  %1976 = vst [vmem:[#allocation2 + $0x20] sm:$0xf] %v11891_v60  ;;  %v11027_v10 = vld [vmem:[%s13852_s21 + $0x82] sm:$0xff] }
  0xd5   : > { %3867 = vmatmul.mubr.bf16.gmra.mxu0 %v13210_v43  ;;  %v13223_v43 = vld [vmem:[#allocation2 + $0x1c0] ss:$36 sps:$4 sm:$0xff]   ;;  %v7271_v47 = vsel %vm13879_vm7, %v7263_v42, %v7270_v28  ;;  %v13234_v63 = vld [vmem:[#allocation2 + $0x254] ss:$36 sps:$4 sm:$0xff]   ;;  %v11892_v0 = vpack.c.bf16 %v11021_v59, %v11021_v59  ;;  %v11896_v9 = vpack.c.bf16 %v11025_v4, %v11025_v4  ;;  %1978 = vst [vmem:[#allocation2 + $0x68] sm:$0xf] %v11893_v1 }
  0xd6   : > { %3874 = vmatprep.mubr.bf16.mxu0 %v13215_v45  ;;  %v13227_v45 = vld [vmem:[#allocation2 + $0x1c8] ss:$36 sps:$4 sm:$0xff]   ;;  %7335 = vst [vmem:[#allocation2 + $0x474] sm:$0xf] %v7271_v47  ;;  %v11026_v5 = vld [vmem:[%s13852_s21 + $0x7a] sm:$0xff]  ;;  %v11028_v12 = vld [vmem:[%s13852_s21 + $0x92] sm:$0xff]  ;;  %v11898_v15 = vpack.c.bf16 %v11027_v10, %v11027_v10 }
  0xd7   : > { %4028 = vmatmul.mubr.bf16.gmra.mxu1 %v13214_v44  ;;  %v13228_v44 = vld [vmem:[#allocation2 + $0x20c] ss:$36 sps:$4 sm:$0xff]   ;;  %v11897_v11 = vpack.c.bf16 %v11026_v5, %v11026_v5  ;;  %v13238_v14 = vld [vmem:[#allocation2 + $0x25c] ss:$36 sps:$4 sm:$0xff]   ;;  %1977 = vst [vmem:[#allocation2 + $0x44] sm:$0xf] %v11892_v0  ;;  %v11899_v16 = vpack.c.bf16 %v11028_v12, %v11028_v12 }
  0xd8   : > { %4035 = vmatprep.mubr.bf16.mxu1 %v13218_v46  ;;  %v7259_v46 = vshll.u32 %v6918_v32, 16  ;;  %v13233_v6 = vld [vmem:[#allocation2 + $0x210] ss:$36 sps:$4 sm:$0xff]   ;;  %1979 = vst [vmem:[#allocation2 + $0x8c] sm:$0xf] %v11894_v2  ;;  %v11032_v21 = vld [vmem:[%s13852_s21 + $0xc2] sm:$0xff] }
  0xd9   : > { %v14227_v52 = vld [vmem:[#allocation2 + $0x454] ss:$36 sps:$4 sm:$0xff]   ;;  %v6917_v53 = vld [vmem:[#allocation3 + $0x110] sm:$0x8]  ;;  %v11030_v19 = vld [vmem:[%s13852_s21 + $0xaa] sm:$0xff]  ;;  %v11903_v26 = vpack.c.bf16 %v11032_v21, %v11032_v21 }
  0xda   : > { %7398 = vst [vmem:[#allocation2 + $0x454] sm:$0xf] %v7366_v48  ;;  %v7251_v57 = vshrl.u32 %v6917_v53, 16  ;;  %v7261_v58 = vor.u32 %v7259_v46, %v7258_v39  ;;  %7399 = vst [vmem:[#allocation2 + $0x478] sm:$0xf] %v7367_v54  ;;  %v11031_v20 = vld [vmem:[%s13852_s21 + $0xb2] sm:$0xff]  ;;  %v11901_v23 = vpack.c.bf16 %v11030_v19, %v11030_v19 }
  0xdb   : > { %1981 = vst [vmem:[#allocation2 + $0xd4] sm:$0xf] %v11896_v9  ;;  %1982 = vst [vmem:[#allocation2 + $0xf8] sm:$0xf] %v11897_v11  ;;  %v11902_v24 = vpack.c.bf16 %v11031_v20, %v11031_v20  ;;  %v11033_v25 = vld [vmem:[%s13852_s21 + $0xca] sm:$0xff]  ;;  %v11034_v27 = vld [vmem:[%s13852_s21 + $0xda] sm:$0xff] }
  0xdc   : > { %v11380_v7 = vrot.slane %v7251_v57, 11  ;;  %v11035_v29 = vld [vmem:[%s13852_s21 + $0xe2] sm:$0xff]  ;;  %1983 = vst [vmem:[#allocation2 + $0x11c] sm:$0xf] %v11898_v15  ;;  %1984 = vst [vmem:[#allocation2 + $0x140] sm:$0xf] %v11899_v16  ;;  %v11904_v30 = vpack.c.bf16 %v11033_v25, %v11033_v25  ;;  %v11905_v31 = vpack.c.bf16 %v11034_v27, %v11034_v27 }
  0xdd   : > { %3875 = vmatmul.mubr.bf16.gmra.mxu0 %v13217_v3  ;;  %v11024_v3 = vld [vmem:[%s13852_s21 + $0x62] sm:$0xff]  ;;  %v11906_v32 = vpack.c.bf16 %v11035_v29, %v11035_v29  ;;  %v11036_v33 = vld [vmem:[%s13852_s21 + $0xf2] sm:$0xff]  ;;  %1986 = vst [vmem:[#allocation2 + $0x188] sm:$0xf] %v11901_v23  ;;  %1987 = vst [vmem:[#allocation2 + $0x1ac] sm:$0xf] %v11902_v24 }
  0xde   : > { %3882 = vmatprep.mubr.bf16.mxu0 %v13221_v8  ;;  %v11895_v8 = vpack.c.bf16 %v11024_v3, %v11024_v3  ;;  %v7262_v22 = vsel %vm13879_vm7, %v11380_v7, %v7261_v58  ;;  %1988 = vst [vmem:[#allocation2 + $0x1d0] sm:$0xf] %v11903_v26  ;;  %v11907_v35 = vpack.c.bf16 %v11036_v33, %v11036_v33  ;;  %1989 = vst [vmem:[#allocation2 + $0x1f4] sm:$0xf] %v11904_v30  ;;  %v13236_v37 = vld [vmem:[#allocation2 + $0x250] ss:$36 sps:$4 sm:$0xff]  }
  0xdf   : > { %4036 = vmatmul.mubr.bf16.gmra.mxu1 %v13220_v13  ;;  %v11029_v13 = vld [vmem:[%s13852_s21 + $0x9a] sm:$0xff]  ;;  %7334 = vst [vmem:[#allocation2 + $0x450] sm:$0xf] %v7262_v22  ;;  %1990 = vst [vmem:[#allocation2 + $0x218] sm:$0xf] %v11905_v31  ;;  %v11051_v60 = vld [vmem:[%s13852_s21 + $0x1a2] sm:$0xff] }
  0xe0   : > { %4043 = vmatprep.mubr.bf16.mxu1 %v13225_v34  ;;  %v11900_v18 = vpack.c.bf16 %v11029_v13, %v11029_v13  ;;  %1980 = vst [vmem:[#allocation2 + $0xb0] sm:$0xf] %v11895_v8  ;;  %v11037_v34 = vld [vmem:[%s13852_s21 + $0xfa] sm:$0xff]  ;;  %1991 = vst [vmem:[#allocation2 + $0x23c] sm:$0xf] %v11906_v32  ;;  %v11922_v2 = vpack.c.bf16 %v11051_v60, %v11051_v60 }
  0xe1   : > { %v11908_v36 = vpack.c.bf16 %v11037_v34, %v11037_v34  ;;  %1992 = vst [vmem:[#allocation2 + $0x260] sm:$0xf] %v11907_v35  ;;  %v13241_v38 = vld [vmem:[#allocation2 + $0x29c] ss:$36 sps:$4 sm:$0xff]   ;;  %v13244_v42 = vld [vmem:[#allocation2 + $0x2a4] ss:$36 sps:$4 sm:$0xff]  }
  0xe2   : > { %1985 = vst [vmem:[#allocation2 + $0x164] sm:$0xf] %v11900_v18  ;;  %v13240_v41 = vld [vmem:[#allocation2 + $0x258] ss:$36 sps:$4 sm:$0xff]   ;;  %v13247_v55 = vld [vmem:[#allocation2 + $0x2e4] ss:$36 sps:$4 sm:$0xff]  }
  0xe3   : > { %1993 = vst [vmem:[#allocation2 + $0x284] sm:$0xf] %v11908_v36  ;;  %v13243_v46 = vld [vmem:[#allocation2 + $0x298] ss:$36 sps:$4 sm:$0xff]   ;;  %v13251_v57 = vld [vmem:[#allocation2 + $0x2ec] ss:$36 sps:$4 sm:$0xff]  }
  0xe4   : > { %v11050_v58 = vld [vmem:[%s13852_s21 + $0x19a] sm:$0xff]  ;;  %2007 = vst [vmem:[#allocation2 + $0x47c] sm:$0xf] %v11922_v2  ;;  %v13254_v18 = vld [vmem:[#allocation2 + $0x32c] ss:$36 sps:$4 sm:$0xff]  }
  0xe5   : > { %3883 = vmatmul.mubr.bf16.gmra.mxu0 %v13223_v43  ;;  %v11921_v61 = vpack.c.bf16 %v11050_v58, %v11050_v58  ;;  %v4558_v62 = vld [vmem:[#allocation3 + $0x11c] sm:$0x1]  ;;  %v7446_v4 = vld [vmem:[#allocation3 + $0x118] sm:$0xf]  ;;  %v13249_v12 = vld [vmem:[#allocation2 + $0x2e0] ss:$36 sps:$4 sm:$0xff]  }
  0xe6   : > { %3890 = vmatprep.mubr.bf16.mxu0 %v13228_v44  ;;  %v4559_v3 = vsel %vm13874_vm6, 0, %v4558_v62  ;;  %v7818_v8 = vshll.u32 %v7446_v4, 16  ;;  %v7822_v9 = vshrl.u32 %v7446_v4, 16  ;;  %v13253_v23 = vld [vmem:[#allocation2 + $0x2e8] ss:$36 sps:$4 sm:$0xff]  }
  0xe7   : > { %4044 = vmatmul.mubr.bf16.gmra.mxu1 %v13227_v45  ;;  %2006 = vst [vmem:[#allocation2 + $0x458] sm:$0xf] %v11921_v61  ;;  %4560 = vst [vmem:[#allocation3 + $0x11c] sm:$0x1] %v4559_v3  ;;  %v13257_v26 = vld [vmem:[#allocation2 + $0x334] ss:$36 sps:$4 sm:$0xff]  }
  0xe8   : > { %4051 = vmatprep.mubr.bf16.mxu1 %v13231_v49  ;;  %v13246_v49 = vld [vmem:[#allocation2 + $0x2a0] ss:$36 sps:$4 sm:$0xff]   ;;  %v7820_v19 = vrot.slane %v7818_v8, 5  ;;  %v7824_v20 = vrot.slane %v7822_v9, 4  ;;  %v13262_v4 = vld [vmem:[#allocation2 + $0x370] ss:$36 sps:$4 sm:$0xff]  }
  0xea   : > { %v7825_v27 = vor.u32 %v7824_v20, %v7820_v19 }
  0xec   : > { %v7826_v34 = vrot.slane %v7825_v27, 4  ;;  %v13273_v27 = vld [vmem:[#allocation2 + $0x404] ss:$36 sps:$4 sm:$0xff]  }
  0xed   : > { %3891 = vmatmul.mubr.bf16.gmra.mxu0 %v13230_v56 }
  0xee   : > { %3898 = vmatprep.mubr.bf16.mxu0 %v13234_v63  ;;  %v7445_v63 = vld [vmem:[#allocation3 + $0x114] sm:$0xf] }
  0xef   : > { %4052 = vmatmul.mubr.bf16.gmra.mxu1 %v13233_v6  ;;  %v7809_v5 = vshrl.u32 %v7445_v63, 16  ;;  %v7812_v6 = vshll.u32 %v7445_v63, 16 }
  0xf0   : > { %4059 = vmatprep.mubr.bf16.mxu1 %v13238_v14 }
  0xf1   : > { %v7811_v13 = vrot.slane %v7809_v5, 4  ;;  %v7814_v14 = vrot.slane %v7812_v6, 5 }
  0xf3   : > { %v7815_v24 = vor.u32 %v7814_v14, %v7811_v13 }
  0xf5   : > { %v11972_v39 = vpop.f32.mrf.mxu0  ;;  %3899 = vmatmul.mubr.bf16.gmra.mxu0 %v13236_v37  ;;  %v7816_v31 = vrot.slane %v7815_v24, 4  ;;  %v7447_v37 = vld [vmem:[#allocation3 + $0x11c] sm:$0x1] }
  0xf6   : > { %3906 = vmatprep.mubr.bf16.mxu0 %v13241_v38  ;;  %v12084_v44 = vpop.f32.mrf.mxu1  ;;  %v13269_v24 = vld [vmem:[#allocation2 + $0x3b8] ss:$36 sps:$4 sm:$0xff]  }
  0xf7   : > { %v11973_v28 = vpop.f32.mrf.mxu0  ;;  %4060 = vmatmul.mubr.bf16.gmra.mxu1 %v13240_v41  ;;  %v7821_v38 = vsel %vm13897_vm10, %v7816_v31, %v7820_v19  ;;  %v14261_v41 = vld [vmem:[#allocation2 + $0x458] ss:$36 sps:$4 sm:$0xff]   ;;  %v13272_v31 = vld [vmem:[#allocation2 + $0x3c0] ss:$36 sps:$4 sm:$0xff]  }
  0xf8   : > { %v11974_v43 = vadd.f32 %v11973_v28, %v11972_v39  ;;  %4067 = vmatprep.mubr.bf16.mxu1 %v13244_v42  ;;  %v12085_v47 = vpop.f32.mrf.mxu1  ;;  %v7828_v42 = vshll.u32 %v7447_v37, 16  ;;  %7894 = vst [vmem:[#allocation2 + $0x458] sm:$0xf] %v7821_v38 }
  0xf9   : > { %v11975_v45 = vpop.f32.mrf.mxu0  ;;  %v12086_v53 = vadd.f32 %v12085_v47, %v12084_v44  ;;  %v13256_v44 = vld [vmem:[#allocation2 + $0x328] ss:$36 sps:$4 sm:$0xff]   ;;  %v13260_v47 = vld [vmem:[#allocation2 + $0x374] ss:$36 sps:$4 sm:$0xff]  }
  0xfa   : > { %v12087_v56 = vpop.f32.mrf.mxu1 }
  0xfb   : > { %v11976_v48 = vpop.f32.mrf.mxu0  ;;  %v14250_v59 = vadd.f32 %v12086_v53, %v11974_v43 }
  0xfc   : > { %v11977_v54 = vadd.f32 %v11976_v48, %v11975_v45  ;;  %v12088_v0 = vpop.f32.mrf.mxu1  ;;  %v7830_v48 = vrot.slane %v7828_v42, 5 }
  0xfd   : > { %v11978_v1 = vpop.f32.mrf.mxu0  ;;  %3907 = vmatmul.mubr.bf16.gmra.mxu0 %v13243_v46  ;;  %v12089_v7 = vadd.f32 %v12088_v0, %v12087_v56  ;;  %v13264_v56 = vld [vmem:[#allocation2 + $0x37c] ss:$36 sps:$4 sm:$0xff]  }
  0xfe   : > { %3914 = vmatprep.mubr.bf16.mxu0 %v13247_v55  ;;  %v12090_v10 = vpop.f32.mrf.mxu1 }
  0xff   : > { %v11979_v11 = vpop.f32.mrf.mxu0  ;;  %4068 = vmatmul.mubr.bf16.gmra.mxu1 %v13246_v49  ;;  %v14255_v15 = vadd.f32 %v12089_v7, %v11977_v54  ;;  %v13259_v54 = vld [vmem:[#allocation2 + $0x330] ss:$36 sps:$4 sm:$0xff]   ;;  %v13267_v7 = vld [vmem:[#allocation2 + $0x3bc] ss:$36 sps:$4 sm:$0xff]  }
 0x100   : > { %v11980_v16 = vadd.f32 %v11979_v11, %v11978_v1  ;;  %4075 = vmatprep.mubr.bf16.mxu1 %v13251_v57  ;;  %v12091_v21 = vpop.f32.mrf.mxu1  ;;  %v7831_v57 = vsel %vm13897_vm10, %v7826_v34, %v7830_v48  ;;  %v13277_v34 = vld [vmem:[#allocation2 + $0x40c] ss:$36 sps:$4 sm:$0xff]  }
 0x101   : > { %v11981_v22 = vpop.f32.mrf.mxu0  ;;  %v12092_v25 = vadd.f32 %v12091_v21, %v12090_v10  ;;  %7895 = vst [vmem:[#allocation2 + $0x47c] sm:$0xf] %v7831_v57  ;;  %v13266_v10 = vld [vmem:[#allocation2 + $0x378] ss:$36 sps:$4 sm:$0xff]  }
 0x102   : > { %v12093_v29 = vpop.f32.mrf.mxu1 }
 0x103   : > { %v11982_v30 = vpop.f32.mrf.mxu0  ;;  %v14257_v32 = vadd.f32 %v12092_v25, %v11980_v16 }
 0x104   : > { %v11983_v33 = vadd.f32 %v11982_v30, %v11981_v22  ;;  %v12094_v35 = vpop.f32.mrf.mxu1 }
 0x105   : > { %v11984_v36 = vpop.f32.mrf.mxu0  ;;  %3915 = vmatmul.mubr.bf16.gmra.mxu0 %v13249_v12  ;;  %v12095_v39 = vadd.f32 %v12094_v35, %v12093_v29  ;;  %v13270_v12 = vld [vmem:[#allocation2 + $0x3c4] ss:$36 sps:$4 sm:$0xff]  }
 0x106   : > { %3922 = vmatprep.mubr.bf16.mxu0 %v13254_v18  ;;  %v12096_v28 = vpop.f32.mrf.mxu1 }
 0x107   : > { %v11985_v43 = vpop.f32.mrf.mxu0  ;;  %4076 = vmatmul.mubr.bf16.gmra.mxu1 %v13253_v23  ;;  %v14263_v45 = vadd.f32 %v12095_v39, %v11983_v33 }
 0x108   : > { %v11986_v46 = vadd.f32 %v11985_v43, %v11984_v36  ;;  %4083 = vmatprep.mubr.bf16.mxu1 %v13257_v26  ;;  %v12097_v49 = vpop.f32.mrf.mxu1 }
 0x109   : > { %v11987_v53 = vpop.f32.mrf.mxu0  ;;  %v12098_v55 = vadd.f32 %v12097_v49, %v12096_v28  ;;  %v13280_v49 = vld [vmem:[#allocation2 + $0x44c] ss:$36 sps:$4 sm:$0xff]  }
 0x10a   : > { %v12099_v58 = vpop.f32.mrf.mxu1 }
 0x10b   : > { %v11988_v60 = vpop.f32.mrf.mxu0  ;;  %v14267_v61 = vadd.f32 %v12098_v55, %v11986_v46  ;;  %v13275_v46 = vld [vmem:[#allocation2 + $0x400] ss:$36 sps:$4 sm:$0xff]   ;;  %v13279_v55 = vld [vmem:[#allocation2 + $0x408] ss:$36 sps:$4 sm:$0xff]  }
 0x10c   : > { %v11989_v62 = vadd.f32 %v11988_v60, %v11987_v53  ;;  %v12100_v63 = vpop.f32.mrf.mxu1 }
 0x10d   : > { %v11990_v0 = vpop.f32.mrf.mxu0  ;;  %3923 = vmatmul.mubr.bf16.gmra.mxu0 %v13256_v44  ;;  %v12101_v1 = vadd.f32 %v12100_v63, %v12099_v58 }
 0x10e   : > { %3930 = vmatprep.mubr.bf16.mxu0 %v13260_v47  ;;  %v12102_v2 = vpop.f32.mrf.mxu1 }
 0x10f   : > { %v11991_v3 = vpop.f32.mrf.mxu0  ;;  %4084 = vmatmul.mubr.bf16.gmra.mxu1 %v13259_v54  ;;  %v14269_v5 = vadd.f32 %v12101_v1, %v11989_v62 }
 0x110   : > { %v11992_v6 = vadd.f32 %v11991_v3, %v11990_v0  ;;  %4091 = vmatprep.mubr.bf16.mxu1 %v13264_v56  ;;  %v12103_v8 = vpop.f32.mrf.mxu1  ;;  %v2166_v3 = vld [vmem:[#allocation2 + $0x474] sm:$0xff] }
 0x111   : > { %v11993_v9 = vpop.f32.mrf.mxu0  ;;  %v12104_v11 = vadd.f32 %v12103_v8, %v12102_v2  ;;  %v2161_v2 = vld [vmem:[#allocation2 + $0x450] sm:$0xff] }
 0x112   : > { %v12105_v13 = vpop.f32.mrf.mxu1 }
 0x113   : > { %v11994_v14 = vpop.f32.mrf.mxu0  ;;  %v14271_v16 = vadd.f32 %v12104_v11, %v11992_v6 }
 0x114   : > { %v11995_v18 = vadd.f32 %v11994_v14, %v11993_v9  ;;  %v12106_v19 = vpop.f32.mrf.mxu1 }
 0x115   : > { %v11996_v20 = vpop.f32.mrf.mxu0  ;;  %3931 = vmatmul.mubr.bf16.gmra.mxu0 %v13262_v4  ;;  %v12107_v21 = vadd.f32 %v12106_v19, %v12105_v13  ;;  %v11225_v19 = vcombine.low %v2161_v2, %v2166_v3 }
 0x116   : > { %3938 = vmatprep.mubr.bf16.mxu0 %v13267_v7  ;;  %v12108_v22 = vpop.f32.mrf.mxu1  ;;  %v13282_v7 = vld [vmem:[#allocation2 + $0x448] ss:$36 sps:$4 sm:$0xff]  }
 0x117   : > { %v11997_v23 = vpop.f32.mrf.mxu0  ;;  %4092 = vmatmul.mubr.bf16.gmra.mxu1 %v13266_v10  ;;  %v14273_v25 = vadd.f32 %v12107_v21, %v11995_v18  ;;  %v13285_v10 = vld [vmem:[#allocation2 + $0x20] ss:$36 sps:$4 sm:$0xff]  }
 0x118   : > { %v11998_v26 = vadd.f32 %v11997_v23, %v11996_v20  ;;  %4099 = vmatprep.mubr.bf16.mxu1 %v13270_v12  ;;  %v12109_v29 = vpop.f32.mrf.mxu1 }
 0x119   : > { %v11999_v30 = vpop.f32.mrf.mxu0  ;;  %v12110_v33 = vadd.f32 %v12109_v29, %v12108_v22  ;;  %v13286_v29 = vld [vmem:[#allocation2 + $0x68] ss:$36 sps:$4 sm:$0xff]  }
 0x11a   : > { %v12111_v35 = vpop.f32.mrf.mxu1 }
 0x11b   : > { %v12000_v36 = vpop.f32.mrf.mxu0  ;;  %v14275_v37 = vadd.f32 %v12110_v33, %v11998_v26 }
 0x11c   : > { %v12001_v38 = vadd.f32 %v12000_v36, %v11999_v30  ;;  %v12112_v39 = vpop.f32.mrf.mxu1 }
 0x11d   : > { %v12002_v42 = vpop.f32.mrf.mxu0  ;;  %3939 = vmatmul.mubr.bf16.gmra.mxu0 %v13269_v24  ;;  %v12113_v28 = vadd.f32 %v12112_v39, %v12111_v35  ;;  %v13287_v35 = vld [vmem:[#allocation2 + $0xb0] ss:$36 sps:$4 sm:$0xff]  }
 0x11e   : > { %3946 = vmatprep.mubr.bf16.mxu0 %v13273_v27  ;;  %v12114_v43 = vpop.f32.mrf.mxu1 }
 0x11f   : > { %v12003_v44 = vpop.f32.mrf.mxu0  ;;  %4100 = vmatmul.mubr.bf16.gmra.mxu1 %v13272_v31  ;;  %v14277_v47 = vadd.f32 %v12113_v28, %v12001_v38 }
 0x120   : > { %v12004_v48 = vadd.f32 %v12003_v44, %v12002_v42  ;;  %4107 = vmatprep.mubr.bf16.mxu1 %v13277_v34  ;;  %v12115_v53 = vpop.f32.mrf.mxu1 }
 0x121   : > { %v12005_v54 = vpop.f32.mrf.mxu0  ;;  %v12116_v56 = vadd.f32 %v12115_v53, %v12114_v43 }
 0x122   : > { %v12117_v57 = vpop.f32.mrf.mxu1 }
 0x123   : > { %v12006_v58 = vpop.f32.mrf.mxu0  ;;  %v14279_v60 = vadd.f32 %v12116_v56, %v12004_v48  ;;  %v13288_v56 = vld [vmem:[#allocation2 + $0xf8] ss:$36 sps:$4 sm:$0xff]  }
 0x124   : > { %v12007_v62 = vadd.f32 %v12006_v58, %v12005_v54  ;;  %v12118_v63 = vpop.f32.mrf.mxu1  ;;  %v13289_v58 = vld [vmem:[#allocation2 + $0x140] ss:$36 sps:$4 sm:$0xff]  }
 0x125   : > { %v12008_v0 = vpop.f32.mrf.mxu0  ;;  %3947 = vmatmul.mubr.bf16.gmra.mxu0 %v13275_v46  ;;  %v12119_v1 = vadd.f32 %v12118_v63, %v12117_v57 }
 0x126   : > { %3954 = vmatprep.mubr.bf16.mxu0 %v13280_v49  ;;  %v12120_v4 = vpop.f32.mrf.mxu1 }
 0x127   : > { %v12009_v6 = vpop.f32.mrf.mxu0  ;;  %4108 = vmatmul.mubr.bf16.gmra.mxu1 %v13279_v55  ;;  %v14281_v8 = vadd.f32 %v12119_v1, %v12007_v62 }
 0x128   : > { %v12010_v9 = vadd.f32 %v12009_v6, %v12008_v0  ;;  %4115 = vmatprep.mubr.bf16.mxu1 %v14227_v52  ;;  %v12121_v11 = vpop.f32.mrf.mxu1 }
 0x129   : > { %v12011_v12 = vpop.f32.mrf.mxu0  ;;  %v12122_v13 = vadd.f32 %v12121_v11, %v12120_v4 }
 0x12a   : > { %v12123_v14 = vpop.f32.mrf.mxu1 }
 0x12b   : > { %v12012_v18 = vpop.f32.mrf.mxu0  ;;  %v14284_v20 = vadd.f32 %v12122_v13, %v12010_v9  ;;  %v13290_v13 = vld [vmem:[#allocation2 + $0x188] ss:$36 sps:$4 sm:$0xff]  }
 0x12c   : > { %v12013_v21 = vadd.f32 %v12012_v18, %v12011_v12  ;;  %v12124_v22 = vpop.f32.mrf.mxu1  ;;  %v13291_v18 = vld [vmem:[#allocation2 + $0x1d0] ss:$36 sps:$4 sm:$0xff]  }
 0x12d   : > { %v12014_v23 = vpop.f32.mrf.mxu0  ;;  %3955 = vmatmul.mubr.bf16.gmra.mxu0 %v13282_v7  ;;  %v12125_v24 = vadd.f32 %v12124_v22, %v12123_v14 }
 0x12e   : > { %12916 = vmatprep.mubr.bf16.mxu0 %v13285_v10  ;;  %v12126_v26 = vpop.f32.mrf.mxu1 }
 0x12f   : > { %v12015_v27 = vpop.f32.mrf.mxu0  ;;  %4116 = vmatmul.mubr.bf16.gmra.mxu1 %v11225_v19  ;;  %v14286_v52 = vadd.f32 %v12125_v24, %v12013_v21 }
 0x130   : > { %v12016_v30 = vadd.f32 %v12015_v27, %v12014_v23  ;;  %v12127_v31 = vpop.f32.mrf.mxu1 }
 0x131   : > { %v12017_v33 = vpop.f32.mrf.mxu0  ;;  %v12128_v34 = vadd.f32 %v12127_v31, %v12126_v26 }
 0x132   : > { %v12129_v36 = vpop.f32.mrf.mxu1 }
 0x133   : > { %v12018_v38 = vpop.f32.mrf.mxu0  ;;  %v14288_v39 = vadd.f32 %v12128_v34, %v12016_v30 }
 0x134   : > { %v12019_v42 = vadd.f32 %v12018_v38, %v12017_v33  ;;  %v12130_v28 = vpop.f32.mrf.mxu1 }
 0x135   : > { %v12020_v43 = vpop.f32.mrf.mxu0  ;;  %12917 = vmatmul.mubr.bf16.vlgmr.msra.gmra.mxu0 %v13286_v29  ;;  %v12131_v44 = vadd.f32 %v12130_v28, %v12129_v36  ;;  %v13292_v36 = vld [vmem:[#allocation2 + $0x218] ss:$36 sps:$4 sm:$0xff]  }
 0x136   : > { %12920 = vmatprep.mubr.bf16.mxu0 %v13287_v35  ;;  %v12132_v46 = vpop.f32.mrf.mxu1 }
 0x137   : > { %v12021_v48 = vpop.f32.mrf.mxu0  ;;  %v14290_v49 = vadd.f32 %v12131_v44, %v12019_v42  ;;  %v13293_v42 = vld [vmem:[#allocation2 + $0x260] ss:$36 sps:$4 sm:$0xff]  }
 0x138   : > { %v12022_v53 = vadd.f32 %v12021_v48, %v12020_v43  ;;  %v12133_v54 = vpop.f32.mrf.mxu1 }
 0x139   : > { %v12023_v55 = vpop.f32.mrf.mxu0  ;;  %v12134_v57 = vadd.f32 %v12133_v54, %v12132_v46 }
 0x13a   : > { %v12135_v62 = vpop.f32.mrf.mxu1 }
 0x13b   : > { %v12024_v63 = vpop.f32.mrf.mxu0  ;;  %v14292_v0 = vadd.f32 %v12134_v57, %v12022_v53 }
 0x13c   : > { %v12025_v1 = vadd.f32 %v12024_v63, %v12023_v55  ;;  %v12136_v2 = vpop.f32.mrf.mxu1 }
 0x13d   : > { %v12026_v3 = vpop.f32.mrf.mxu0  ;;  %12921 = vmatmul.mubr.bf16.gmra.mxu0 %v13288_v56  ;;  %v12137_v4 = vadd.f32 %v12136_v2, %v12135_v62 }
 0x13e   : > { %12924 = vmatprep.mubr.bf16.mxu0 %v13289_v58  ;;  %v12138_v6 = vpop.f32.mrf.mxu1 }
 0x13f   : > { %v12027_v7 = vpop.f32.mrf.mxu0  ;;  %v14294_v9 = vadd.f32 %v12137_v4, %v12025_v1  ;;  %v13294_v1 = vld [vmem:[#allocation2 + $0x2a8] ss:$36 sps:$4 sm:$0xff]  }
 0x140   : > { %v12028_v10 = vadd.f32 %v12027_v7, %v12026_v3  ;;  %v12139_v11 = vpop.f32.mrf.mxu1  ;;  %v13295_v3 = vld [vmem:[#allocation2 + $0x2f0] ss:$36 sps:$4 sm:$0xff]  }
 0x141   : > { %v12029_v12 = vpop.f32.mrf.mxu0  ;;  %v12140_v14 = vadd.f32 %v12139_v11, %v12138_v6 }
 0x142   : > { %v12141_v19 = vpop.f32.mrf.mxu1 }
 0x143   : > { %v12030_v21 = vpop.f32.mrf.mxu0  ;;  %v14296_v22 = vadd.f32 %v12140_v14, %v12028_v10 }
 0x144   : > { %v12031_v23 = vadd.f32 %v12030_v21, %v12029_v12  ;;  %v12142_v24 = vpop.f32.mrf.mxu1 }
 0x145   : > { %v12032_v26 = vpop.f32.mrf.mxu0  ;;  %12925 = vmatmul.mubr.bf16.gmra.mxu0 %v13290_v13  ;;  %v12143_v27 = vadd.f32 %v12142_v24, %v12141_v19 }
 0x146   : > { %12928 = vmatprep.mubr.bf16.mxu0 %v13291_v18  ;;  %v12144_v29 = vpop.f32.mrf.mxu1 }
 0x147   : > { %v12033_v30 = vpop.f32.mrf.mxu0  ;;  %v14298_v31 = vadd.f32 %v12143_v27, %v12031_v23 }
 0x148   : > { %v12034_v33 = vadd.f32 %v12033_v30, %v12032_v26  ;;  %v12145_v34 = vpop.f32.mrf.mxu1  ;;  %v13296_v26 = vld [vmem:[#allocation2 + $0x338] ss:$36 sps:$4 sm:$0xff]  }
 0x149   : > { %v12035_v35 = vpop.f32.mrf.mxu0  ;;  %v12146_v38 = vadd.f32 %v12145_v34, %v12144_v29  ;;  %v13297_v29 = vld [vmem:[#allocation2 + $0x380] ss:$36 sps:$4 sm:$0xff]  }
 0x14a   : > { %v12147_v28 = vpop.f32.mrf.mxu1 }
 0x14b   : > { %v12036_v43 = vpop.f32.mrf.mxu0  ;;  %v14300_v44 = vadd.f32 %v12146_v38, %v12034_v33 }
 0x14c   : > { %v12037_v46 = vadd.f32 %v12036_v43, %v12035_v35  ;;  %v12148_v48 = vpop.f32.mrf.mxu1 }
 0x14d   : > { %v12038_v53 = vpop.f32.mrf.mxu0  ;;  %12929 = vmatmul.mubr.bf16.gmra.mxu0 %v13292_v36  ;;  %v12149_v54 = vadd.f32 %v12148_v48, %v12147_v28 }
 0x14e   : > { %12932 = vmatprep.mubr.bf16.mxu0 %v13293_v42  ;;  %v12150_v55 = vpop.f32.mrf.mxu1 }
 0x14f   : > { %v12039_v56 = vpop.f32.mrf.mxu0  ;;  %v14302_v57 = vadd.f32 %v12149_v54, %v12037_v46 }
 0x150   : > { %v12040_v58 = vadd.f32 %v12039_v56, %v12038_v53  ;;  %v12151_v62 = vpop.f32.mrf.mxu1 }
 0x151   : > { %v12041_v63 = vpop.f32.mrf.mxu0  ;;  %v12152_v2 = vadd.f32 %v12151_v62, %v12150_v55  ;;  %v13298_v55 = vld [vmem:[#allocation2 + $0x3c8] ss:$36 sps:$4 sm:$0xff]  }
 0x152   : > { %v12153_v4 = vpop.f32.mrf.mxu1 }
 0x153   : > { %v12042_v6 = vpop.f32.mrf.mxu0  ;;  %v14304_v7 = vadd.f32 %v12152_v2, %v12040_v58  ;;  %v13299_v58 = vld [vmem:[#allocation2 + $0x410] ss:$36 sps:$4 sm:$0xff]  }
 0x154   : > { %v12043_v10 = vadd.f32 %v12042_v6, %v12041_v63  ;;  %v12154_v11 = vpop.f32.mrf.mxu1 }
 0x155   : > { %v12044_v12 = vpop.f32.mrf.mxu0  ;;  %12933 = vmatmul.mubr.bf16.gmra.mxu0 %v13294_v1  ;;  %v12155_v13 = vadd.f32 %v12154_v11, %v12153_v4 }
 0x156   : > { %12936 = vmatprep.mubr.bf16.mxu0 %v13295_v3  ;;  %v12156_v14 = vpop.f32.mrf.mxu1 }
 0x157   : > { %v12045_v18 = vpop.f32.mrf.mxu0  ;;  %v14306_v19 = vadd.f32 %v12155_v13, %v12043_v10 }
 0x158   : > { %v12046_v21 = vadd.f32 %v12045_v18, %v12044_v12  ;;  %v12157_v23 = vpop.f32.mrf.mxu1 }
 0x159   : > { %v12047_v24 = vpop.f32.mrf.mxu0  ;;  %v12158_v27 = vadd.f32 %v12157_v23, %v12156_v14 }
 0x15a   : > { %v12159_v30 = vpop.f32.mrf.mxu1 }
 0x15b   : > { %v12048_v33 = vpop.f32.mrf.mxu0  ;;  %v14308_v34 = vadd.f32 %v12158_v27, %v12046_v21 }
 0x15c   : > { %v12049_v35 = vadd.f32 %v12048_v33, %v12047_v24  ;;  %v12160_v36 = vpop.f32.mrf.mxu1 }
 0x15d   : > { %v12050_v38 = vpop.f32.mrf.mxu0  ;;  %12937 = vmatmul.mubr.bf16.gmra.mxu0 %v13296_v26  ;;  %v12161_v42 = vadd.f32 %v12160_v36, %v12159_v30 }
 0x15e   : > { %12940 = vmatprep.mubr.bf16.mxu0 %v13297_v29  ;;  %v12162_v28 = vpop.f32.mrf.mxu1 }
 0x15f   : > { %v12051_v43 = vpop.f32.mrf.mxu0  ;;  %v14310_v46 = vadd.f32 %v12161_v42, %v12049_v35 }
 0x160   : > { %v12052_v48 = vadd.f32 %v12051_v43, %v12050_v38  ;;  %v12163_v53 = vpop.f32.mrf.mxu1 }
 0x161   : > { %v12053_v54 = vpop.f32.mrf.mxu0  ;;  %v12164_v56 = vadd.f32 %v12163_v53, %v12162_v28 }
 0x162   : > { %v12165_v62 = vpop.f32.mrf.mxu1 }
 0x163   : > { %v12054_v63 = vpop.f32.mrf.mxu0  ;;  %v14312_v1 = vadd.f32 %v12164_v56, %v12052_v48 }
 0x164   : > { %v12055_v2 = vadd.f32 %v12054_v63, %v12053_v54  ;;  %v12166_v3 = vpop.f32.mrf.mxu1 }
 0x165   : > { %v12056_v4 = vpop.f32.mrf.mxu0  ;;  %12941 = vmatmul.mubr.bf16.gmra.mxu0 %v13298_v55  ;;  %v12167_v6 = vadd.f32 %v12166_v3, %v12165_v62 }
 0x166   : > { %12944 = vmatprep.mubr.bf16.mxu0 %v13299_v58  ;;  %v12168_v10 = vpop.f32.mrf.mxu1 }
 0x167   : > { %v12057_v11 = vpop.f32.mrf.mxu0  ;;  %v14314_v12 = vadd.f32 %v12167_v6, %v12055_v2 }
 0x168   : > { %v12058_v13 = vadd.f32 %v12057_v11, %v12056_v4  ;;  %v12169_v14 = vpop.f32.mrf.mxu1 }
 0x169   : > { %v12059_v18 = vpop.f32.mrf.mxu0  ;;  %v12170_v21 = vadd.f32 %v12169_v14, %v12168_v10 }
 0x16a   : > { %v12171_v23 = vpop.f32.mrf.mxu1 }
 0x16b   : > { %v12060_v24 = vpop.f32.mrf.mxu0  ;;  %v14316_v26 = vadd.f32 %v12170_v21, %v12058_v13 }
 0x16c   : > { %v12061_v27 = vadd.f32 %v12060_v24, %v12059_v18  ;;  %v12172_v29 = vpop.f32.mrf.mxu1 }
 0x16d   : > { %v12062_v30 = vpop.f32.mrf.mxu0  ;;  %12945 = vmatmul.mubr.bf16.gmra.mxu0 %v14261_v41  ;;  %v12173_v33 = vadd.f32 %v12172_v29, %v12171_v23 }
 0x16e   : > { %v12174_v35 = vpop.f32.mrf.mxu1 }
 0x16f   : > { %v12063_v36 = vpop.f32.mrf.mxu0  ;;  %v14319_v38 = vadd.f32 %v12173_v33, %v12061_v27 }
 0x170   : > { %v12064_v42 = vadd.f32 %v12063_v36, %v12062_v30  ;;  %v12175_v28 = vpop.f32.mrf.mxu1 }
 0x171   : > { %v12065_v43 = vpop.f32.mrf.mxu0  ;;  %v12176_v48 = vadd.f32 %v12175_v28, %v12174_v35  ;;  %v13301_v28 = vld [vmem:[%s18193_s4 + $0x78] sm:$0xff]  }
 0x172   : > { %v12177_v53 = vpop.f32.mrf.mxu1  ;;  %12428 = vmatprep.subr.bf16.mxu1 %v13301_v28 }
 0x173   : > { %v12066_v54 = vpop.f32.mrf.mxu0  ;;  %v14321_v55 = vadd.f32 %v12176_v48, %v12064_v42 }
 0x174   : > { %v12067_v56 = vadd.f32 %v12066_v54, %v12065_v43  ;;  %v12178_v58 = vpop.f32.mrf.mxu1  ;;  %v13302_v43 = vld [vmem:[%s18193_s4 + $0x38] sm:$0xff]  }
 0x175   : > { %v12196_v62 = vpop.f32.mrf.mxu0  ;;  %v12179_v63 = vadd.f32 %v12178_v58, %v12177_v53  ;;  %12429 = vmatpush3.bf16.msra.mxu1 %v13302_v43 }
 0x177   : > { %v12197_v2 = vpop.f32.mrf.mxu0  ;;  %v12308_v3 = vpop.f32.mrf.mxu1  ;;  %v14323_v41 = vadd.f32 %v12179_v63, %v12067_v56 }
 0x178   : > { %v12198_v4 = vadd.f32 %v12197_v2, %v12196_v62 }
 0x179   : > { %v12199_v6 = vpop.f32.mrf.mxu0  ;;  %v12309_v10 = vpop.f32.mrf.mxu1 }
 0x17a   : > { %v3837_v11 = vadd.f32 %v12198_v4, %v14250_v59  ;;  %v12310_v13 = vadd.f32 %v12309_v10, %v12308_v3 }
 0x17b   : > { %v12200_v14 = vpop.f32.mrf.mxu0  ;;  %v14326_v18 = vpop.f32.mrf.mxu1 }
 0x17c   : > { %v12201_v21 = vadd.f32 %v12200_v14, %v12199_v6  ;;  %v14328_v23 = vadd.f32 %v12310_v13, %v3837_v11  ;;  %v4616_v6 = vld [vmem:[#allocation3 + $0x3c] sm:$0x1] }
 0x17d   : > { %v12202_v24 = vpop.f32.mrf.mxu0  ;;  %v14330_v27 = vpop.f32.mrf.mxu1  ;;  %v4617_v13 = vsel %vm13874_vm6, 0, %v4616_v6 }
 0x17e   : > { %v14333_v29 = vadd.f32 %v12201_v21, %v14255_v15  ;;  %4618 = vst [vmem:[#allocation3 + $0x3c] sm:$0x1] %v4617_v13 }
 0x17f   : > { %v12203_v30 = vpop.f32.mrf.mxu0  ;;  %v14335_v33 = vpop.f32.mrf.mxu1 }
 0x180   : > { %v12204_v35 = vadd.f32 %v12203_v30, %v12202_v24 }
 0x181   : > { %v12205_v36 = vpop.f32.mrf.mxu0  ;;  %v14337_v42 = vpop.f32.mrf.mxu1 }
 0x182   : > { %v14340_v59 = vadd.f32 %v12204_v35, %v14257_v32 }
 0x183   : > { %v12206_v15 = vpop.f32.mrf.mxu0  ;;  %v14348_v48 = vpop.f32.mrf.mxu1 }
 0x184   : > { %v12207_v53 = vadd.f32 %v12206_v15, %v12205_v36  ;;  %v13303_v15 = vld [vmem:[%s18193_s4 + $0x70] sm:$0xff]  }
 0x185   : > { %v12208_v54 = vpop.f32.mrf.mxu0  ;;  %v14350_v56 = vpop.f32.mrf.mxu1  ;;  %12430 = vmatprep.subr.bf16.mxu1 %v13303_v15 }
 0x186   : > { %v14353_v32 = vadd.f32 %v12207_v53, %v14263_v45  ;;  %v13304_v53 = vld [vmem:[%s18193_s4 + $0x30] sm:$0xff]  }
 0x187   : > { %v12209_v58 = vpop.f32.mrf.mxu0  ;;  %v14355_v62 = vpop.f32.mrf.mxu1  ;;  %12431 = vmatpush3.bf16.msra.mxu1 %v13304_v53 }
 0x188   : > { %v12210_v63 = vadd.f32 %v12209_v58, %v12208_v54 }
 0x189   : > { %v12211_v2 = vpop.f32.mrf.mxu0  ;;  %v14357_v3 = vpop.f32.mrf.mxu1 }
 0x18a   : > { %v14360_v4 = vadd.f32 %v12210_v63, %v14267_v61 }
 0x18b   : > { %v12212_v10 = vpop.f32.mrf.mxu0  ;;  %v14362_v11 = vpop.f32.mrf.mxu1 }
 0x18c   : > { %v12213_v14 = vadd.f32 %v12212_v10, %v12211_v2 }
 0x18d   : > { %v12214_v45 = vpop.f32.mrf.mxu0  ;;  %v14366_v21 = vpop.f32.mrf.mxu1 }
 0x18e   : > { %v14369_v24 = vadd.f32 %v12213_v14, %v14269_v5 }
 0x18f   : > { %v12215_v30 = vpop.f32.mrf.mxu0  ;;  %v14371_v35 = vpop.f32.mrf.mxu1 }
 0x190   : > { %v12216_v61 = vadd.f32 %v12215_v30, %v12214_v45 }
 0x191   : > { %v12217_v36 = vpop.f32.mrf.mxu0  ;;  %v14373_v28 = vpop.f32.mrf.mxu1 }
 0x192   : > { %v14376_v43 = vadd.f32 %v12216_v61, %v14271_v16 }
 0x193   : > { %v12218_v5 = vpop.f32.mrf.mxu0  ;;  %v14384_v54 = vpop.f32.mrf.mxu1 }
 0x194   : > { %v12219_v58 = vadd.f32 %v12218_v5, %v12217_v36 }
 0x195   : > { %v12220_v63 = vpop.f32.mrf.mxu0  ;;  %v14386_v2 = vpop.f32.mrf.mxu1 }
 0x196   : > { %v14389_v16 = vadd.f32 %v12219_v58, %v14273_v25 }
 0x197   : > { %v12221_v6 = vpop.f32.mrf.mxu0  ;;  %v14391_v10 = vpop.f32.mrf.mxu1 }
 0x198   : > { %v12222_v13 = vadd.f32 %v12221_v6, %v12220_v63 }
 0x199   : > { %v12223_v14 = vpop.f32.mrf.mxu0  ;;  %v14393_v45 = vpop.f32.mrf.mxu1 }
 0x19a   : > { %v14396_v30 = vadd.f32 %v12222_v13, %v14275_v37  ;;  %v13305_v13 = vld [vmem:[%s18193_s4 + $0x68] sm:$0xff]  }
 0x19b   : > { %v12224_v61 = vpop.f32.mrf.mxu0  ;;  %v14398_v36 = vpop.f32.mrf.mxu1  ;;  %12432 = vmatprep.subr.bf16.mxu1 %v13305_v13 }
 0x19c   : > { %18367 = vst [vmem:[#allocation11_spill] sm:$0xff] %v14396_v30  ;;  %v12225_v15 = vadd.f32 %v12224_v61, %v12223_v14  ;;  %v13306_v14 = vld [vmem:[%s18193_s4 + $0x28] sm:$0xff]  }
 0x19d   : > { %v12226_v5 = vpop.f32.mrf.mxu0  ;;  %v14400_v50 = vpop.f32.mrf.mxu1  ;;  %12433 = vmatpush3.bf16.msra.mxu1 %v13306_v14 }
 0x19e   : > { %v14403_v25 = vadd.f32 %v12225_v15, %v14277_v47 }
 0x19f   : > { %v12227_v53 = vpop.f32.mrf.mxu0  ;;  %v14405_v58 = vpop.f32.mrf.mxu1 }
 0x1a0   : > { %18368 = vst [vmem:[#allocation12_spill] sm:$0xff] %v14403_v25  ;;  %v12228_v63 = vadd.f32 %v12227_v53, %v12226_v5 }
 0x1a1   : > { %v12229_v6 = vpop.f32.mrf.mxu0  ;;  %v14407_v51 = vpop.f32.mrf.mxu1 }
 0x1a2   : > { %v14410_v37 = vadd.f32 %v12228_v63, %v14279_v60 }
 0x1a3   : > { %v12230_v47 = vpop.f32.mrf.mxu0  ;;  %v14418_v61 = vpop.f32.mrf.mxu1 }
 0x1a4   : > { %18369 = vst [vmem:[#allocation13_spill] sm:$0xff] %v14410_v37  ;;  %18370 = vst [vmem:[#allocation14_spill] sm:$0xff] %v14418_v61  ;;  %v12231_v15 = vadd.f32 %v12230_v47, %v12229_v6 }
 0x1a5   : > { %v12232_v5 = vpop.f32.mrf.mxu0  ;;  %v14420_v53 = vpop.f32.mrf.mxu1 }
 0x1a6   : > { %18371 = vst [vmem:[#allocation15_spill] sm:$0xff] %v14420_v53  ;;  %v14423_v60 = vadd.f32 %v12231_v15, %v14281_v8 }
 0x1a7   : > { %v12233_v63 = vpop.f32.mrf.mxu0  ;;  %v14425_v40 = vpop.f32.mrf.mxu1 }
 0x1a8   : > { %18372 = vst [vmem:[#allocation16_spill] sm:$0xff] %v14423_v60  ;;  %v12234_v17 = vadd.f32 %v12233_v63, %v12232_v5 }
 0x1a9   : > { %v12235_v25 = vpop.f32.mrf.mxu0  ;;  %v14427_v37 = vpop.f32.mrf.mxu1 }
 0x1aa   : > { %v14430_v30 = vadd.f32 %v12234_v17, %v14284_v20  ;;  %v13307_v20 = vld [vmem:[%s18193_s4 + $0x60] sm:$0xff]  }
 0x1ab   : > { %v12236_v61 = vpop.f32.mrf.mxu0  ;;  %v14432_v6 = vpop.f32.mrf.mxu1  ;;  %12434 = vmatprep.subr.bf16.mxu1 %v13307_v20 }
 0x1ac   : > { %18373 = vst [vmem:[#allocation17_spill] sm:$0xff] %v14430_v30  ;;  %v12237_v13 = vadd.f32 %v12236_v61, %v12235_v25  ;;  %v13308_v25 = vld [vmem:[%s18193_s4 + $0x20] sm:$0xff]  }
 0x1ad   : > { %v12238_v47 = vpop.f32.mrf.mxu0  ;;  %v14434_v53 = vpop.f32.mrf.mxu1  ;;  %12435 = vmatpush3.bf16.msra.mxu1 %v13308_v25 }
 0x1ae   : > { %v14437_v8 = vadd.f32 %v12237_v13, %v14286_v52 }
 0x1af   : > { %v12239_v14 = vpop.f32.mrf.mxu0  ;;  %v14439_v15 = vpop.f32.mrf.mxu1 }
 0x1b0   : > { %18374 = vst [vmem:[#allocation18_spill] sm:$0xff] %v14437_v8  ;;  %18375 = vst [vmem:[#allocation19_spill] sm:$0xff] %v14439_v15  ;;  %v12240_v5 = vadd.f32 %v12239_v14, %v12238_v47 }
 0x1b1   : > { %v12241_v63 = vpop.f32.mrf.mxu0  ;;  %v14441_v60 = vpop.f32.mrf.mxu1 }
 0x1b2   : > { %18376 = vst [vmem:[#allocation20_spill] sm:$0xff] %v14441_v60  ;;  %v14444_v17 = vadd.f32 %v12240_v5, %v14288_v39 }
 0x1b3   : > { %v12242_v52 = vpop.f32.mrf.mxu0  ;;  %v14452_v61 = vpop.f32.mrf.mxu1 }
 0x1b4   : > { %18377 = vst [vmem:[#allocation21_spill] sm:$0xff] %v14444_v17  ;;  %18378 = vst [vmem:[#allocation22_spill] sm:$0xff] %v14452_v61  ;;  %v12243_v13 = vadd.f32 %v12242_v52, %v12241_v63 }
 0x1b5   : > { %v12244_v47 = vpop.f32.mrf.mxu0  ;;  %v14454_v14 = vpop.f32.mrf.mxu1 }
 0x1b6   : > { %18379 = vst [vmem:[#allocation23_spill] sm:$0xff] %v14454_v14  ;;  %v14457_v39 = vadd.f32 %v12243_v13, %v14290_v49 }
 0x1b7   : > { %v12245_v5 = vpop.f32.mrf.mxu0  ;;  %v14459_v8 = vpop.f32.mrf.mxu1 }
 0x1b8   : > { %18380 = vst [vmem:[#allocation24_spill] sm:$0xff] %v14457_v39  ;;  %v12246_v17 = vadd.f32 %v12245_v5, %v12244_v47 }
 0x1b9   : > { %v12247_v30 = vpop.f32.mrf.mxu0  ;;  %v14461_v60 = vpop.f32.mrf.mxu1 }
 0x1ba   : > { %v14464_v15 = vadd.f32 %v12246_v17, %v14292_v0 }
 0x1bb   : > { %v12248_v61 = vpop.f32.mrf.mxu0  ;;  %v14466_v63 = vpop.f32.mrf.mxu1 }
 0x1bc   : > { %18381 = vst [vmem:[#allocation25_spill] sm:$0xff] %v14464_v15  ;;  %18382 = vst [vmem:[#allocation26_spill] sm:$0xff] %v14466_v63  ;;  %v12249_v20 = vadd.f32 %v12248_v61, %v12247_v30 }
 0x1bd   : > { %v12250_v52 = vpop.f32.mrf.mxu0  ;;  %v14468_v14 = vpop.f32.mrf.mxu1 }
 0x1be   : > { %18383 = vst [vmem:[#allocation27_spill] sm:$0xff] %v14468_v14  ;;  %v14471_v49 = vadd.f32 %v12249_v20, %v14294_v9 }
 0x1bf   : > { %v12251_v25 = vpop.f32.mrf.mxu0  ;;  %v14473_v39 = vpop.f32.mrf.mxu1 }
 0x1c0   : > { %18384 = vst [vmem:[#allocation28_spill] sm:$0xff] %v14471_v49  ;;  %v12252_v13 = vadd.f32 %v12251_v25, %v12250_v52 }
 0x1c1   : > { %v12253_v47 = vpop.f32.mrf.mxu0  ;;  %v14478_v17 = vpop.f32.mrf.mxu1 }
 0x1c2   : > { %v14476_v5 = vadd.f32 %v12252_v13, %v14296_v22 }
 0x1c3   : > { %v12254_v0 = vpop.f32.mrf.mxu0  ;;  %v14483_v14 = vpop.f32.mrf.mxu1 }
 0x1c4   : > { %18385 = vst [vmem:[#allocation29_spill] sm:$0xff] %v14476_v5  ;;  %v12255_v15 = vadd.f32 %v12254_v0, %v12253_v47 }
 0x1c5   : > { %v12256_v63 = vpop.f32.mrf.mxu0  ;;  %v14488_v49 = vpop.f32.mrf.mxu1 }
 0x1c6   : > { %v14481_v30 = vadd.f32 %v12255_v15, %v14298_v31 }
 0x1c7   : > { %v12257_v61 = vpop.f32.mrf.mxu0  ;;  %v14493_v0 = vpop.f32.mrf.mxu1 }
 0x1c8   : > { %18386 = vst [vmem:[#allocation30_spill] sm:$0xff] %v14481_v30  ;;  %v12258_v9 = vadd.f32 %v12257_v61, %v12256_v63 }
 0x1c9   : > { %v12259_v20 = vpop.f32.mrf.mxu0  ;;  %v14498_v61 = vpop.f32.mrf.mxu1 }
 0x1ca   : > { %v14486_v52 = vadd.f32 %v12258_v9, %v14300_v44 }
 0x1cb   : > { %v12260_v25 = vpop.f32.mrf.mxu0 }
 0x1cc   : > { %18387 = vst [vmem:[#allocation31_spill] sm:$0xff] %v14486_v52  ;;  %v12261_v22 = vadd.f32 %v12260_v25, %v12259_v20  ;;  %v14503_v25 = vpop.f32.mrf.mxu1 }
 0x1cd   : > { %v12262_v13 = vpop.f32.mrf.mxu0 }
 0x1ce   : > { %v14491_v5 = vadd.f32 %v12261_v22, %v14302_v57 }
 0x1cf   : > { %v12263_v47 = vpop.f32.mrf.mxu0 }
 0x1d0   : > { %18388 = vst [vmem:[#allocation32_spill] sm:$0xff] %v14491_v5  ;;  %v12264_v31 = vadd.f32 %v12263_v47, %v12262_v13  ;;  %v14508_v47 = vpop.f32.mrf.mxu1 }
 0x1d1   : > { %v12265_v15 = vpop.f32.mrf.mxu0 }
 0x1d2   : > { %v14496_v30 = vadd.f32 %v12264_v31, %v14304_v7 }
 0x1d3   : > { %v12266_v63 = vpop.f32.mrf.mxu0 }
 0x1d4   : > { %18389 = vst [vmem:[#allocation33_spill] sm:$0xff] %v14496_v30  ;;  %v12267_v44 = vadd.f32 %v12266_v63, %v12265_v15  ;;  %v14513_v63 = vpop.f32.mrf.mxu1 }
 0x1d5   : > { %v12268_v9 = vpop.f32.mrf.mxu0 }
 0x1d6   : > { %v14501_v52 = vadd.f32 %v12267_v44, %v14306_v19 }
 0x1d7   : > { %v12269_v20 = vpop.f32.mrf.mxu0 }
 0x1d8   : > { %18390 = vst [vmem:[#allocation34_spill] sm:$0xff] %v14501_v52  ;;  %v12270_v57 = vadd.f32 %v12269_v20, %v12268_v9  ;;  %v14518_v20 = vpop.f32.mrf.mxu1 }
 0x1d9   : > { %v12271_v22 = vpop.f32.mrf.mxu0 }
 0x1da   : > { %v14506_v5 = vadd.f32 %v12270_v57, %v14308_v34 }
 0x1db   : > { %v12272_v13 = vpop.f32.mrf.mxu0 }
 0x1dc   : > { %18391 = vst [vmem:[#allocation35_spill] sm:$0xff] %v14506_v5  ;;  %v12273_v7 = vadd.f32 %v12272_v13, %v12271_v22  ;;  %v14523_v13 = vpop.f32.mrf.mxu1 }
 0x1dd   : > { %v12274_v31 = vpop.f32.mrf.mxu0 }
 0x1de   : > { %v14511_v30 = vadd.f32 %v12273_v7, %v14310_v46 }
 0x1df   : > { %v12275_v15 = vpop.f32.mrf.mxu0 }
 0x1e0   : > { %18392 = vst [vmem:[#allocation36_spill] sm:$0xff] %v14511_v30  ;;  %v12276_v19 = vadd.f32 %v12275_v15, %v12274_v31  ;;  %v14528_v15 = vpop.f32.mrf.mxu1 }
 0x1e1   : > { %v12277_v44 = vpop.f32.mrf.mxu0 }
 0x1e2   : > { %v14516_v52 = vadd.f32 %v12276_v19, %v14312_v1 }
 0x1e3   : > { %v12278_v9 = vpop.f32.mrf.mxu0 }
 0x1e4   : > { %18393 = vst [vmem:[#allocation37_spill] sm:$0xff] %v14516_v52  ;;  %v12279_v34 = vadd.f32 %v12278_v9, %v12277_v44  ;;  %v14533_v9 = vpop.f32.mrf.mxu1 }
 0x1e5   : > { %v12280_v57 = vpop.f32.mrf.mxu0 }
 0x1e6   : > { %v14521_v5 = vadd.f32 %v12279_v34, %v14314_v12 }
 0x1e7   : > { %v12281_v22 = vpop.f32.mrf.mxu0 }
 0x1e8   : > { %18394 = vst [vmem:[#allocation38_spill] sm:$0xff] %v14521_v5  ;;  %v12282_v46 = vadd.f32 %v12281_v22, %v12280_v57  ;;  %v14538_v22 = vpop.f32.mrf.mxu1 }
 0x1e9   : > { %v12283_v7 = vpop.f32.mrf.mxu0 }
 0x1ea   : > { %v14526_v30 = vadd.f32 %v12282_v46, %v14316_v26 }
 0x1eb   : > { %v12284_v31 = vpop.f32.mrf.mxu0 }
 0x1ec   : > { %v12285_v1 = vadd.f32 %v12284_v31, %v12283_v7  ;;  %v12313_v7 = vadd.f32 %v14330_v27, %v14326_v18 }
 0x1ed   : > { %v12286_v19 = vpop.f32.mrf.mxu0 }
 0x1ee   : > { %v14531_v52 = vadd.f32 %v12285_v1, %v14319_v38  ;;  %v12316_v38 = vadd.f32 %v14337_v42, %v14335_v33  ;;  %v4001_v27 = vadd.f32 %v12313_v7, %v14333_v29 }
 0x1ef   : > { %v12287_v44 = vpop.f32.mrf.mxu0 }
 0x1f0   : > { %v12288_v12 = vadd.f32 %v12287_v44, %v12286_v19  ;;  %v12319_v19 = vadd.f32 %v14350_v56, %v14348_v48  ;;  %v12322_v44 = vadd.f32 %v14357_v3, %v14355_v62  ;;  %v12325_v62 = vadd.f32 %v14366_v21, %v14362_v11 }
 0x1f1   : > { %v12289_v34 = vpop.f32.mrf.mxu0  ;;  %v12331_v11 = vadd.f32 %v14386_v2, %v14384_v54 }
 0x1f2   : > { %v14536_v5 = vadd.f32 %v12288_v12, %v14321_v55  ;;  %v14549_v55 = vpop.f32.mrf.mxu1  ;;  %v4009_v48 = vadd.f32 %v12319_v19, %v14353_v32 }
 0x1f3   : > { %v12290_v57 = vpop.f32.mrf.mxu0 }
 0x1f4   : > { %v12291_v26 = vadd.f32 %v12290_v57, %v12289_v34  ;;  %v4006_v34 = vadd.f32 %v12316_v38, %v14340_v59  ;;  %v12328_v59 = vadd.f32 %v14373_v28, %v14371_v35  ;;  %v12334_v38 = vadd.f32 %v14393_v45, %v14391_v10 }
 0x1f5   : > { %v12918_v46 = vpop.f32.mrf.mxu0 }
 0x1f6   : > { %v14545_v31 = vadd.f32 %v12291_v26, %v14323_v41  ;;  %v14558_v41 = vpop.f32.mrf.mxu1  ;;  %v14560_v42 = vadd.f32 %v12918_v46, %v4006_v34 }
 0x1f7   : > { %v4158_v1 = vpop.f32.mrf.mxu0 }
 0x1f8   : > { %v14555_v18 = vadd.f32 %v4158_v1, %v14328_v23  ;;  %v4014_v23 = vadd.f32 %v12322_v44, %v14360_v4  ;;  %v14580_v46 = vpop.f32.mrf.mxu1  ;;  %v4326_v4 = vmul.f32 %v14560_v42, %v14560_v42  ;;  %v4022_v1 = vadd.f32 %v12328_v59, %v14376_v43 }
 0x1f9   : > { %v12919_v12 = vpop.f32.mrf.mxu0 }
 0x1fa   : > { %v4324_v29 = vmul.f32 %v14555_v18, %v14555_v18  ;;  %v14572_v57 = vadd.f32 %v12919_v12, %v4009_v48  ;;  %v4017_v12 = vadd.f32 %v12325_v62, %v14369_v24  ;;  %v14597_v48 = vpop.f32.mrf.mxu1  ;;  %v12340_v24 = vadd.f32 %v14407_v51, %v14405_v58 }
 0x1fb   : > { %v4161_v33 = vpop.f32.mrf.mxu0 }
 0x1fc   : > { %v14563_v56 = vadd.f32 %v4161_v33, %v4001_v27  ;;  %v4327_v54 = vmul.f32 %v14572_v57, %v14572_v57  ;;  %v4025_v27 = vadd.f32 %v12331_v11, %v14389_v16 }
 0x1fd   : > { %v12922_v3 = vpop.f32.mrf.mxu0 }
 0x1fe   : > { %v4287_v26 = vadd.f32 %v14563_v56, %v14555_v18  ;;  %v4325_v32 = vmul.f32 %v14563_v56, %v14563_v56  ;;  %v14594_v34 = vadd.f32 %v12922_v3, %v4022_v1  ;;  %v18395_v3 = vld [vmem:[#allocation11_spill] sm:$0xff]  ;;  %v14616_v1 = vpop.f32.mrf.mxu1 }
 0x1ff   : > { %v4174_v21 = vpop.f32.mrf.mxu0  ;;  %v4030_v16 = vadd.f32 %v12334_v38, %v18395_v3  ;;  %v12346_v38 = vadd.f32 %v14427_v37, %v14425_v40 }
 0x200   : > { %v4288_v35 = vadd.f32 %v4287_v26, %v14560_v42  ;;  %v4356_v28 = vadd.f32 %v4325_v32, %v4324_v29  ;;  %v14585_v7 = vadd.f32 %v4174_v21, %v4014_v23  ;;  %v12337_v23 = vadd.f32 %v14400_v50, %v14398_v36  ;;  %v18396_v21 = vld [vmem:[#allocation14_spill] sm:$0xff] }
 0x201   : > { %v12923_v19 = vpop.f32.mrf.mxu0  ;;  %v4330_v50 = vmul.f32 %v14594_v34, %v14594_v34 }
 0x202   : > { %v4357_v2 = vadd.f32 %v4356_v28, %v4326_v4  ;;  %v4289_v44 = vadd.f32 %v4288_v35, %v14572_v57  ;;  %v4328_v43 = vmul.f32 %v14585_v7, %v14585_v7  ;;  %v14609_v26 = vadd.f32 %v12923_v19, %v4025_v27  ;;  %v18397_v4 = vld [vmem:[#allocation15_spill] sm:$0xff]  ;;  %v18398_v19 = vld [vmem:[#allocation13_spill] sm:$0xff] }
 0x203   : > { %v4177_v33 = vpop.f32.mrf.mxu0  ;;  %v12343_v35 = vadd.f32 %v18397_v4, %v18396_v21  ;;  %v18401_v21 = vld [vmem:[#allocation19_spill] sm:$0xff] }
 0x204   : > { %v4290_v10 = vadd.f32 %v4289_v44, %v14585_v7  ;;  %v4358_v45 = vadd.f32 %v4357_v2, %v4327_v54  ;;  %v14602_v59 = vadd.f32 %v4177_v33, %v4017_v12  ;;  %v4038_v54 = vadd.f32 %v12340_v24, %v18398_v19  ;;  %v18399_v33 = vld [vmem:[#allocation12_spill] sm:$0xff] }
 0x205   : > { %v12926_v62 = vpop.f32.mrf.mxu0  ;;  %v4331_v44 = vmul.f32 %v14609_v26, %v14609_v26 }
 0x206   : > { %v4359_v29 = vadd.f32 %v4358_v45, %v4328_v43  ;;  %v4291_v32 = vadd.f32 %v4290_v10, %v14602_v59  ;;  %v4329_v11 = vmul.f32 %v14602_v59, %v14602_v59  ;;  %v4033_v10 = vadd.f32 %v12337_v23, %v18399_v33  ;;  %v18400_v45 = vld [vmem:[#allocation16_spill] sm:$0xff] }
 0x207   : > { %v4190_v28 = vpop.f32.mrf.mxu0  ;;  %v14630_v43 = vadd.f32 %v12926_v62, %v4038_v54  ;;  %v4041_v3 = vadd.f32 %v12343_v35, %v18400_v45  ;;  %v18402_v23 = vld [vmem:[#allocation20_spill] sm:$0xff]  ;;  %v18404_v54 = vld [vmem:[#allocation22_spill] sm:$0xff]  ;;  %v18406_v45 = vld [vmem:[#allocation21_spill] sm:$0xff] }
 0x208   : > { %v4292_v51 = vadd.f32 %v4291_v32, %v14594_v34  ;;  %v4360_v36 = vadd.f32 %v4359_v29, %v4329_v11  ;;  %v14621_v58 = vadd.f32 %v4190_v28, %v4030_v16  ;;  %v14633_v29 = vpop.f32.mrf.mxu1  ;;  %v12349_v11 = vadd.f32 %v14434_v53, %v14432_v6  ;;  %v18403_v28 = vld [vmem:[#allocation17_spill] sm:$0xff] }
 0x209   : > { %v12927_v2 = vpop.f32.mrf.mxu0  ;;  %v12352_v62 = vadd.f32 %v18402_v23, %v18401_v21  ;;  %v4046_v35 = vadd.f32 %v12346_v38, %v18403_v28  ;;  %v4334_v53 = vmul.f32 %v14630_v43, %v14630_v43  ;;  %v18407_v21 = vld [vmem:[#allocation18_spill] sm:$0xff] }
 0x20a   : > { %v4361_v12 = vadd.f32 %v4360_v36, %v4330_v50  ;;  %v4293_v27 = vadd.f32 %v4292_v51, %v14609_v26  ;;  %v4332_v37 = vmul.f32 %v14621_v58, %v14621_v58  ;;  %v14645_v51 = vadd.f32 %v12927_v2, %v4041_v3  ;;  %v14652_v33 = vpop.f32.mrf.mxu1 }
 0x20b   : > { %v4193_v16 = vpop.f32.mrf.mxu0  ;;  %v12358_v2 = vadd.f32 %v14461_v60, %v14459_v8  ;;  %v4054_v3 = vadd.f32 %v12352_v62, %v18406_v45  ;;  %v4049_v23 = vadd.f32 %v12349_v11, %v18407_v21  ;;  %v12364_v11 = vadd.f32 %v14478_v17, %v14473_v39 }
 0x20c   : > { %v4294_v40 = vadd.f32 %v4293_v27, %v14621_v58  ;;  %v4362_v24 = vadd.f32 %v4361_v12, %v4331_v44  ;;  %v14638_v32 = vadd.f32 %v4193_v16, %v4033_v10  ;;  %v18405_v44 = vld [vmem:[#allocation23_spill] sm:$0xff] }
 0x20d   : > { %v12930_v4 = vpop.f32.mrf.mxu0  ;;  %v12355_v12 = vadd.f32 %v18405_v44, %v18404_v54  ;;  %v18409_v44 = vld [vmem:[#allocation26_spill] sm:$0xff] }
 0x20e   : > { %v4363_v50 = vadd.f32 %v4362_v24, %v4332_v37  ;;  %v4295_v36 = vadd.f32 %v4294_v40, %v14638_v32  ;;  %v4333_v19 = vmul.f32 %v14638_v32, %v14638_v32  ;;  %v4335_v40 = vmul.f32 %v14645_v51, %v14645_v51 }
 0x20f   : > { %v4206_v27 = vpop.f32.mrf.mxu0  ;;  %v14666_v28 = vadd.f32 %v12930_v4, %v4054_v3 }
 0x210   : > { %v4296_v6 = vadd.f32 %v4295_v36, %v14630_v43  ;;  %v4364_v38 = vadd.f32 %v4363_v50, %v4333_v19  ;;  %v14657_v10 = vadd.f32 %v4206_v27, %v4046_v35  ;;  %v18408_v36 = vld [vmem:[#allocation24_spill] sm:$0xff]  ;;  %v14669_v19 = vpop.f32.mrf.mxu1  ;;  %v18410_v27 = vld [vmem:[#allocation27_spill] sm:$0xff] }
 0x211   : > { %v12931_v16 = vpop.f32.mrf.mxu0  ;;  %v4057_v50 = vadd.f32 %v12355_v12, %v18408_v36  ;;  %v4338_v39 = vmul.f32 %v14666_v28, %v14666_v28  ;;  %v18412_v36 = vld [vmem:[#allocation29_spill] sm:$0xff] }
 0x212   : > { %v4365_v37 = vadd.f32 %v4364_v38, %v4334_v53  ;;  %v4297_v24 = vadd.f32 %v4296_v6, %v14645_v51  ;;  %v4336_v8 = vmul.f32 %v14657_v10, %v14657_v10  ;;  %v12361_v53 = vadd.f32 %v18410_v27, %v18409_v44  ;;  %v18411_v6 = vld [vmem:[#allocation25_spill] sm:$0xff]  ;;  %v14688_v21 = vpop.f32.mrf.mxu1  ;;  %v18414_v27 = vld [vmem:[#allocation30_spill] sm:$0xff] }
 0x213   : > { %v4209_v35 = vpop.f32.mrf.mxu0  ;;  %v4062_v12 = vadd.f32 %v12358_v2, %v18411_v6  ;;  %v14681_v45 = vadd.f32 %v12931_v16, %v4057_v50  ;;  %v12370_v16 = vadd.f32 %v14498_v61, %v14493_v0  ;;  %v4070_v50 = vadd.f32 %v12364_v11, %v18412_v36 }
 0x214   : > { %v4298_v60 = vadd.f32 %v4297_v24, %v14657_v10  ;;  %v4366_v62 = vadd.f32 %v4365_v37, %v4335_v40  ;;  %v14674_v54 = vadd.f32 %v4209_v35, %v4049_v23  ;;  %v12367_v40 = vadd.f32 %v14488_v49, %v14483_v14 }
 0x215   : > { %v12934_v4 = vpop.f32.mrf.mxu0  ;;  %v4339_v14 = vmul.f32 %v14681_v45, %v14681_v45 }
 0x216   : > { %v4367_v38 = vadd.f32 %v4366_v62, %v4336_v8  ;;  %v4299_v3 = vadd.f32 %v4298_v60, %v14674_v54  ;;  %v4337_v24 = vmul.f32 %v14674_v54, %v14674_v54  ;;  %v18413_v8 = vld [vmem:[#allocation28_spill] sm:$0xff]  ;;  %v14702_v44 = vadd.f32 %v12934_v4, %v4070_v50 }
 0x217   : > { %v4222_v37 = vpop.f32.mrf.mxu0  ;;  %v4065_v62 = vadd.f32 %v12361_v53, %v18413_v8  ;;  %v4073_v6 = vadd.f32 %v12367_v40, %v18414_v27  ;;  %v12376_v53 = vadd.f32 %v14518_v20, %v14513_v63  ;;  %v12379_v50 = vadd.f32 %v14528_v15, %v14523_v13  ;;  %v18417_v27 = vld [vmem:[#allocation32_spill] sm:$0xff] }
 0x218   : > { %v4300_v17 = vadd.f32 %v4299_v3, %v14666_v28  ;;  %v4368_v2 = vadd.f32 %v4367_v38, %v4337_v24  ;;  %v14693_v23 = vadd.f32 %v4222_v37, %v4062_v12  ;;  %v14705_v38 = vpop.f32.mrf.mxu1  ;;  %v12373_v24 = vadd.f32 %v14508_v47, %v14503_v25  ;;  %v18415_v37 = vld [vmem:[#allocation31_spill] sm:$0xff] }
 0x219   : > { %v12935_v35 = vpop.f32.mrf.mxu0  ;;  %v4078_v40 = vadd.f32 %v12370_v16, %v18415_v37  ;;  %v4342_v25 = vmul.f32 %v14702_v44, %v14702_v44  ;;  %v12382_v16 = vadd.f32 %v14538_v22, %v14533_v9 }
 0x21a   : > { %v4369_v49 = vadd.f32 %v4368_v2, %v4338_v39  ;;  %v4301_v60 = vadd.f32 %v4300_v17, %v14681_v45  ;;  %v4340_v61 = vmul.f32 %v14693_v23, %v14693_v23  ;;  %v14717_v17 = vadd.f32 %v12935_v35, %v4073_v6  ;;  %v18416_v35 = vld [vmem:[#allocation33_spill] sm:$0xff] }
 0x21b   : > { %v4225_v12 = vpop.f32.mrf.mxu0  ;;  %v4081_v6 = vadd.f32 %v12373_v24, %v18417_v27  ;;  %v12388_v24 = vadd.f32 %v14597_v48, %v14580_v46  ;;  %v18421_v27 = vld [vmem:[#allocation36_spill] sm:$0xff] }
 0x21c   : > { %v4302_v0 = vadd.f32 %v4301_v60, %v14693_v23  ;;  %v4370_v11 = vadd.f32 %v4369_v49, %v4339_v14  ;;  %v14710_v3 = vadd.f32 %v4225_v12, %v4065_v62  ;;  %v12398_v49 = vpop.f32.mrf.mxu1  ;;  %v4086_v60 = vadd.f32 %v12376_v53, %v18416_v35 }
 0x21d   : > { %v12938_v4 = vpop.f32.mrf.mxu0  ;;  %v4343_v62 = vmul.f32 %v14717_v17, %v14717_v17 }
 0x21e   : > { %v4371_v39 = vadd.f32 %v4370_v11, %v4340_v61  ;;  %v4303_v2 = vadd.f32 %v4302_v0, %v14710_v3  ;;  %v4341_v36 = vmul.f32 %v14710_v3, %v14710_v3  ;;  %v14736_v12 = vadd.f32 %v12938_v4, %v4086_v60  ;;  %v18418_v0 = vld [vmem:[#allocation34_spill] sm:$0xff]  ;;  %v12399_v37 = vpop.f32.mrf.mxu1 }
 0x21f   : > { %v4238_v14 = vpop.f32.mrf.mxu0  ;;  %v4089_v61 = vadd.f32 %v12379_v50, %v18418_v0 }
 0x220   : > { %v4304_v47 = vadd.f32 %v4303_v2, %v14702_v44  ;;  %v4372_v63 = vadd.f32 %v4371_v39, %v4341_v36  ;;  %v14727_v20 = vadd.f32 %v4238_v14, %v4078_v40  ;;  %v12385_v39 = vadd.f32 %v14558_v41, %v14549_v55  ;;  %v18419_v2 = vld [vmem:[#allocation35_spill] sm:$0xff]  ;;  %v12401_v60 = vpop.f32.mrf.mxu1 }
 0x221   : > { %v12939_v8 = vpop.f32.mrf.mxu0  ;;  %v4094_v36 = vadd.f32 %v12382_v16, %v18419_v2  ;;  %v4346_v55 = vmul.f32 %v14736_v12, %v14736_v12  ;;  %v12394_v16 = vadd.f32 %v14669_v19, %v14652_v33  ;;  %v12397_v2 = vadd.f32 %v14705_v38, %v14688_v21 }
 0x222   : > { %v4373_v13 = vadd.f32 %v4372_v63, %v4342_v25  ;;  %v4305_v15 = vadd.f32 %v4304_v47, %v14717_v17  ;;  %v4344_v9 = vmul.f32 %v14727_v20, %v14727_v20  ;;  %v14749_v14 = vadd.f32 %v12939_v8, %v4089_v61  ;;  %v18420_v8 = vld [vmem:[#allocation37_spill] sm:$0xff]  ;;  %v18422_v61 = vld [vmem:[#allocation38_spill] sm:$0xff] }
 0x223   : > { %v4241_v11 = vpop.f32.mrf.mxu0  ;;  %v12391_v63 = vadd.f32 %v14633_v29, %v14616_v1 }
 0x224   : > { %v4306_v40 = vadd.f32 %v4305_v15, %v14727_v20  ;;  %v4374_v22 = vadd.f32 %v4373_v13, %v4343_v62  ;;  %v14742_v53 = vadd.f32 %v4241_v11, %v4081_v6  ;;  %v4102_v62 = vadd.f32 %v12388_v24, %v18420_v8 }
 0x225   : > { %v12942_v4 = vpop.f32.mrf.mxu0  ;;  %v4347_v15 = vmul.f32 %v14749_v14, %v14749_v14  ;;  %v4097_v6 = vadd.f32 %v12385_v39, %v18421_v27  ;;  %v4105_v11 = vadd.f32 %v12391_v63, %v18422_v61  ;;  %v4110_v39 = vadd.f32 %v12394_v16, %v14526_v30 }
 0x226   : > { %v4375_v50 = vadd.f32 %v4374_v22, %v4344_v9  ;;  %v4307_v25 = vadd.f32 %v4306_v40, %v14742_v53  ;;  %v4345_v47 = vmul.f32 %v14742_v53, %v14742_v53  ;;  %v14768_v0 = vadd.f32 %v12942_v4, %v4102_v62  ;;  %v12402_v9 = vpop.f32.mrf.mxu1 }
 0x227   : > { %v4254_v35 = vpop.f32.mrf.mxu0 }
 0x228   : > { %v4308_v41 = vadd.f32 %v4307_v25, %v14736_v12  ;;  %v4376_v46 = vadd.f32 %v4375_v50, %v4345_v47  ;;  %v14759_v48 = vadd.f32 %v4254_v35, %v4094_v36  ;;  %v12400_v36 = vadd.f32 %v12399_v37, %v12398_v49 }
 0x229   : > { %v12943_v13 = vpop.f32.mrf.mxu0  ;;  %v12403_v35 = vadd.f32 %v12402_v9, %v12401_v60  ;;  %v4113_v60 = vadd.f32 %v12397_v2, %v14531_v52 }
 0x22a   : > { %v4377_v1 = vadd.f32 %v4376_v46, %v4346_v55  ;;  %v4309_v29 = vadd.f32 %v4308_v41, %v14749_v14  ;;  %v4348_v33 = vmul.f32 %v14759_v48, %v14759_v48  ;;  %v14779_v25 = vadd.f32 %v12943_v13, %v4105_v11 }
 0x22b   : > { %v4257_v40 = vpop.f32.mrf.mxu0  ;;  %v4350_v41 = vmul.f32 %v14768_v0, %v14768_v0  ;;  %v4118_v30 = vadd.f32 %v12400_v36, %v14536_v5  ;;  %v4121_v13 = vadd.f32 %v12403_v35, %v14545_v31 }
 0x22c   : > { %v4310_v22 = vadd.f32 %v4309_v29, %v14759_v48  ;;  %v4378_v19 = vadd.f32 %v4377_v1, %v4347_v15  ;;  %v14774_v24 = vadd.f32 %v4257_v40, %v4097_v6  ;;  %v4351_v37 = vmul.f32 %v14779_v25, %v14779_v25 }
 0x22d   : > { %v12946_v50 = vpop.f32.mrf.mxu0 }
 0x22e   : > { %v4379_v4 = vadd.f32 %v4378_v19, %v4348_v33  ;;  %v4311_v47 = vadd.f32 %v4310_v22, %v14774_v24  ;;  %v4349_v63 = vmul.f32 %v14774_v24, %v14774_v24  ;;  %v14794_v62 = vadd.f32 %v12946_v50, %v4118_v30 }
 0x22f   : > { %v4270_v55 = vpop.f32.mrf.mxu0 }
 0x230   : > { %v4312_v46 = vadd.f32 %v4311_v47, %v14768_v0  ;;  %v4380_v21 = vadd.f32 %v4379_v4, %v4349_v63  ;;  %v14787_v38 = vadd.f32 %v4270_v55, %v4110_v39  ;;  %v4354_v31 = vmul.f32 %v14794_v62, %v14794_v62 }
 0x231   : > { %v12947_v49 = vpop.f32.mrf.mxu0 }
 0x232   : > { %v4381_v16 = vadd.f32 %v4380_v21, %v4350_v41  ;;  %v4313_v8 = vadd.f32 %v4312_v46, %v14779_v25  ;;  %v4352_v29 = vmul.f32 %v14787_v38, %v14787_v38  ;;  %v14802_v61 = vadd.f32 %v12947_v49, %v4121_v13 }
 0x233   : > { %v4273_v15 = vpop.f32.mrf.mxu0 }
 0x234   : > { %v4314_v1 = vadd.f32 %v4313_v8, %v14787_v38  ;;  %v4382_v5 = vadd.f32 %v4381_v16, %v4351_v37  ;;  %v14800_v27 = vadd.f32 %v4273_v15, %v4113_v60  ;;  %v4355_v22 = vmul.f32 %v14802_v61, %v14802_v61 }
 0x236   : > { %v4383_v6 = vadd.f32 %v4382_v5, %v4352_v29  ;;  %v4315_v11 = vadd.f32 %v4314_v1, %v14800_v27  ;;  %v4353_v52 = vmul.f32 %v14800_v27, %v14800_v27 }
 0x238   : > { %v4316_v40 = vadd.f32 %v4315_v11, %v14794_v62  ;;  %v4384_v9 = vadd.f32 %v4383_v6, %v4353_v52  ;;  %v4432_v52 = vlaneseq }
 0x23a   : > { %v4317_v33 = vadd.f32 %v4316_v40, %v14802_v61  ;;  %v4385_v19 = vadd.f32 %v4384_v9, %v4354_v31 }
 0x23c   : > { %v4318_v2 = vrot.slane %v4317_v33, 4  ;;  %v4386_v36 = vadd.f32 %v4385_v19, %v4355_v22 }
 0x23e   : > { %v4319_v50 = vadd.f32 %v4318_v2, %v4317_v33  ;;  %v4387_v39 = vrot.slane %v4386_v36, 4 }
 0x240   : > { %v4320_v4 = vrot.slane %v4319_v50, 2  ;;  %v4388_v47 = vadd.f32 %v4387_v39, %v4386_v36 }
 0x242   : > { %v4321_v63 = vadd.f32 %v4320_v4, %v4319_v50  ;;  %v4389_v35 = vrot.slane %v4388_v47, 2 }
 0x244   : > { %v4322_v55 = vrot.slane %v4321_v63, 1  ;;  %v4390_v41 = vadd.f32 %v4389_v35, %v4388_v47 }
 0x246   : > { %v4323_v46 = vadd.f32 %v4322_v55, %v4321_v63  ;;  %v4391_v21 = vrot.slane %v4390_v41, 1 }
 0x248   : > { %v4392_v30 = vadd.f32 %v4391_v21, %v4390_v41  ;;  %v14813_v49 = vmul.f32 0.00390625, %v4323_v46 }
 0x24a   : > { %v4394_v37 = vmul.f32 0.00390625, %v4392_v30  ;;  %v4395_v16 = vmul.f32 %v14813_v49, %v14813_v49  ;;  %v4429_v8 = vsub.f32 %v14800_v27, %v14813_v49  ;;  %v4409_v13 = vsub.f32 %v14638_v32, %v14813_v49 }
 0x24b   : > { %v4412_v1 = vsub.f32 %v14657_v10, %v14813_v49  ;;  %v4413_v29 = vsub.f32 %v14674_v54, %v14813_v49  ;;  %v4414_v5 = vsub.f32 %v14666_v28, %v14813_v49  ;;  %v4415_v6 = vsub.f32 %v14681_v45, %v14813_v49 }
 0x24c   : > { %v4396_v60 = vsub.f32 %v4394_v37, %v4395_v16  ;;  %v4416_v27 = vsub.f32 %v14693_v23, %v14813_v49  ;;  %v4417_v11 = vsub.f32 %v14710_v3, %v14813_v49  ;;  %v4418_v32 = vsub.f32 %v14702_v44, %v14813_v49 }
 0x24d   : > { %v4419_v10 = vsub.f32 %v14717_v17, %v14813_v49  ;;  %v4420_v54 = vsub.f32 %v14727_v20, %v14813_v49  ;;  %v4421_v28 = vsub.f32 %v14742_v53, %v14813_v49  ;;  %v4422_v45 = vsub.f32 %v14736_v12, %v14813_v49 }
 0x24e   : > { %v4397_v15 = vadd.f32 1e-05, %v4396_v60  ;;  %v4423_v23 = vsub.f32 %v14749_v14, %v14813_v49  ;;  %v4424_v3 = vsub.f32 %v14759_v48, %v14813_v49  ;;  %v4425_v44 = vsub.f32 %v14774_v24, %v14813_v49  ;;  %v4285_v24 = vld [vmem:[%s18191_s2] sm:$0x1] }
 0x24f   : > { %v4426_v17 = vsub.f32 %v14768_v0, %v14813_v49  ;;  %v4427_v20 = vsub.f32 %v14779_v25, %v14813_v49  ;;  %v4428_v53 = vsub.f32 %v14787_v38, %v14813_v49  ;;  %v4430_v12 = vsub.f32 %v14794_v62, %v14813_v49 }
 0x250   : > { %13581 = vrsqrt.f32 %v4397_v15  ;;  %v4431_v14 = vsub.f32 %v14802_v61, %v14813_v49  ;;  %v14859_v48 = vshrl.u32 %v4432_v52, 7  ;;  %v4400_v38 = vsub.f32 %v14555_v18, %v14813_v49 }
 0x251   : > { %v4401_v62 = vsub.f32 %v14563_v56, %v14813_v49  ;;  %v4402_v61 = vsub.f32 %v14560_v42, %v14813_v49  ;;  %v4403_v40 = vsub.f32 %v14572_v57, %v14813_v49  ;;  %v4404_v22 = vsub.f32 %v14585_v7, %v14813_v49  ;;  %v14884_v56 = vld [vmem:[%s18192_s3] ss:$0 sm:$0xff] }
 0x252   : > { %18423 = vst [vmem:[#allocation11_spill] sm:$0xff] %v14859_v48  ;;  %v18205_v0 = vsub.s32 0, %v14859_v48  ;;  %v4405_v33 = vsub.f32 %v14602_v59, %v14813_v49  ;;  %v4406_v18 = vsub.f32 %v14594_v34, %v14813_v49  ;;  %v4407_v42 = vsub.f32 %v14609_v26, %v14813_v49 }
 0x253   : > { %v4408_v57 = vsub.f32 %v14621_v58, %v14813_v49  ;;  %v4410_v7 = vsub.f32 %v14630_v43, %v14813_v49  ;;  %v4411_v59 = vsub.f32 %v14645_v51, %v14813_v49 }
 0x25d   : > { %v13582_v31 = vpop.eup %13581 }
 0x25e   : > { %v4399_v25 = vmul.f32 %v13582_v31, %v4285_v24 }
 0x260   : > { %v4435_v9 = vrot.slane %v4399_v25, %v18205_v0 }
 0x262   : > { %v4465_v19 = vmul.f32 %v4435_v9, %v4429_v8  ;;  %v4436_v2 = vmul.f32 %v4435_v9, %v4400_v38  ;;  %v4437_v34 = vmul.f32 %v4435_v9, %v4401_v62  ;;  %v4438_v36 = vmul.f32 %v4435_v9, %v4402_v61 }
 0x263   : > { %v4439_v50 = vmul.f32 %v4435_v9, %v4403_v40  ;;  %v4440_v39 = vmul.f32 %v4435_v9, %v4404_v22  ;;  %v4441_v4 = vmul.f32 %v4435_v9, %v4405_v33  ;;  %v4442_v47 = vmul.f32 %v4435_v9, %v4406_v18 }
 0x264   : > { %v4503_v63 = vadd.f32 %v14884_v56, %v4465_v19  ;;  %v4443_v26 = vmul.f32 %v4435_v9, %v4407_v42  ;;  %v4444_v35 = vmul.f32 %v4435_v9, %v4408_v57  ;;  %v4445_v55 = vmul.f32 %v4435_v9, %v4409_v13 }
 0x265   : > { %v4446_v58 = vmul.f32 %v4435_v9, %v4410_v7  ;;  %v4447_v41 = vmul.f32 %v4435_v9, %v4411_v59  ;;  %v4448_v46 = vmul.f32 %v4435_v9, %v4412_v1  ;;  %v4449_v43 = vmul.f32 %v4435_v9, %v4413_v29 }
 0x266   : > { %v4535_v21 = vmax.f32 %v4503_v63, 0.0  ;;  %v4450_v30 = vmul.f32 %v4435_v9, %v4414_v5  ;;  %v4451_v51 = vmul.f32 %v4435_v9, %v4415_v6  ;;  %v4452_v49 = vmul.f32 %v4435_v9, %v4416_v27 }
 0x267   : > { %v4453_v37 = vmul.f32 %v4435_v9, %v4417_v11  ;;  %v4454_v16 = vmul.f32 %v4435_v9, %v4418_v32  ;;  %v4455_v8 = vmul.f32 %v4435_v9, %v4419_v10  ;;  %v4456_v60 = vmul.f32 %v4435_v9, %v4420_v54 }
 0x268   : > { %v11952_v15 = vpack.c.bf16 %v4535_v21, %v4535_v21  ;;  %v4457_v52 = vmul.f32 %v4435_v9, %v4421_v28  ;;  %v4458_v24 = vmul.f32 %v4435_v9, %v4422_v45  ;;  %v4459_v31 = vmul.f32 %v4435_v9, %v4423_v23 }
 0x269   : > { %v4460_v25 = vmul.f32 %v4435_v9, %v4424_v3  ;;  %v4461_v38 = vmul.f32 %v4435_v9, %v4425_v44  ;;  %v4462_v62 = vmul.f32 %v4435_v9, %v4426_v17  ;;  %v4463_v13 = vmul.f32 %v4435_v9, %v4427_v20 }
 0x26a   : > { %4815 = vst [vmem:[#allocation3 + $0xf8] sm:$0xf] %v11952_v15  ;;  %v4464_v61 = vmul.f32 %v4435_v9, %v4428_v53  ;;  %v4466_v1 = vmul.f32 %v4435_v9, %v4430_v12  ;;  %v4467_v29 = vmul.f32 %v4435_v9, %v4431_v14  ;;  %v14896_v5 = vadd.f32 %v14884_v56, %v4436_v2 }
 0x26b   : > { %v14899_v6 = vadd.f32 %v14884_v56, %v4437_v34  ;;  %v14902_v27 = vadd.f32 %v14884_v56, %v4438_v36  ;;  %v14905_v11 = vadd.f32 %v14884_v56, %v4439_v50  ;;  %v14908_v32 = vadd.f32 %v14884_v56, %v4440_v39 }
 0x26c   : > { %v14911_v10 = vadd.f32 %v14884_v56, %v4441_v4  ;;  %v14914_v54 = vadd.f32 %v14884_v56, %v4442_v47  ;;  %v14917_v28 = vadd.f32 %v14884_v56, %v4443_v26  ;;  %v14920_v45 = vadd.f32 %v14884_v56, %v4444_v35 }
 0x26d   : > { %v14923_v23 = vadd.f32 %v14884_v56, %v4445_v55  ;;  %v14926_v3 = vadd.f32 %v14884_v56, %v4446_v58  ;;  %v14929_v44 = vadd.f32 %v14884_v56, %v4447_v41  ;;  %v14932_v17 = vadd.f32 %v14884_v56, %v4448_v46 }
 0x26e   : > { %v14935_v20 = vadd.f32 %v14884_v56, %v4449_v43  ;;  %v14938_v53 = vadd.f32 %v14884_v56, %v4450_v30  ;;  %v14941_v12 = vadd.f32 %v14884_v56, %v4451_v51  ;;  %v14944_v14 = vadd.f32 %v14884_v56, %v4452_v49 }
 0x26f   : > { %v14947_v40 = vadd.f32 %v14884_v56, %v4453_v37  ;;  %v14950_v9 = vadd.f32 %v14884_v56, %v4454_v16  ;;  %v14953_v22 = vadd.f32 %v14884_v56, %v4455_v8  ;;  %v14956_v33 = vadd.f32 %v14884_v56, %v4456_v60 }
 0x270   : > { %v14959_v18 = vadd.f32 %v14884_v56, %v4457_v52  ;;  %v14962_v42 = vadd.f32 %v14884_v56, %v4458_v24  ;;  %v14965_v57 = vadd.f32 %v14884_v56, %v4459_v31  ;;  %v14968_v7 = vadd.f32 %v14884_v56, %v4460_v25 }
 0x271   : > { %v14971_v59 = vadd.f32 %v14884_v56, %v4461_v38  ;;  %v14974_v19 = vadd.f32 %v14884_v56, %v4462_v62  ;;  %v14977_v2 = vadd.f32 %v14884_v56, %v4463_v13  ;;  %v14980_v34 = vadd.f32 %v14884_v56, %v4464_v61 }
 0x272   : > { %v14983_v36 = vadd.f32 %v14884_v56, %v4466_v1  ;;  %v14986_v50 = vadd.f32 %v14884_v56, %v4467_v29  ;;  %v4506_v39 = vmax.f32 %v14896_v5, 0.0  ;;  %v4507_v4 = vmax.f32 %v14899_v6, 0.0 }
 0x273   : > { %v4508_v47 = vmax.f32 %v14902_v27, 0.0  ;;  %v4509_v63 = vmax.f32 %v14905_v11, 0.0  ;;  %v4510_v26 = vmax.f32 %v14908_v32, 0.0  ;;  %v4511_v35 = vmax.f32 %v14911_v10, 0.0 }
 0x274   : > { %v4512_v55 = vmax.f32 %v14914_v54, 0.0  ;;  %v4513_v58 = vmax.f32 %v14917_v28, 0.0  ;;  %v4514_v41 = vmax.f32 %v14920_v45, 0.0  ;;  %v4515_v56 = vmax.f32 %v14923_v23, 0.0 }
 0x275   : > { %v4516_v46 = vmax.f32 %v14926_v3, 0.0  ;;  %v4517_v43 = vmax.f32 %v14929_v44, 0.0  ;;  %v4518_v21 = vmax.f32 %v14932_v17, 0.0  ;;  %v4519_v30 = vmax.f32 %v14935_v20, 0.0 }
 0x276   : > { %v4520_v51 = vmax.f32 %v14938_v53, 0.0  ;;  %v4521_v49 = vmax.f32 %v14941_v12, 0.0  ;;  %v4522_v37 = vmax.f32 %v14944_v14, 0.0  ;;  %v4523_v16 = vmax.f32 %v14947_v40, 0.0 }
 0x277   : > { %v4524_v8 = vmax.f32 %v14950_v9, 0.0  ;;  %v4525_v60 = vmax.f32 %v14953_v22, 0.0  ;;  %v4526_v15 = vmax.f32 %v14956_v33, 0.0  ;;  %v4527_v52 = vmax.f32 %v14959_v18, 0.0 }
 0x278   : > { %v4528_v24 = vmax.f32 %v14962_v42, 0.0  ;;  %v4529_v31 = vmax.f32 %v14965_v57, 0.0  ;;  %v4530_v25 = vmax.f32 %v14968_v7, 0.0  ;;  %v4531_v38 = vmax.f32 %v14971_v59, 0.0 }
 0x279   : > { %v4532_v62 = vmax.f32 %v14974_v19, 0.0  ;;  %v4533_v13 = vmax.f32 %v14977_v2, 0.0  ;;  %v4534_v61 = vmax.f32 %v14980_v34, 0.0  ;;  %v4536_v1 = vmax.f32 %v14983_v36, 0.0 }
 0x27a   : > { %v4537_v29 = vmax.f32 %v14986_v50, 0.0  ;;  %v11923_v5 = vpack.c.bf16 %v4506_v39, %v4506_v39  ;;  %v11924_v6 = vpack.c.bf16 %v4507_v4, %v4507_v4  ;;  %v11925_v27 = vpack.c.bf16 %v4508_v47, %v4508_v47  ;;  %v7405_v39 = vld [vmem:[#allocation3 + $0x3c] sm:$0x1]  ;;  %v15019_v4 = vld [vmem:[#allocation3 + $0xf8] sm:$0xf] }
 0x27b   : > { %v11926_v11 = vpack.c.bf16 %v4509_v63, %v4509_v63  ;;  %v11927_v32 = vpack.c.bf16 %v4510_v26, %v4510_v26  ;;  %v11928_v10 = vpack.c.bf16 %v4511_v35, %v4511_v35  ;;  %v11929_v54 = vpack.c.bf16 %v4512_v55, %v4512_v55  ;;  %18424 = vst [vmem:[#allocation14_spill] sm:$0xff] %v15019_v4  ;;  %v5394_v47 = vld [vmem:[#allocation3 + $0xf8] sm:$0xf] }
 0x27c   : > { %v11930_v28 = vpack.c.bf16 %v4513_v58, %v4513_v58  ;;  %v11931_v45 = vpack.c.bf16 %v4514_v41, %v4514_v41  ;;  %4786 = vst [vmem:[#allocation3 + $0x14] sm:$0xf] %v11923_v5  ;;  %v11932_v23 = vpack.c.bf16 %v4515_v56, %v4515_v56  ;;  %v11933_v3 = vpack.c.bf16 %v4516_v46, %v4516_v46  ;;  %v15021_v63 = vld [vmem:[#allocation3 + $0xf8] sm:$0xf] }
 0x27d   : > { %v11934_v44 = vpack.c.bf16 %v4517_v43, %v4517_v43  ;;  %v11935_v17 = vpack.c.bf16 %v4518_v21, %v4518_v21  ;;  %4787 = vst [vmem:[#allocation3 + $0x18] sm:$0xf] %v11924_v6  ;;  %4788 = vst [vmem:[#allocation3 + $0x24] sm:$0xf] %v11925_v27  ;;  %v11936_v20 = vpack.c.bf16 %v4519_v30, %v4519_v30  ;;  %v6418_v26 = vld [vmem:[#allocation3 + $0xf8] sm:$0xf] }
 0x27e   : > { %4789 = vst [vmem:[#allocation3 + $0x28] sm:$0xf] %v11926_v11  ;;  %4790 = vst [vmem:[#allocation3 + $0x34] sm:$0xf] %v11927_v32  ;;  %v11937_v53 = vpack.c.bf16 %v4520_v51, %v4520_v51  ;;  %v11938_v12 = vpack.c.bf16 %v4521_v49, %v4521_v49  ;;  %v11939_v14 = vpack.c.bf16 %v4522_v37, %v4522_v37  ;;  %v7492_v35 = vshll.u32 %v7405_v39, 16 }
 0x27f   : > { %4791 = vst [vmem:[#allocation3 + $0x38] sm:$0xf] %v11928_v10  ;;  %4792 = vst [vmem:[#allocation3 + $0x44] sm:$0xf] %v11929_v54  ;;  %v11940_v40 = vpack.c.bf16 %v4523_v16, %v4523_v16  ;;  %v11941_v9 = vpack.c.bf16 %v4524_v8, %v4524_v8  ;;  %v11942_v22 = vpack.c.bf16 %v4525_v60, %v4525_v60  ;;  %v15023_v55 = vld [vmem:[#allocation3 + $0xf8] sm:$0xf] }
 0x280   : > { %4793 = vst [vmem:[#allocation3 + $0x48] sm:$0xf] %v11930_v28  ;;  %4794 = vst [vmem:[#allocation3 + $0x54] sm:$0xf] %v11931_v45  ;;  %v11943_v33 = vpack.c.bf16 %v4526_v15, %v4526_v15  ;;  %v11944_v18 = vpack.c.bf16 %v4527_v52, %v4527_v52  ;;  %v11945_v42 = vpack.c.bf16 %v4528_v24, %v4528_v24  ;;  %v5213_v58 = vshrl.u32 %v15019_v4, 16 }
 0x281   : > { %4795 = vst [vmem:[#allocation3 + $0x58] sm:$0xf] %v11932_v23  ;;  %4796 = vst [vmem:[#allocation3 + $0x64] sm:$0xf] %v11933_v3  ;;  %v11946_v57 = vpack.c.bf16 %v4529_v31, %v4529_v31  ;;  %v11947_v7 = vpack.c.bf16 %v4530_v25, %v4530_v25  ;;  %v11948_v59 = vpack.c.bf16 %v4531_v38, %v4531_v38  ;;  %v5773_v41 = vshrl.u32 %v5394_v47, 16 }
 0x282   : > { %4797 = vst [vmem:[#allocation3 + $0x68] sm:$0xf] %v11934_v44  ;;  %4798 = vst [vmem:[#allocation3 + $0x74] sm:$0xf] %v11935_v17  ;;  %v11949_v19 = vpack.c.bf16 %v4532_v62, %v4532_v62  ;;  %v11950_v2 = vpack.c.bf16 %v4533_v13, %v4533_v13  ;;  %v11951_v34 = vpack.c.bf16 %v4534_v61, %v4534_v61  ;;  %v6218_v56 = vshrl.u32 %v15021_v63, 16 }
 0x283   : > { %4799 = vst [vmem:[#allocation3 + $0x78] sm:$0xf] %v11936_v20  ;;  %4800 = vst [vmem:[#allocation3 + $0x84] sm:$0xf] %v11937_v53  ;;  %v11953_v36 = vpack.c.bf16 %v4536_v1, %v4536_v1  ;;  %v11954_v50 = vpack.c.bf16 %v4537_v29, %v4537_v29  ;;  %v6773_v46 = vshrl.u32 %v6418_v26, 16  ;;  %v7221_v21 = vshrl.u32 %v15023_v55, 16 }
 0x284   : > { %4801 = vst [vmem:[#allocation3 + $0x88] sm:$0xf] %v11938_v12  ;;  %4802 = vst [vmem:[#allocation3 + $0x94] sm:$0xf] %v11939_v14  ;;  %v7440_v43 = vld [vmem:[#allocation3 + $0xf8] sm:$0xf] }
 0x285   : > { %4803 = vst [vmem:[#allocation3 + $0x98] sm:$0xf] %v11940_v40  ;;  %4804 = vst [vmem:[#allocation3 + $0xa4] sm:$0xf] %v11941_v9  ;;  %v15028_v30 = vrot.slane %v7492_v35, 5  ;;  %v7770_v37 = vshll.u32 %v7440_v43, 16 }
 0x286   : > { %4805 = vst [vmem:[#allocation3 + $0xa8] sm:$0xf] %v11942_v22  ;;  %4806 = vst [vmem:[#allocation3 + $0xb4] sm:$0xf] %v11943_v33  ;;  %v15032_v16 = vld [vmem:[#allocation3 + $0x14] sm:$0xf] }
 0x287   : > { %4807 = vst [vmem:[#allocation3 + $0xb8] sm:$0xf] %v11944_v18  ;;  %4808 = vst [vmem:[#allocation3 + $0xc4] sm:$0xf] %v11945_v42  ;;  %v15034_v8 = vrot.slane %v5213_v58, 7  ;;  %v15036_v60 = vrot.slane %v5773_v41, 4 }
 0x288   : > { %4809 = vst [vmem:[#allocation3 + $0xc8] sm:$0xf] %v11946_v57  ;;  %4810 = vst [vmem:[#allocation3 + $0xd4] sm:$0xf] %v11947_v7  ;;  %v15038_v15 = vrot.slane %v6218_v56, 7  ;;  %v15040_v52 = vrot.slane %v6773_v46, 4 }
 0x289   : > { %4811 = vst [vmem:[#allocation3 + $0xd8] sm:$0xf] %v11948_v59  ;;  %4812 = vst [vmem:[#allocation3 + $0xe4] sm:$0xf] %v11949_v19  ;;  %v15042_v24 = vld [vmem:[#allocation3 + $0x18] sm:$0xf] }
 0x28a   : > { %4813 = vst [vmem:[#allocation3 + $0xe8] sm:$0xf] %v11950_v2  ;;  %4814 = vst [vmem:[#allocation3 + $0xf4] sm:$0xf] %v11951_v34  ;;  %v7774_v25 = vshrl.u32 %v7440_v43, 16  ;;  %v15049_v13 = vrot.slane %v7221_v21, 7 }
 0x28b   : > { %4816 = vst [vmem:[#allocation3 + $0x104] sm:$0xf] %v11953_v36  ;;  %4817 = vst [vmem:[#allocation3 + $0x108] sm:$0xf] %v11954_v50  ;;  %v15045_v38 = vld [vmem:[#allocation3 + $0x24] sm:$0xf] }
 0x28c   : > { %18425 = vst [vmem:[#allocation15_spill] sm:$0xff] %v15021_v63  ;;  %18426 = vst [vmem:[#allocation13_spill] sm:$0xff] %v15023_v55  ;;  %v15047_v62 = vld [vmem:[#allocation3 + $0x28] sm:$0xf]  ;;  %v15051_v61 = vld [vmem:[#allocation3 + $0x34] sm:$0xf] }
 0x28d   : > { %18427 = vst [vmem:[#allocation12_spill] sm:$0xff] %v15034_v8  ;;  %18428 = vst [vmem:[#allocation16_spill] sm:$0xff] %v15036_v60  ;;  %v15053_v1 = vld [vmem:[#allocation3 + $0x38] sm:$0xf]  ;;  %v4896_v29 = vshrl.u32 %v15032_v16, 16  ;;  %v15056_v5 = vrot.slane %v7770_v37, 5 }
 0x28e   : > { %18429 = vst [vmem:[#allocation19_spill] sm:$0xff] %v15038_v15  ;;  %18430 = vst [vmem:[#allocation20_spill] sm:$0xff] %v15040_v52  ;;  %v15058_v6 = vld [vmem:[#allocation3 + $0x44] sm:$0xf]  ;;  %v15060_v27 = vld [vmem:[#allocation3 + $0x48] sm:$0xf] }
 0x28f   : > { %18431 = vst [vmem:[#allocation17_spill] sm:$0xff] %v15049_v13  ;;  %18432 = vst [vmem:[#allocation22_spill] sm:$0xff] %v15056_v5  ;;  %v4905_v11 = vshrl.u32 %v15042_v24, 16  ;;  %v15063_v32 = vld [vmem:[#allocation3 + $0x54] sm:$0xf]  ;;  %v4918_v54 = vshrl.u32 %v15045_v38, 16 }
 0x290   : > { %v15065_v10 = vld [vmem:[#allocation3 + $0x58] sm:$0xf]  ;;  %v4927_v28 = vshrl.u32 %v15047_v62, 16  ;;  %v15069_v45 = vrot.slane %v7774_v25, 4  ;;  %v15071_v23 = vld [vmem:[#allocation3 + $0x64] sm:$0xf] }
 0x291   : > { %v15073_v3 = vld [vmem:[#allocation3 + $0x68] sm:$0xf]  ;;  %v4940_v17 = vshrl.u32 %v15051_v61, 16  ;;  %v4949_v20 = vshrl.u32 %v15053_v1, 16  ;;  %v15078_v53 = vld [vmem:[#allocation3 + $0x74] sm:$0xf] }
 0x292   : > { %18433 = vst [vmem:[#allocation23_spill] sm:$0xff] %v15069_v45  ;;  %18434 = vst [vmem:[#allocation21_spill] sm:$0xff] %v15073_v3  ;;  %v15080_v12 = vrot.slane %v4896_v29, 7  ;;  %v15085_v22 = vld [vmem:[#allocation3 + $0x78] sm:$0xf]  ;;  %v15087_v33 = vrot.slane %v4905_v11, 7 }
 0x293   : > { %18435 = vst [vmem:[#allocation18_spill] sm:$0xff] %v15078_v53  ;;  %18436 = vst [vmem:[#allocation24_spill] sm:$0xff] %v15085_v22  ;;  %v4962_v42 = vshrl.u32 %v15058_v6, 16  ;;  %v4971_v57 = vshrl.u32 %v15060_v27, 16  ;;  %v15092_v7 = vld [vmem:[#allocation3 + $0x84] sm:$0xf] }
 0x294   : > { %18437 = vst [vmem:[#allocation26_spill] sm:$0xff] %v15092_v7  ;;  %v15094_v59 = vld [vmem:[#allocation3 + $0x88] sm:$0xf]  ;;  %v15096_v19 = vrot.slane %v4918_v54, 7  ;;  %v15098_v2 = vrot.slane %v4927_v28, 7  ;;  %v4984_v34 = vshrl.u32 %v15063_v32, 16 }
 0x295   : > { %18438 = vst [vmem:[#allocation27_spill] sm:$0xff] %v15094_v59  ;;  %v4993_v36 = vshrl.u32 %v15065_v10, 16  ;;  %v15102_v50 = vld [vmem:[#allocation3 + $0x94] sm:$0xf]  ;;  %v15104_v39 = vrot.slane %v4940_v17, 7  ;;  %v15106_v47 = vrot.slane %v4949_v20, 7 }
 0x296   : > { %18439 = vst [vmem:[#allocation25_spill] sm:$0xff] %v15096_v19  ;;  %18440 = vst [vmem:[#allocation29_spill] sm:$0xff] %v15102_v50  ;;  %v15110_v58 = vld [vmem:[#allocation3 + $0x98] sm:$0xf]  ;;  %v5006_v46 = vshrl.u32 %v15071_v23, 16  ;;  %v5015_v43 = vshrl.u32 %v15073_v3, 16 }
 0x297   : > { %18441 = vst [vmem:[#allocation28_spill] sm:$0xff] %v15104_v39  ;;  %18442 = vst [vmem:[#allocation30_spill] sm:$0xff] %v15110_v58  ;;  %v15116_v21 = vld [vmem:[#allocation3 + $0xa4] sm:$0xf]  ;;  %v15118_v37 = vld [vmem:[#allocation3 + $0xa8] sm:$0xf] }
 0x298   : > { %18443 = vst [vmem:[#allocation31_spill] sm:$0xff] %v15116_v21  ;;  %18444 = vst [vmem:[#allocation33_spill] sm:$0xff] %v15118_v37  ;;  %v15120_v25 = vrot.slane %v4962_v42, 7  ;;  %v15122_v29 = vrot.slane %v4971_v57, 7  ;;  %v5028_v11 = vshrl.u32 %v15078_v53, 16  ;;  %v5037_v54 = vshrl.u32 %v15085_v22, 16 }
 0x299   : > { %v15126_v28 = vld [vmem:[#allocation3 + $0xb4] sm:$0xf]  ;;  %v15128_v17 = vrot.slane %v4984_v34, 7  ;;  %v15130_v20 = vrot.slane %v4993_v36, 7  ;;  %v15134_v49 = vld [vmem:[#allocation3 + $0xb8] sm:$0xf] }
 0x29a   : > { %18445 = vst [vmem:[#allocation32_spill] sm:$0xff] %v15126_v28  ;;  %18446 = vst [vmem:[#allocation34_spill] sm:$0xff] %v15134_v49  ;;  %v5050_v51 = vshrl.u32 %v15092_v7, 16  ;;  %v5059_v56 = vshrl.u32 %v15094_v59, 16  ;;  %v15140_v41 = vld [vmem:[#allocation3 + $0xc4] sm:$0xf] }
 0x29b   : > { %18447 = vst [vmem:[#allocation35_spill] sm:$0xff] %v15140_v41  ;;  %v15142_v34 = vld [vmem:[#allocation3 + $0xc8] sm:$0xf]  ;;  %v15144_v36 = vrot.slane %v5006_v46, 7  ;;  %v15146_v35 = vrot.slane %v5015_v43, 7  ;;  %v5072_v31 = vshrl.u32 %v15102_v50, 16 }
 0x29c   : > { %18448 = vst [vmem:[#allocation37_spill] sm:$0xff] %v15142_v34  ;;  %v5081_v0 = vshrl.u32 %v15110_v58, 16  ;;  %v15150_v26 = vld [vmem:[#allocation3 + $0xd4] sm:$0xf]  ;;  %v15152_v42 = vrot.slane %v5028_v11, 7  ;;  %v15154_v57 = vrot.slane %v5037_v54, 7 }
 0x29d   : > { %18449 = vst [vmem:[#allocation36_spill] sm:$0xff] %v15146_v35  ;;  %18450 = vst [vmem:[#allocation38_spill] sm:$0xff] %v15150_v26  ;;  %v15158_v40 = vld [vmem:[#allocation3 + $0xd8] sm:$0xf]  ;;  %v5094_v14 = vshrl.u32 %v15116_v21, 16  ;;  %v5103_v44 = vshrl.u32 %v15118_v37, 16 }
 0x29e   : > { %18451 = vst [vmem:[#allocation39_spill] sm:$0xff] %v15152_v42  ;;  %18452 = vst [vmem:[#allocation40_spill] sm:$0xff] %v15154_v57  ;;  %v15164_v48 = vld [vmem:[#allocation3 + $0xe4] sm:$0xf]  ;;  %v15166_v11 = vrot.slane %v5050_v51, 7  ;;  %v15168_v54 = vrot.slane %v5059_v56, 7 }
 0x29f   : > { %18453 = vst [vmem:[#allocation41_spill] sm:$0xff] %v15158_v40  ;;  %18454 = vst [vmem:[#allocation42_spill] sm:$0xff] %v15164_v48  ;;  %v5116_v9 = vshrl.u32 %v15126_v28, 16  ;;  %v5351_v45 = vld [vmem:[#allocation3 + $0x14] sm:$0xf]  ;;  %v15174_v46 = vrot.slane %v5072_v31, 7 }
 0x2a0   : > { %18455 = vst [vmem:[#allocation43_spill] sm:$0xff] %v15166_v11  ;;  %18456 = vst [vmem:[#allocation44_spill] sm:$0xff] %v15168_v54  ;;  %v15172_v52 = vld [vmem:[#allocation3 + $0xe8] sm:$0xf]  ;;  %v15176_v43 = vrot.slane %v5081_v0, 7  ;;  %v5125_v13 = vshrl.u32 %v15134_v49, 16 }
 0x2a1   : > { %18457 = vst [vmem:[#allocation45_spill] sm:$0xff] %v15172_v52  ;;  %18458 = vst [vmem:[#allocation46_spill] sm:$0xff] %v15174_v46  ;;  %v15180_v5 = vld [vmem:[#allocation3 + $0xf4] sm:$0xf]  ;;  %v5138_v18 = vshrl.u32 %v15140_v41, 16  ;;  %v5147_v60 = vshrl.u32 %v15142_v34, 16 }
 0x2a2   : > { %18459 = vst [vmem:[#allocation47_spill] sm:$0xff] %v15176_v43  ;;  %18460 = vst [vmem:[#allocation48_spill] sm:$0xff] %v15180_v5  ;;  %v15186_v63 = vrot.slane %v5094_v14, 7  ;;  %v15188_v31 = vrot.slane %v5103_v44, 7  ;;  %v5160_v0 = vshrl.u32 %v15150_v26, 16  ;;  %v5169_v55 = vshrl.u32 %v15158_v40, 16 }
 0x2a3   : > { %v15192_v15 = vrot.slane %v5116_v9, 7  ;;  %v5182_v56 = vshrl.u32 %v15164_v48, 16  ;;  %v5352_v8 = vld [vmem:[#allocation3 + $0x18] sm:$0xf]  ;;  %v15197_v28 = vrot.slane %v5125_v13, 7  ;;  %v5191_v14 = vshrl.u32 %v15172_v52, 16 }
 0x2a4   : > { %18461 = vst [vmem:[#allocation49_spill] sm:$0xff] %v15186_v63  ;;  %18462 = vst [vmem:[#allocation50_spill] sm:$0xff] %v15188_v31  ;;  %v5204_v44 = vshrl.u32 %v15180_v5, 16  ;;  %v5354_v37 = vld [vmem:[#allocation3 + $0x24] sm:$0xf]  ;;  %v5424_v63 = vshrl.u32 %v5351_v45, 16 }
 0x2a5   : > { %18463 = vst [vmem:[#allocation51_spill] sm:$0xff] %v15192_v15  ;;  %18464 = vst [vmem:[#allocation52_spill] sm:$0xff] %v15197_v28  ;;  %v15201_v31 = vld [vmem:[#allocation3 + $0x28] sm:$0xf]  ;;  %v5357_v21 = vld [vmem:[#allocation3 + $0x34] sm:$0xf] }
 0x2a6   : > { %18465 = vst [vmem:[#allocation53_spill] sm:$0xff] %v15201_v31  ;;  %v15203_v9 = vrot.slane %v5138_v18, 7  ;;  %v15205_v15 = vrot.slane %v5147_v60, 7  ;;  %v5358_v41 = vld [vmem:[#allocation3 + $0x38] sm:$0xf]  ;;  %v15209_v49 = vrot.slane %v5160_v0, 7 }
 0x2a7   : > { %v5360_v13 = vld [vmem:[#allocation3 + $0x44] sm:$0xf]  ;;  %v15211_v28 = vrot.slane %v5169_v55, 7  ;;  %v15215_v46 = vld [vmem:[#allocation3 + $0x48] sm:$0xf]  ;;  %v15217_v18 = vrot.slane %v5182_v56, 7 }
 0x2a8   : > { %18466 = vst [vmem:[#allocation54_spill] sm:$0xff] %v15203_v9  ;;  %18467 = vst [vmem:[#allocation55_spill] sm:$0xff] %v15205_v15  ;;  %v5363_v34 = vld [vmem:[#allocation3 + $0x54] sm:$0xf]  ;;  %v5427_v4 = vshll.u32 %v5351_v45, 16  ;;  %v15221_v26 = vrot.slane %v5191_v14, 7 }
 0x2a9   : > { %18468 = vst [vmem:[#allocation56_spill] sm:$0xff] %v15209_v49  ;;  %18469 = vst [vmem:[#allocation57_spill] sm:$0xff] %v15211_v28  ;;  %v15223_v0 = vrot.slane %v5204_v44, 7  ;;  %v5364_v55 = vld [vmem:[#allocation3 + $0x58] sm:$0xf]  ;;  %v15225_v49 = vrot.slane %v5424_v63, 4 }
 0x2aa   : > { %18470 = vst [vmem:[#allocation58_spill] sm:$0xff] %v15215_v46  ;;  %18471 = vst [vmem:[#allocation59_spill] sm:$0xff] %v15217_v18  ;;  %v5437_v50 = vshrl.u32 %v5352_v8, 16  ;;  %v5366_v40 = vld [vmem:[#allocation3 + $0x64] sm:$0xf]  ;;  %v5448_v7 = vshrl.u32 %v5354_v37, 16 }
 0x2ab   : > { %18472 = vst [vmem:[#allocation60_spill] sm:$0xff] %v15221_v26  ;;  %18473 = vst [vmem:[#allocation61_spill] sm:$0xff] %v15223_v0  ;;  %v5451_v48 = vshll.u32 %v5354_v37, 16  ;;  %v5461_v56 = vshrl.u32 %v15201_v31, 16  ;;  %v5472_v18 = vshrl.u32 %v5357_v21, 16  ;;  %v5475_v52 = vshll.u32 %v5357_v21, 16 }
 0x2ac   : > { %18474 = vst [vmem:[#allocation62_spill] sm:$0xff] %v15225_v49  ;;  %v5485_v51 = vshrl.u32 %v5358_v41, 16  ;;  %v5496_v5 = vshrl.u32 %v5360_v13, 16  ;;  %v15229_v45 = vld [vmem:[#allocation3 + $0x68] sm:$0xf]  ;;  %v15231_v14 = vrot.slane %v5427_v4, 5 }
 0x2ad   : > { %18475 = vst [vmem:[#allocation63_spill] sm:$0xff] %v15229_v45  ;;  %v5499_v44 = vshll.u32 %v5360_v13, 16  ;;  %v5509_v63 = vshrl.u32 %v15215_v46, 16  ;;  %v5520_v0 = vshrl.u32 %v5363_v34, 16  ;;  %v5369_v8 = vld [vmem:[#allocation3 + $0x74] sm:$0xf] }
 0x2ae   : > { %18476 = vst [vmem:[#allocation64_spill] sm:$0xff] %v15231_v14  ;;  %v5370_v26 = vld [vmem:[#allocation3 + $0x78] sm:$0xf]  ;;  %v5372_v28 = vld [vmem:[#allocation3 + $0x84] sm:$0xf]  ;;  %v15234_v37 = vrot.slane %v5437_v50, 4 }
 0x2af   : > { %v5523_v15 = vshll.u32 %v5363_v34, 16  ;;  %v5533_v9 = vshrl.u32 %v5364_v55, 16  ;;  %v5544_v11 = vshrl.u32 %v5366_v40, 16  ;;  %v15236_v60 = vld [vmem:[#allocation3 + $0x88] sm:$0xf]  ;;  %v15238_v41 = vrot.slane %v5448_v7, 4 }
 0x2b0   : > { %18477 = vst [vmem:[#allocation65_spill] sm:$0xff] %v15234_v37  ;;  %18478 = vst [vmem:[#allocation66_spill] sm:$0xff] %v15236_v60  ;;  %v15240_v21 = vrot.slane %v5451_v48, 5  ;;  %v15242_v4 = vrot.slane %v5461_v56, 4  ;;  %v15244_v13 = vrot.slane %v5472_v18, 4  ;;  %v15246_v43 = vrot.slane %v5475_v52, 5 }
 0x2b1   : > { %18479 = vst [vmem:[#allocation67_spill] sm:$0xff] %v15238_v41  ;;  %v5375_v58 = vld [vmem:[#allocation3 + $0x94] sm:$0xf]  ;;  %v15248_v59 = vrot.slane %v5485_v51, 4  ;;  %v15250_v50 = vrot.slane %v5496_v5, 4  ;;  %v15253_v54 = vrot.slane %v5499_v44, 5 }
 0x2b2   : > { %18480 = vst [vmem:[#allocation68_spill] sm:$0xff] %v15240_v21  ;;  %18481 = vst [vmem:[#allocation69_spill] sm:$0xff] %v15242_v4  ;;  %v5376_v55 = vld [vmem:[#allocation3 + $0x98] sm:$0xf]  ;;  %v15255_v7 = vrot.slane %v5509_v63, 4  ;;  %v15257_v48 = vrot.slane %v5520_v0, 4 }
 0x2b3   : > { %18482 = vst [vmem:[#allocation70_spill] sm:$0xff] %v15248_v59  ;;  %v5547_v56 = vshll.u32 %v5366_v40, 16  ;;  %v5378_v22 = vld [vmem:[#allocation3 + $0xa4] sm:$0xf]  ;;  %v15259_v18 = vrot.slane %v5523_v15, 5  ;;  %v15261_v57 = vrot.slane %v5533_v9, 4 }
 0x2b4   : > { %18483 = vst [vmem:[#allocation71_spill] sm:$0xff] %v15255_v7  ;;  %18484 = vst [vmem:[#allocation72_spill] sm:$0xff] %v15257_v48  ;;  %v15263_v52 = vrot.slane %v5544_v11, 4  ;;  %v5557_v5 = vshrl.u32 %v15229_v45, 16  ;;  %v15266_v51 = vld [vmem:[#allocation3 + $0xa8] sm:$0xf] }
 0x2b5   : > { %18485 = vst [vmem:[#allocation73_spill] sm:$0xff] %v15259_v18  ;;  %18486 = vst [vmem:[#allocation74_spill] sm:$0xff] %v15261_v57  ;;  %v5568_v34 = vshrl.u32 %v5369_v8, 16  ;;  %v5571_v53 = vshll.u32 %v5369_v8, 16  ;;  %v5581_v44 = vshrl.u32 %v5370_v26, 16  ;;  %v5592_v42 = vshrl.u32 %v5372_v28, 16 }
 0x2b6   : > { %18487 = vst [vmem:[#allocation75_spill] sm:$0xff] %v15263_v52  ;;  %18488 = vst [vmem:[#allocation76_spill] sm:$0xff] %v15266_v51  ;;  %v5381_v63 = vld [vmem:[#allocation3 + $0xb4] sm:$0xf]  ;;  %v5595_v7 = vshll.u32 %v5372_v28, 16  ;;  %v5605_v40 = vshrl.u32 %v15236_v60, 16 }
 0x2b7   : > { %v5616_v15 = vshrl.u32 %v5375_v58, 16  ;;  %v5382_v46 = vld [vmem:[#allocation3 + $0xb8] sm:$0xf]  ;;  %v15270_v9 = vrot.slane %v5547_v56, 5  ;;  %v5619_v11 = vshll.u32 %v5375_v58, 16  ;;  %v5629_v57 = vshrl.u32 %v5376_v55, 16 }
 0x2b8   : > { %v5640_v52 = vshrl.u32 %v5378_v22, 16  ;;  %v5384_v59 = vld [vmem:[#allocation3 + $0xc4] sm:$0xf]  ;;  %v15272_v18 = vld [vmem:[#allocation3 + $0xc8] sm:$0xf]  ;;  %v15274_v8 = vrot.slane %v5557_v5, 4 }
 0x2b9   : > { %18489 = vst [vmem:[#allocation77_spill] sm:$0xff] %v15270_v9  ;;  %18490 = vst [vmem:[#allocation78_spill] sm:$0xff] %v15272_v18  ;;  %v5387_v48 = vld [vmem:[#allocation3 + $0xd4] sm:$0xf]  ;;  %v5643_v4 = vshll.u32 %v5378_v22, 16  ;;  %v5653_v28 = vshrl.u32 %v15266_v51, 16 }
 0x2ba   : > { %18491 = vst [vmem:[#allocation79_spill] sm:$0xff] %v15274_v8  ;;  %v5388_v0 = vld [vmem:[#allocation3 + $0xd8] sm:$0xf]  ;;  %v15278_v45 = vrot.slane %v5568_v34, 4  ;;  %v15280_v37 = vrot.slane %v5571_v53, 5  ;;  %v15282_v56 = vrot.slane %v5581_v44, 4 }
 0x2bb   : > { %v15284_v58 = vrot.slane %v5592_v42, 4  ;;  %v5390_v55 = vld [vmem:[#allocation3 + $0xe4] sm:$0xf]  ;;  %v15286_v9 = vrot.slane %v5595_v7, 5  ;;  %v15288_v31 = vrot.slane %v5605_v40, 4  ;;  %v15290_v5 = vrot.slane %v5616_v15, 4 }
 0x2bc   : > { %18492 = vst [vmem:[#allocation80_spill] sm:$0xff] %v15278_v45  ;;  %18493 = vst [vmem:[#allocation81_spill] sm:$0xff] %v15280_v37  ;;  %v5664_v26 = vshrl.u32 %v5381_v63, 16  ;;  %v15292_v22 = vld [vmem:[#allocation3 + $0xe8] sm:$0xf]  ;;  %v15294_v60 = vrot.slane %v5619_v11, 5 }
 0x2bd   : > { %18494 = vst [vmem:[#allocation82_spill] sm:$0xff] %v15282_v56  ;;  %18495 = vst [vmem:[#allocation83_spill] sm:$0xff] %v15284_v58  ;;  %v15296_v34 = vrot.slane %v5629_v57, 4  ;;  %v15298_v53 = vrot.slane %v5640_v52, 4  ;;  %v5393_v42 = vld [vmem:[#allocation3 + $0xf4] sm:$0xf] }
 0x2be   : > { %18496 = vst [vmem:[#allocation84_spill] sm:$0xff] %v15286_v9  ;;  %18497 = vst [vmem:[#allocation85_spill] sm:$0xff] %v15288_v31  ;;  %v15301_v56 = vrot.slane %v5643_v4, 5  ;;  %v15303_v7 = vrot.slane %v5653_v28, 4  ;;  %v5667_v40 = vshll.u32 %v5381_v63, 16  ;;  %v5677_v31 = vshrl.u32 %v5382_v46, 16 }
 0x2bf   : > { %18498 = vst [vmem:[#allocation86_spill] sm:$0xff] %v15290_v5  ;;  %18499 = vst [vmem:[#allocation87_spill] sm:$0xff] %v15292_v22  ;;  %v5688_v15 = vshrl.u32 %v5384_v59, 16  ;;  %v5691_v5 = vshll.u32 %v5384_v59, 16  ;;  %v5701_v8 = vshrl.u32 %v15272_v18, 16  ;;  %v5712_v9 = vshrl.u32 %v5387_v48, 16 }
 0x2c0   : > { %18500 = vst [vmem:[#allocation88_spill] sm:$0xff] %v15294_v60  ;;  %18501 = vst [vmem:[#allocation89_spill] sm:$0xff] %v15296_v34  ;;  %v15306_v11 = vld [vmem:[#allocation3 + $0x14] sm:$0xf]  ;;  %v15308_v57 = vrot.slane %v5664_v26, 4  ;;  %v5715_v52 = vshll.u32 %v5387_v48, 16 }
 0x2c1   : > { %18502 = vst [vmem:[#allocation90_spill] sm:$0xff] %v15298_v53  ;;  %18503 = vst [vmem:[#allocation91_spill] sm:$0xff] %v15301_v56  ;;  %v5725_v34 = vshrl.u32 %v5388_v0, 16  ;;  %v5736_v53 = vshrl.u32 %v5390_v55, 16  ;;  %v5739_v4 = vshll.u32 %v5390_v55, 16  ;;  %v5749_v28 = vshrl.u32 %v15292_v22, 16 }
 0x2c2   : > { %18504 = vst [vmem:[#allocation92_spill] sm:$0xff] %v15303_v7  ;;  %18505 = vst [vmem:[#allocation93_spill] sm:$0xff] %v15308_v57  ;;  %v5760_v7 = vshrl.u32 %v5393_v42, 16  ;;  %v15312_v63 = vrot.slane %v5667_v40, 5  ;;  %v15314_v46 = vrot.slane %v5677_v31, 4  ;;  %v5763_v59 = vshll.u32 %v5393_v42, 16 }
 0x2c3   : > { %v15316_v51 = vld [vmem:[#allocation3 + $0x18] sm:$0xf]  ;;  %v15318_v56 = vld [vmem:[#allocation3 + $0x24] sm:$0xf]  ;;  %v5901_v26 = vshrl.u32 %v15306_v11, 16  ;;  %v15321_v48 = vrot.slane %v5688_v15, 4 }
 0x2c4   : > { %18506 = vst [vmem:[#allocation94_spill] sm:$0xff] %v15312_v63  ;;  %18507 = vst [vmem:[#allocation95_spill] sm:$0xff] %v15314_v46  ;;  %v15323_v0 = vrot.slane %v5691_v5, 5  ;;  %v15325_v44 = vrot.slane %v5701_v8, 4  ;;  %v15327_v55 = vrot.slane %v5712_v9, 4  ;;  %v15331_v40 = vrot.slane %v5715_v52, 5 }
 0x2c5   : > { %18508 = vst [vmem:[#allocation96_spill] sm:$0xff] %v15321_v48  ;;  %v15329_v18 = vld [vmem:[#allocation3 + $0x28] sm:$0xf]  ;;  %v15333_v31 = vrot.slane %v5725_v34, 4  ;;  %v15335_v42 = vrot.slane %v5736_v53, 4  ;;  %v15340_v15 = vrot.slane %v5739_v4, 5 }
 0x2c6   : > { %18509 = vst [vmem:[#allocation97_spill] sm:$0xff] %v15323_v0  ;;  %18510 = vst [vmem:[#allocation98_spill] sm:$0xff] %v15325_v44  ;;  %v15338_v63 = vld [vmem:[#allocation3 + $0x34] sm:$0xf]  ;;  %v15342_v5 = vrot.slane %v5749_v28, 4  ;;  %v15344_v8 = vrot.slane %v5760_v7, 4 }
 0x2c7   : > { %18511 = vst [vmem:[#allocation99_spill] sm:$0xff] %v15327_v55  ;;  %18512 = vst [vmem:[#allocation100_spill] sm:$0xff] %v15331_v40  ;;  %v15346_v9 = vld [vmem:[#allocation3 + $0x38] sm:$0xf]  ;;  %v18518_v52 = vshll.u32 %v15032_v16, 16  ;;  %v15353_v34 = vrot.slane %v5763_v59, 5 }
 0x2c8   : > { %18513 = vst [vmem:[#allocation101_spill] sm:$0xff] %v15333_v31  ;;  %18514 = vst [vmem:[#allocation102_spill] sm:$0xff] %v15335_v42  ;;  %v15355_v53 = vld [vmem:[#allocation3 + $0x44] sm:$0xf]  ;;  %v15357_v46 = vld [vmem:[#allocation3 + $0x48] sm:$0xf] }
 0x2c9   : > { %18515 = vst [vmem:[#allocation103_spill] sm:$0xff] %v15340_v15  ;;  %18516 = vst [vmem:[#allocation104_spill] sm:$0xff] %v15342_v5  ;;  %v15351_v44 = vor.u32 %v18518_v52, %v15080_v12  ;;  %v15359_v22 = vrot.slane %v5901_v26, 7  ;;  %v18521_v4 = vshll.u32 %v15042_v24, 16  ;;  %v18523_v28 = vshll.u32 %v15045_v38, 16 }
 0x2ca   : > { %18517 = vst [vmem:[#allocation105_spill] sm:$0xff] %v15344_v8  ;;  %18520 = vst [vmem:[#allocation107_spill] sm:$0xff] %v15353_v34  ;;  %v15371_v16 = vld [vmem:[#allocation3 + $0x54] sm:$0xf]  ;;  %v5910_v59 = vshrl.u32 %v15316_v51, 16  ;;  %v5923_v52 = vshrl.u32 %v15318_v56, 16 }
 0x2cb   : > { %18519 = vst [vmem:[#allocation106_spill] sm:$0xff] %v15351_v44  ;;  %v15364_v7 = vor.u32 %v18521_v4, %v15087_v33  ;;  %v15369_v8 = vor.u32 %v18523_v28, %v15096_v19  ;;  %v5932_v34 = vshrl.u32 %v15329_v18, 16  ;;  %v18525_v26 = vshll.u32 %v15047_v62, 16  ;;  %v15381_v24 = vld [vmem:[#allocation3 + $0x58] sm:$0xf] }
 0x2cc   : > { %v15383_v33 = vld [vmem:[#allocation3 + $0x64] sm:$0xf]  ;;  %v5945_v38 = vshrl.u32 %v15338_v63, 16  ;;  %v18528_v28 = vshll.u32 %v15051_v61, 16  ;;  %v18530_v15 = vshll.u32 %v15053_v1, 16  ;;  %v5954_v40 = vshrl.u32 %v15346_v9, 16 }
 0x2cd   : > { %18522 = vst [vmem:[#allocation108_spill] sm:$0xff] %v15364_v7  ;;  %18524 = vst [vmem:[#allocation109_spill] sm:$0xff] %v15369_v8  ;;  %v15379_v5 = vor.u32 %v18525_v26, %v15098_v2  ;;  %v15398_v2 = vld [vmem:[#allocation3 + $0x68] sm:$0xf]  ;;  %v15405_v55 = vld [vmem:[#allocation3 + $0x74] sm:$0xf] }
 0x2ce   : > { %18527 = vst [vmem:[#allocation111_spill] sm:$0xff] %v15383_v33  ;;  %v15391_v31 = vor.u32 %v18528_v28, %v15104_v39  ;;  %v15396_v62 = vor.u32 %v18530_v15, %v15106_v47  ;;  %18532 = vst [vmem:[#allocation114_spill] sm:$0xff] %v15398_v2  ;;  %v15407_v61 = vld [vmem:[#allocation3 + $0x78] sm:$0xf]  ;;  %v5967_v47 = vshrl.u32 %v15355_v53, 16  ;;  %v5976_v15 = vshrl.u32 %v15357_v46, 16 }
 0x2cf   : > { %18526 = vst [vmem:[#allocation110_spill] sm:$0xff] %v15379_v5  ;;  %18533 = vst [vmem:[#allocation115_spill] sm:$0xff] %v15405_v55  ;;  %v15413_v26 = vld [vmem:[#allocation3 + $0x84] sm:$0xf]  ;;  %v15415_v42 = vrot.slane %v5910_v59, 7  ;;  %v15417_v0 = vrot.slane %v5923_v52, 7 }
 0x2d0   : > { %18529 = vst [vmem:[#allocation112_spill] sm:$0xff] %v15391_v31  ;;  %18531 = vst [vmem:[#allocation113_spill] sm:$0xff] %v15396_v62  ;;  %v15419_v48 = vrot.slane %v5932_v34, 7  ;;  %v15422_v57 = vld [vmem:[#allocation3 + $0x88] sm:$0xf]  ;;  %v15424_v60 = vrot.slane %v5945_v38, 7 }
 0x2d1   : > { %18534 = vst [vmem:[#allocation116_spill] sm:$0xff] %v15407_v61  ;;  %18535 = vst [vmem:[#allocation117_spill] sm:$0xff] %v15413_v26  ;;  %v5989_v28 = vshrl.u32 %v15371_v16, 16  ;;  %v5998_v58 = vshrl.u32 %v15381_v24, 16  ;;  %v15429_v37 = vld [vmem:[#allocation3 + $0x94] sm:$0xf] }
 0x2d2   : > { %18536 = vst [vmem:[#allocation118_spill] sm:$0xff] %v15422_v57  ;;  %18537 = vst [vmem:[#allocation119_spill] sm:$0xff] %v15429_v37  ;;  %v15431_v59 = vld [vmem:[#allocation3 + $0x98] sm:$0xf]  ;;  %v15433_v52 = vrot.slane %v5954_v40, 7  ;;  %v6011_v4 = vshrl.u32 %v15383_v33, 16 }
 0x2d3   : > { %18538 = vst [vmem:[#allocation120_spill] sm:$0xff] %v15431_v59  ;;  %v6020_v45 = vshrl.u32 %v15398_v2, 16  ;;  %v15438_v38 = vld [vmem:[#allocation3 + $0xa4] sm:$0xf]  ;;  %v15440_v31 = vrot.slane %v5967_v47, 7  ;;  %v15442_v1 = vrot.slane %v5976_v15, 7 }
 0x2d4   : > { %18539 = vst [vmem:[#allocation121_spill] sm:$0xff] %v15438_v38  ;;  %v15446_v62 = vld [vmem:[#allocation3 + $0xa8] sm:$0xf]  ;;  %v6033_v41 = vshrl.u32 %v15405_v55, 16  ;;  %v6042_v21 = vshrl.u32 %v15407_v61, 16  ;;  %v15456_v15 = vrot.slane %v5989_v28, 7 }
 0x2d5   : > { %18540 = vst [vmem:[#allocation122_spill] sm:$0xff] %v15446_v62  ;;  %v15452_v39 = vld [vmem:[#allocation3 + $0xb4] sm:$0xf]  ;;  %v15454_v47 = vld [vmem:[#allocation3 + $0xb8] sm:$0xf]  ;;  %v15458_v49 = vrot.slane %v5998_v58, 7 }
 0x2d6   : > { %18541 = vst [vmem:[#allocation123_spill] sm:$0xff] %v15452_v39  ;;  %18542 = vst [vmem:[#allocation124_spill] sm:$0xff] %v15454_v47  ;;  %v6055_v44 = vshrl.u32 %v15413_v26, 16  ;;  %v6064_v8 = vshrl.u32 %v15422_v57, 16  ;;  %v15462_v14 = vld [vmem:[#allocation3 + $0xc4] sm:$0xf] }
 0x2d7   : > { %18543 = vst [vmem:[#allocation125_spill] sm:$0xff] %v15462_v14  ;;  %v15464_v40 = vrot.slane %v6011_v4, 7  ;;  %v15466_v34 = vrot.slane %v6020_v45, 7  ;;  %v15470_v7 = vld [vmem:[#allocation3 + $0xc8] sm:$0xf]  ;;  %v6077_v3 = vshrl.u32 %v15429_v37, 16 }
 0x2d8   : > { %18546 = vst [vmem:[#allocation128_spill] sm:$0xff] %v15470_v7  ;;  %v6086_v35 = vshrl.u32 %v15431_v59, 16  ;;  %v15476_v19 = vld [vmem:[#allocation3 + $0xd4] sm:$0xf]  ;;  %v15478_v4 = vld [vmem:[#allocation3 + $0xd8] sm:$0xf] }
 0x2d9   : > { %18544 = vst [vmem:[#allocation126_spill] sm:$0xff] %v15464_v40  ;;  %18545 = vst [vmem:[#allocation127_spill] sm:$0xff] %v15466_v34  ;;  %v15480_v45 = vrot.slane %v6033_v41, 7  ;;  %v15482_v34 = vrot.slane %v6042_v21, 7  ;;  %v6099_v5 = vshrl.u32 %v15438_v38, 16  ;;  %v6108_v33 = vshrl.u32 %v15446_v62, 16 }
 0x2da   : > { %18547 = vst [vmem:[#allocation129_spill] sm:$0xff] %v15476_v19  ;;  %18548 = vst [vmem:[#allocation130_spill] sm:$0xff] %v15478_v4  ;;  %v15486_v55 = vld [vmem:[#allocation3 + $0xe4] sm:$0xf]  ;;  %v15488_v28 = vrot.slane %v6055_v44, 7  ;;  %v15490_v58 = vrot.slane %v6064_v8, 7 }
 0x2db   : > { %18549 = vst [vmem:[#allocation131_spill] sm:$0xff] %v15480_v45  ;;  %18550 = vst [vmem:[#allocation132_spill] sm:$0xff] %v15482_v34  ;;  %v15494_v2 = vld [vmem:[#allocation3 + $0xe8] sm:$0xf]  ;;  %v6121_v34 = vshrl.u32 %v15452_v39, 16  ;;  %v6130_v45 = vshrl.u32 %v15454_v47, 16 }
 0x2dc   : > { %18551 = vst [vmem:[#allocation133_spill] sm:$0xff] %v15486_v55  ;;  %18552 = vst [vmem:[#allocation134_spill] sm:$0xff] %v15488_v28  ;;  %v15500_v40 = vld [vmem:[#allocation3 + $0xf4] sm:$0xf]  ;;  %v15502_v44 = vrot.slane %v6077_v3, 7  ;;  %v15504_v8 = vrot.slane %v6086_v35, 7 }
 0x2dd   : > { %18553 = vst [vmem:[#allocation135_spill] sm:$0xff] %v15490_v58  ;;  %18554 = vst [vmem:[#allocation136_spill] sm:$0xff] %v15494_v2  ;;  %v6143_v61 = vshrl.u32 %v15462_v14, 16  ;;  %v15508_v37 = vld [vmem:[#allocation3 + $0x104] sm:$0xf]  ;;  %v15510_v28 = vrot.slane %v6099_v5, 7 }
 0x2de   : > { %18555 = vst [vmem:[#allocation137_spill] sm:$0xff] %v15500_v40  ;;  %18556 = vst [vmem:[#allocation138_spill] sm:$0xff] %v15502_v44  ;;  %v15512_v41 = vrot.slane %v6108_v33, 7  ;;  %v6152_v38 = vshrl.u32 %v15470_v7, 16  ;;  %v15516_v59 = vld [vmem:[#allocation3 + $0x108] sm:$0xf] }
 0x2df   : > { %18557 = vst [vmem:[#allocation139_spill] sm:$0xff] %v15504_v8  ;;  %18558 = vst [vmem:[#allocation140_spill] sm:$0xff] %v15508_v37  ;;  %v6165_v26 = vshrl.u32 %v15476_v19, 16  ;;  %v6174_v62 = vshrl.u32 %v15478_v4, 16  ;;  %v15522_v44 = vrot.slane %v6121_v34, 7  ;;  %v15524_v5 = vrot.slane %v6130_v45, 7 }
 0x2e0   : > { %18559 = vst [vmem:[#allocation141_spill] sm:$0xff] %v15510_v28  ;;  %18560 = vst [vmem:[#allocation142_spill] sm:$0xff] %v15512_v41  ;;  %v6187_v33 = vshrl.u32 %v15486_v55, 16  ;;  %v6196_v21 = vshrl.u32 %v15494_v2, 16  ;;  %v6375_v39 = vld [vmem:[#allocation3 + $0x14] sm:$0xf] }
 0x2e1   : > { %18561 = vst [vmem:[#allocation143_spill] sm:$0xff] %v15516_v59  ;;  %18562 = vst [vmem:[#allocation144_spill] sm:$0xff] %v15522_v44  ;;  %v15528_v41 = vrot.slane %v6143_v61, 7  ;;  %v6209_v35 = vshrl.u32 %v15500_v40, 16  ;;  %v6376_v14 = vld [vmem:[#allocation3 + $0x18] sm:$0xf] }
 0x2e2   : > { %18563 = vst [vmem:[#allocation145_spill] sm:$0xff] %v15524_v5  ;;  %v15533_v47 = vrot.slane %v6152_v38, 7  ;;  %v6231_v5 = vshrl.u32 %v15508_v37, 16  ;;  %v6378_v44 = vld [vmem:[#allocation3 + $0x24] sm:$0xf]  ;;  %v15538_v8 = vrot.slane %v6165_v26, 7 }
 0x2e3   : > { %18564 = vst [vmem:[#allocation146_spill] sm:$0xff] %v15528_v41  ;;  %v15540_v61 = vrot.slane %v6174_v62, 7  ;;  %v6240_v3 = vshrl.u32 %v15516_v59, 16  ;;  %v15544_v19 = vld [vmem:[#allocation3 + $0x28] sm:$0xf]  ;;  %v15546_v38 = vrot.slane %v6187_v33, 7 }
 0x2e4   : > { %18565 = vst [vmem:[#allocation147_spill] sm:$0xff] %v15533_v47  ;;  %18566 = vst [vmem:[#allocation148_spill] sm:$0xff] %v15538_v8  ;;  %v6381_v41 = vld [vmem:[#allocation3 + $0x34] sm:$0xf]  ;;  %v15548_v7 = vrot.slane %v6196_v21, 7  ;;  %v6424_v55 = vshrl.u32 %v6375_v39, 16 }
 0x2e5   : > { %18567 = vst [vmem:[#allocation149_spill] sm:$0xff] %v15540_v61  ;;  %18568 = vst [vmem:[#allocation150_spill] sm:$0xff] %v15544_v19  ;;  %v6382_v34 = vld [vmem:[#allocation3 + $0x38] sm:$0xf]  ;;  %v15551_v4 = vrot.slane %v6209_v35, 7  ;;  %v6427_v2 = vshll.u32 %v6375_v39, 16 }
 0x2e6   : > { %18569 = vst [vmem:[#allocation151_spill] sm:$0xff] %v15546_v38  ;;  %18570 = vst [vmem:[#allocation152_spill] sm:$0xff] %v15548_v7  ;;  %v6384_v28 = vld [vmem:[#allocation3 + $0x44] sm:$0xf]  ;;  %v15555_v61 = vrot.slane %v6231_v5, 7  ;;  %v6437_v38 = vshrl.u32 %v6376_v14, 16 }
 0x2e7   : > { %18571 = vst [vmem:[#allocation153_spill] sm:$0xff] %v15551_v4  ;;  %v15557_v8 = vld [vmem:[#allocation3 + $0x48] sm:$0xf]  ;;  %v6387_v33 = vld [vmem:[#allocation3 + $0x54] sm:$0xf]  ;;  %v18574_v21 = vshll.u32 %v15306_v11, 16 }
 0x2e8   : > { %18572 = vst [vmem:[#allocation154_spill] sm:$0xff] %v15555_v61  ;;  %18573 = vst [vmem:[#allocation155_spill] sm:$0xff] %v15557_v8  ;;  %v18575_v35 = vshll.u32 %v15316_v51, 16  ;;  %v15569_v62 = vrot.slane %v6240_v3, 7  ;;  %v6388_v26 = vld [vmem:[#allocation3 + $0x58] sm:$0xf] }
 0x2e9   : > { %v15562_v45 = vor.u32 %v18574_v21, %v15359_v22  ;;  %v6448_v39 = vshrl.u32 %v6378_v44, 16  ;;  %v6451_v5 = vshll.u32 %v6378_v44, 16  ;;  %v18577_v59 = vshll.u32 %v15318_v56, 16  ;;  %v6390_v14 = vld [vmem:[#allocation3 + $0x64] sm:$0xf] }
 0x2ea   : > { %v15567_v40 = vor.u32 %v18575_v35, %v15415_v42  ;;  %18576 = vst [vmem:[#allocation156_spill] sm:$0xff] %v15569_v62  ;;  %v15576_v61 = vrot.slane %v6424_v55, 4  ;;  %v6461_v11 = vshrl.u32 %v15544_v19, 16  ;;  %v6472_v21 = vshrl.u32 %v6381_v41, 16  ;;  %v15584_v3 = vld [vmem:[#allocation3 + $0x68] sm:$0xf] }
 0x2eb   : > { %v15574_v37 = vor.u32 %v18577_v59, %v15417_v0  ;;  %v18579_v51 = vshll.u32 %v15329_v18, 16  ;;  %18580 = vst [vmem:[#allocation158_spill] sm:$0xff] %v15584_v3  ;;  %v15586_v35 = vrot.slane %v6427_v2, 5  ;;  %v6475_v56 = vshll.u32 %v6381_v41, 16  ;;  %v6393_v62 = vld [vmem:[#allocation3 + $0x74] sm:$0xf] }
 0x2ec   : > { %18578 = vst [vmem:[#allocation157_spill] sm:$0xff] %v15576_v61  ;;  %v6485_v59 = vshrl.u32 %v6382_v34, 16  ;;  %v15589_v4 = vrot.slane %v6437_v38, 4  ;;  %v6496_v55 = vshrl.u32 %v6384_v28, 16  ;;  %v6499_v61 = vshll.u32 %v6384_v28, 16 }
 0x2ed   : > { %v15582_v42 = vor.u32 %v18579_v51, %v15419_v48  ;;  %18581 = vst [vmem:[#allocation159_spill] sm:$0xff] %v15586_v35  ;;  %v6509_v7 = vshrl.u32 %v15557_v8, 16  ;;  %v6394_v47 = vld [vmem:[#allocation3 + $0x78] sm:$0xf]  ;;  %v15592_v57 = vrot.slane %v6448_v39, 4  ;;  %v15594_v18 = vrot.slane %v6451_v5, 5 }
 0x2ee   : > { %18582 = vst [vmem:[#allocation160_spill] sm:$0xff] %v15589_v4  ;;  %v6520_v48 = vshrl.u32 %v6387_v33, 16  ;;  %v6523_v51 = vshll.u32 %v6387_v33, 16  ;;  %v6396_v2 = vld [vmem:[#allocation3 + $0x84] sm:$0xf]  ;;  %v15598_v44 = vrot.slane %v6461_v11, 4 }
 0x2ef   : > { %18583 = vst [vmem:[#allocation161_spill] sm:$0xff] %v15592_v57  ;;  %18584 = vst [vmem:[#allocation162_spill] sm:$0xff] %v15594_v18  ;;  %v15596_v35 = vld [vmem:[#allocation3 + $0x88] sm:$0xf]  ;;  %v15600_v41 = vrot.slane %v6472_v21, 4  ;;  %v6533_v34 = vshrl.u32 %v6388_v26, 16 }
 0x2f0   : > { %18585 = vst [vmem:[#allocation163_spill] sm:$0xff] %v15596_v35  ;;  %18586 = vst [vmem:[#allocation164_spill] sm:$0xff] %v15598_v44  ;;  %v6544_v38 = vshrl.u32 %v6390_v14, 16  ;;  %v6399_v4 = vld [vmem:[#allocation3 + $0x94] sm:$0xf]  ;;  %v15602_v28 = vrot.slane %v6475_v56, 5 }
 0x2f1   : > { %18587 = vst [vmem:[#allocation165_spill] sm:$0xff] %v15600_v41  ;;  %v15604_v19 = vrot.slane %v6485_v59, 4  ;;  %v6547_v5 = vshll.u32 %v6390_v14, 16  ;;  %v6400_v18 = vld [vmem:[#allocation3 + $0x98] sm:$0xf]  ;;  %v15607_v33 = vrot.slane %v6496_v55, 4 }
 0x2f2   : > { %18588 = vst [vmem:[#allocation166_spill] sm:$0xff] %v15602_v28  ;;  %v6402_v57 = vld [vmem:[#allocation3 + $0xa4] sm:$0xf]  ;;  %v15609_v58 = vrot.slane %v6499_v61, 5  ;;  %v15611_v11 = vrot.slane %v6509_v7, 4  ;;  %v6557_v21 = vshrl.u32 %v15584_v3, 16 }
 0x2f3   : > { %18589 = vst [vmem:[#allocation167_spill] sm:$0xff] %v15604_v19  ;;  %18590 = vst [vmem:[#allocation168_spill] sm:$0xff] %v15607_v33  ;;  %v15614_v26 = vld [vmem:[#allocation3 + $0xa8] sm:$0xf]  ;;  %v15616_v41 = vrot.slane %v6520_v48, 4  ;;  %v15618_v56 = vrot.slane %v6523_v51, 5 }
 0x2f4   : > { %18591 = vst [vmem:[#allocation169_spill] sm:$0xff] %v15609_v58  ;;  %18592 = vst [vmem:[#allocation170_spill] sm:$0xff] %v15611_v11  ;;  %v6568_v59 = vshrl.u32 %v6393_v62, 16  ;;  %v6571_v19 = vshll.u32 %v6393_v62, 16  ;;  %v6405_v39 = vld [vmem:[#allocation3 + $0xb4] sm:$0xf] }
 0x2f5   : > { %18593 = vst [vmem:[#allocation171_spill] sm:$0xff] %v15614_v26  ;;  %18594 = vst [vmem:[#allocation172_spill] sm:$0xff] %v15616_v41  ;;  %v15620_v14 = vrot.slane %v6533_v34, 4  ;;  %v15622_v8 = vrot.slane %v6544_v38, 4  ;;  %v6581_v55 = vshrl.u32 %v6394_v47, 16  ;;  %v15625_v11 = vrot.slane %v6547_v5, 5 }
 0x2f6   : > { %18595 = vst [vmem:[#allocation173_spill] sm:$0xff] %v15618_v56  ;;  %v6406_v7 = vld [vmem:[#allocation3 + $0xb8] sm:$0xf]  ;;  %v6592_v58 = vshrl.u32 %v6396_v2, 16  ;;  %v6595_v33 = vshll.u32 %v6396_v2, 16  ;;  %v6605_v48 = vshrl.u32 %v15596_v35, 16 }
 0x2f7   : > { %18596 = vst [vmem:[#allocation174_spill] sm:$0xff] %v15620_v14  ;;  %18597 = vst [vmem:[#allocation175_spill] sm:$0xff] %v15622_v8  ;;  %v6408_v41 = vld [vmem:[#allocation3 + $0xc4] sm:$0xf]  ;;  %v15628_v51 = vrot.slane %v6557_v21, 4  ;;  %v6616_v56 = vshrl.u32 %v6399_v4, 16 }
 0x2f8   : > { %18598 = vst [vmem:[#allocation176_spill] sm:$0xff] %v15625_v11  ;;  %v6619_v34 = vshll.u32 %v6399_v4, 16  ;;  %v15631_v14 = vld [vmem:[#allocation3 + $0xc8] sm:$0xf]  ;;  %v15633_v38 = vrot.slane %v6568_v59, 4  ;;  %v15635_v61 = vrot.slane %v6571_v19, 5 }
 0x2f9   : > { %18599 = vst [vmem:[#allocation177_spill] sm:$0xff] %v15628_v51  ;;  %18600 = vst [vmem:[#allocation178_spill] sm:$0xff] %v15631_v14  ;;  %v6629_v47 = vshrl.u32 %v6400_v18, 16  ;;  %v6640_v5 = vshrl.u32 %v6402_v57, 16  ;;  %v6411_v3 = vld [vmem:[#allocation3 + $0xd4] sm:$0xf] }
 0x2fa   : > { %18601 = vst [vmem:[#allocation179_spill] sm:$0xff] %v15633_v38  ;;  %18602 = vst [vmem:[#allocation180_spill] sm:$0xff] %v15635_v61  ;;  %v15637_v11 = vrot.slane %v6581_v55, 4  ;;  %v6643_v2 = vshll.u32 %v6402_v57, 16  ;;  %v6653_v8 = vshrl.u32 %v15614_v26, 16  ;;  %v6664_v21 = vshrl.u32 %v6405_v39, 16 }
 0x2fb   : > { %v6412_v51 = vld [vmem:[#allocation3 + $0xd8] sm:$0xf]  ;;  %v6414_v28 = vld [vmem:[#allocation3 + $0xe4] sm:$0xf]  ;;  %v15640_v62 = vrot.slane %v6592_v58, 4  ;;  %v15642_v4 = vrot.slane %v6595_v33, 5 }
 0x2fc   : > { %18603 = vst [vmem:[#allocation181_spill] sm:$0xff] %v15637_v11  ;;  %v15644_v35 = vrot.slane %v6605_v48, 4  ;;  %v6667_v59 = vshll.u32 %v6405_v39, 16  ;;  %v15646_v19 = vld [vmem:[#allocation3 + $0xe8] sm:$0xf]  ;;  %v15648_v61 = vrot.slane %v6616_v56, 4 }
 0x2fd   : > { %18604 = vst [vmem:[#allocation182_spill] sm:$0xff] %v15640_v62  ;;  %18605 = vst [vmem:[#allocation183_spill] sm:$0xff] %v15642_v4  ;;  %v6417_v18 = vld [vmem:[#allocation3 + $0xf4] sm:$0xf]  ;;  %v15650_v55 = vrot.slane %v6619_v34, 5  ;;  %v6677_v11 = vshrl.u32 %v6406_v7, 16 }
 0x2fe   : > { %18606 = vst [vmem:[#allocation184_spill] sm:$0xff] %v15644_v35  ;;  %18607 = vst [vmem:[#allocation185_spill] sm:$0xff] %v15646_v19  ;;  %v6420_v38 = vld [vmem:[#allocation3 + $0x104] sm:$0xf]  ;;  %v15653_v44 = vrot.slane %v6629_v47, 4  ;;  %v15655_v58 = vrot.slane %v6640_v5, 4 }
 0x2ff   : > { %18608 = vst [vmem:[#allocation186_spill] sm:$0xff] %v15648_v61  ;;  %18609 = vst [vmem:[#allocation187_spill] sm:$0xff] %v15650_v55  ;;  %v6688_v33 = vshrl.u32 %v6408_v41, 16  ;;  %v6691_v4 = vshll.u32 %v6408_v41, 16  ;;  %v15657_v48 = vld [vmem:[#allocation3 + $0x108] sm:$0xf] }
 0x300   : > { %18610 = vst [vmem:[#allocation188_spill] sm:$0xff] %v15653_v44  ;;  %18611 = vst [vmem:[#allocation189_spill] sm:$0xff] %v15655_v58  ;;  %v15659_v39 = vrot.slane %v6643_v2, 5  ;;  %v15661_v35 = vrot.slane %v6653_v8, 4  ;;  %v15663_v56 = vrot.slane %v6664_v21, 4  ;;  %v6701_v34 = vshrl.u32 %v15631_v14, 16 }
 0x301   : > { %18612 = vst [vmem:[#allocation190_spill] sm:$0xff] %v15657_v48  ;;  %v15666_v55 = vrot.slane %v6667_v59, 5  ;;  %v6712_v47 = vshrl.u32 %v6411_v3, 16  ;;  %v6715_v57 = vshll.u32 %v6411_v3, 16  ;;  %v15669_v5 = vld [vmem:[#allocation3 + $0x24] sm:$0xf] }
 0x302   : > { %18613 = vst [vmem:[#allocation191_spill] sm:$0xff] %v15659_v39  ;;  %18614 = vst [vmem:[#allocation192_spill] sm:$0xff] %v15661_v35  ;;  %v15671_v26 = vrot.slane %v6677_v11, 4  ;;  %v6725_v41 = vshrl.u32 %v6412_v51, 16  ;;  %v6736_v44 = vshrl.u32 %v6414_v28, 16  ;;  %v6739_v2 = vshll.u32 %v6414_v28, 16 }
 0x303   : > { %18615 = vst [vmem:[#allocation193_spill] sm:$0xff] %v15663_v56  ;;  %18616 = vst [vmem:[#allocation194_spill] sm:$0xff] %v15666_v55  ;;  %v15673_v39 = vld [vmem:[#allocation3 + $0x28] sm:$0xf]  ;;  %v15675_v8 = vrot.slane %v6688_v33, 4  ;;  %v15677_v21 = vrot.slane %v6691_v4, 5 }
 0x304   : > { %18617 = vst [vmem:[#allocation195_spill] sm:$0xff] %v15669_v5  ;;  %18618 = vst [vmem:[#allocation196_spill] sm:$0xff] %v15671_v26  ;;  %v6749_v59 = vshrl.u32 %v15646_v19, 16  ;;  %v6760_v35 = vshrl.u32 %v6417_v18, 16  ;;  %v15680_v55 = vld [vmem:[#allocation3 + $0x34] sm:$0xf] }
 0x305   : > { %18619 = vst [vmem:[#allocation197_spill] sm:$0xff] %v15673_v39  ;;  %18620 = vst [vmem:[#allocation198_spill] sm:$0xff] %v15675_v8  ;;  %v15682_v7 = vrot.slane %v6701_v34, 4  ;;  %v6763_v3 = vshll.u32 %v6417_v18, 16  ;;  %v6784_v14 = vshrl.u32 %v6420_v38, 16  ;;  %v6787_v11 = vshll.u32 %v6420_v38, 16 }
 0x306   : > { %18621 = vst [vmem:[#allocation199_spill] sm:$0xff] %v15677_v21  ;;  %18622 = vst [vmem:[#allocation200_spill] sm:$0xff] %v15680_v55  ;;  %v15684_v26 = vld [vmem:[#allocation3 + $0x38] sm:$0xf]  ;;  %v15686_v51 = vld [vmem:[#allocation3 + $0x44] sm:$0xf] }
 0x307   : > { %18623 = vst [vmem:[#allocation201_spill] sm:$0xff] %v15682_v7  ;;  %18624 = vst [vmem:[#allocation202_spill] sm:$0xff] %v15684_v26  ;;  %v15688_v28 = vrot.slane %v6712_v47, 4  ;;  %v15690_v33 = vrot.slane %v6715_v57, 5  ;;  %v6797_v21 = vshrl.u32 %v15657_v48, 16  ;;  %v15696_v56 = vrot.slane %v6725_v41, 4 }
 0x308   : > { %18625 = vst [vmem:[#allocation203_spill] sm:$0xff] %v15686_v51  ;;  %v15694_v8 = vld [vmem:[#allocation3 + $0x48] sm:$0xf]  ;;  %v15698_v34 = vrot.slane %v6736_v44, 4  ;;  %v15700_v18 = vrot.slane %v6739_v2, 5  ;;  %v6926_v7 = vshrl.u32 %v15669_v5, 16 }
 0x309   : > { %18626 = vst [vmem:[#allocation204_spill] sm:$0xff] %v15688_v28  ;;  %18627 = vst [vmem:[#allocation205_spill] sm:$0xff] %v15690_v33  ;;  %v15702_v38 = vld [vmem:[#allocation3 + $0x54] sm:$0xf]  ;;  %v15705_v47 = vrot.slane %v6749_v59, 4  ;;  %v15707_v57 = vrot.slane %v6760_v35, 4 }
 0x30a   : > { %18628 = vst [vmem:[#allocation206_spill] sm:$0xff] %v15694_v8  ;;  %18629 = vst [vmem:[#allocation207_spill] sm:$0xff] %v15696_v56  ;;  %v15710_v19 = vld [vmem:[#allocation3 + $0x58] sm:$0xf]  ;;  %v15712_v33 = vld [vmem:[#allocation3 + $0x64] sm:$0xf] }
 0x30b   : > { %18630 = vst [vmem:[#allocation208_spill] sm:$0xff] %v15698_v34  ;;  %18631 = vst [vmem:[#allocation209_spill] sm:$0xff] %v15700_v18  ;;  %v6935_v41 = vshrl.u32 %v15673_v39, 16  ;;  %v15715_v44 = vrot.slane %v6763_v3, 5  ;;  %v15717_v2 = vrot.slane %v6784_v14, 4  ;;  %v15719_v56 = vrot.slane %v6787_v11, 5 }
 0x30c   : > { %18632 = vst [vmem:[#allocation210_spill] sm:$0xff] %v15702_v38  ;;  %18633 = vst [vmem:[#allocation211_spill] sm:$0xff] %v15705_v47  ;;  %v15721_v18 = vld [vmem:[#allocation3 + $0x68] sm:$0xf]  ;;  %v6948_v59 = vshrl.u32 %v15680_v55, 16  ;;  %v15724_v35 = vrot.slane %v6797_v21, 4 }
 0x30d   : > { %18634 = vst [vmem:[#allocation212_spill] sm:$0xff] %v15707_v57  ;;  %18635 = vst [vmem:[#allocation213_spill] sm:$0xff] %v15710_v19  ;;  %v15726_v47 = vld [vmem:[#allocation3 + $0x74] sm:$0xf]  ;;  %v6957_v48 = vshrl.u32 %v15684_v26, 16  ;;  %v6970_v57 = vshrl.u32 %v15686_v51, 16 }
 0x30e   : > { %18636 = vst [vmem:[#allocation214_spill] sm:$0xff] %v15712_v33  ;;  %18637 = vst [vmem:[#allocation215_spill] sm:$0xff] %v15715_v44  ;;  %v15731_v3 = vld [vmem:[#allocation3 + $0x78] sm:$0xf]  ;;  %v15733_v14 = vrot.slane %v6926_v7, 7  ;;  %v6992_v34 = vshrl.u32 %v15702_v38, 16 }
 0x30f   : > { %18638 = vst [vmem:[#allocation216_spill] sm:$0xff] %v15717_v2  ;;  %18639 = vst [vmem:[#allocation217_spill] sm:$0xff] %v15719_v56  ;;  %v6979_v2 = vshrl.u32 %v15694_v8, 16  ;;  %v15738_v21 = vld [vmem:[#allocation3 + $0x84] sm:$0xf]  ;;  %v15747_v7 = vrot.slane %v6948_v59, 7 }
 0x310   : > { %18640 = vst [vmem:[#allocation218_spill] sm:$0xff] %v15721_v18  ;;  %18641 = vst [vmem:[#allocation219_spill] sm:$0xff] %v15724_v35  ;;  %v15740_v35 = vrot.slane %v6935_v41, 7  ;;  %v15745_v28 = vld [vmem:[#allocation3 + $0x88] sm:$0xf]  ;;  %v7001_v56 = vshrl.u32 %v15710_v19, 16 }
 0x311   : > { %18642 = vst [vmem:[#allocation220_spill] sm:$0xff] %v15726_v47  ;;  %18643 = vst [vmem:[#allocation221_spill] sm:$0xff] %v15731_v3  ;;  %v7014_v58 = vshrl.u32 %v15712_v33, 16  ;;  %v15752_v61 = vld [vmem:[#allocation3 + $0x94] sm:$0xf]  ;;  %v15754_v41 = vrot.slane %v6957_v48, 7 }
 0x312   : > { %18644 = vst [vmem:[#allocation222_spill] sm:$0xff] %v15733_v14  ;;  %18645 = vst [vmem:[#allocation223_spill] sm:$0xff] %v15738_v21  ;;  %v15756_v62 = vrot.slane %v6970_v57, 7  ;;  %v7023_v44 = vshrl.u32 %v15721_v18, 16  ;;  %v7036_v4 = vshrl.u32 %v15726_v47, 16  ;;  %v15762_v59 = vrot.slane %v6979_v2, 7 }
 0x313   : > { %18646 = vst [vmem:[#allocation224_spill] sm:$0xff] %v15740_v35  ;;  %18647 = vst [vmem:[#allocation225_spill] sm:$0xff] %v15745_v28  ;;  %v15760_v51 = vld [vmem:[#allocation3 + $0x98] sm:$0xf]  ;;  %v7045_v8 = vshrl.u32 %v15731_v3, 16  ;;  %v7058_v26 = vshrl.u32 %v15738_v21, 16 }
 0x314   : > { %18648 = vst [vmem:[#allocation226_spill] sm:$0xff] %v15747_v7  ;;  %18649 = vst [vmem:[#allocation227_spill] sm:$0xff] %v15752_v61  ;;  %v15767_v55 = vld [vmem:[#allocation3 + $0xa4] sm:$0xf]  ;;  %v15769_v48 = vrot.slane %v6992_v34, 7  ;;  %v15776_v2 = vrot.slane %v7001_v56, 7 }
 0x315   : > { %18650 = vst [vmem:[#allocation228_spill] sm:$0xff] %v15754_v41  ;;  %18651 = vst [vmem:[#allocation229_spill] sm:$0xff] %v15756_v62  ;;  %v7067_v41 = vshrl.u32 %v15745_v28, 16  ;;  %v15774_v7 = vld [vmem:[#allocation3 + $0xa8] sm:$0xf]  ;;  %v7080_v38 = vshrl.u32 %v15752_v61, 16 }
 0x316   : > { %18652 = vst [vmem:[#allocation230_spill] sm:$0xff] %v15760_v51  ;;  %18653 = vst [vmem:[#allocation231_spill] sm:$0xff] %v15762_v59  ;;  %v15778_v59 = vrot.slane %v7014_v58, 7  ;;  %v15782_v39 = vld [vmem:[#allocation3 + $0xb4] sm:$0xf]  ;;  %v15784_v34 = vrot.slane %v7023_v44, 7 }
 0x317   : > { %18654 = vst [vmem:[#allocation232_spill] sm:$0xff] %v15767_v55  ;;  %18655 = vst [vmem:[#allocation233_spill] sm:$0xff] %v15769_v48  ;;  %v15786_v48 = vrot.slane %v7036_v4, 7  ;;  %v7403_v33 = vld [vmem:[#allocation3 + $0x34] sm:$0xf]  ;;  %v15790_v19 = vrot.slane %v7045_v8, 7 }
 0x318   : > { %18656 = vst [vmem:[#allocation234_spill] sm:$0xff] %v15774_v7  ;;  %18657 = vst [vmem:[#allocation235_spill] sm:$0xff] %v15776_v2  ;;  %v15792_v56 = vrot.slane %v7058_v26, 7  ;;  %v15796_v18 = vld [vmem:[#allocation3 + $0xb8] sm:$0xf]  ;;  %v15798_v44 = vrot.slane %v7067_v41, 7 }
 0x319   : > { %18658 = vst [vmem:[#allocation236_spill] sm:$0xff] %v15778_v59  ;;  %18659 = vst [vmem:[#allocation237_spill] sm:$0xff] %v15782_v39  ;;  %v7404_v59 = vld [vmem:[#allocation3 + $0x38] sm:$0xf]  ;;  %v7089_v62 = vshrl.u32 %v15760_v51, 16  ;;  %v15805_v8 = vrot.slane %v7080_v38, 7 }
 0x31a   : > { %18660 = vst [vmem:[#allocation238_spill] sm:$0xff] %v15784_v34  ;;  %18661 = vst [vmem:[#allocation239_spill] sm:$0xff] %v15786_v48  ;;  %v15803_v47 = vld [vmem:[#allocation3 + $0xc4] sm:$0xf]  ;;  %v7102_v26 = vshrl.u32 %v15767_v55, 16  ;;  %v7473_v58 = vshrl.u32 %v7403_v33, 16 }
 0x31b   : > { %18662 = vst [vmem:[#allocation240_spill] sm:$0xff] %v15790_v19  ;;  %18663 = vst [vmem:[#allocation241_spill] sm:$0xff] %v15792_v56  ;;  %v7476_v21 = vshll.u32 %v7403_v33, 16  ;;  %v13309_v11 = vld [vmem:[%s18193_s4 + $0x58] sm:$0xff]   ;;  %v15814_v4 = vld [vmem:[#allocation3 + $0xc8] sm:$0xf] }
 0x31c   : > { %18664 = vst [vmem:[#allocation242_spill] sm:$0xff] %v15796_v18  ;;  %18665 = vst [vmem:[#allocation243_spill] sm:$0xff] %v15798_v44  ;;  %v13310_v41 = vld [vmem:[%s18193_s4 + $0x18] sm:$0xff]   ;;  %v15816_v61 = vld [vmem:[#allocation3 + $0xd4] sm:$0xf]  ;;  %v7111_v38 = vshrl.u32 %v15774_v7, 16  ;;  %12436 = vmatprep.subr.bf16.mxu1 %v13309_v11 }
 0x31d   : > { %18666 = vst [vmem:[#allocation244_spill] sm:$0xff] %v15803_v47  ;;  %18667 = vst [vmem:[#allocation245_spill] sm:$0xff] %v15805_v8  ;;  %v7482_v8 = vshll.u32 %v7404_v59, 16  ;;  %v7486_v51 = vshrl.u32 %v7404_v59, 16  ;;  %v13311_v33 = vld [vmem:[%s18193_s4 + $0x50] sm:$0xff]   ;;  %v7124_v44 = vshrl.u32 %v15782_v39, 16  ;;  %12437 = vmatpush3.bf16.msra.mxu1 %v13310_v41 }
 0x31e   : > { %18668 = vst [vmem:[#allocation246_spill] sm:$0xff] %v15814_v4  ;;  %18669 = vst [vmem:[#allocation247_spill] sm:$0xff] %v15816_v61  ;;  %v15823_v56 = vld [vmem:[#allocation3 + $0xd8] sm:$0xf]  ;;  %v7475_v48 = vrot.slane %v7473_v58, 4  ;;  %v7478_v3 = vrot.slane %v7476_v21, 5  ;;  %12438 = vmatprep.subr.bf16.mxu1 %v13311_v33 }
 0x31f   : > { %18670 = vst [vmem:[#allocation248_spill] sm:$0xff] %v15823_v56  ;;  %v15827_v19 = vld [vmem:[#allocation3 + $0xe4] sm:$0xf]  ;;  %v15829_v57 = vld [vmem:[#allocation3 + $0xe8] sm:$0xf]  ;;  %v15831_v55 = vrot.slane %v7089_v62, 7 }
 0x320   : > { %18671 = vst [vmem:[#allocation249_spill] sm:$0xff] %v15827_v19  ;;  %18672 = vst [vmem:[#allocation250_spill] sm:$0xff] %v15829_v57  ;;  %v7484_v59 = vrot.slane %v7482_v8, 5  ;;  %v7488_v34 = vrot.slane %v7486_v51, 4  ;;  %v13312_v2 = vld [vmem:[%s18193_s4 + $0x10] sm:$0xff]   ;;  %v13315_v28 = vld [vmem:[%s18193_s4 + $0xf8] sm:$0xff]   ;;  %v7479_v41 = vor.u32 %v7478_v3, %v7475_v48 }
 0x321   : > { %18673 = vst [vmem:[#allocation251_spill] sm:$0xff] %v15831_v55  ;;  %v13316_v11 = vld [vmem:[%s18193_s4 + $0xb8] sm:$0xff]   ;;  %v18674_v21 = vshll.u32 %v15338_v63, 16  ;;  %v15847_v58 = vrot.slane %v7102_v26, 7  ;;  %v7133_v8 = vshrl.u32 %v15796_v18, 16  ;;  %v13313_v7 = vld [vmem:[%s18193_s4 + $0x48] sm:$0xff]   ;;  %12540 = vmatprep.subr.bf16.mxu0 %v13315_v28  ;;  %12439 = vmatpush3.bf16.msra.mxu1 %v13312_v2 }
 0x322   : > { %v13317_v55 = vld [vmem:[%s18193_s4 + $0xf0] sm:$0xff]   ;;  %v15859_v63 = vrot.slane %v7111_v38, 7  ;;  %v7489_v51 = vor.u32 %v7488_v34, %v7484_v59  ;;  %v15863_v3 = vld [vmem:[#allocation3 + $0x104] sm:$0xf]  ;;  %v15865_v48 = vld [vmem:[#allocation3 + $0x108] sm:$0xf]  ;;  %12541 = vmatpush3.bf16.msra.mxu0 %v13316_v11  ;;  %12440 = vmatprep.subr.bf16.mxu1 %v13313_v7 }
 0x323   : > { %v15845_v62 = vor.u32 %v18674_v21, %v15424_v60  ;;  %18676 = vst [vmem:[#allocation253_spill] sm:$0xff] %v15847_v58  ;;  %v15857_v35 = vld [vmem:[#allocation3 + $0xf4] sm:$0xf]  ;;  %v7146_v21 = vshrl.u32 %v15803_v47, 16  ;;  %18679 = vst [vmem:[#allocation256_spill] sm:$0xff] %v15863_v3  ;;  %v15867_v33 = vrot.slane %v7124_v44, 7  ;;  %12542 = vmatprep.subr.bf16.mxu0 %v13317_v55 }
 0x324   : > { %18677 = vst [vmem:[#allocation254_spill] sm:$0xff] %v15857_v35  ;;  %18678 = vst [vmem:[#allocation255_spill] sm:$0xff] %v15859_v63  ;;  %v7155_v39 = vshrl.u32 %v15814_v4, 16  ;;  %v7168_v58 = vshrl.u32 %v15816_v61, 16  ;;  %v7480_v5 = vrot.slane %v7479_v41, 4  ;;  %v13318_v38 = vld [vmem:[%s18193_s4 + $0xb0] sm:$0xff]  }
 0x325   : > { %18675 = vst [vmem:[#allocation252_spill] sm:$0xff] %v15845_v62  ;;  %18680 = vst [vmem:[#allocation257_spill] sm:$0xff] %v15865_v48  ;;  %v7177_v34 = vshrl.u32 %v15823_v56, 16  ;;  %v7490_v18 = vrot.slane %v7489_v51, 4  ;;  %v13314_v44 = vld [vmem:[%s18193_s4 + $0x8] sm:$0xff]   ;;  %v15883_v41 = vrot.slane %v7133_v8, 7 }
 0x326   : > { %18681 = vst [vmem:[#allocation258_spill] sm:$0xff] %v15867_v33  ;;  %v13320_v11 = vld [vmem:[%s18193_s4 + $0xe8] sm:$0xff]   ;;  %v7190_v33 = vshrl.u32 %v15827_v19, 16  ;;  %v7199_v26 = vshrl.u32 %v15829_v57, 16  ;;  %v15887_v28 = vld [vmem:[#allocation3 + $0x24] sm:$0xf]  ;;  %v7485_v51 = vsel %vm13897_vm10, %v7480_v5, %v7484_v59  ;;  %12543 = vmatpush3.bf16.msra.mxu0 %v13318_v38  ;;  %12441 = vmatpush3.bf16.msra.mxu1 %v13314_v44 }
 0x327   : > { %18682 = vst [vmem:[#allocation259_spill] sm:$0xff] %v15883_v41  ;;  %v15889_v47 = vld [vmem:[#allocation3 + $0x54] sm:$0xf]  ;;  %v13319_v55 = vld [vmem:[%s18193_s4 + $0x40] sm:$0xff]   ;;  %v15896_v4 = vrot.slane %v7146_v21, 7  ;;  %v7212_v41 = vshrl.u32 %v15857_v35, 16  ;;  %v7495_v63 = vsel %vm13897_vm10, %v7490_v18, %v15028_v30  ;;  %12544 = vmatprep.subr.bf16.mxu0 %v13320_v11 }
 0x328   : > { %7866 = vst [vmem:[#allocation2 + $0x68] sm:$0xf] %v7485_v51  ;;  %v13329_v14 = vld [vmem:[#allocation2 + $0x4] ss:$36 sps:$4 sm:$0xff]   ;;  %v15903_v62 = vrot.slane %v7155_v39, 7  ;;  %v15905_v5 = vrot.slane %v7168_v58, 7  ;;  %12442 = vmatprep.subr.bf16.mxu1 %v13319_v55 }
 0x329   : > { %18684 = vst [vmem:[#allocation10_spill] sm:$0xff] %v15896_v4  ;;  %v15909_v21 = vld [vmem:[#allocation3 + $0x28] sm:$0xf]  ;;  %7867 = vst [vmem:[#allocation2 + $0x8c] sm:$0xf] %v7495_v63  ;;  %v15914_v61 = vrot.slane %v7177_v34, 7  ;;  %9400 = vmatprep.mubr.bf16.mxu1 %v13329_v14 }
 0x32a   : > { %18685 = vst [vmem:[#allocation260_spill] sm:$0xff] %v15905_v5  ;;  %18686 = vst [vmem:[#allocation261_spill] sm:$0xff] %v15909_v21  ;;  %v13322_v8 = vld [vmem:[%s18193_s4 + $0xa8] sm:$0xff]   ;;  %v7234_v39 = vshrl.u32 %v15863_v3, 16  ;;  %v7243_v18 = vshrl.u32 %v15865_v48, 16  ;;  %v13321_v63 = vld [vmem:[%s18193_s4] sm:$0xff]  }
 0x32b   : > { %18687 = vst [vmem:[#allocation262_spill] sm:$0xff] %v15914_v61  ;;  %v15919_v58 = vld [vmem:[#allocation3 + $0x44] sm:$0xf]  ;;  %v15921_v51 = vld [vmem:[#allocation3 + $0x74] sm:$0xf]  ;;  %v15929_v34 = vrot.slane %v7190_v33, 7  ;;  %12545 = vmatpush3.bf16.msra.mxu0 %v13322_v8  ;;  %12443 = vmatpush3.bf16.msra.mxu1 %v13321_v63 }
 0x32c   : > { %v13323_v38 = vld [vmem:[%s18193_s4 + $0xe0] sm:$0xff]   ;;  %v15931_v59 = vrot.slane %v7199_v26, 7  ;;  %v15935_v19 = vld [vmem:[#allocation3 + $0x48] sm:$0xf]  ;;  %v13333_v44 = vld [vmem:[%s18193_s4 + $0x178] sm:$0xff]   ;;  %v15940_v11 = vrot.slane %v7212_v41, 7 }
 0x32d   : > { %18688 = vst [vmem:[#allocation263_spill] sm:$0xff] %v15929_v34  ;;  %18690 = vst [vmem:[#allocation265_spill] sm:$0xff] %v15935_v19  ;;  %v15942_v57 = vld [vmem:[#allocation3 + $0x58] sm:$0xf]  ;;  %v7449_v33 = vshrl.u32 %v15887_v28, 16  ;;  %v7521_v26 = vshrl.u32 %v15889_v47, 16  ;;  %12546 = vmatprep.subr.bf16.mxu0 %v13323_v38  ;;  %12652 = vmatprep.subr.bf16.mxu1 %v13333_v44 }
 0x32e   : > { %18689 = vst [vmem:[#allocation264_spill] sm:$0xff] %v15931_v59  ;;  %18691 = vst [vmem:[#allocation266_spill] sm:$0xff] %v15940_v11  ;;  %v7524_v30 = vshll.u32 %v15889_v47, 16  ;;  %v5286_v35 = vld [vmem:[#allocation3 + $0x14] sm:$0xf]  ;;  %v7452_v55 = vshll.u32 %v15887_v28, 16 }
 0x32f   : > { %v15947_v7 = vld [vmem:[#allocation3 + $0x64] sm:$0xf]  ;;  %v5287_v3 = vld [vmem:[#allocation3 + $0x18] sm:$0xf]  ;;  %5318 = vst [vmem:[#allocation2 + $0x4c] sm:$0xf] %v5286_v35 }
 0x330   : > { %v13324_v14 = vld [vmem:[%s18193_s4 + $0xa0] sm:$0xff]   ;;  %v18692_v11 = vshll.u32 %v15346_v9, 16  ;;  %v18693_v47 = vshll.u32 %v15058_v6, 16  ;;  %v18694_v28 = vshll.u32 %v15060_v27, 16  ;;  %v15968_v5 = vrot.slane %v7234_v39, 7  ;;  %v13325_v6 = vld [vmem:[%s18193_s4 + $0xd8] sm:$0xff]  }
 0x331   : > { %v13327_v41 = vld [vmem:[#allocation2] ss:$36 sps:$4 sm:$0xff]   ;;  %v15970_v56 = vrot.slane %v7243_v18, 7  ;;  %v7462_v9 = vshrl.u32 %v15909_v21, 16  ;;  %v13335_v27 = vld [vmem:[%s18193_s4 + $0x138] sm:$0xff]   ;;  %v7572_v39 = vshll.u32 %v15921_v51, 16  ;;  %12547 = vmatpush3.bf16.msra.mxu0 %v13324_v14 }
 0x332   : > { %v15956_v34 = vor.u32 %v18692_v11, %v15433_v52  ;;  %v15961_v59 = vor.u32 %v18693_v47, %v15120_v25  ;;  %v15966_v8 = vor.u32 %v18694_v28, %v15122_v29  ;;  %18695 = vst [vmem:[#allocation267_spill] sm:$0xff] %v15968_v5  ;;  %5319 = vst [vmem:[#allocation2 + $0x70] sm:$0xf] %v5287_v3  ;;  %v7497_v29 = vshrl.u32 %v15919_v58, 16  ;;  %v5288_v18 = vld [vmem:[#allocation3 + $0x24] sm:$0xf] }
 0x333   : > { %18696 = vst [vmem:[#allocation268_spill] sm:$0xff] %v15970_v56  ;;  %v7569_v52 = vshrl.u32 %v15921_v51, 16  ;;  %v13350_v63 = vld [vmem:[%s18193_s4 + $0x170] sm:$0xff]   ;;  %v15988_v11 = vld [vmem:[#allocation3 + $0x68] sm:$0xf]  ;;  %v7500_v3 = vshll.u32 %v15919_v58, 16  ;;  %9401 = vmatmul.mubr.bf16.vlgmr.msra.gmra.mxu1 %v13327_v41  ;;  %12548 = vmatprep.subr.bf16.mxu0 %v13325_v6 }
 0x334   : > { %18697 = vst [vmem:[#allocation269_spill] sm:$0xff] %v15988_v11  ;;  %v15990_v47 = vld [vmem:[#allocation3 + $0x78] sm:$0xf]  ;;  %v7510_v28 = vshrl.u32 %v15935_v19, 16  ;;  %v7523_v35 = vrot.slane %v7521_v26, 4  ;;  %v7526_v5 = vrot.slane %v7524_v30, 5  ;;  %12653 = vmatpush3.bf16.msra.mxu1 %v13335_v27 }
 0x335   : > { %v5289_v51 = vld [vmem:[#allocation3 + $0x28] sm:$0xf]  ;;  %5320 = vst [vmem:[#allocation2 + $0x94] sm:$0xf] %v5288_v18  ;;  %v15994_v44 = vld [vmem:[#allocation3 + $0x84] sm:$0xf]  ;;  %12654 = vmatprep.subr.bf16.mxu1 %v13350_v63 }
 0x336   : > { %v15996_v48 = vld [vmem:[#allocation3 + $0x88] sm:$0xf]  ;;  %v15998_v56 = vrot.slane %v7449_v33, 4  ;;  %v16000_v61 = vrot.slane %v7452_v55, 5  ;;  %v7530_v4 = vshll.u32 %v15942_v57, 16  ;;  %v13326_v58 = vld [vmem:[%s18193_s4 + $0x98] sm:$0xff]  }
 0x337   : > { %18698 = vst [vmem:[#allocation270_spill] sm:$0xff] %v15996_v48  ;;  %5321 = vst [vmem:[#allocation2 + $0xb8] sm:$0xf] %v5289_v51  ;;  %v16007_v30 = vrot.slane %v7462_v9, 4  ;;  %v7534_v33 = vshrl.u32 %v15942_v57, 16  ;;  %v7545_v55 = vshrl.u32 %v15947_v7, 16  ;;  %12549 = vmatpush3.bf16.msra.mxu0 %v13326_v58 }
 0x338   : > { %18699 = vst [vmem:[#allocation271_spill] sm:$0xff] %v16000_v61  ;;  %v13330_v18 = vld [vmem:[%s18193_s4 + $0xd0] sm:$0xff]   ;;  %v7548_v9 = vshll.u32 %v15947_v7, 16  ;;  %v7571_v51 = vrot.slane %v7569_v52, 4  ;;  %v7574_v26 = vrot.slane %v7572_v39, 5  ;;  %v18701_v6 = vshll.u32 %v15355_v53, 16 }
 0x339   : > { %18700 = vst [vmem:[#allocation272_spill] sm:$0xff] %v16007_v30  ;;  %v13357_v14 = vld [vmem:[%s18193_s4 + $0x130] sm:$0xff]   ;;  %v13364_v27 = vld [vmem:[%s18193_s4 + $0x168] sm:$0xff]   ;;  %v16029_v19 = vld [vmem:[#allocation3 + $0x98] sm:$0xf]  ;;  %v16031_v30 = vrot.slane %v7497_v29, 4  ;;  %v7527_v52 = vor.u32 %v7526_v5, %v7523_v35  ;;  %12550 = vmatprep.subr.bf16.mxu0 %v13330_v18 }
 0x33a   : > { %v16018_v41 = vld [vmem:[#allocation3 + $0x94] sm:$0xf]  ;;  %v16024_v38 = vor.u32 %v18701_v6, %v15440_v31  ;;  %v16033_v21 = vrot.slane %v7500_v3, 5  ;;  %v16035_v7 = vrot.slane %v7510_v28, 4  ;;  %v5291_v39 = vld [vmem:[#allocation3 + $0x38] sm:$0xf]  ;;  %12655 = vmatpush3.bf16.msra.mxu1 %v13357_v14 }
 0x33b   : > { %v5290_v57 = vld [vmem:[#allocation3 + $0x34] sm:$0xf]  ;;  %18702 = vst [vmem:[#allocation273_spill] sm:$0xff] %v16031_v30  ;;  %v16037_v63 = vrot.slane %v7530_v4, 5  ;;  %v7558_v53 = vshrl.u32 %v15988_v11, 16  ;;  %v7578_v6 = vshll.u32 %v15990_v47, 16  ;;  %12656 = vmatprep.subr.bf16.mxu1 %v13364_v27 }
 0x33c   : > { %18703 = vst [vmem:[#allocation274_spill] sm:$0xff] %v16033_v21  ;;  %18704 = vst [vmem:[#allocation275_spill] sm:$0xff] %v16035_v7  ;;  %v7582_v61 = vshrl.u32 %v15990_v47, 16  ;;  %v13331_v29 = vld [vmem:[%s18193_s4 + $0x90] sm:$0xff]   ;;  %v16045_v3 = vrot.slane %v7534_v33, 4  ;;  %v7593_v5 = vshrl.u32 %v15994_v44, 16 }
 0x33d   : > { %5322 = vst [vmem:[#allocation2 + $0xdc] sm:$0xf] %v5290_v57  ;;  %5323 = vst [vmem:[#allocation2 + $0x100] sm:$0xf] %v5291_v39  ;;  %v7596_v35 = vshll.u32 %v15994_v44, 16  ;;  %v7606_v4 = vshrl.u32 %v15996_v48, 16  ;;  %v7575_v39 = vor.u32 %v7574_v26, %v7571_v51  ;;  %12551 = vmatpush3.bf16.msra.mxu0 %v13331_v29 }
 0x33e   : > { %18705 = vst [vmem:[#allocation276_spill] sm:$0xff] %v16045_v3  ;;  %v13332_v28 = vld [vmem:[%s18193_s4 + $0xc8] sm:$0xff]   ;;  %v16056_v58 = vld [vmem:[#allocation3 + $0xb4] sm:$0xf]  ;;  %v16058_v33 = vrot.slane %v7545_v55, 4  ;;  %v16060_v57 = vrot.slane %v7548_v9, 5 }
 0x33f   : > { %v13371_v47 = vld [vmem:[%s18193_s4 + $0x128] sm:$0xff]   ;;  %v5292_v7 = vld [vmem:[#allocation3 + $0x44] sm:$0xf]  ;;  %v16066_v14 = vrot.slane %v7527_v52, 4  ;;  %v7617_v3 = vshrl.u32 %v16018_v41, 16  ;;  %v7620_v21 = vshll.u32 %v16018_v41, 16  ;;  %12552 = vmatprep.subr.bf16.mxu0 %v13332_v28 }
 0x340   : > { %18706 = vst [vmem:[#allocation277_spill] sm:$0xff] %v16058_v33  ;;  %18707 = vst [vmem:[#allocation278_spill] sm:$0xff] %v16060_v57  ;;  %v13378_v18 = vld [vmem:[%s18193_s4 + $0x160] sm:$0xff]   ;;  %v13334_v55 = vld [vmem:[%s18193_s4 + $0x88] sm:$0xff]   ;;  %v18708_v26 = vshll.u32 %v15357_v46, 16  ;;  %v16078_v27 = vrot.slane %v7558_v53, 4  ;;  %12657 = vmatpush3.bf16.msra.mxu1 %v13371_v47 }
 0x341   : > { %v5293_v9 = vld [vmem:[#allocation3 + $0x48] sm:$0xf]  ;;  %5324 = vst [vmem:[#allocation2 + $0x124] sm:$0xf] %v5292_v7  ;;  %v16080_v44 = vrot.slane %v7578_v6, 5  ;;  %v16082_v52 = vrot.slane %v7582_v61, 4  ;;  %12658 = vmatprep.subr.bf16.mxu1 %v13378_v18  ;;  %12553 = vmatpush3.bf16.msra.mxu0 %v13334_v55 }
 0x342   : > { %v16076_v51 = vor.u32 %v18708_v26, %v15442_v1  ;;  %18709 = vst [vmem:[#allocation279_spill] sm:$0xff] %v16078_v27  ;;  %v7626_v11 = vshll.u32 %v16029_v19, 16  ;;  %v4562_v41 = vld [vmem:[#allocation3 + $0x10] sm:$0x8]  ;;  %5325 = vst [vmem:[#allocation2 + $0x148] sm:$0xf] %v5293_v9 }
 0x343   : > { %18710 = vst [vmem:[#allocation280_spill] sm:$0xff] %v16082_v52  ;;  %v16085_v57 = vld [vmem:[#allocation3 + $0xb8] sm:$0xf]  ;;  %v16087_v33 = vrot.slane %v7593_v5, 4  ;;  %v16089_v7 = vrot.slane %v7596_v35, 5  ;;  %v16092_v1 = vrot.slane %v7606_v4, 4 }
 0x344   : > { %v13336_v61 = vld [vmem:[%s18193_s4 + $0xc0] sm:$0xff]   ;;  %v16100_v6 = vrot.slane %v7575_v39, 4  ;;  %v18714_v35 = vshll.u32 %v15063_v32, 16  ;;  %v18715_v28 = vshll.u32 %v15065_v10, 16  ;;  %v5294_v9 = vld [vmem:[#allocation3 + $0x54] sm:$0xf] }
 0x345   : > { %18711 = vst [vmem:[#allocation281_spill] sm:$0xff] %v16087_v33  ;;  %18712 = vst [vmem:[#allocation282_spill] sm:$0xff] %v16089_v7  ;;  %v13385_v53 = vld [vmem:[%s18193_s4 + $0x120] sm:$0xff]   ;;  %v13392_v26 = vld [vmem:[%s18193_s4 + $0x158] sm:$0xff]   ;;  %v16120_v46 = vrot.slane %v7617_v3, 4  ;;  %v18716_v3 = vshll.u32 %v15371_v16, 16  ;;  %12554 = vmatprep.subr.bf16.mxu0 %v13336_v61 }
 0x346   : > { %18713 = vst [vmem:[#allocation283_spill] sm:$0xff] %v16092_v1  ;;  %v13337_v29 = vld [vmem:[%s18193_s4 + $0x80] sm:$0xff]   ;;  %v16108_v4 = vor.u32 %v18714_v35, %v15128_v17  ;;  %v16113_v47 = vor.u32 %v18715_v28, %v15130_v20  ;;  %v16122_v1 = vrot.slane %v7620_v21, 5  ;;  %v7665_v35 = vshrl.u32 %v16056_v58, 16  ;;  %v5295_v10 = vld [vmem:[#allocation3 + $0x58] sm:$0xf]  ;;  %12659 = vmatpush3.bf16.msra.mxu1 %v13385_v53 }
 0x347   : > { %v4565_v5 = vld [vmem:[#allocation3 + $0x20] sm:$0x8]  ;;  %5326 = vst [vmem:[#allocation2 + $0x16c] sm:$0xf] %v5294_v9  ;;  %v16126_v20 = vrot.slane %v7626_v11, 5  ;;  %v7668_v28 = vshll.u32 %v16056_v58, 16  ;;  %v16132_v48 = vor.u32 %v18716_v3, %v15456_v15  ;;  %12660 = vmatprep.subr.bf16.mxu1 %v13392_v26  ;;  %12555 = vmatpush3.bf16.msra.mxu0 %v13337_v29 }
 0x348   : > { %v4610_v18 = vld [vmem:[#allocation3 + $0x1c] sm:$0x1]  ;;  %v4568_v39 = vld [vmem:[#allocation3 + $0x30] sm:$0x8]  ;;  %5327 = vst [vmem:[#allocation2 + $0x190] sm:$0xf] %v5295_v10 }
 0x349   : > { %v18717_v21 = vshll.u32 %v15381_v24, 16  ;;  %v4563_v11 = vsel %vm13864_vm3, 0, %v4562_v41  ;;  %v4903_v58 = vrot.slane %v15080_v12, 4  ;;  %v5908_v55 = vrot.slane %v15359_v22, 4  ;;  %v4613_v27 = vld [vmem:[#allocation3 + $0x2c] sm:$0x1] }
 0x34a   : > { %v18719_v10 = vshll.u32 %v15071_v23, 16  ;;  %4564 = vst [vmem:[#allocation3 + $0x10] sm:$0x8] %v4563_v11  ;;  %v4566_v41 = vsel %vm13864_vm3, 0, %v4565_v5  ;;  %v18720_v12 = vld [vmem:[#allocation25_spill] sm:$0xff]  ;;  %v18721_v22 = vld [vmem:[#allocation36_spill] sm:$0xff] }
 0x34b   : > { %v16137_v32 = vor.u32 %v18717_v21, %v15458_v49  ;;  %v13393_v49 = vld [vmem:[%s18193_s4 + $0x1f8] sm:$0xff]   ;;  %v4925_v61 = vrot.slane %v18720_v12, 4  ;;  %v18722_v3 = vld [vmem:[#allocation21_spill] sm:$0xff]  ;;  %v5296_v23 = vld [vmem:[#allocation3 + $0x64] sm:$0xf]  ;;  %v5916_v5 = vsel %vm13879_vm7, %v5908_v55, %v15567_v40  ;;  %v16173_v26 = vrot.slane %v7668_v28, 5 }
 0x34c   : > { %v16146_v16 = vor.u32 %v18719_v10, %v15144_v36  ;;  %v18723_v21 = vshll.u32 %v18722_v3, 16  ;;  %v13400_v53 = vld [vmem:[%s18193_s4 + $0x118] sm:$0xff]   ;;  %v16163_v10 = vrot.slane %v7665_v35, 4  ;;  %v18724_v24 = vld [vmem:[#allocation108_spill] sm:$0xff]  ;;  %4567 = vst [vmem:[#allocation3 + $0x20] sm:$0x8] %v4566_v41  ;;  %12764 = vmatprep.subr.bf16.mxu0 %v13393_v49 }
 0x34d   : > { %v4911_v33 = vsel %vm13879_vm7, %v4903_v58, %v18724_v24  ;;  %v5297_v3 = vld [vmem:[#allocation3 + $0x68] sm:$0xf]  ;;  %5328 = vst [vmem:[#allocation2 + $0x1b4] sm:$0xf] %v5296_v23  ;;  %6280 = vst [vmem:[#allocation2 + $0x30] sm:$0xf] %v5916_v5  ;;  %12661 = vmatpush3.bf16.msra.mxu1 %v13400_v53 }
 0x34e   : > { %v16158_v7 = vor.u32 %v18723_v21, %v18721_v22  ;;  %v4611_v22 = vsel %vm13874_vm6, 0, %v4610_v18  ;;  %5255 = vst [vmem:[#allocation2 + $0x6c] sm:$0xf] %v4911_v33  ;;  %v18727_v35 = vld [vmem:[#allocation110_spill] sm:$0xff]  ;;  %v18728_v58 = vld [vmem:[#allocation64_spill] sm:$0xff]  ;;  %v5930_v28 = vrot.slane %v15417_v0, 4 }
 0x34f   : > { %v4933_v21 = vsel %vm13879_vm7, %v4925_v61, %v18727_v35  ;;  %4612 = vst [vmem:[#allocation3 + $0x1c] sm:$0x1] %v4611_v22  ;;  %v18729_v24 = vld [vmem:[#allocation62_spill] sm:$0xff]  ;;  %v4571_v30 = vld [vmem:[#allocation3 + $0x40] sm:$0x8]  ;;  %v4569_v33 = vsel %vm13864_vm3, 0, %v4568_v39 }
 0x350   : > { %v18730_v52 = vor.u32 %v18728_v58, %v18729_v24  ;;  %v13585_v55 = vld [vmem:[#allocation3 + $0x18] sm:$0xf]  ;;  %5329 = vst [vmem:[#allocation2 + $0x1d8] sm:$0xf] %v5297_v3  ;;  %5257 = vst [vmem:[#allocation2 + $0xb4] sm:$0xf] %v4933_v21 }
 0x351   : > { %v5433_v41 = vshll.u32 %v13585_v55, 16  ;;  %v18731_v29 = vld [vmem:[#allocation28_spill] sm:$0xff]  ;;  %v4614_v61 = vsel %vm13874_vm6, 0, %v4613_v27  ;;  %v5298_v23 = vld [vmem:[#allocation3 + $0x74] sm:$0xf]  ;;  %v18733_v22 = vld [vmem:[#allocation67_spill] sm:$0xff]  ;;  %v5938_v27 = vsel %vm13879_vm7, %v5930_v28, %v15582_v42 }
 0x352   : > { %v5431_v40 = vrot.slane %v18730_v52, 4  ;;  %v4947_v18 = vrot.slane %v18731_v29, 4  ;;  %4570 = vst [vmem:[#allocation3 + $0x30] sm:$0x8] %v4569_v33  ;;  %4615 = vst [vmem:[#allocation3 + $0x2c] sm:$0x1] %v4614_v61 }
 0x353   : > { %v5435_v5 = vrot.slane %v5433_v41, 5  ;;  %v18732_v52 = vld [vmem:[#allocation68_spill] sm:$0xff]  ;;  %v18735_v21 = vld [vmem:[#allocation53_spill] sm:$0xff]  ;;  %v5952_v39 = vrot.slane %v15424_v60, 4  ;;  %v5299_v24 = vld [vmem:[#allocation3 + $0x78] sm:$0xf] }
 0x354   : > { %v18734_v3 = vor.u32 %v18732_v52, %v18733_v22  ;;  %v18736_v0 = vshll.u32 %v18735_v21, 16  ;;  %5330 = vst [vmem:[#allocation2 + $0x1fc] sm:$0xf] %v5298_v23  ;;  %v18737_v49 = vld [vmem:[#allocation113_spill] sm:$0xff]  ;;  %v4572_v55 = vsel %vm13864_vm3, 0, %v4571_v30  ;;  %v4969_v41 = vrot.slane %v15120_v25, 4 }
 0x355   : > { %v4955_v53 = vsel %vm13879_vm7, %v4947_v18, %v18737_v49  ;;  %5331 = vst [vmem:[#allocation2 + $0x220] sm:$0xf] %v5299_v24  ;;  %v5436_v33 = vsel %vm13897_vm10, %v5431_v40, %v5435_v5  ;;  %v18738_v60 = vld [vmem:[#allocation65_spill] sm:$0xff]  ;;  %6282 = vst [vmem:[#allocation2 + $0x78] sm:$0xf] %v5938_v27  ;;  %v5960_v25 = vsel %vm13879_vm7, %v5952_v39, %v15956_v34  ;;  %v18904_v9 = vld [vmem:[#allocation104_spill] sm:$0xff] }
 0x356   : > { %v5455_v35 = vrot.slane %v18734_v3, 4  ;;  %v5459_v58 = vrot.slane %v18736_v0, 5  ;;  %v5440_v29 = vor.u32 %v18738_v60, %v5435_v5  ;;  %5259 = vst [vmem:[#allocation2 + $0xfc] sm:$0xf] %v4955_v53  ;;  %v18739_v28 = vld [vmem:[#allocation69_spill] sm:$0xff]  ;;  %v4977_v40 = vsel %vm13879_vm7, %v4969_v41, %v15966_v8  ;;  %v18741_v8 = vld [vmem:[#allocation72_spill] sm:$0xff] }
 0x357   : > { %4573 = vst [vmem:[#allocation3 + $0x40] sm:$0x8] %v4572_v55  ;;  %v5300_v18 = vld [vmem:[#allocation3 + $0x84] sm:$0xf]  ;;  %v5301_v23 = vld [vmem:[#allocation3 + $0x88] sm:$0xf]  ;;  %v18740_v5 = vor.u32 %v15246_v43, %v15244_v13 }
 0x358   : > { %v5460_v42 = vsel %vm13897_vm10, %v5455_v35, %v5459_v58  ;;  %v5464_v61 = vor.u32 %v18739_v28, %v5459_v58  ;;  %v4821_v52 = vld [vmem:[#allocation3 + $0x10] sm:$0x8]  ;;  %5817 = vst [vmem:[#allocation2 + $0x50] sm:$0xf] %v5436_v33  ;;  %v13586_v3 = vld [vmem:[#allocation3 + $0x38] sm:$0xf] }
 0x359   : > { %v5847_v30 = vld [vmem:[#allocation3 + $0x10] sm:$0x8]  ;;  %5819 = vst [vmem:[#allocation2 + $0x98] sm:$0xf] %v5460_v42  ;;  %v5479_v22 = vrot.slane %v18740_v5, 4  ;;  %v5481_v35 = vshll.u32 %v13586_v3, 16 }
 0x35a   : > { %5332 = vst [vmem:[#allocation2 + $0x244] sm:$0xf] %v5300_v18  ;;  %5333 = vst [vmem:[#allocation2 + $0x268] sm:$0xf] %v5301_v23  ;;  %v4891_v21 = vshrl.u32 %v4821_v52, 16  ;;  %v5896_v0 = vshrl.u32 %v5847_v30, 16 }
 0x35b   : > { %v4824_v58 = vld [vmem:[#allocation3 + $0x20] sm:$0x8]  ;;  %v5441_v24 = vrot.slane %v5440_v29, 4  ;;  %v16217_v27 = vrot.slane %v5464_v61, 4  ;;  %6284 = vst [vmem:[#allocation2 + $0xc0] sm:$0xf] %v5960_v25 }
 0x35c   : > { %5261 = vst [vmem:[#allocation2 + $0x144] sm:$0xf] %v4977_v40  ;;  %v4913_v34 = vshrl.u32 %v4824_v58, 16  ;;  %v5353_v39 = vld [vmem:[#allocation3 + $0x1c] sm:$0x1]  ;;  %v5483_v49 = vrot.slane %v5481_v35, 5 }
 0x35d   : > { %v18742_v53 = vld [vmem:[#allocation73_spill] sm:$0xff]  ;;  %v18743_v43 = vld [vmem:[#allocation126_spill] sm:$0xff]  ;;  %v18744_v13 = vld [vmem:[#allocation111_spill] sm:$0xff]  ;;  %v11334_v60 = vrot.slane %v4891_v21, 11  ;;  %v11349_v42 = vrot.slane %v5896_v0, 11  ;;  %v5443_v28 = vshll.u32 %v5353_v39, 16 }
 0x35e   : > { %v18745_v41 = vshll.u32 %v18744_v13, 16  ;;  %v5850_v18 = vld [vmem:[#allocation3 + $0x20] sm:$0x8]  ;;  %v5359_v29 = vld [vmem:[#allocation3 + $0x3c] sm:$0x1]  ;;  %v11335_v25 = vrot.slane %v4913_v34, 11  ;;  %v5484_v35 = vsel %vm13897_vm10, %v5479_v22, %v5483_v49 }
 0x35f   : > { %v18746_v61 = vld [vmem:[#allocation127_spill] sm:$0xff]  ;;  %v18747_v23 = vld [vmem:[#allocation114_spill] sm:$0xff]  ;;  %v5918_v40 = vshrl.u32 %v5850_v18, 16  ;;  %v4827_v5 = vld [vmem:[#allocation3 + $0x30] sm:$0x8]  ;;  %v5907_v0 = vsel %vm13879_vm7, %v11349_v42, %v15562_v45  ;;  %v5445_v39 = vrot.slane %v5443_v28, 5 }
 0x360   : > { %v16224_v33 = vor.u32 %v18745_v41, %v18743_v43  ;;  %v18748_v52 = vshll.u32 %v18747_v23, 16  ;;  %v5356_v3 = vld [vmem:[#allocation3 + $0x2c] sm:$0x1]  ;;  %v18749_v58 = vld [vmem:[#allocation70_spill] sm:$0xff]  ;;  %v5853_v23 = vld [vmem:[#allocation3 + $0x30] sm:$0x8] }
 0x361   : > { %v5488_v13 = vor.u32 %v18749_v58, %v5483_v49  ;;  %v18750_v41 = vld [vmem:[#allocation106_spill] sm:$0xff]  ;;  %5821 = vst [vmem:[#allocation2 + $0xe0] sm:$0xf] %v5484_v35  ;;  %v4574_v34 = vld [vmem:[#allocation3 + $0x50] sm:$0x8]  ;;  %v11350_v49 = vrot.slane %v5918_v40, 11 }
 0x362   : > { %v16229_v30 = vor.u32 %v18748_v52, %v18746_v61  ;;  %v4902_v21 = vsel %vm13879_vm7, %v11334_v60, %v18750_v41  ;;  %v4935_v61 = vshrl.u32 %v4827_v5, 16  ;;  %6279 = vst [vmem:[#allocation2 + $0xc] sm:$0xf] %v5907_v0  ;;  %v18751_v18 = vld [vmem:[#allocation109_spill] sm:$0xff]  ;;  %v5467_v52 = vshll.u32 %v5356_v3, 16 }
 0x363   : > { %5254 = vst [vmem:[#allocation2 + $0x48] sm:$0xf] %v4902_v21  ;;  %v4924_v22 = vsel %vm13879_vm7, %v11335_v25, %v18751_v18  ;;  %v5940_v58 = vshrl.u32 %v5853_v23, 16  ;;  %v4830_v55 = vld [vmem:[#allocation3 + $0x40] sm:$0x8]  ;;  %v5446_v60 = vsel %vm13897_vm10, %v5441_v24, %v5445_v39  ;;  %v5489_v28 = vrot.slane %v5488_v13, 4 }
 0x364   : > { %5256 = vst [vmem:[#allocation2 + $0x90] sm:$0xf] %v4924_v22  ;;  %v11336_v45 = vrot.slane %v4935_v61, 11  ;;  %v4957_v42 = vshrl.u32 %v4830_v55, 16  ;;  %v5856_v5 = vld [vmem:[#allocation3 + $0x40] sm:$0x8]  ;;  %v5929_v25 = vsel %vm13879_vm7, %v11350_v49, %v15574_v37 }
 0x365   : > { %v4619_v35 = vld [vmem:[#allocation3 + $0x4c] sm:$0x1]  ;;  %v13408_v41 = vld [vmem:[%s18193_s4 + $0x150] sm:$0xff]   ;;  %5818 = vst [vmem:[#allocation2 + $0x74] sm:$0xf] %v5446_v60  ;;  %v5469_v40 = vrot.slane %v5467_v52, 5 }
 0x366   : > { %v11351_v3 = vrot.slane %v5940_v58, 11  ;;  %v5491_v21 = vshll.u32 %v5359_v29, 16  ;;  %v5302_v0 = vld [vmem:[#allocation3 + $0x94] sm:$0xf]  ;;  %6281 = vst [vmem:[#allocation2 + $0x54] sm:$0xf] %v5929_v25  ;;  %12662 = vmatprep.subr.bf16.mxu1 %v13408_v41 }
 0x367   : > { %v18752_v24 = vld [vmem:[#allocation112_spill] sm:$0xff]  ;;  %v11337_v13 = vrot.slane %v4957_v42, 11  ;;  %v5962_v39 = vshrl.u32 %v5856_v5, 16  ;;  %v5974_v61 = vrot.slane %v15440_v31, 4  ;;  %v5303_v23 = vld [vmem:[#allocation3 + $0x98] sm:$0xf]  ;;  %v5470_v37 = vsel %vm13897_vm10, %v16217_v27, %v5469_v40 }
 0x368   : > { %v4946_v55 = vsel %vm13879_vm7, %v11336_v45, %v18752_v24  ;;  %5334 = vst [vmem:[#allocation2 + $0x28c] sm:$0xf] %v5302_v0  ;;  %v16255_v18 = vld [vmem:[#allocation3 + $0xd4] sm:$0xf]  ;;  %v18753_v29 = vld [vmem:[#allocation252_spill] sm:$0xff]  ;;  %v5493_v49 = vrot.slane %v5491_v21, 5 }
 0x369   : > { %5258 = vst [vmem:[#allocation2 + $0xd8] sm:$0xf] %v4946_v55  ;;  %v5951_v22 = vsel %vm13879_vm7, %v11351_v3, %v18753_v29  ;;  %v4575_v52 = vsel %vm13864_vm3, 0, %v4574_v34  ;;  %v4577_v58 = vld [vmem:[#allocation3 + $0x60] sm:$0x8]  ;;  %v4968_v31 = vsel %vm13879_vm7, %v11337_v13, %v15961_v59  ;;  %v11352_v60 = vrot.slane %v5962_v39, 11 }
 0x36a   : > { %5335 = vst [vmem:[#allocation2 + $0x2b0] sm:$0xf] %v5303_v23  ;;  %5820 = vst [vmem:[#allocation2 + $0xbc] sm:$0xf] %v5470_v37  ;;  %v5982_v27 = vsel %vm13879_vm7, %v5974_v61, %v16076_v51  ;;  %v4991_v45 = vrot.slane %v15128_v17, 4  ;;  %v5494_v34 = vsel %vm13897_vm10, %v5489_v28, %v5493_v49  ;;  %v4620_v25 = vsel %vm13874_vm6, 0, %v4619_v35 }
 0x36b   : > { %6283 = vst [vmem:[#allocation2 + $0x9c] sm:$0xf] %v5951_v22  ;;  %4576 = vst [vmem:[#allocation3 + $0x50] sm:$0x8] %v4575_v52  ;;  %v4622_v42 = vld [vmem:[#allocation3 + $0x5c] sm:$0x1]  ;;  %v18754_v59 = vor.u32 %v15253_v54, %v15250_v50  ;;  %v7623_v54 = vor.u32 %v16122_v1, %v16120_v46  ;;  %v5973_v24 = vsel %vm13879_vm7, %v11352_v60, %v16024_v38 }
 0x36c   : > { %v5304_v5 = vld [vmem:[#allocation3 + $0xa4] sm:$0xf]  ;;  %v5305_v41 = vld [vmem:[#allocation3 + $0xa8] sm:$0xf]  ;;  %5260 = vst [vmem:[#allocation2 + $0x120] sm:$0xf] %v4968_v31  ;;  %v4999_v55 = vsel %vm13879_vm7, %v4991_v45, %v16113_v47  ;;  %v7671_v31 = vor.u32 %v16173_v26, %v16163_v10 }
 0x36d   : > { %6286 = vst [vmem:[#allocation2 + $0x108] sm:$0xf] %v5982_v27  ;;  %v5503_v40 = vrot.slane %v18754_v59, 4  ;;  %v18755_v3 = vld [vmem:[#allocation58_spill] sm:$0xff]  ;;  %5336 = vst [vmem:[#allocation2 + $0x2d4] sm:$0xf] %v5304_v5 }
 0x36e   : > { %v18756_v51 = vshll.u32 %v18755_v3, 16  ;;  %v13401_v17 = vld [vmem:[%s18193_s4 + $0x1b8] sm:$0xff]   ;;  %5337 = vst [vmem:[#allocation2 + $0x2f8] sm:$0xf] %v5305_v41  ;;  %v13416_v28 = vld [vmem:[%s18193_s4 + $0x110] sm:$0xff]   ;;  %v5996_v13 = vrot.slane %v15456_v15, 4 }
 0x36f   : > { %v16289_v0 = vld [vmem:[#allocation3 + $0xd8] sm:$0xf]  ;;  %v13338_v50 = vld [vmem:[#allocation2 + $0x48] ss:$36 sps:$4 sm:$0xff]   ;;  %5822 = vst [vmem:[#allocation2 + $0x104] sm:$0xf] %v5494_v34  ;;  %12663 = vmatpush3.bf16.msra.mxu1 %v13416_v28 }
 0x370   : > { %v16281_v21 = vrot.slane %v18756_v51, 5  ;;  %v13340_v35 = vld [vmem:[#allocation2 + $0x4c] ss:$36 sps:$4 sm:$0xff]   ;;  %4621 = vst [vmem:[#allocation3 + $0x4c] sm:$0x1] %v4620_v25  ;;  %v4578_v1 = vsel %vm13864_vm3, 0, %v4577_v58  ;;  %v6004_v27 = vsel %vm13879_vm7, %v5996_v13, %v16137_v32 }
 0x371   : > { %v13341_v39 = vld [vmem:[#allocation2 + $0x8] ss:$36 sps:$4 sm:$0xff]   ;;  %6285 = vst [vmem:[#allocation2 + $0xe4] sm:$0xf] %v5973_v24  ;;  %5263 = vst [vmem:[#allocation2 + $0x18c] sm:$0xf] %v4999_v55  ;;  %9408 = vmatprep.mubr.bf16.mxu1 %v13340_v35 }
 0x372   : > { %v13343_v61 = vld [vmem:[#allocation2 + $0xc] ss:$36 sps:$4 sm:$0xff]   ;;  %v5508_v46 = vsel %vm13897_vm10, %v5503_v40, %v16281_v21  ;;  %v18757_v23 = vld [vmem:[#allocation39_spill] sm:$0xff]  ;;  %v18758_v38 = vld [vmem:[#allocation18_spill] sm:$0xff]  ;;  %v7713_v60 = vshrl.u32 %v16255_v18, 16  ;;  %v5013_v45 = vrot.slane %v15144_v36, 4  ;;  %9409 = vmatmul.mubr.bf16.gmra.mxu1 %v13338_v50 }
 0x373   : > { %v18759_v37 = vshll.u32 %v18758_v38, 16  ;;  %v18760_v47 = vld [vmem:[#allocation40_spill] sm:$0xff]  ;;  %v16315_v52 = vld [vmem:[#allocation3 + $0xf4] sm:$0xf]  ;;  %5823 = vst [vmem:[#allocation2 + $0x128] sm:$0xf] %v5508_v46  ;;  %9561 = vmatprep.mubr.bf16.mxu0 %v13343_v61 }
 0x374   : > { %v18761_v22 = vld [vmem:[#allocation24_spill] sm:$0xff]  ;;  %v13346_v58 = vld [vmem:[#allocation2 + $0x94] ss:$36 sps:$4 sm:$0xff]   ;;  %4579 = vst [vmem:[#allocation3 + $0x60] sm:$0x8] %v4578_v1  ;;  %v7716_v41 = vshll.u32 %v16255_v18, 16  ;;  %9562 = vmatmul.mubr.bf16.vlgmr.msra.gmra.mxu0 %v13341_v39  ;;  %v5021_v24 = vsel %vm13879_vm7, %v5013_v45, %v16158_v7 }
 0x375   : > { %v16308_v29 = vor.u32 %v18759_v37, %v18757_v23  ;;  %v18762_v49 = vshll.u32 %v18761_v22, 16  ;;  %v13409_v5 = vld [vmem:[%s18193_s4 + $0x1f0] sm:$0xff]   ;;  %6288 = vst [vmem:[#allocation2 + $0x150] sm:$0xf] %v6004_v27  ;;  %v4623_v10 = vsel %vm13874_vm6, 0, %v4622_v42  ;;  %v18763_v34 = vld [vmem:[#allocation75_spill] sm:$0xff]  ;;  %9416 = vmatprep.mubr.bf16.mxu1 %v13346_v58  ;;  %12765 = vmatpush3.bf16.msra.mxu0 %v13401_v17 }
 0x376   : > { %v4580_v26 = vld [vmem:[#allocation3 + $0x70] sm:$0x8]  ;;  %v18765_v32 = vld [vmem:[#allocation131_spill] sm:$0xff]  ;;  %v16337_v51 = vrot.slane %v7623_v54, 4  ;;  %v18768_v28 = vshll.u32 %v16085_v57, 16  ;;  %v18770_v54 = vor.u32 %v18742_v53, %v18741_v8  ;;  %v6018_v39 = vrot.slane %v18743_v43, 4  ;;  %12766 = vmatprep.subr.bf16.mxu0 %v13409_v5 }
 0x377   : > { %v16313_v15 = vor.u32 %v18762_v49, %v18760_v47  ;;  %v18764_v25 = vld [vmem:[#allocation77_spill] sm:$0xff]  ;;  %v18766_v40 = vld [vmem:[#allocation115_spill] sm:$0xff]  ;;  %4624 = vst [vmem:[#allocation3 + $0x5c] sm:$0x1] %v4623_v10  ;;  %5265 = vst [vmem:[#allocation2 + $0x1d4] sm:$0xf] %v5021_v24 }
 0x378   : > { %v5550_v59 = vor.u32 %v18764_v25, %v18763_v34  ;;  %v18767_v3 = vshll.u32 %v18766_v40, 16  ;;  %v16341_v18 = vrot.slane %v18768_v28, 5  ;;  %v13349_v50 = vld [vmem:[#allocation2 + $0x54] ss:$36 sps:$4 sm:$0xff]   ;;  %v18769_v42 = vld [vmem:[#allocation71_spill] sm:$0xff]  ;;  %v5527_v57 = vrot.slane %v18770_v54, 4 }
 0x379   : > { %v5512_v35 = vor.u32 %v18769_v42, %v16281_v21  ;;  %v13587_v13 = vld [vmem:[#allocation3 + $0x58] sm:$0xf]  ;;  %v16353_v46 = vrot.slane %v7671_v31, 4  ;;  %v16355_v21 = vrot.slane %v7713_v60, 4  ;;  %9569 = vmatprep.mubr.bf16.mxu0 %v13349_v50  ;;  %v4581_v7 = vsel %vm13864_vm3, 0, %v4580_v26  ;;  %v18771_v38 = vld [vmem:[#allocation132_spill] sm:$0xff] }
 0x37a   : > { %v16335_v36 = vor.u32 %v18767_v3, %v18765_v32  ;;  %v5529_v61 = vshll.u32 %v13587_v13, 16  ;;  %v4625_v1 = vld [vmem:[#allocation3 + $0x6c] sm:$0x1]  ;;  %v16364_v8 = vrot.slane %v7716_v41, 5  ;;  %v13344_v43 = vld [vmem:[#allocation2 + $0x90] ss:$36 sps:$4 sm:$0xff]   ;;  %v6026_v49 = vsel %vm13879_vm7, %v6018_v39, %v16229_v30 }
 0x37b   : > { %v18772_v37 = vld [vmem:[#allocation116_spill] sm:$0xff]  ;;  %4582 = vst [vmem:[#allocation3 + $0x70] sm:$0x8] %v4581_v7  ;;  %v13347_v31 = vld [vmem:[#allocation2 + $0x50] ss:$36 sps:$4 sm:$0xff]   ;;  %v5513_v58 = vrot.slane %v5512_v35, 4  ;;  %9417 = vmatmul.mubr.bf16.gmra.mxu1 %v13344_v43 }
 0x37c   : > { %v18773_v47 = vshll.u32 %v18772_v37, 16  ;;  %v5531_v17 = vrot.slane %v5529_v61, 5  ;;  %v13353_v60 = vld [vmem:[#allocation2 + $0xdc] ss:$36 sps:$4 sm:$0xff]   ;;  %6290 = vst [vmem:[#allocation2 + $0x198] sm:$0xf] %v6026_v49  ;;  %9570 = vmatmul.mubr.bf16.gmra.mxu0 %v13347_v31 }
 0x37d   : > { %v5035_v27 = vrot.slane %v18757_v23, 4  ;;  %v18774_v45 = vld [vmem:[#allocation44_spill] sm:$0xff]  ;;  %v18775_v10 = vld [vmem:[#allocation27_spill] sm:$0xff]  ;;  %v18778_v34 = vld [vmem:[#allocation81_spill] sm:$0xff]  ;;  %v4626_v35 = vsel %vm13874_vm6, 0, %v4625_v1  ;;  %9424 = vmatprep.mubr.bf16.mxu1 %v13353_v60 }
 0x37e   : > { %v16362_v22 = vor.u32 %v18773_v47, %v18771_v38  ;;  %v18776_v5 = vshll.u32 %v18775_v10, 16  ;;  %v18777_v26 = vld [vmem:[#allocation80_spill] sm:$0xff]  ;;  %v13356_v40 = vld [vmem:[#allocation2 + $0x9c] ss:$36 sps:$4 sm:$0xff]   ;;  %v4833_v3 = vld [vmem:[#allocation3 + $0x50] sm:$0x8]  ;;  %v5532_v30 = vsel %vm13897_vm10, %v5527_v57, %v5531_v17 }
 0x37f   : > { %v5574_v25 = vor.u32 %v18778_v34, %v18777_v26  ;;  %v5362_v28 = vld [vmem:[#allocation3 + $0x4c] sm:$0x1]  ;;  %v18779_v50 = vld [vmem:[#allocation74_spill] sm:$0xff]  ;;  %v18780_v23 = vld [vmem:[#allocation135_spill] sm:$0xff]  ;;  %v4979_v61 = vshrl.u32 %v4833_v3, 16  ;;  %v5043_v37 = vsel %vm13879_vm7, %v5035_v27, %v16313_v15  ;;  %v5551_v3 = vrot.slane %v5550_v59, 4  ;;  %9577 = vmatprep.mubr.bf16.mxu0 %v13356_v40 }
 0x380   : > { %v16374_v41 = vor.u32 %v18776_v5, %v18774_v45  ;;  %v5536_v42 = vor.u32 %v18779_v50, %v5531_v17  ;;  %v18781_v24 = vld [vmem:[#allocation118_spill] sm:$0xff]  ;;  %v5515_v39 = vshll.u32 %v5362_v28, 16  ;;  %v5859_v7 = vld [vmem:[#allocation3 + $0x50] sm:$0x8]  ;;  %v4836_v38 = vld [vmem:[#allocation3 + $0x60] sm:$0x8] }
 0x381   : > { %v18782_v54 = vshll.u32 %v18781_v24, 16  ;;  %5825 = vst [vmem:[#allocation2 + $0x170] sm:$0xf] %v5532_v30  ;;  %4627 = vst [vmem:[#allocation3 + $0x6c] sm:$0x1] %v4626_v35  ;;  %v18783_v57 = vld [vmem:[#allocation47_spill] sm:$0xff] }
 0x382   : > { %v18784_v47 = vld [vmem:[#allocation30_spill] sm:$0xff]  ;;  %v5984_v1 = vshrl.u32 %v5859_v7, 16  ;;  %v5001_v45 = vshrl.u32 %v4836_v38, 16  ;;  %v5537_v5 = vrot.slane %v5536_v42, 4  ;;  %5267 = vst [vmem:[#allocation2 + $0x21c] sm:$0xf] %v5043_v37 }
 0x383   : > { %v16386_v13 = vor.u32 %v18782_v54, %v18780_v23  ;;  %v18785_v17 = vshll.u32 %v18784_v47, 16  ;;  %v5365_v10 = vld [vmem:[#allocation3 + $0x5c] sm:$0x1]  ;;  %v11338_v28 = vrot.slane %v4979_v61, 11  ;;  %v5517_v30 = vrot.slane %v5515_v39, 5  ;;  %v18786_v15 = vld [vmem:[#allocation83_spill] sm:$0xff] }
 0x384   : > { %v5539_v50 = vshll.u32 %v5365_v10, 16  ;;  %v5862_v23 = vld [vmem:[#allocation3 + $0x60] sm:$0x8]  ;;  %v18787_v27 = vld [vmem:[#allocation84_spill] sm:$0xff]  ;;  %v11353_v24 = vrot.slane %v5984_v1, 11  ;;  %v11339_v54 = vrot.slane %v5001_v45, 11 }
 0x385   : > { %v16394_v49 = vor.u32 %v18785_v17, %v18783_v57  ;;  %v5598_v35 = vor.u32 %v18787_v27, %v18786_v15  ;;  %v6006_v57 = vshrl.u32 %v5862_v23, 16  ;;  %v18788_v43 = vld [vmem:[#allocation63_spill] sm:$0xff]  ;;  %v4990_v59 = vsel %vm13879_vm7, %v11338_v28, %v16108_v4  ;;  %v4839_v42 = vld [vmem:[#allocation3 + $0x70] sm:$0x8]  ;;  %v4628_v40 = vld [vmem:[#allocation3 + $0x7c] sm:$0x1] }
 0x386   : > { %v18789_v7 = vshll.u32 %v18788_v43, 16  ;;  %v4583_v47 = vld [vmem:[#allocation3 + $0x80] sm:$0x8]  ;;  %v5518_v31 = vsel %vm13897_vm10, %v5513_v58, %v5517_v30  ;;  %v5541_v60 = vrot.slane %v5539_v50, 5  ;;  %v5865_v61 = vld [vmem:[#allocation3 + $0x70] sm:$0x8]  ;;  %v5995_v17 = vsel %vm13879_vm7, %v11353_v24, %v16132_v48 }
 0x387   : > { %v6040_v39 = vrot.slane %v18765_v32, 4  ;;  %v13351_v37 = vld [vmem:[#allocation2 + $0xd8] ss:$36 sps:$4 sm:$0xff]   ;;  %5262 = vst [vmem:[#allocation2 + $0x168] sm:$0xf] %v4990_v59  ;;  %v5012_v4 = vsel %vm13879_vm7, %v11339_v54, %v16146_v16  ;;  %v11354_v1 = vrot.slane %v6006_v57, 11 }
 0x388   : > { %v5555_v38 = vrot.slane %v18789_v7, 5  ;;  %5824 = vst [vmem:[#allocation2 + $0x14c] sm:$0xf] %v5518_v31  ;;  %v5023_v45 = vshrl.u32 %v4839_v42, 16  ;;  %v5306_v58 = vld [vmem:[#allocation3 + $0xb4] sm:$0xf]  ;;  %v5542_v32 = vsel %vm13897_vm10, %v5537_v5, %v5541_v60  ;;  %9425 = vmatmul.mubr.bf16.gmra.mxu1 %v13351_v37 }
 0x389   : > { %v5307_v10 = vld [vmem:[#allocation3 + $0xb8] sm:$0xf]  ;;  %v13360_v30 = vld [vmem:[#allocation2 + $0x124] ss:$36 sps:$4 sm:$0xff]   ;;  %6287 = vst [vmem:[#allocation2 + $0x12c] sm:$0xf] %v5995_v17  ;;  %v6017_v5 = vsel %vm13879_vm7, %v11354_v1, %v16224_v33 }
 0x38a   : > { %v13354_v28 = vld [vmem:[#allocation2 + $0x98] ss:$36 sps:$4 sm:$0xff]   ;;  %5264 = vst [vmem:[#allocation2 + $0x1b0] sm:$0xf] %v5012_v4  ;;  %v5556_v50 = vsel %vm13897_vm10, %v5551_v3, %v5555_v38  ;;  %v18790_v23 = vld [vmem:[#allocation79_spill] sm:$0xff]  ;;  %v6028_v24 = vshrl.u32 %v5865_v61, 16  ;;  %v6048_v3 = vsel %vm13879_vm7, %v6040_v39, %v16362_v22  ;;  %9432 = vmatprep.mubr.bf16.mxu1 %v13360_v30 }
 0x38b   : > { %v5560_v48 = vor.u32 %v18790_v23, %v5555_v38  ;;  %v4586_v43 = vld [vmem:[#allocation3 + $0x90] sm:$0x8]  ;;  %v4631_v7 = vld [vmem:[#allocation3 + $0x8c] sm:$0x1]  ;;  %5338 = vst [vmem:[#allocation2 + $0x31c] sm:$0xf] %v5306_v58  ;;  %9578 = vmatmul.mubr.bf16.gmra.mxu0 %v13354_v28 }
 0x38c   : > { %5339 = vst [vmem:[#allocation2 + $0x340] sm:$0xf] %v5307_v10  ;;  %v13417_v16 = vld [vmem:[%s18193_s4 + $0x1b0] sm:$0xff]   ;;  %v13363_v54 = vld [vmem:[#allocation2 + $0xe4] ss:$36 sps:$4 sm:$0xff]   ;;  %v11340_v57 = vrot.slane %v5023_v45, 11 }
 0x38d   : > { %5826 = vst [vmem:[#allocation2 + $0x194] sm:$0xf] %v5542_v32  ;;  %v5368_v59 = vld [vmem:[#allocation3 + $0x6c] sm:$0x1]  ;;  %5827 = vst [vmem:[#allocation2 + $0x1b8] sm:$0xf] %v5556_v50  ;;  %12767 = vmatpush3.bf16.msra.mxu0 %v13417_v16  ;;  %9585 = vmatprep.mubr.bf16.mxu0 %v13363_v54 }
 0x38e   : > { %v4584_v38 = vsel %vm13864_vm3, 0, %v4583_v47  ;;  %v5308_v31 = vld [vmem:[#allocation3 + $0xc4] sm:$0xf]  ;;  %6289 = vst [vmem:[#allocation2 + $0x174] sm:$0xf] %v6017_v5  ;;  %v5561_v60 = vrot.slane %v5560_v48, 4  ;;  %v5034_v22 = vsel %vm13879_vm7, %v11340_v57, %v16308_v29 }
 0x38f   : > { %v5563_v42 = vshll.u32 %v5368_v59, 16  ;;  %v11355_v61 = vrot.slane %v6028_v24, 11  ;;  %6292 = vst [vmem:[#allocation2 + $0x1e0] sm:$0xf] %v6048_v3  ;;  %4585 = vst [vmem:[#allocation3 + $0x80] sm:$0x8] %v4584_v38 }
 0x390   : > { %v18791_v17 = vld [vmem:[#allocation43_spill] sm:$0xff]  ;;  %5340 = vst [vmem:[#allocation2 + $0x364] sm:$0xf] %v5308_v31  ;;  %v13424_v33 = vld [vmem:[%s18193_s4 + $0x148] sm:$0xff]   ;;  %v4629_v47 = vsel %vm13874_vm6, 0, %v4628_v40  ;;  %v5575_v39 = vrot.slane %v5574_v25, 4 }
 0x391   : > { %v5057_v4 = vrot.slane %v18791_v17, 4  ;;  %v13588_v1 = vld [vmem:[#allocation3 + $0x78] sm:$0xf]  ;;  %v5309_v58 = vld [vmem:[#allocation3 + $0xc8] sm:$0xf]  ;;  %v5565_v37 = vrot.slane %v5563_v42, 5  ;;  %v6039_v29 = vsel %vm13879_vm7, %v11355_v61, %v16335_v36  ;;  %12664 = vmatprep.subr.bf16.mxu1 %v13424_v33 }
 0x392   : > { %v5577_v45 = vshll.u32 %v13588_v1, 16  ;;  %v13425_v10 = vld [vmem:[%s18193_s4 + $0x1e8] sm:$0xff]   ;;  %5266 = vst [vmem:[#allocation2 + $0x1f8] sm:$0xf] %v5034_v22  ;;  %4630 = vst [vmem:[#allocation3 + $0x7c] sm:$0x1] %v4629_v47 }
 0x393   : > { %v5065_v26 = vsel %vm13879_vm7, %v5057_v4, %v16374_v41  ;;  %v18792_v34 = vld [vmem:[#allocation134_spill] sm:$0xff]  ;;  %5341 = vst [vmem:[#allocation2 + $0x388] sm:$0xf] %v5309_v58  ;;  %6291 = vst [vmem:[#allocation2 + $0x1bc] sm:$0xf] %v6039_v29  ;;  %v4587_v28 = vsel %vm13864_vm3, 0, %v4586_v43  ;;  %v5566_v41 = vsel %vm13897_vm10, %v5561_v60, %v5565_v37  ;;  %12768 = vmatprep.subr.bf16.mxu0 %v13425_v10 }
 0x394   : > { %v6062_v25 = vrot.slane %v18792_v34, 4  ;;  %5269 = vst [vmem:[#allocation2 + $0x264] sm:$0xf] %v5065_v26  ;;  %v5579_v40 = vrot.slane %v5577_v45, 5  ;;  %v18793_v30 = vld [vmem:[#allocation46_spill] sm:$0xff]  ;;  %v4632_v36 = vsel %vm13874_vm6, 0, %v4631_v7 }
 0x395   : > { %v5079_v32 = vrot.slane %v18793_v30, 4  ;;  %v5310_v50 = vld [vmem:[#allocation3 + $0xd4] sm:$0xf]  ;;  %4588 = vst [vmem:[#allocation3 + $0x90] sm:$0x8] %v4587_v28  ;;  %v5599_v48 = vrot.slane %v5598_v35, 4 }
 0x396   : > { %v6070_v23 = vsel %vm13879_vm7, %v6062_v25, %v16386_v13  ;;  %4633 = vst [vmem:[#allocation3 + $0x8c] sm:$0x1] %v4632_v36  ;;  %v18794_v24 = vld [vmem:[#allocation139_spill] sm:$0xff]  ;;  %v18795_v43 = vld [vmem:[#allocation120_spill] sm:$0xff]  ;;  %5342 = vst [vmem:[#allocation2 + $0x3ac] sm:$0xf] %v5310_v50  ;;  %v5580_v13 = vsel %vm13897_vm10, %v5575_v39, %v5579_v40 }
 0x397   : > { %v18796_v16 = vshll.u32 %v18795_v43, 16  ;;  %v4589_v7 = vld [vmem:[#allocation3 + $0xa0] sm:$0x8]  ;;  %5828 = vst [vmem:[#allocation2 + $0x1dc] sm:$0xf] %v5566_v41  ;;  %v18797_v5 = vld [vmem:[#allocation26_spill] sm:$0xff]  ;;  %v5087_v15 = vsel %vm13879_vm7, %v5079_v32, %v16394_v49 }
 0x398   : > { %v18798_v57 = vshll.u32 %v18797_v5, 16  ;;  %6294 = vst [vmem:[#allocation2 + $0x228] sm:$0xf] %v6070_v23  ;;  %v18799_v27 = vld [vmem:[#allocation66_spill] sm:$0xff]  ;;  %5829 = vst [vmem:[#allocation2 + $0x200] sm:$0xf] %v5580_v13 }
 0x399   : > { %v6091_v54 = vor.u32 %v18796_v16, %v18794_v24  ;;  %v18800_v35 = vshll.u32 %v18799_v27, 16  ;;  %v18801_v38 = vld [vmem:[#allocation82_spill] sm:$0xff]  ;;  %v18802_v60 = vld [vmem:[#allocation117_spill] sm:$0xff]  ;;  %5271 = vst [vmem:[#allocation2 + $0x2ac] sm:$0xf] %v5087_v15  ;;  %v18807_v1 = vld [vmem:[#allocation119_spill] sm:$0xff] }
 0x39a   : > { %v5055_v59 = vor.u32 %v18798_v57, %v18791_v17  ;;  %v5584_v31 = vor.u32 %v18801_v38, %v5579_v40  ;;  %v18803_v42 = vshll.u32 %v18802_v60, 16  ;;  %v18804_v17 = vld [vmem:[#allocation29_spill] sm:$0xff]  ;;  %v18806_v22 = vld [vmem:[#allocation138_spill] sm:$0xff]  ;;  %v13358_v49 = vld [vmem:[#allocation2 + $0x120] ss:$36 sps:$4 sm:$0xff]   ;;  %v18808_v45 = vshll.u32 %v18807_v1, 16 }
 0x39b   : > { %v5603_v3 = vrot.slane %v18800_v35, 5  ;;  %v18805_v4 = vshll.u32 %v18804_v17, 16  ;;  %v6084_v47 = vrot.slane %v18806_v22, 4  ;;  %v4590_v10 = vsel %vm13864_vm3, 0, %v4589_v7  ;;  %v18809_v37 = vld [vmem:[#allocation49_spill] sm:$0xff]  ;;  %v18810_v29 = vld [vmem:[#allocation31_spill] sm:$0xff]  ;;  %9433 = vmatmul.mubr.bf16.gmra.mxu1 %v13358_v49 }
 0x39c   : > { %v16480_v61 = vor.u32 %v18803_v42, %v18792_v34  ;;  %v16493_v58 = vor.u32 %v18808_v45, %v18806_v22  ;;  %v18811_v26 = vshll.u32 %v18810_v29, 16  ;;  %v13361_v25 = vld [vmem:[#allocation2 + $0xe0] ss:$36 sps:$4 sm:$0xff]   ;;  %v13367_v40 = vld [vmem:[#allocation2 + $0x16c] ss:$36 sps:$4 sm:$0xff]   ;;  %v18813_v50 = vld [vmem:[#allocation50_spill] sm:$0xff] }
 0x39d   : > { %v16485_v33 = vor.u32 %v18805_v4, %v18793_v30  ;;  %v5604_v39 = vsel %vm13897_vm10, %v5599_v48, %v5603_v3  ;;  %v4842_v28 = vld [vmem:[#allocation3 + $0x80] sm:$0x8]  ;;  %v18812_v30 = vld [vmem:[#allocation85_spill] sm:$0xff]  ;;  %v6092_v36 = vsel %vm13879_vm7, %v6084_v47, %v6091_v54  ;;  %4591 = vst [vmem:[#allocation3 + $0xa0] sm:$0x8] %v4590_v10  ;;  %v18816_v24 = vld [vmem:[#allocation86_spill] sm:$0xff]  ;;  %9586 = vmatmul.mubr.bf16.gmra.mxu0 %v13361_v25 }
 0x39e   : > { %v16500_v34 = vor.u32 %v18811_v26, %v18809_v37  ;;  %v5608_v32 = vor.u32 %v18812_v30, %v5603_v3  ;;  %5831 = vst [vmem:[#allocation2 + $0x248] sm:$0xf] %v5604_v39  ;;  %v18814_v41 = vld [vmem:[#allocation33_spill] sm:$0xff]  ;;  %v18817_v43 = vld [vmem:[#allocation88_spill] sm:$0xff]  ;;  %v5045_v5 = vshrl.u32 %v4842_v28, 16  ;;  %v18821_v3 = vld [vmem:[#allocation142_spill] sm:$0xff]  ;;  %9440 = vmatprep.mubr.bf16.mxu1 %v13367_v40 }
 0x39f   : > { %v18815_v23 = vshll.u32 %v18814_v41, 16  ;;  %v5622_v16 = vor.u32 %v18817_v43, %v18816_v24  ;;  %v13370_v7 = vld [vmem:[#allocation2 + $0x12c] ss:$36 sps:$4 sm:$0xff]   ;;  %6296 = vst [vmem:[#allocation2 + $0x270] sm:$0xf] %v6092_v36  ;;  %v18822_v54 = vld [vmem:[#allocation122_spill] sm:$0xff] }
 0x3a0   : > { %v4634_v57 = vld [vmem:[#allocation3 + $0x9c] sm:$0x1]  ;;  %v18818_v13 = vld [vmem:[#allocation141_spill] sm:$0xff]  ;;  %v18823_v38 = vshll.u32 %v18822_v54, 16  ;;  %v18824_v42 = vld [vmem:[#allocation51_spill] sm:$0xff]  ;;  %v5585_v49 = vrot.slane %v5584_v31, 4  ;;  %9593 = vmatprep.mubr.bf16.mxu0 %v13370_v7 }
 0x3a1   : > { %v5108_v48 = vor.u32 %v18815_v23, %v18813_v50  ;;  %v18819_v15 = vld [vmem:[#allocation121_spill] sm:$0xff]  ;;  %v18825_v17 = vld [vmem:[#allocation32_spill] sm:$0xff]  ;;  %v5371_v47 = vld [vmem:[#allocation3 + $0x7c] sm:$0x1]  ;;  %v5101_v39 = vrot.slane %v18809_v37, 4  ;;  %v11341_v36 = vrot.slane %v5045_v5, 11 }
 0x3a2   : > { %v18820_v27 = vshll.u32 %v18819_v15, 16  ;;  %v16518_v60 = vor.u32 %v18823_v38, %v18821_v3  ;;  %v18826_v4 = vshll.u32 %v18825_v17, 16  ;;  %v18827_v1 = vld [vmem:[#allocation52_spill] sm:$0xff]  ;;  %v18828_v45 = vld [vmem:[#allocation34_spill] sm:$0xff]  ;;  %v18831_v28 = vld [vmem:[#allocation91_spill] sm:$0xff]  ;;  %v5587_v50 = vshll.u32 %v5371_v47, 16 }
 0x3a3   : > { %v18829_v10 = vshll.u32 %v18828_v45, 16  ;;  %v18830_v26 = vld [vmem:[#allocation90_spill] sm:$0xff]  ;;  %v5868_v41 = vld [vmem:[#allocation3 + $0x80] sm:$0x8]  ;;  %v4845_v23 = vld [vmem:[#allocation3 + $0x90] sm:$0x8]  ;;  %v5109_v38 = vsel %vm13879_vm7, %v5101_v39, %v5108_v48 }
 0x3a4   : > { %v16513_v35 = vor.u32 %v18820_v27, %v18818_v13  ;;  %v16523_v22 = vor.u32 %v18826_v4, %v18824_v42  ;;  %v18832_v24 = vld [vmem:[#allocation144_spill] sm:$0xff]  ;;  %v18833_v25 = vld [vmem:[#allocation123_spill] sm:$0xff]  ;;  %v18835_v31 = vld [vmem:[#allocation145_spill] sm:$0xff]  ;;  %v6050_v3 = vshrl.u32 %v5868_v41, 16  ;;  %v5609_v54 = vrot.slane %v5608_v32, 4 }
 0x3a5   : > { %v16529_v29 = vor.u32 %v18829_v10, %v18827_v1  ;;  %v18834_v40 = vshll.u32 %v18833_v25, 16  ;;  %v18836_v37 = vld [vmem:[#allocation124_spill] sm:$0xff]  ;;  %v18838_v7 = vld [vmem:[#allocation54_spill] sm:$0xff]  ;;  %v18839_v5 = vld [vmem:[#allocation35_spill] sm:$0xff]  ;;  %v5056_v1 = vsel %vm13879_vm7, %v11341_v36, %v5055_v59  ;;  %v5589_v45 = vrot.slane %v5587_v50, 5 }
 0x3a6   : > { %v18837_v15 = vshll.u32 %v18836_v37, 16  ;;  %v18840_v17 = vshll.u32 %v18839_v5, 16  ;;  %v13365_v47 = vld [vmem:[#allocation2 + $0x168] ss:$36 sps:$4 sm:$0xff]   ;;  %v5067_v10 = vshrl.u32 %v4845_v23, 16  ;;  %v4635_v41 = vsel %vm13874_vm6, 0, %v4634_v57 }
 0x3a7   : > { %v16536_v43 = vor.u32 %v18834_v40, %v18832_v24  ;;  %v5374_v25 = vld [vmem:[#allocation3 + $0x8c] sm:$0x1]  ;;  %5273 = vst [vmem:[#allocation2 + $0x2f4] sm:$0xf] %v5109_v38  ;;  %v13374_v40 = vld [vmem:[#allocation2 + $0x1b4] ss:$36 sps:$4 sm:$0xff]   ;;  %v5590_v59 = vsel %vm13897_vm10, %v5585_v49, %v5589_v45  ;;  %9441 = vmatmul.mubr.bf16.gmra.mxu1 %v13365_v47 }
 0x3a8   : > { %v16541_v27 = vor.u32 %v18837_v15, %v18835_v31  ;;  %v16548_v4 = vor.u32 %v18840_v17, %v18838_v7  ;;  %v13368_v32 = vld [vmem:[#allocation2 + $0x128] ss:$36 sps:$4 sm:$0xff]   ;;  %5268 = vst [vmem:[#allocation2 + $0x240] sm:$0xf] %v5056_v1  ;;  %v11356_v48 = vrot.slane %v6050_v3, 11  ;;  %v5611_v39 = vshll.u32 %v5374_v25, 16  ;;  %9448 = vmatprep.mubr.bf16.mxu1 %v13374_v40 }
 0x3a9   : > { %v5871_v31 = vld [vmem:[#allocation3 + $0x90] sm:$0x8]  ;;  %4636 = vst [vmem:[#allocation3 + $0x9c] sm:$0x1] %v4635_v41  ;;  %v5623_v37 = vrot.slane %v5622_v16, 4  ;;  %v11342_v36 = vrot.slane %v5067_v10, 11  ;;  %9594 = vmatmul.mubr.bf16.gmra.mxu0 %v13368_v32 }
 0x3aa   : > { %v13589_v15 = vld [vmem:[#allocation3 + $0x98] sm:$0xf]  ;;  %v4592_v17 = vld [vmem:[#allocation3 + $0xb0] sm:$0x8]  ;;  %v6072_v50 = vshrl.u32 %v5871_v31, 16  ;;  %v6061_v3 = vsel %vm13879_vm7, %v11356_v48, %v16480_v61  ;;  %v5613_v16 = vrot.slane %v5611_v39, 5 }
 0x3ab   : > { %v5625_v5 = vshll.u32 %v13589_v15, 16  ;;  %v4848_v23 = vld [vmem:[#allocation3 + $0xa0] sm:$0x8]  ;;  %v4637_v53 = vld [vmem:[#allocation3 + $0xac] sm:$0x1]  ;;  %v18841_v57 = vld [vmem:[#allocation93_spill] sm:$0xff]  ;;  %v5078_v10 = vsel %vm13879_vm7, %v11342_v36, %v16485_v33 }
 0x3ac   : > { %v5874_v38 = vld [vmem:[#allocation3 + $0xa0] sm:$0x8]  ;;  %v18842_v55 = vld [vmem:[#allocation94_spill] sm:$0xff]  ;;  %5830 = vst [vmem:[#allocation2 + $0x224] sm:$0xf] %v5590_v59  ;;  %v5089_v1 = vshrl.u32 %v4848_v23, 16  ;;  %v5614_v47 = vsel %vm13897_vm10, %v5609_v54, %v5613_v16 }
 0x3ad   : > { %v5670_v30 = vor.u32 %v18842_v55, %v18841_v57  ;;  %v5627_v25 = vrot.slane %v5625_v5, 5  ;;  %v5311_v41 = vld [vmem:[#allocation3 + $0xd8] sm:$0xf]  ;;  %v13432_v49 = vld [vmem:[%s18193_s4 + $0x108] sm:$0xff]   ;;  %6293 = vst [vmem:[#allocation2 + $0x204] sm:$0xf] %v6061_v3 }
 0x3ae   : > { %v13377_v45 = vld [vmem:[#allocation2 + $0x174] ss:$36 sps:$4 sm:$0xff]   ;;  %v11357_v31 = vrot.slane %v6072_v50, 11  ;;  %v6094_v15 = vshrl.u32 %v5874_v38, 16  ;;  %v6106_v59 = vrot.slane %v18818_v13, 4  ;;  %v13433_v61 = vld [vmem:[%s18193_s4 + $0x1a8] sm:$0xff]   ;;  %12665 = vmatpush3.bf16.msra.mxu1 %v13432_v49 }
 0x3af   : > { %5343 = vst [vmem:[#allocation2 + $0x3d0] sm:$0xf] %v5311_v41  ;;  %5270 = vst [vmem:[#allocation2 + $0x288] sm:$0xf] %v5078_v10  ;;  %v11343_v48 = vrot.slane %v5089_v1, 11  ;;  %v5628_v39 = vsel %vm13897_vm10, %v5623_v37, %v5627_v25  ;;  %v18843_v33 = vld [vmem:[#allocation89_spill] sm:$0xff]  ;;  %9601 = vmatprep.mubr.bf16.mxu0 %v13377_v45  ;;  %12769 = vmatpush3.bf16.msra.mxu0 %v13433_v61  ;;  %v18847_v45 = vor.u32 %v18831_v28, %v18830_v26 }
 0x3b0   : > { %v5632_v5 = vor.u32 %v18843_v33, %v5627_v25  ;;  %v4595_v36 = vld [vmem:[#allocation3 + $0xc0] sm:$0x8]  ;;  %v5312_v50 = vld [vmem:[#allocation3 + $0xe4] sm:$0xf]  ;;  %5832 = vst [vmem:[#allocation2 + $0x26c] sm:$0xf] %v5614_v47  ;;  %v6083_v32 = vsel %vm13879_vm7, %v11357_v31, %v16493_v58  ;;  %v6114_v40 = vsel %vm13879_vm7, %v6106_v59, %v16518_v60 }
 0x3b1   : > { %v13440_v13 = vld [vmem:[%s18193_s4 + $0x140] sm:$0xff]   ;;  %5833 = vst [vmem:[#allocation2 + $0x290] sm:$0xf] %v5628_v39  ;;  %v11358_v54 = vrot.slane %v6094_v15, 11  ;;  %v4593_v37 = vsel %vm13864_vm3, 0, %v4592_v17  ;;  %v5100_v3 = vsel %vm13879_vm7, %v11343_v48, %v16500_v34  ;;  %v5123_v58 = vrot.slane %v18824_v42, 4 }
 0x3b2   : > { %v4640_v23 = vld [vmem:[#allocation3 + $0xbc] sm:$0x1]  ;;  %v5313_v38 = vld [vmem:[#allocation3 + $0xe8] sm:$0xf]  ;;  %5344 = vst [vmem:[#allocation2 + $0x3f4] sm:$0xf] %v5312_v50  ;;  %12666 = vmatprep.subr.bf16.mxu1 %v13440_v13 }
 0x3b3   : > { %6295 = vst [vmem:[#allocation2 + $0x24c] sm:$0xf] %v6083_v32  ;;  %6298 = vst [vmem:[#allocation2 + $0x2b8] sm:$0xf] %v6114_v40  ;;  %v4638_v16 = vsel %vm13874_vm6, 0, %v4637_v53  ;;  %v18844_v60 = vld [vmem:[#allocation55_spill] sm:$0xff]  ;;  %v6105_v53 = vsel %vm13879_vm7, %v11358_v54, %v16513_v35  ;;  %v5131_v39 = vsel %vm13879_vm7, %v5123_v58, %v16529_v29 }
 0x3b4   : > { %4594 = vst [vmem:[#allocation3 + $0xb0] sm:$0x8] %v4593_v37  ;;  %v18845_v1 = vld [vmem:[#allocation37_spill] sm:$0xff]  ;;  %5345 = vst [vmem:[#allocation2 + $0x418] sm:$0xf] %v5313_v38  ;;  %v13441_v41 = vld [vmem:[%s18193_s4 + $0x1e0] sm:$0xff]  }
 0x3b5   : > { %v18846_v25 = vshll.u32 %v18845_v1, 16  ;;  %v13448_v34 = vld [vmem:[%s18193_s4 + $0x100] sm:$0xff]   ;;  %v13372_v49 = vld [vmem:[#allocation2 + $0x1b0] ss:$36 sps:$4 sm:$0xff]   ;;  %5272 = vst [vmem:[#allocation2 + $0x2d0] sm:$0xf] %v5100_v3  ;;  %12770 = vmatprep.subr.bf16.mxu0 %v13441_v41 }
 0x3b6   : > { %v5633_v42 = vrot.slane %v5632_v5, 4  ;;  %4639 = vst [vmem:[#allocation3 + $0xac] sm:$0x1] %v4638_v16  ;;  %v5647_v10 = vrot.slane %v18847_v45, 4  ;;  %v18848_v31 = vld [vmem:[#allocation147_spill] sm:$0xff]  ;;  %v18849_v15 = vld [vmem:[#allocation128_spill] sm:$0xff]  ;;  %12667 = vmatpush3.bf16.msra.mxu1 %v13448_v34 }
 0x3b7   : > { %v5152_v17 = vor.u32 %v18846_v25, %v18844_v60  ;;  %v18850_v59 = vshll.u32 %v18849_v15, 16  ;;  %v4598_v47 = vld [vmem:[#allocation3 + $0xd0] sm:$0x8]  ;;  %v5377_v48 = vld [vmem:[#allocation3 + $0x9c] sm:$0x1]  ;;  %v18851_v33 = vld [vmem:[#allocation76_spill] sm:$0xff]  ;;  %9449 = vmatmul.mubr.bf16.gmra.mxu1 %v13372_v49 }
 0x3b8   : > { %6297 = vst [vmem:[#allocation2 + $0x294] sm:$0xf] %v6105_v53  ;;  %v18852_v5 = vshll.u32 %v18851_v33, 16  ;;  %v6128_v35 = vrot.slane %v18832_v24, 4  ;;  %v4596_v26 = vsel %vm13864_vm3, 0, %v4595_v36  ;;  %v13449_v28 = vld [vmem:[%s18193_s4 + $0x1a0] sm:$0xff]  }
 0x3b9   : > { %v6157_v61 = vor.u32 %v18850_v59, %v18848_v31  ;;  %v5635_v13 = vshll.u32 %v5377_v48, 16  ;;  %5275 = vst [vmem:[#allocation2 + $0x33c] sm:$0xf] %v5131_v39  ;;  %4597 = vst [vmem:[#allocation3 + $0xc0] sm:$0x8] %v4596_v26  ;;  %v5145_v32 = vrot.slane %v18838_v7, 4  ;;  %12771 = vmatpush3.bf16.msra.mxu0 %v13449_v28 }
 0x3ba   : > { %v5651_v50 = vrot.slane %v18852_v5, 5  ;;  %v4641_v29 = vsel %vm13874_vm6, 0, %v4640_v23  ;;  %v5671_v24 = vrot.slane %v5670_v30, 4  ;;  %v13450_v36 = vld [vmem:[%s18193_s4 + $0x1d8] sm:$0xff]   ;;  %v13375_v54 = vld [vmem:[#allocation2 + $0x170] ss:$36 sps:$4 sm:$0xff]   ;;  %v6136_v7 = vsel %vm13879_vm7, %v6128_v35, %v16541_v27 }
 0x3bb   : > { %v13381_v40 = vld [vmem:[#allocation2 + $0x1fc] ss:$36 sps:$4 sm:$0xff]   ;;  %v18853_v38 = vld [vmem:[#allocation92_spill] sm:$0xff]  ;;  %4642 = vst [vmem:[#allocation3 + $0xbc] sm:$0x1] %v4641_v29  ;;  %v5637_v57 = vrot.slane %v5635_v13, 5  ;;  %v5153_v58 = vsel %vm13879_vm7, %v5145_v32, %v5152_v17  ;;  %12772 = vmatprep.subr.bf16.mxu0 %v13450_v36  ;;  %9602 = vmatmul.mubr.bf16.gmra.mxu0 %v13375_v54 }
 0x3bc   : > { %v5652_v37 = vsel %vm13897_vm10, %v5647_v10, %v5651_v50  ;;  %v5656_v3 = vor.u32 %v18853_v38, %v5651_v50  ;;  %v13590_v23 = vld [vmem:[#allocation3 + $0xb8] sm:$0xf]  ;;  %v13384_v30 = vld [vmem:[#allocation2 + $0x1bc] ss:$36 sps:$4 sm:$0xff]   ;;  %6300 = vst [vmem:[#allocation2 + $0x300] sm:$0xf] %v6136_v7  ;;  %9456 = vmatprep.mubr.bf16.mxu1 %v13381_v40 }
 0x3bd   : > { %v5673_v55 = vshll.u32 %v13590_v23, 16  ;;  %5835 = vst [vmem:[#allocation2 + $0x2d8] sm:$0xf] %v5652_v37  ;;  %v18854_v16 = vld [vmem:[#allocation57_spill] sm:$0xff]  ;;  %v4643_v41 = vld [vmem:[#allocation3 + $0xcc] sm:$0x1]  ;;  %9609 = vmatprep.mubr.bf16.mxu0 %v13384_v30  ;;  %v5638_v39 = vsel %vm13897_vm10, %v5633_v42, %v5637_v57 }
 0x3be   : > { %v18855_v60 = vld [vmem:[#allocation41_spill] sm:$0xff]  ;;  %v18857_v34 = vld [vmem:[#allocation96_spill] sm:$0xff]  ;;  %5277 = vst [vmem:[#allocation2 + $0x384] sm:$0xf] %v5153_v58  ;;  %v18859_v45 = vld [vmem:[#allocation146_spill] sm:$0xff]  ;;  %v4599_v59 = vsel %vm13864_vm3, 0, %v4598_v47 }
 0x3bf   : > { %v18856_v1 = vshll.u32 %v18855_v60, 16  ;;  %v18858_v53 = vld [vmem:[#allocation97_spill] sm:$0xff]  ;;  %v5675_v49 = vrot.slane %v5673_v55, 5  ;;  %v6150_v17 = vrot.slane %v18859_v45, 4  ;;  %v13457_v48 = vld [vmem:[%s18193_s4 + $0x198] sm:$0xff]   ;;  %v5657_v33 = vrot.slane %v5656_v3, 4 }
 0x3c0   : > { %v5694_v27 = vor.u32 %v18858_v53, %v18857_v34  ;;  %v18860_v10 = vld [vmem:[#allocation125_spill] sm:$0xff]  ;;  %4600 = vst [vmem:[#allocation3 + $0xd0] sm:$0x8] %v4599_v59  ;;  %v18862_v5 = vld [vmem:[#allocation56_spill] sm:$0xff]  ;;  %v18863_v50 = vld [vmem:[#allocation38_spill] sm:$0xff]  ;;  %v4644_v42 = vsel %vm13874_vm6, 0, %v4643_v41  ;;  %12773 = vmatpush3.bf16.msra.mxu0 %v13457_v48 }
 0x3c1   : > { %v5174_v25 = vor.u32 %v18856_v1, %v18854_v16  ;;  %v18861_v31 = vshll.u32 %v18860_v10, 16  ;;  %v18864_v35 = vshll.u32 %v18863_v50, 16  ;;  %v5167_v28 = vrot.slane %v18862_v5, 4  ;;  %5834 = vst [vmem:[#allocation2 + $0x2b4] sm:$0xf] %v5638_v39  ;;  %v18865_v13 = vld [vmem:[#allocation95_spill] sm:$0xff] }
 0x3c2   : > { %v5676_v47 = vsel %vm13897_vm10, %v5671_v24, %v5675_v49  ;;  %v5680_v32 = vor.u32 %v18865_v13, %v5675_v49  ;;  %v6158_v29 = vsel %vm13879_vm7, %v6150_v17, %v6157_v61  ;;  %v13379_v36 = vld [vmem:[#allocation2 + $0x1f8] ss:$36 sps:$4 sm:$0xff]   ;;  %v4851_v54 = vld [vmem:[#allocation3 + $0xb0] sm:$0x8]  ;;  %v5380_v40 = vld [vmem:[#allocation3 + $0xac] sm:$0x1] }
 0x3c3   : > { %v16647_v15 = vor.u32 %v18861_v31, %v18859_v45  ;;  %v16660_v26 = vor.u32 %v18864_v35, %v18862_v5  ;;  %5837 = vst [vmem:[#allocation2 + $0x320] sm:$0xf] %v5676_v47  ;;  %6302 = vst [vmem:[#allocation2 + $0x348] sm:$0xf] %v6158_v29  ;;  %v5175_v37 = vsel %vm13879_vm7, %v5167_v28, %v5174_v25  ;;  %v5695_v38 = vrot.slane %v5694_v27, 4  ;;  %v18866_v24 = vld [vmem:[#allocation148_spill] sm:$0xff] }
 0x3c4   : > { %4645 = vst [vmem:[#allocation3 + $0xcc] sm:$0x1] %v4644_v42  ;;  %v18867_v3 = vld [vmem:[#allocation129_spill] sm:$0xff]  ;;  %v18870_v55 = vld [vmem:[#allocation130_spill] sm:$0xff]  ;;  %v13388_v16 = vld [vmem:[#allocation2 + $0x244] ss:$36 sps:$4 sm:$0xff]   ;;  %9457 = vmatmul.mubr.bf16.gmra.mxu1 %v13379_v36 }
 0x3c5   : > { %v18868_v7 = vshll.u32 %v18867_v3, 16  ;;  %v18869_v61 = vld [vmem:[#allocation149_spill] sm:$0xff]  ;;  %v18871_v30 = vshll.u32 %v18870_v55, 16  ;;  %v13382_v58 = vld [vmem:[#allocation2 + $0x1b8] ss:$36 sps:$4 sm:$0xff]   ;;  %v5111_v60 = vshrl.u32 %v4851_v54, 16  ;;  %9464 = vmatprep.mubr.bf16.mxu1 %v13388_v16 }
 0x3c6   : > { %v5659_v1 = vshll.u32 %v5380_v40, 16  ;;  %v5877_v41 = vld [vmem:[#allocation3 + $0xb0] sm:$0x8]  ;;  %v5681_v34 = vrot.slane %v5680_v32, 4  ;;  %5279 = vst [vmem:[#allocation2 + $0x3cc] sm:$0xf] %v5175_v37  ;;  %9610 = vmatmul.mubr.bf16.gmra.mxu0 %v13382_v58 }
 0x3c7   : > { %v16675_v23 = vor.u32 %v18868_v7, %v18866_v24  ;;  %v16680_v57 = vor.u32 %v18871_v30, %v18869_v61  ;;  %v18872_v25 = vld [vmem:[#allocation60_spill] sm:$0xff]  ;;  %v18873_v53 = vld [vmem:[#allocation45_spill] sm:$0xff]  ;;  %v6116_v45 = vshrl.u32 %v5877_v41, 16  ;;  %v4854_v10 = vld [vmem:[#allocation3 + $0xc0] sm:$0x8]  ;;  %v11344_v32 = vrot.slane %v5111_v60, 11 }
 0x3c8   : > { %v18874_v27 = vshll.u32 %v18873_v53, 16  ;;  %v5383_v31 = vld [vmem:[#allocation3 + $0xbc] sm:$0x1]  ;;  %v18877_v39 = vld [vmem:[#allocation99_spill] sm:$0xff]  ;;  %v18878_v5 = vld [vmem:[#allocation100_spill] sm:$0xff]  ;;  %v5661_v29 = vrot.slane %v5659_v1, 5 }
 0x3c9   : > { %v18875_v17 = vld [vmem:[#allocation78_spill] sm:$0xff]  ;;  %v5718_v50 = vor.u32 %v18878_v5, %v18877_v39  ;;  %v18879_v35 = vld [vmem:[#allocation152_spill] sm:$0xff]  ;;  %v5133_v42 = vshrl.u32 %v4854_v10, 16  ;;  %v5683_v54 = vshll.u32 %v5383_v31, 16  ;;  %v5880_v40 = vld [vmem:[#allocation3 + $0xc0] sm:$0x8]  ;;  %v5122_v60 = vsel %vm13879_vm7, %v11344_v32, %v16523_v22 }
 0x3ca   : > { %v16685_v49 = vor.u32 %v18874_v27, %v18872_v25  ;;  %v18876_v59 = vshll.u32 %v18875_v17, 16  ;;  %v18880_v28 = vld [vmem:[#allocation136_spill] sm:$0xff]  ;;  %v11359_v3 = vrot.slane %v6116_v45, 11  ;;  %v6138_v7 = vshrl.u32 %v5880_v40, 16  ;;  %v18882_v55 = vld [vmem:[#allocation98_spill] sm:$0xff]  ;;  %v13458_v41 = vld [vmem:[%s18193_s4 + $0x1d0] sm:$0xff]  }
 0x3cb   : > { %v18881_v47 = vshll.u32 %v18880_v28, 16  ;;  %v13391_v37 = vld [vmem:[#allocation2 + $0x204] ss:$36 sps:$4 sm:$0xff]   ;;  %v5662_v36 = vsel %vm13897_vm10, %v5657_v33, %v5661_v29  ;;  %v11345_v1 = vrot.slane %v5133_v42, 11  ;;  %v5685_v25 = vrot.slane %v5683_v54, 5  ;;  %v18884_v22 = vld [vmem:[#allocation14_spill] sm:$0xff]  ;;  %12774 = vmatprep.subr.bf16.mxu0 %v13458_v41 }
 0x3cc   : > { %v5699_v48 = vrot.slane %v18876_v59, 5  ;;  %v4857_v53 = vld [vmem:[#allocation3 + $0xd0] sm:$0x8]  ;;  %9617 = vmatprep.mubr.bf16.mxu0 %v13391_v37  ;;  %5274 = vst [vmem:[#allocation2 + $0x318] sm:$0xf] %v5122_v60  ;;  %v6127_v58 = vsel %vm13879_vm7, %v11359_v3, %v16536_v43  ;;  %v11360_v16 = vrot.slane %v6138_v7, 11 }
 0x3cd   : > { %v16694_v13 = vor.u32 %v18881_v47, %v18879_v35  ;;  %5836 = vst [vmem:[#allocation2 + $0x2fc] sm:$0xf] %v5662_v36  ;;  %v4601_v27 = vld [vmem:[#allocation3 + $0xe0] sm:$0x8]  ;;  %v4646_v45 = vld [vmem:[#allocation3 + $0xdc] sm:$0x1]  ;;  %v5144_v39 = vsel %vm13879_vm7, %v11345_v1, %v16548_v4  ;;  %v5686_v43 = vsel %vm13897_vm10, %v5681_v34, %v5685_v25 }
 0x3ce   : > { %v5700_v61 = vsel %vm13897_vm10, %v5695_v38, %v5699_v48  ;;  %v5704_v30 = vor.u32 %v18882_v55, %v5699_v48  ;;  %v5883_v38 = vld [vmem:[#allocation3 + $0xd0] sm:$0x8]  ;;  %v18883_v10 = vld [vmem:[#allocation12_spill] sm:$0xff]  ;;  %v18885_v31 = vshll.u32 %v18884_v22, 16  ;;  %v18886_v33 = vld [vmem:[#allocation102_spill] sm:$0xff]  ;;  %v5155_v5 = vshrl.u32 %v4857_v53, 16 }
 0x3cf   : > { %5839 = vst [vmem:[#allocation2 + $0x368] sm:$0xf] %v5700_v61  ;;  %v18887_v59 = vld [vmem:[#allocation103_spill] sm:$0xff]  ;;  %6299 = vst [vmem:[#allocation2 + $0x2dc] sm:$0xf] %v6127_v58  ;;  %v6149_v29 = vsel %vm13879_vm7, %v11360_v16, %v16647_v15  ;;  %v6160_v54 = vshrl.u32 %v5883_v38, 16 }
 0x3d0   : > { %v16713_v17 = vor.u32 %v18885_v31, %v18883_v10  ;;  %v5742_v48 = vor.u32 %v18887_v59, %v18886_v33  ;;  %v5386_v35 = vld [vmem:[#allocation3 + $0xcc] sm:$0x1]  ;;  %v5705_v28 = vrot.slane %v5704_v30, 4  ;;  %v5314_v47 = vld [vmem:[#allocation3 + $0xf4] sm:$0xf]  ;;  %v6172_v40 = vrot.slane %v18866_v24, 4 }
 0x3d1   : > { %v13386_v32 = vld [vmem:[#allocation2 + $0x240] ss:$36 sps:$4 sm:$0xff]   ;;  %5276 = vst [vmem:[#allocation2 + $0x360] sm:$0xf] %v5144_v39  ;;  %5838 = vst [vmem:[#allocation2 + $0x344] sm:$0xf] %v5686_v43 }
 0x3d2   : > { %v5707_v42 = vshll.u32 %v5386_v35, 16  ;;  %v5315_v37 = vld [vmem:[#allocation3 + $0xf8] sm:$0xf]  ;;  %5346 = vst [vmem:[#allocation2 + $0x43c] sm:$0xf] %v5314_v47  ;;  %v11346_v34 = vrot.slane %v5155_v5, 11  ;;  %v6180_v24 = vsel %vm13879_vm7, %v6172_v40, %v16680_v57  ;;  %9465 = vmatmul.mubr.bf16.gmra.mxu1 %v13386_v32 }
 0x3d3   : > { %v13389_v4 = vld [vmem:[#allocation2 + $0x200] ss:$36 sps:$4 sm:$0xff]   ;;  %6301 = vst [vmem:[#allocation2 + $0x324] sm:$0xf] %v6149_v29  ;;  %v4602_v3 = vsel %vm13864_vm3, 0, %v4601_v27  ;;  %v4647_v55 = vsel %vm13874_vm6, 0, %v4646_v45 }
 0x3d4   : > { %v18888_v7 = vld [vmem:[#allocation59_spill] sm:$0xff]  ;;  %v4604_v30 = vld [vmem:[#allocation3 + $0xf0] sm:$0x8]  ;;  %5347 = vst [vmem:[#allocation2 + $0x460] sm:$0xf] %v5315_v37  ;;  %v5709_v41 = vrot.slane %v5707_v42, 5  ;;  %v5166_v25 = vsel %vm13879_vm7, %v11346_v34, %v16660_v26  ;;  %9618 = vmatmul.mubr.bf16.gmra.mxu0 %v13389_v4 }
 0x3d5   : > { %v5189_v61 = vrot.slane %v18888_v7, 4  ;;  %v13396_v15 = vld [vmem:[#allocation2 + $0x28c] ss:$36 sps:$4 sm:$0xff]   ;;  %v11361_v60 = vrot.slane %v6160_v54, 11  ;;  %4603 = vst [vmem:[#allocation3 + $0xe0] sm:$0x8] %v4602_v3 }
 0x3d6   : > { %4648 = vst [vmem:[#allocation3 + $0xdc] sm:$0x1] %v4647_v55  ;;  %v5719_v36 = vrot.slane %v5718_v50, 4  ;;  %v13459_v1 = vld [vmem:[%s18193_s4 + $0x190] sm:$0xff]   ;;  %6304 = vst [vmem:[#allocation2 + $0x390] sm:$0xf] %v6180_v24  ;;  %v5710_v10 = vsel %vm13897_vm10, %v5705_v28, %v5709_v41  ;;  %9472 = vmatprep.mubr.bf16.mxu1 %v13396_v15 }
 0x3d7   : > { %v5197_v53 = vsel %vm13879_vm7, %v5189_v61, %v16685_v49  ;;  %v13591_v38 = vld [vmem:[#allocation3 + $0xd8] sm:$0xf]  ;;  %v18889_v16 = vld [vmem:[#allocation151_spill] sm:$0xff]  ;;  %v4649_v27 = vld [vmem:[#allocation3 + $0xec] sm:$0x1]  ;;  %v6171_v26 = vsel %vm13879_vm7, %v11361_v60, %v16675_v23  ;;  %v4605_v49 = vsel %vm13864_vm3, 0, %v4604_v30  ;;  %12775 = vmatpush3.bf16.msra.mxu0 %v13459_v1 }
 0x3d8   : > { %v5721_v58 = vshll.u32 %v13591_v38, 16  ;;  %v6194_v57 = vrot.slane %v18889_v16, 4  ;;  %v6311_v45 = vld [vmem:[#allocation3 + $0x14] sm:$0xf]  ;;  %v13399_v50 = vld [vmem:[#allocation2 + $0x24c] ss:$36 sps:$4 sm:$0xff]  }
 0x3d9   : > { %5278 = vst [vmem:[#allocation2 + $0x3a8] sm:$0xf] %v5166_v25  ;;  %5281 = vst [vmem:[#allocation2 + $0x414] sm:$0xf] %v5197_v53  ;;  %v18890_v22 = vld [vmem:[#allocation61_spill] sm:$0xff]  ;;  %v18891_v43 = vshll.u32 %v16289_v0, 16  ;;  %9625 = vmatprep.mubr.bf16.mxu0 %v13399_v50 }
 0x3da   : > { %v5211_v31 = vrot.slane %v18890_v22, 4  ;;  %v6312_v39 = vld [vmem:[#allocation3 + $0x18] sm:$0xf]  ;;  %6343 = vst [vmem:[#allocation2 + $0x10] sm:$0xf] %v6311_v45  ;;  %v7764_v35 = vshll.u32 %v16315_v52, 16  ;;  %v6202_v28 = vsel %vm13879_vm7, %v6194_v57, %v16694_v13 }
 0x3db   : > { %v16754_v5 = vrot.slane %v18891_v43, 5  ;;  %5840 = vst [vmem:[#allocation2 + $0x38c] sm:$0xf] %v5710_v10  ;;  %6303 = vst [vmem:[#allocation2 + $0x36c] sm:$0xf] %v6171_v26  ;;  %v5723_v23 = vrot.slane %v5721_v58, 5 }
 0x3dc   : > { %4606 = vst [vmem:[#allocation3 + $0xf0] sm:$0x8] %v4605_v49  ;;  %v4607_v47 = vld [vmem:[#allocation3 + $0x100] sm:$0x8]  ;;  %6344 = vst [vmem:[#allocation2 + $0x34] sm:$0xf] %v6312_v39  ;;  %v5219_v0 = vsel %vm13879_vm7, %v5211_v31, %v16713_v17 }
 0x3dd   : > { %6306 = vst [vmem:[#allocation2 + $0x3d8] sm:$0xf] %v6202_v28  ;;  %v4650_v32 = vsel %vm13874_vm6, 0, %v4649_v27  ;;  %v5743_v29 = vrot.slane %v5742_v48, 4  ;;  %v18892_v42 = vld [vmem:[#allocation19_spill] sm:$0xff]  ;;  %v18895_v37 = vshrl.u32 %v16315_v52, 16  ;;  %v5724_v34 = vsel %vm13897_vm10, %v5719_v36, %v5723_v23 }
 0x3de   : > { %v18893_v54 = vld [vmem:[#allocation15_spill] sm:$0xff]  ;;  %v18896_v3 = vld [vmem:[#allocation101_spill] sm:$0xff]  ;;  %5283 = vst [vmem:[#allocation2 + $0x45c] sm:$0xf] %v5219_v0  ;;  %4651 = vst [vmem:[#allocation3 + $0xec] sm:$0x1] %v4650_v32 }
 0x3df   : > { %v18894_v40 = vshll.u32 %v18893_v54, 16  ;;  %v16773_v4 = vrot.slane %v18895_v37, 4  ;;  %v5728_v17 = vor.u32 %v18896_v3, %v5723_v23  ;;  %v18897_v61 = vld [vmem:[#allocation87_spill] sm:$0xff]  ;;  %v13394_v33 = vld [vmem:[#allocation2 + $0x288] ss:$36 sps:$4 sm:$0xff]   ;;  %v18899_v59 = vld [vmem:[#allocation153_spill] sm:$0xff] }
 0x3e0   : > { %v18898_v55 = vshll.u32 %v18897_v61, 16  ;;  %5841 = vst [vmem:[#allocation2 + $0x3b0] sm:$0xf] %v5724_v34  ;;  %v6216_v48 = vrot.slane %v18899_v59, 4  ;;  %v4608_v15 = vsel %vm13864_vm3, 0, %v4607_v47  ;;  %v18900_v1 = vld [vmem:[#allocation42_spill] sm:$0xff]  ;;  %9473 = vmatmul.mubr.bf16.gmra.mxu1 %v13394_v33 }
 0x3e1   : > { %v6223_v13 = vor.u32 %v18894_v40, %v18892_v42  ;;  %v13397_v41 = vld [vmem:[#allocation2 + $0x248] ss:$36 sps:$4 sm:$0xff]   ;;  %v13404_v60 = vld [vmem:[#allocation2 + $0x2d4] ss:$36 sps:$4 sm:$0xff]   ;;  %v4860_v24 = vld [vmem:[#allocation3 + $0xe0] sm:$0x8] }
 0x3e2   : > { %v5747_v30 = vrot.slane %v18898_v55, 5  ;;  %v18901_v36 = vshll.u32 %v18900_v1, 16  ;;  %4609 = vst [vmem:[#allocation3 + $0x100] sm:$0x8] %v4608_v15  ;;  %v5177_v38 = vshrl.u32 %v4860_v24, 16  ;;  %v18902_v27 = vld [vmem:[#allocation133_spill] sm:$0xff]  ;;  %9626 = vmatmul.mubr.bf16.gmra.mxu0 %v13397_v41  ;;  %9480 = vmatprep.mubr.bf16.mxu1 %v13404_v60 }
 0x3e3   : > { %v5389_v58 = vld [vmem:[#allocation3 + $0xdc] sm:$0x1]  ;;  %v5886_v57 = vld [vmem:[#allocation3 + $0xe0] sm:$0x8]  ;;  %v18903_v45 = vshll.u32 %v18902_v27, 16  ;;  %v6224_v26 = vsel %vm13879_vm7, %v6216_v48, %v6223_v13  ;;  %v5729_v31 = vrot.slane %v5728_v17, 4 }
 0x3e4   : > { %v5187_v25 = vor.u32 %v18901_v36, %v18888_v7  ;;  %v5748_v53 = vsel %vm13897_vm10, %v5743_v29, %v5747_v30  ;;  %v5752_v10 = vor.u32 %v18904_v9, %v5747_v30  ;;  %v13407_v49 = vld [vmem:[#allocation2 + $0x294] ss:$36 sps:$4 sm:$0xff]   ;;  %v5731_v7 = vshll.u32 %v5389_v58, 16  ;;  %v18905_v39 = vld [vmem:[#allocation48_spill] sm:$0xff]  ;;  %6308 = vst [vmem:[#allocation2 + $0x420] sm:$0xf] %v6224_v26 }
 0x3e5   : > { %v6192_v50 = vor.u32 %v18903_v45, %v18889_v16  ;;  %5843 = vst [vmem:[#allocation2 + $0x3f8] sm:$0xf] %v5748_v53  ;;  %v18906_v43 = vshll.u32 %v18905_v39, 16  ;;  %v18907_v28 = vld [vmem:[#allocation105_spill] sm:$0xff]  ;;  %v18908_v47 = vld [vmem:[#allocation107_spill] sm:$0xff]  ;;  %v11347_v32 = vrot.slane %v5177_v38, 11  ;;  %9633 = vmatprep.mubr.bf16.mxu0 %v13407_v49 }
 0x3e6   : > { %v5766_v0 = vor.u32 %v18908_v47, %v18907_v28  ;;  %v6182_v16 = vshrl.u32 %v5886_v57, 16  ;;  %v18909_v29 = vld [vmem:[#allocation137_spill] sm:$0xff]  ;;  %v4652_v40 = vld [vmem:[#allocation3 + $0xfc] sm:$0x1]  ;;  %v18912_v37 = vld [vmem:[#allocation140_spill] sm:$0xff]  ;;  %v5753_v60 = vrot.slane %v5752_v10, 4 }
 0x3e7   : > { %v5209_v23 = vor.u32 %v18906_v43, %v18890_v22  ;;  %v18910_v42 = vshll.u32 %v18909_v29, 16  ;;  %v18911_v13 = vld [vmem:[#allocation154_spill] sm:$0xff]  ;;  %v18913_v34 = vshll.u32 %v18912_v37, 16  ;;  %v5733_v22 = vrot.slane %v5731_v7, 5  ;;  %v4863_v17 = vld [vmem:[#allocation3 + $0xf0] sm:$0x8] }
 0x3e8   : > { %v18914_v61 = vld [vmem:[#allocation156_spill] sm:$0xff]  ;;  %v18915_v55 = vld [vmem:[#allocation143_spill] sm:$0xff]  ;;  %v18917_v48 = vld [vmem:[#allocation157_spill] sm:$0xff]  ;;  %v5188_v53 = vsel %vm13879_vm7, %v11347_v32, %v5187_v25  ;;  %v11362_v38 = vrot.slane %v6182_v16, 11  ;;  %v5199_v58 = vshrl.u32 %v4863_v17, 16  ;;  %v4653_v26 = vsel %vm13874_vm6, 0, %v4652_v40 }
 0x3e9   : > { %v16802_v54 = vor.u32 %v18910_v42, %v18899_v59  ;;  %v16807_v3 = vor.u32 %v18913_v34, %v18911_v13  ;;  %v18916_v30 = vshll.u32 %v18915_v55, 16  ;;  %v18918_v15 = vld [vmem:[#allocation159_spill] sm:$0xff]  ;;  %v18919_v1 = vld [vmem:[#allocation161_spill] sm:$0xff]  ;;  %v18920_v59 = vld [vmem:[#allocation162_spill] sm:$0xff]  ;;  %5280 = vst [vmem:[#allocation2 + $0x3f0] sm:$0xf] %v5188_v53  ;;  %v5734_v27 = vsel %vm13897_vm10, %v5729_v31, %v5733_v22 }
 0x3ea   : > { %v6430_v24 = vor.u32 %v18918_v15, %v18917_v48  ;;  %v6454_v36 = vor.u32 %v18920_v59, %v18919_v1  ;;  %v5392_v41 = vld [vmem:[#allocation3 + $0xec] sm:$0x1]  ;;  %v16818_v57 = vld [vmem:[#allocation3 + $0x1c] sm:$0x1]  ;;  %v5889_v9 = vld [vmem:[#allocation3 + $0xf0] sm:$0x8]  ;;  %v6193_v10 = vsel %vm13879_vm7, %v11362_v38, %v6192_v50 }
 0x3eb   : > { %v6245_v33 = vor.u32 %v18916_v30, %v18914_v61  ;;  %v5755_v45 = vshll.u32 %v5392_v41, 16  ;;  %v5767_v7 = vrot.slane %v5766_v0, 4  ;;  %v13460_v25 = vld [vmem:[%s18193_s4 + $0x1c8] sm:$0xff]   ;;  %v13402_v49 = vld [vmem:[#allocation2 + $0x2d0] ss:$36 sps:$4 sm:$0xff]   ;;  %v11348_v39 = vrot.slane %v5199_v58, 11 }
 0x3ec   : > { %5842 = vst [vmem:[#allocation2 + $0x3d4] sm:$0xf] %v5734_v27  ;;  %v6204_v43 = vshrl.u32 %v5889_v9, 16  ;;  %4654 = vst [vmem:[#allocation3 + $0xfc] sm:$0x1] %v4653_v26  ;;  %v16832_v32 = vld [vmem:[%s18193_s4 + $0x238] sm:$0xff]   ;;  %12776 = vmatprep.subr.bf16.mxu0 %v13460_v25  ;;  %9481 = vmatmul.mubr.bf16.gmra.mxu1 %v13402_v49 }
 0x3ed   : > { %v13592_v28 = vld [vmem:[#allocation3 + $0xf8] sm:$0xf]  ;;  %v5892_v47 = vld [vmem:[#allocation3 + $0x100] sm:$0x8]  ;;  %v13405_v0 = vld [vmem:[#allocation2 + $0x290] ss:$36 sps:$4 sm:$0xff]   ;;  %v5210_v22 = vsel %vm13879_vm7, %v11348_v39, %v5209_v23  ;;  %12948 = vmatprep.subr.bf16.mxu1 %v16832_v32 }
 0x3ee   : > { %v5769_v31 = vshll.u32 %v13592_v28, 16  ;;  %v13412_v16 = vld [vmem:[#allocation2 + $0x31c] ss:$36 sps:$4 sm:$0xff]   ;;  %6305 = vst [vmem:[#allocation2 + $0x3b4] sm:$0xf] %v6193_v10  ;;  %v5757_v29 = vrot.slane %v5755_v45, 5  ;;  %9634 = vmatmul.mubr.bf16.gmra.mxu0 %v13405_v0 }
 0x3ef   : > { %v6226_v42 = vshrl.u32 %v5892_v47, 16  ;;  %v6238_v40 = vrot.slane %v18911_v13, 4  ;;  %v6431_v37 = vrot.slane %v6430_v24, 4  ;;  %v6313_v50 = vld [vmem:[#allocation3 + $0x24] sm:$0xf]  ;;  %v11363_v17 = vrot.slane %v6204_v43, 11  ;;  %9488 = vmatprep.mubr.bf16.mxu1 %v13412_v16 }
 0x3f0   : > { %v13415_v34 = vld [vmem:[#allocation2 + $0x2dc] ss:$36 sps:$4 sm:$0xff]   ;;  %v5771_v61 = vrot.slane %v5769_v31, 5  ;;  %v13593_v55 = vld [vmem:[#allocation3 + $0x18] sm:$0xf]  ;;  %v13465_v15 = vld [vmem:[%s18193_s4 + $0x188] sm:$0xff]   ;;  %v5758_v13 = vsel %vm13897_vm10, %v5753_v60, %v5757_v29 }
 0x3f1   : > { %v6433_v30 = vshll.u32 %v13593_v55, 16  ;;  %v6314_v48 = vld [vmem:[#allocation3 + $0x28] sm:$0xf]  ;;  %6345 = vst [vmem:[#allocation2 + $0x58] sm:$0xf] %v6313_v50  ;;  %v11364_v24 = vrot.slane %v6226_v42, 11  ;;  %v6246_v23 = vsel %vm13879_vm7, %v6238_v40, %v6245_v33  ;;  %v6215_v41 = vsel %vm13879_vm7, %v11363_v17, %v16802_v54  ;;  %12777 = vmatpush3.bf16.msra.mxu0 %v13465_v15  ;;  %9641 = vmatprep.mubr.bf16.mxu0 %v13415_v34 }
 0x3f2   : > { %5282 = vst [vmem:[#allocation2 + $0x438] sm:$0xf] %v5210_v22  ;;  %v6443_v53 = vshll.u32 %v16818_v57, 16  ;;  %6346 = vst [vmem:[#allocation2 + $0x7c] sm:$0xf] %v6314_v48  ;;  %v5772_v27 = vsel %vm13897_vm10, %v5767_v7, %v5771_v61  ;;  %v18921_v45 = vld [vmem:[#allocation16_spill] sm:$0xff] }
 0x3f3   : > { %v6380_v38 = vld [vmem:[#allocation3 + $0x2c] sm:$0x1]  ;;  %v6872_v58 = vld [vmem:[#allocation3 + $0x20] sm:$0x8]  ;;  %5844 = vst [vmem:[#allocation2 + $0x41c] sm:$0xf] %v5758_v13  ;;  %v5776_v60 = vor.u32 %v18921_v45, %v5771_v61  ;;  %v6237_v54 = vsel %vm13879_vm7, %v11364_v24, %v16807_v3 }
 0x3f4   : > { %6310 = vst [vmem:[#allocation2 + $0x468] sm:$0xf] %v6246_v23  ;;  %v6435_v9 = vrot.slane %v6433_v30, 5  ;;  %v7336_v33 = vld [vmem:[#allocation3 + $0x24] sm:$0xf]  ;;  %v16857_v25 = vrot.slane %v7764_v35, 5 }
 0x3f5   : > { %v7337_v26 = vld [vmem:[#allocation3 + $0x28] sm:$0xf]  ;;  %v13469_v57 = vld [vmem:[%s18193_s4 + $0x1c0] sm:$0xff]   ;;  %6307 = vst [vmem:[#allocation2 + $0x3fc] sm:$0xf] %v6215_v41  ;;  %v6455_v7 = vrot.slane %v6454_v36, 4 }
 0x3f6   : > { %5845 = vst [vmem:[#allocation2 + $0x440] sm:$0xf] %v5772_v27  ;;  %v18922_v49 = vld [vmem:[#allocation150_spill] sm:$0xff]  ;;  %7368 = vst [vmem:[#allocation2 + $0x1c] sm:$0xf] %v7336_v33  ;;  %v13470_v52 = vld [vmem:[%s18193_s4 + $0x180] sm:$0xff]   ;;  %v6436_v43 = vsel %vm13897_vm10, %v6431_v37, %v6435_v9  ;;  %12778 = vmatprep.subr.bf16.mxu0 %v13469_v57 }
 0x3f7   : > { %v18923_v10 = vshll.u32 %v18922_v49, 16  ;;  %7369 = vst [vmem:[#allocation2 + $0x40] sm:$0xf] %v7337_v26  ;;  %v6315_v35 = vld [vmem:[#allocation3 + $0x34] sm:$0xf]  ;;  %v18924_v3 = vld [vmem:[#allocation160_spill] sm:$0xff]  ;;  %12779 = vmatpush3.bf16.msra.mxu0 %v13470_v52 }
 0x3f8   : > { %6309 = vst [vmem:[#allocation2 + $0x444] sm:$0xf] %v6237_v54  ;;  %v6440_v28 = vor.u32 %v18924_v3, %v6435_v9  ;;  %v6445_v31 = vrot.slane %v6443_v53, 5  ;;  %v18925_v1 = vld [vmem:[#allocation222_spill] sm:$0xff]  ;;  %v18926_v59 = vld [vmem:[#allocation195_spill] sm:$0xff]  ;;  %v18928_v29 = vld [vmem:[#allocation164_spill] sm:$0xff] }
 0x3f9   : > { %v6459_v39 = vrot.slane %v18923_v10, 5  ;;  %v18927_v36 = vshll.u32 %v18926_v59, 16  ;;  %6347 = vst [vmem:[#allocation2 + $0xa0] sm:$0xf] %v6315_v35  ;;  %v5395_v0 = vld [vmem:[#allocation3 + $0xfc] sm:$0x1] }
 0x3fa   : > { %6839 = vst [vmem:[#allocation2 + $0x14] sm:$0xf] %v6436_v43  ;;  %v6467_v40 = vshll.u32 %v6380_v38, 16  ;;  %v6921_v50 = vshrl.u32 %v6872_v58, 16  ;;  %v13410_v34 = vld [vmem:[#allocation2 + $0x318] ss:$36 sps:$4 sm:$0xff]  }
 0x3fb   : > { %v6931_v47 = vor.u32 %v18927_v36, %v18925_v1  ;;  %v6460_v16 = vsel %vm13897_vm10, %v6455_v7, %v6459_v39  ;;  %v6464_v42 = vor.u32 %v18928_v29, %v6459_v39  ;;  %v5777_v37 = vrot.slane %v5776_v60, 4  ;;  %v18929_v17 = vld [vmem:[#allocation224_spill] sm:$0xff]  ;;  %v18930_v61 = vld [vmem:[#allocation197_spill] sm:$0xff]  ;;  %v18933_v15 = vld [vmem:[#allocation166_spill] sm:$0xff]  ;;  %9489 = vmatmul.mubr.bf16.gmra.mxu1 %v13410_v34 }
 0x3fc   : > { %v5779_v22 = vshll.u32 %v5395_v0, 16  ;;  %6841 = vst [vmem:[#allocation2 + $0x5c] sm:$0xf] %v6460_v16  ;;  %v18931_v55 = vshll.u32 %v18930_v61, 16  ;;  %v18932_v48 = vld [vmem:[#allocation165_spill] sm:$0xff]  ;;  %v6441_v24 = vrot.slane %v6440_v28, 4  ;;  %v7719_v34 = vor.u32 %v16364_v8, %v16355_v21 }
 0x3fd   : > { %v6478_v13 = vor.u32 %v18933_v15, %v18932_v48  ;;  %v6465_v23 = vrot.slane %v6464_v42, 4  ;;  %v6469_v53 = vrot.slane %v6467_v40, 5  ;;  %v11365_v41 = vrot.slane %v6921_v50, 11  ;;  %v6316_v27 = vld [vmem:[#allocation3 + $0x38] sm:$0xf]  ;;  %v18935_v9 = vld [vmem:[#allocation200_spill] sm:$0xff] }
 0x3fe   : > { %v6940_v30 = vor.u32 %v18931_v55, %v18929_v17  ;;  %v13413_v45 = vld [vmem:[#allocation2 + $0x2d8] ss:$36 sps:$4 sm:$0xff]   ;;  %v13420_v38 = vld [vmem:[#allocation2 + $0x364] ss:$36 sps:$4 sm:$0xff]   ;;  %v5781_v58 = vrot.slane %v5779_v22, 5  ;;  %v18936_v33 = vshll.u32 %v18935_v9, 16  ;;  %v6446_v57 = vsel %vm13897_vm10, %v6441_v24, %v6445_v31 }
 0x3ff   : > { %6348 = vst [vmem:[#allocation2 + $0xc4] sm:$0xf] %v6316_v27  ;;  %v18934_v60 = vld [vmem:[#allocation226_spill] sm:$0xff]  ;;  %v6470_v54 = vsel %vm13897_vm10, %v6465_v23, %v6469_v53  ;;  %v6932_v7 = vsel %vm13879_vm7, %v11365_v41, %v6931_v47  ;;  %v6933_v49 = vrot.slane %v18925_v1, 4  ;;  %v6875_v39 = vld [vmem:[#allocation3 + $0x30] sm:$0x8]  ;;  %9642 = vmatmul.mubr.bf16.gmra.mxu0 %v13413_v45  ;;  %9496 = vmatprep.mubr.bf16.mxu1 %v13420_v38 }
 0x400   : > { %v6953_v26 = vor.u32 %v18936_v33, %v18934_v60  ;;  %v6383_v10 = vld [vmem:[#allocation3 + $0x3c] sm:$0x1]  ;;  %v13423_v52 = vld [vmem:[#allocation2 + $0x324] ss:$36 sps:$4 sm:$0xff]   ;;  %v5782_v35 = vsel %vm13897_vm10, %v5777_v37, %v5781_v58  ;;  %6840 = vst [vmem:[#allocation2 + $0x38] sm:$0xf] %v6446_v57  ;;  %v7767_v61 = vor.u32 %v16857_v25, %v16773_v4 }
 0x401   : > { %6842 = vst [vmem:[#allocation2 + $0x80] sm:$0xf] %v6470_v54  ;;  %7304 = vst [vmem:[#allocation2 + $0x18] sm:$0xf] %v6932_v7  ;;  %v6479_v43 = vrot.slane %v6478_v13, 4  ;;  %v18937_v3 = vld [vmem:[#allocation228_spill] sm:$0xff]  ;;  %v6941_v1 = vsel %vm13879_vm7, %v6933_v49, %v6940_v30  ;;  %9649 = vmatprep.mubr.bf16.mxu0 %v13423_v52 }
 0x402   : > { %v18938_v28 = vld [vmem:[#allocation202_spill] sm:$0xff]  ;;  %v18940_v36 = vld [vmem:[#allocation168_spill] sm:$0xff]  ;;  %v18941_v0 = vld [vmem:[#allocation169_spill] sm:$0xff]  ;;  %5846 = vst [vmem:[#allocation2 + $0x464] sm:$0xf] %v5782_v35  ;;  %v6491_v42 = vshll.u32 %v6383_v10, 16 }
 0x403   : > { %v18939_v31 = vshll.u32 %v18938_v28, 16  ;;  %v6502_v47 = vor.u32 %v18941_v0, %v18940_v36  ;;  %v13594_v16 = vld [vmem:[#allocation3 + $0x38] sm:$0xf]  ;;  %v6943_v40 = vshrl.u32 %v6875_v39, 16  ;;  %v7338_v50 = vld [vmem:[#allocation3 + $0x34] sm:$0xf] }
 0x404   : > { %v6481_v29 = vshll.u32 %v13594_v16, 16  ;;  %7305 = vst [vmem:[#allocation2 + $0x3c] sm:$0xf] %v6941_v1  ;;  %v6955_v37 = vrot.slane %v18934_v60, 4  ;;  %v7339_v22 = vld [vmem:[#allocation3 + $0x38] sm:$0xf] }
 0x405   : > { %v6962_v59 = vor.u32 %v18939_v31, %v18937_v3  ;;  %7370 = vst [vmem:[#allocation2 + $0x64] sm:$0xf] %v7338_v50  ;;  %v6317_v17 = vld [vmem:[#allocation3 + $0x44] sm:$0xf]  ;;  %v6493_v30 = vrot.slane %v6491_v42, 5  ;;  %v11366_v48 = vrot.slane %v6943_v40, 11 }
 0x406   : > { %v6483_v55 = vrot.slane %v6481_v29, 5  ;;  %7371 = vst [vmem:[#allocation2 + $0x88] sm:$0xf] %v7339_v22  ;;  %v6318_v15 = vld [vmem:[#allocation3 + $0x48] sm:$0xf]  ;;  %v6503_v24 = vrot.slane %v6502_v47, 4 }
 0x407   : > { %6349 = vst [vmem:[#allocation2 + $0xe8] sm:$0xf] %v6317_v17  ;;  %v13418_v13 = vld [vmem:[#allocation2 + $0x360] ss:$36 sps:$4 sm:$0xff]   ;;  %v6963_v21 = vsel %vm13879_vm7, %v6955_v37, %v6962_v59  ;;  %6350 = vst [vmem:[#allocation2 + $0x10c] sm:$0xf] %v6318_v15  ;;  %v6954_v33 = vsel %vm13879_vm7, %v11366_v48, %v6953_v26 }
 0x408   : > { %v6386_v8 = vld [vmem:[#allocation3 + $0x4c] sm:$0x1]  ;;  %v18942_v23 = vld [vmem:[#allocation155_spill] sm:$0xff]  ;;  %v18945_v38 = vld [vmem:[#allocation206_spill] sm:$0xff]  ;;  %v6484_v58 = vsel %vm13897_vm10, %v6479_v43, %v6483_v55  ;;  %7307 = vst [vmem:[#allocation2 + $0x84] sm:$0xf] %v6963_v21  ;;  %9497 = vmatmul.mubr.bf16.gmra.mxu1 %v13418_v13  ;;  %v7533_v13 = vsel %vm13897_vm10, %v16066_v14, %v16037_v63 }
 0x409   : > { %v18943_v53 = vshll.u32 %v18942_v23, 16  ;;  %v6878_v27 = vld [vmem:[#allocation3 + $0x40] sm:$0x8]  ;;  %v18946_v4 = vshll.u32 %v18945_v38, 16  ;;  %v6515_v57 = vshll.u32 %v6386_v8, 16  ;;  %v18948_v10 = vld [vmem:[#allocation170_spill] sm:$0xff] }
 0x40a   : > { %v18944_v45 = vld [vmem:[#allocation231_spill] sm:$0xff]  ;;  %v7341_v7 = vld [vmem:[#allocation3 + $0x48] sm:$0xf]  ;;  %6843 = vst [vmem:[#allocation2 + $0xa4] sm:$0xf] %v6484_v58  ;;  %v6965_v52 = vshrl.u32 %v6878_v27, 16 }
 0x40b   : > { %v6507_v41 = vrot.slane %v18943_v53, 5  ;;  %v6984_v25 = vor.u32 %v18946_v4, %v18944_v45  ;;  %v18947_v60 = vld [vmem:[#allocation167_spill] sm:$0xff]  ;;  %7306 = vst [vmem:[#allocation2 + $0x60] sm:$0xf] %v6954_v33  ;;  %v18949_v35 = vld [vmem:[#allocation229_spill] sm:$0xff]  ;;  %v18950_v36 = vld [vmem:[#allocation172_spill] sm:$0xff] }
 0x40c   : > { %v6488_v9 = vor.u32 %v18947_v60, %v6483_v55  ;;  %v7340_v54 = vld [vmem:[#allocation3 + $0x44] sm:$0xf]  ;;  %v6977_v3 = vrot.slane %v18949_v35, 4  ;;  %7373 = vst [vmem:[#allocation2 + $0xd0] sm:$0xf] %v7341_v7  ;;  %v18951_v0 = vld [vmem:[#allocation173_spill] sm:$0xff]  ;;  %v7629_v7 = vsel %vm13897_vm10, %v16337_v51, %v16126_v20 }
 0x40d   : > { %v6508_v49 = vsel %vm13897_vm10, %v6503_v24, %v6507_v41  ;;  %v6512_v39 = vor.u32 %v18948_v10, %v6507_v41  ;;  %7372 = vst [vmem:[#allocation2 + $0xac] sm:$0xf] %v7340_v54  ;;  %v6319_v43 = vld [vmem:[#allocation3 + $0x54] sm:$0xf]  ;;  %v6320_v28 = vld [vmem:[#allocation3 + $0x58] sm:$0xf]  ;;  %v6526_v47 = vor.u32 %v18951_v0, %v18950_v36 }
 0x40e   : > { %v13421_v31 = vld [vmem:[#allocation2 + $0x320] ss:$36 sps:$4 sm:$0xff]   ;;  %v13428_v26 = vld [vmem:[#allocation2 + $0x3ac] ss:$36 sps:$4 sm:$0xff]   ;;  %v6489_v59 = vrot.slane %v6488_v9, 4  ;;  %v7720_v1 = vrot.slane %v7719_v34, 4  ;;  %v6985_v37 = vsel %vm13879_vm7, %v6977_v3, %v6984_v25  ;;  %v7677_v3 = vsel %vm13897_vm10, %v16353_v46, %v16341_v18 }
 0x40f   : > { %6845 = vst [vmem:[#allocation2 + $0xec] sm:$0xf] %v6508_v49  ;;  %6351 = vst [vmem:[#allocation2 + $0x130] sm:$0xf] %v6319_v43  ;;  %v13431_v16 = vld [vmem:[#allocation2 + $0x36c] ss:$36 sps:$4 sm:$0xff]   ;;  %9650 = vmatmul.mubr.bf16.gmra.mxu0 %v13421_v31  ;;  %9504 = vmatprep.mubr.bf16.mxu1 %v13428_v26 }
 0x410   : > { %6352 = vst [vmem:[#allocation2 + $0x154] sm:$0xf] %v6320_v28  ;;  %v6513_v29 = vrot.slane %v6512_v39, 4  ;;  %v18952_v42 = vld [vmem:[#allocation203_spill] sm:$0xff]  ;;  %v6494_v22 = vsel %vm13897_vm10, %v6489_v59, %v6493_v30  ;;  %v6517_v17 = vrot.slane %v6515_v57, 5  ;;  %v18955_v48 = vld [vmem:[#allocation213_spill] sm:$0xff]  ;;  %9657 = vmatprep.mubr.bf16.mxu0 %v13431_v16  ;;  %v7581_v30 = vsel %vm13897_vm10, %v16100_v6, %v16080_v44 }
 0x411   : > { %v18953_v40 = vshll.u32 %v18952_v42, 16  ;;  %7309 = vst [vmem:[#allocation2 + $0xcc] sm:$0xf] %v6985_v37  ;;  %v18954_v55 = vld [vmem:[#allocation235_spill] sm:$0xff]  ;;  %v18956_v34 = vshll.u32 %v18955_v48, 16  ;;  %v7768_v21 = vrot.slane %v7767_v61, 4  ;;  %v7725_v26 = vsel %vm13897_vm10, %v7720_v1, %v16754_v5 }
 0x412   : > { %6844 = vst [vmem:[#allocation2 + $0xc8] sm:$0xf] %v6494_v22  ;;  %v11367_v8 = vrot.slane %v6965_v52, 11  ;;  %v18957_v24 = vld [vmem:[#allocation175_spill] sm:$0xff]  ;;  %v18958_v23 = vld [vmem:[#allocation176_spill] sm:$0xff]  ;;  %v6518_v41 = vsel %vm13897_vm10, %v6513_v29, %v6517_v17  ;;  %v6527_v45 = vrot.slane %v6526_v47, 4 }
 0x413   : > { %v6975_v50 = vor.u32 %v18953_v40, %v18949_v35  ;;  %v7006_v15 = vor.u32 %v18956_v34, %v18954_v55  ;;  %v6550_v53 = vor.u32 %v18958_v23, %v18957_v24  ;;  %7870 = vst [vmem:[#allocation2 + $0xf8] sm:$0xf] %v7533_v13  ;;  %v6389_v27 = vld [vmem:[#allocation3 + $0x5c] sm:$0x1]  ;;  %v13595_v38 = vld [vmem:[#allocation3 + $0x58] sm:$0xf] }
 0x414   : > { %v6529_v14 = vshll.u32 %v13595_v38, 16  ;;  %v18959_v61 = vld [vmem:[#allocation233_spill] sm:$0xff]  ;;  %7874 = vst [vmem:[#allocation2 + $0x188] sm:$0xf] %v7581_v30  ;;  %v13426_v25 = vld [vmem:[#allocation2 + $0x3a8] ss:$36 sps:$4 sm:$0xff]  }
 0x415   : > { %v6999_v4 = vrot.slane %v18959_v61, 4  ;;  %6846 = vst [vmem:[#allocation2 + $0x110] sm:$0xf] %v6518_v41  ;;  %v6976_v58 = vsel %vm13879_vm7, %v11367_v8, %v6975_v50  ;;  %v6539_v60 = vshll.u32 %v6389_v27, 16  ;;  %v6881_v9 = vld [vmem:[#allocation3 + $0x50] sm:$0x8]  ;;  %9505 = vmatmul.mubr.bf16.gmra.mxu1 %v13426_v25 }
 0x416   : > { %v18960_v33 = vld [vmem:[#allocation210_spill] sm:$0xff]  ;;  %v7342_v54 = vld [vmem:[#allocation3 + $0x54] sm:$0xf]  ;;  %v13429_v49 = vld [vmem:[#allocation2 + $0x368] ss:$36 sps:$4 sm:$0xff]   ;;  %v6531_v39 = vrot.slane %v6529_v14, 5 }
 0x417   : > { %v18961_v6 = vshll.u32 %v18960_v33, 16  ;;  %v13436_v10 = vld [vmem:[#allocation2 + $0x3f4] ss:$36 sps:$4 sm:$0xff]   ;;  %7308 = vst [vmem:[#allocation2 + $0xa8] sm:$0xf] %v6976_v58  ;;  %v6987_v52 = vshrl.u32 %v6881_v9, 16  ;;  %v7007_v35 = vsel %vm13879_vm7, %v6999_v4, %v7006_v15  ;;  %9658 = vmatmul.mubr.bf16.gmra.mxu0 %v13429_v49 }
 0x418   : > { %7374 = vst [vmem:[#allocation2 + $0xf4] sm:$0xf] %v7342_v54  ;;  %7878 = vst [vmem:[#allocation2 + $0x218] sm:$0xf] %v7629_v7  ;;  %v16964_v43 = vld [vmem:[#allocation3 + $0xa4] sm:$0xf]  ;;  %v6532_v59 = vsel %vm13897_vm10, %v6527_v45, %v6531_v39  ;;  %9512 = vmatprep.mubr.bf16.mxu1 %v13436_v10 }
 0x419   : > { %v6997_v57 = vor.u32 %v18961_v6, %v18959_v61  ;;  %v13439_v28 = vld [vmem:[#allocation2 + $0x3b4] ss:$36 sps:$4 sm:$0xff]   ;;  %v6541_v31 = vrot.slane %v6539_v60, 5  ;;  %7311 = vst [vmem:[#allocation2 + $0x114] sm:$0xf] %v7007_v35  ;;  %v11368_v47 = vrot.slane %v6987_v52, 11 }
 0x41a   : > { %v7343_v51 = vld [vmem:[#allocation3 + $0x58] sm:$0xf]  ;;  %7882 = vst [vmem:[#allocation2 + $0x2a8] sm:$0xf] %v7677_v3  ;;  %v6321_v16 = vld [vmem:[#allocation3 + $0x64] sm:$0xf]  ;;  %9665 = vmatprep.mubr.bf16.mxu0 %v13439_v28 }
 0x41b   : > { %v18962_v36 = vld [vmem:[#allocation174_spill] sm:$0xff]  ;;  %7375 = vst [vmem:[#allocation2 + $0x118] sm:$0xf] %v7343_v51  ;;  %v6322_v46 = vld [vmem:[#allocation3 + $0x68] sm:$0xf]  ;;  %v6551_v29 = vrot.slane %v6550_v53, 4  ;;  %v6998_v34 = vsel %vm13879_vm7, %v11368_v47, %v6997_v57 }
 0x41c   : > { %v6536_v0 = vor.u32 %v18962_v36, %v6531_v39  ;;  %7886 = vst [vmem:[#allocation2 + $0x338] sm:$0xf] %v7725_v26  ;;  %6847 = vst [vmem:[#allocation2 + $0x134] sm:$0xf] %v6532_v59  ;;  %v6392_v42 = vld [vmem:[#allocation3 + $0x6c] sm:$0x1] }
 0x41d   : > { %6353 = vst [vmem:[#allocation2 + $0x178] sm:$0xf] %v6321_v16  ;;  %6354 = vst [vmem:[#allocation2 + $0x19c] sm:$0xf] %v6322_v46  ;;  %v18963_v40 = vld [vmem:[#allocation158_spill] sm:$0xff]  ;;  %v18969_v23 = vld [vmem:[#allocation179_spill] sm:$0xff] }
 0x41e   : > { %v18964_v50 = vshll.u32 %v18963_v40, 16  ;;  %v6884_v1 = vld [vmem:[#allocation3 + $0x60] sm:$0x8]  ;;  %v18965_v22 = vld [vmem:[#allocation22_spill] sm:$0xff]  ;;  %v16977_v55 = vld [vmem:[#allocation3 + $0xa8] sm:$0xf] }
 0x41f   : > { %v7773_v17 = vsel %vm13897_vm10, %v7768_v21, %v18965_v22  ;;  %v6537_v48 = vrot.slane %v6536_v0, 4  ;;  %v18966_v15 = vld [vmem:[#allocation238_spill] sm:$0xff]  ;;  %v18970_v53 = vld [vmem:[#allocation180_spill] sm:$0xff]  ;;  %7310 = vst [vmem:[#allocation2 + $0xf0] sm:$0xf] %v6998_v34  ;;  %v18971_v41 = vld [vmem:[#allocation177_spill] sm:$0xff] }
 0x420   : > { %v6555_v37 = vrot.slane %v18964_v50, 5  ;;  %v18967_v13 = vld [vmem:[#allocation218_spill] sm:$0xff]  ;;  %v6574_v30 = vor.u32 %v18970_v53, %v18969_v23  ;;  %7890 = vst [vmem:[#allocation2 + $0x3c8] sm:$0xf] %v7773_v17  ;;  %v6563_v45 = vshll.u32 %v6392_v42, 16  ;;  %v7009_v38 = vshrl.u32 %v6884_v1, 16 }
 0x421   : > { %v18968_v8 = vshll.u32 %v18967_v13, 16  ;;  %v7344_v14 = vld [vmem:[#allocation3 + $0x64] sm:$0xf]  ;;  %v7345_v61 = vld [vmem:[#allocation3 + $0x68] sm:$0xf]  ;;  %v7641_v4 = vshrl.u32 %v16964_v43, 16  ;;  %v6542_v25 = vsel %vm13897_vm10, %v6537_v48, %v6541_v31 }
 0x422   : > { %v6556_v21 = vsel %vm13897_vm10, %v6551_v29, %v6555_v37  ;;  %v6560_v27 = vor.u32 %v18971_v41, %v6555_v37  ;;  %v18972_v58 = vld [vmem:[#allocation236_spill] sm:$0xff]  ;;  %v18973_v60 = vld [vmem:[#allocation214_spill] sm:$0xff]  ;;  %7376 = vst [vmem:[#allocation2 + $0x13c] sm:$0xf] %v7344_v14  ;;  %7377 = vst [vmem:[#allocation2 + $0x160] sm:$0xf] %v7345_v61 }
 0x423   : > { %v7028_v24 = vor.u32 %v18968_v8, %v18966_v15  ;;  %6849 = vst [vmem:[#allocation2 + $0x17c] sm:$0xf] %v6556_v21  ;;  %v18974_v9 = vshll.u32 %v18973_v60, 16  ;;  %v7021_v6 = vrot.slane %v18972_v58, 4  ;;  %v7644_v57 = vshll.u32 %v16964_v43, 16  ;;  %v18975_v10 = vld [vmem:[#allocation240_spill] sm:$0xff] }
 0x424   : > { %v7654_v54 = vshrl.u32 %v16977_v55, 16  ;;  %v13434_v7 = vld [vmem:[#allocation2 + $0x3f0] ss:$36 sps:$4 sm:$0xff]   ;;  %6848 = vst [vmem:[#allocation2 + $0x158] sm:$0xf] %v6542_v25  ;;  %v6561_v49 = vrot.slane %v6560_v27, 4 }
 0x425   : > { %v7019_v33 = vor.u32 %v18974_v9, %v18972_v58  ;;  %v18976_v39 = vld [vmem:[#allocation221_spill] sm:$0xff]  ;;  %v13444_v28 = vld [vmem:[#allocation2 + $0x43c] ss:$36 sps:$4 sm:$0xff]   ;;  %v6565_v31 = vrot.slane %v6563_v45, 5  ;;  %v11369_v51 = vrot.slane %v7009_v38, 11  ;;  %v7029_v26 = vsel %vm13879_vm7, %v7021_v6, %v7028_v24  ;;  %9513 = vmatmul.mubr.bf16.gmra.mxu1 %v13434_v7  ;;  %v18981_v24 = vld [vmem:[#allocation220_spill] sm:$0xff] }
 0x426   : > { %v18977_v52 = vshll.u32 %v18976_v39, 16  ;;  %v13437_v3 = vld [vmem:[#allocation2 + $0x3b0] ss:$36 sps:$4 sm:$0xff]   ;;  %v6324_v36 = vld [vmem:[#allocation3 + $0x78] sm:$0xf]  ;;  %v18979_v43 = vld [vmem:[#allocation183_spill] sm:$0xff]  ;;  %9520 = vmatprep.mubr.bf16.mxu1 %v13444_v28 }
 0x427   : > { %v6323_v59 = vld [vmem:[#allocation3 + $0x74] sm:$0xf]  ;;  %v18978_v0 = vld [vmem:[#allocation182_spill] sm:$0xff]  ;;  %7313 = vst [vmem:[#allocation2 + $0x15c] sm:$0xf] %v7029_v26  ;;  %v6575_v46 = vrot.slane %v6574_v30, 4  ;;  %v6566_v37 = vsel %vm13897_vm10, %v6561_v49, %v6565_v31  ;;  %v7020_v1 = vsel %vm13879_vm7, %v11369_v51, %v7019_v33  ;;  %9666 = vmatmul.mubr.bf16.gmra.mxu0 %v13437_v3 }
 0x428   : > { %v7050_v35 = vor.u32 %v18977_v52, %v18975_v10  ;;  %v6598_v47 = vor.u32 %v18979_v43, %v18978_v0  ;;  %6355 = vst [vmem:[#allocation2 + $0x1c0] sm:$0xf] %v6323_v59  ;;  %6356 = vst [vmem:[#allocation2 + $0x1e4] sm:$0xf] %v6324_v36  ;;  %v6395_v16 = vld [vmem:[#allocation3 + $0x7c] sm:$0x1] }
 0x429   : > { %v13596_v29 = vld [vmem:[#allocation3 + $0x78] sm:$0xf]  ;;  %v18980_v40 = vld [vmem:[#allocation239_spill] sm:$0xff]  ;;  %v6587_v17 = vshll.u32 %v6395_v16, 16  ;;  %v6887_v48 = vld [vmem:[#allocation3 + $0x70] sm:$0x8] }
 0x42a   : > { %v6577_v42 = vshll.u32 %v13596_v29, 16  ;;  %v7043_v50 = vrot.slane %v18980_v40, 4  ;;  %v7346_v34 = vld [vmem:[#allocation3 + $0x74] sm:$0xf]  ;;  %v13447_v15 = vld [vmem:[#allocation2 + $0x3fc] ss:$36 sps:$4 sm:$0xff]  }
 0x42b   : > { %6850 = vst [vmem:[#allocation2 + $0x1a0] sm:$0xf] %v6566_v37  ;;  %7312 = vst [vmem:[#allocation2 + $0x138] sm:$0xf] %v7020_v1  ;;  %v7031_v8 = vshrl.u32 %v6887_v48, 16  ;;  %v18982_v23 = vshll.u32 %v18981_v24, 16  ;;  %9673 = vmatprep.mubr.bf16.mxu0 %v13447_v15 }
 0x42c   : > { %v6579_v13 = vrot.slane %v6577_v42, 5  ;;  %v7051_v30 = vsel %vm13879_vm7, %v7043_v50, %v7050_v35  ;;  %v7347_v21 = vld [vmem:[#allocation3 + $0x78] sm:$0xf]  ;;  %7378 = vst [vmem:[#allocation2 + $0x184] sm:$0xf] %v7346_v34  ;;  %v18983_v41 = vshrl.u32 %v16029_v19, 16 }
 0x42d   : > { %v7041_v53 = vor.u32 %v18982_v23, %v18980_v40  ;;  %v7650_v45 = vshll.u32 %v16977_v55, 16  ;;  %v6589_v38 = vrot.slane %v6587_v17, 5  ;;  %7315 = vst [vmem:[#allocation2 + $0x1a4] sm:$0xf] %v7051_v30  ;;  %7379 = vst [vmem:[#allocation2 + $0x1a8] sm:$0xf] %v7347_v21 }
 0x42e   : > { %v17017_v27 = vrot.slane %v18983_v41, 4  ;;  %v6599_v14 = vrot.slane %v6598_v47, 4  ;;  %v6580_v61 = vsel %vm13897_vm10, %v6575_v46, %v6579_v13  ;;  %v18984_v25 = vld [vmem:[#allocation181_spill] sm:$0xff]  ;;  %v11370_v60 = vrot.slane %v7031_v8, 11  ;;  %v6325_v9 = vld [vmem:[#allocation3 + $0x84] sm:$0xf] }
 0x42f   : > { %v6584_v58 = vor.u32 %v18984_v25, %v6579_v13  ;;  %v6326_v33 = vld [vmem:[#allocation3 + $0x88] sm:$0xf]  ;;  %v18985_v19 = vld [vmem:[#allocation243_spill] sm:$0xff]  ;;  %v18986_v6 = vld [vmem:[#allocation225_spill] sm:$0xff]  ;;  %v17026_v10 = vrot.slane %v7641_v4, 4  ;;  %v17028_v39 = vrot.slane %v7644_v57, 5 }
 0x430   : > { %v18987_v7 = vshll.u32 %v18986_v6, 16  ;;  %v17030_v52 = vrot.slane %v7654_v54, 4  ;;  %6851 = vst [vmem:[#allocation2 + $0x1c4] sm:$0xf] %v6580_v61  ;;  %6357 = vst [vmem:[#allocation2 + $0x208] sm:$0xf] %v6325_v9  ;;  %v7042_v26 = vsel %vm13879_vm7, %v11370_v60, %v7041_v53  ;;  %v7633_v11 = vor.u32 %v17017_v27, %v16126_v20 }
 0x431   : > { %6358 = vst [vmem:[#allocation2 + $0x22c] sm:$0xf] %v6326_v33  ;;  %v18988_v35 = vld [vmem:[#allocation163_spill] sm:$0xff]  ;;  %v13442_v31 = vld [vmem:[#allocation2 + $0x438] ss:$36 sps:$4 sm:$0xff]   ;;  %v6585_v51 = vrot.slane %v6584_v58, 4 }
 0x432   : > { %v7072_v49 = vor.u32 %v18987_v7, %v18985_v19  ;;  %v18989_v3 = vshll.u32 %v18988_v35, 16  ;;  %v6398_v59 = vld [vmem:[#allocation3 + $0x8c] sm:$0x1]  ;;  %v6890_v36 = vld [vmem:[#allocation3 + $0x80] sm:$0x8]  ;;  %v18990_v0 = vld [vmem:[#allocation241_spill] sm:$0xff]  ;;  %9521 = vmatmul.mubr.bf16.gmra.mxu1 %v13442_v31 }
 0x433   : > { %v7065_v4 = vrot.slane %v18990_v0, 4  ;;  %v18991_v43 = vld [vmem:[#allocation186_spill] sm:$0xff]  ;;  %v18992_v57 = vld [vmem:[#allocation187_spill] sm:$0xff]  ;;  %7314 = vst [vmem:[#allocation2 + $0x180] sm:$0xf] %v7042_v26  ;;  %v18993_v46 = vld [vmem:[#allocation184_spill] sm:$0xff]  ;;  %v6590_v37 = vsel %vm13897_vm10, %v6585_v51, %v6589_v38 }
 0x434   : > { %v6603_v28 = vrot.slane %v18989_v3, 5  ;;  %v6622_v47 = vor.u32 %v18992_v57, %v18991_v43  ;;  %v17039_v54 = vld [vmem:[#allocation3 + $0xc4] sm:$0xf]  ;;  %v6611_v42 = vshll.u32 %v6398_v59, 16  ;;  %v7053_v40 = vshrl.u32 %v6890_v36, 16  ;;  %v18997_v61 = vld [vmem:[#allocation230_spill] sm:$0xff] }
 0x435   : > { %v7348_v50 = vld [vmem:[#allocation3 + $0x84] sm:$0xf]  ;;  %v7073_v1 = vsel %vm13879_vm7, %v7065_v4, %v7072_v49  ;;  %v7349_v17 = vld [vmem:[#allocation3 + $0x88] sm:$0xf]  ;;  %v6327_v48 = vld [vmem:[#allocation3 + $0x94] sm:$0xf] }
 0x436   : > { %v6604_v16 = vsel %vm13897_vm10, %v6599_v14, %v6603_v28  ;;  %v6608_v29 = vor.u32 %v18993_v46, %v6603_v28  ;;  %7380 = vst [vmem:[#allocation2 + $0x1cc] sm:$0xf] %v7348_v50  ;;  %v6328_v34 = vld [vmem:[#allocation3 + $0x98] sm:$0xf]  ;;  %6852 = vst [vmem:[#allocation2 + $0x1e8] sm:$0xf] %v6590_v37 }
 0x437   : > { %6853 = vst [vmem:[#allocation2 + $0x20c] sm:$0xf] %v6604_v16  ;;  %v13445_v15 = vld [vmem:[#allocation2 + $0x3f8] ss:$36 sps:$4 sm:$0xff]   ;;  %v18994_v24 = vld [vmem:[#allocation223_spill] sm:$0xff]  ;;  %v6613_v38 = vrot.slane %v6611_v42, 5 }
 0x438   : > { %v13456_v13 = vld [vmem:[#allocation2 + $0x14] ss:$36 sps:$4 sm:$0xff]   ;;  %v6609_v8 = vrot.slane %v6608_v29, 4  ;;  %v18995_v23 = vshll.u32 %v18994_v24, 16  ;;  %7317 = vst [vmem:[#allocation2 + $0x1ec] sm:$0xf] %v7073_v1  ;;  %9674 = vmatmul.mubr.bf16.gmra.mxu0 %v13445_v15 }
 0x439   : > { %7381 = vst [vmem:[#allocation2 + $0x1f0] sm:$0xf] %v7349_v17  ;;  %6359 = vst [vmem:[#allocation2 + $0x250] sm:$0xf] %v6327_v48  ;;  %v13597_v30 = vld [vmem:[#allocation3 + $0xb8] sm:$0xf]  ;;  %9722 = vmatprep.mubr.bf16.mxu1 %v13456_v13 }
 0x43a   : > { %v7063_v53 = vor.u32 %v18995_v23, %v18990_v0  ;;  %6360 = vst [vmem:[#allocation2 + $0x274] sm:$0xf] %v6328_v34  ;;  %v7678_v21 = vshrl.u32 %v13597_v30, 16  ;;  %v13453_v41 = vld [vmem:[#allocation2 + $0x444] ss:$36 sps:$4 sm:$0xff]   ;;  %v18998_v25 = vshll.u32 %v18997_v61, 16  ;;  %v6614_v28 = vsel %vm13897_vm10, %v6609_v8, %v6613_v38 }
 0x43b   : > { %v18996_v14 = vld [vmem:[#allocation251_spill] sm:$0xff]  ;;  %v18999_v60 = vld [vmem:[#allocation189_spill] sm:$0xff]  ;;  %v11371_v19 = vrot.slane %v7053_v40, 11  ;;  %v6401_v6 = vld [vmem:[#allocation3 + $0x9c] sm:$0x1]  ;;  %v6623_v7 = vrot.slane %v6622_v47, 4  ;;  %9681 = vmatprep.mubr.bf16.mxu0 %v13453_v41 }
 0x43c   : > { %v7094_v58 = vor.u32 %v18998_v25, %v18996_v14  ;;  %v19000_v9 = vld [vmem:[#allocation191_spill] sm:$0xff]  ;;  %v13598_v49 = vld [vmem:[#allocation3 + $0x98] sm:$0xf]  ;;  %v7689_v3 = vshrl.u32 %v17039_v54, 16  ;;  %v6635_v31 = vshll.u32 %v6401_v6, 16  ;;  %v19001_v26 = vld [vmem:[#allocation245_spill] sm:$0xff] }
 0x43d   : > { %v6646_v33 = vor.u32 %v19000_v9, %v18999_v60  ;;  %v6625_v35 = vshll.u32 %v13598_v49, 16  ;;  %v6893_v51 = vld [vmem:[#allocation3 + $0x90] sm:$0x8]  ;;  %v7087_v59 = vrot.slane %v19001_v26, 4  ;;  %6854 = vst [vmem:[#allocation2 + $0x230] sm:$0xf] %v6614_v28  ;;  %v7064_v36 = vsel %vm13879_vm7, %v11371_v19, %v7063_v53 }
 0x43e   : > { %v7075_v4 = vshrl.u32 %v6893_v51, 16  ;;  %v19002_v43 = vld [vmem:[#allocation227_spill] sm:$0xff]  ;;  %v7350_v16 = vld [vmem:[#allocation3 + $0x94] sm:$0xf]  ;;  %v7351_v46 = vld [vmem:[#allocation3 + $0x98] sm:$0xf] }
 0x43f   : > { %v6627_v0 = vrot.slane %v6625_v35, 5  ;;  %v19003_v57 = vshll.u32 %v19002_v43, 16  ;;  %v17065_v29 = vrot.slane %v7678_v21, 4  ;;  %v13454_v42 = vld [vmem:[#allocation2 + $0x10] ss:$36 sps:$4 sm:$0xff]   ;;  %v6637_v40 = vrot.slane %v6635_v31, 5 }
 0x440   : > { %7316 = vst [vmem:[#allocation2 + $0x1c8] sm:$0xf] %v7064_v36  ;;  %v7095_v50 = vsel %vm13879_vm7, %v7087_v59, %v7094_v58  ;;  %7382 = vst [vmem:[#allocation2 + $0x214] sm:$0xf] %v7350_v16  ;;  %v6647_v37 = vrot.slane %v6646_v33, 4  ;;  %v17074_v48 = vld [vmem:[%s18193_s4 + $0x230] sm:$0xff]   ;;  %9723 = vmatmul.mubr.bf16.vlgmr.msra.gmra.mxu1 %v13454_v42 }
 0x441   : > { %v7085_v47 = vor.u32 %v19003_v57, %v19001_v26  ;;  %7383 = vst [vmem:[#allocation2 + $0x238] sm:$0xf] %v7351_v46  ;;  %v17069_v1 = vld [vmem:[#allocation3 + $0xc8] sm:$0xf]  ;;  %v13451_v17 = vld [vmem:[#allocation2 + $0x440] ss:$36 sps:$4 sm:$0xff]   ;;  %v6628_v34 = vsel %vm13897_vm10, %v6623_v7, %v6627_v0  ;;  %12949 = vmatpush3.bf16.msra.mxu1 %v16832_v32 }
 0x442   : > { %v19004_v15 = vld [vmem:[#allocation188_spill] sm:$0xff]  ;;  %v11372_v8 = vrot.slane %v7075_v4, 11  ;;  %7319 = vst [vmem:[#allocation2 + $0x234] sm:$0xf] %v7095_v50  ;;  %v6329_v24 = vld [vmem:[#allocation3 + $0xa4] sm:$0xf]  ;;  %9682 = vmatmul.mubr.bf16.gmra.mxu0 %v13451_v17  ;;  %12950 = vmatprep.subr.bf16.mxu1 %v17074_v48 }
 0x443   : > { %v6632_v13 = vor.u32 %v19004_v15, %v6627_v0  ;;  %v6330_v23 = vld [vmem:[#allocation3 + $0xa8] sm:$0xf]  ;;  %v13464_v53 = vld [vmem:[#allocation2 + $0x5c] ss:$36 sps:$4 sm:$0xff]   ;;  %6855 = vst [vmem:[#allocation2 + $0x254] sm:$0xf] %v6628_v34 }
 0x444   : > { %v13468_v30 = vld [vmem:[#allocation2 + $0x1c] ss:$36 sps:$4 sm:$0xff]   ;;  %6361 = vst [vmem:[#allocation2 + $0x298] sm:$0xf] %v6329_v24  ;;  %6362 = vst [vmem:[#allocation2 + $0x2bc] sm:$0xf] %v6330_v23  ;;  %v7086_v61 = vsel %vm13879_vm7, %v11372_v8, %v7085_v47  ;;  %9730 = vmatprep.mubr.bf16.mxu1 %v13464_v53 }
 0x445   : > { %v19005_v21 = vld [vmem:[#allocation171_spill] sm:$0xff]  ;;  %v6633_v14 = vrot.slane %v6632_v13, 4  ;;  %v6404_v25 = vld [vmem:[#allocation3 + $0xac] sm:$0x1]  ;;  %v19008_v9 = vld [vmem:[#allocation234_spill] sm:$0xff]  ;;  %v7692_v0 = vshll.u32 %v17039_v54, 16  ;;  %9883 = vmatprep.mubr.bf16.mxu0 %v13468_v30  ;;  %12951 = vmatpush3.bf16.msra.mxu1 %v17074_v48 }
 0x446   : > { %v19006_v41 = vshll.u32 %v19005_v21, 16  ;;  %v6896_v58 = vld [vmem:[#allocation3 + $0xa0] sm:$0x8]  ;;  %v19009_v33 = vshll.u32 %v19008_v9, 16  ;;  %v19010_v6 = vld [vmem:[#allocation193_spill] sm:$0xff]  ;;  %v19011_v7 = vld [vmem:[#allocation194_spill] sm:$0xff] }
 0x447   : > { %v19007_v60 = vld [vmem:[#allocation255_spill] sm:$0xff]  ;;  %v6670_v49 = vor.u32 %v19011_v7, %v19010_v6  ;;  %7318 = vst [vmem:[#allocation2 + $0x210] sm:$0xf] %v7086_v61  ;;  %v19012_v28 = vld [vmem:[#allocation192_spill] sm:$0xff]  ;;  %v6659_v51 = vshll.u32 %v6404_v25, 16  ;;  %v7097_v26 = vshrl.u32 %v6896_v58, 16  ;;  %v6638_v4 = vsel %vm13897_vm10, %v6633_v14, %v6637_v40 }
 0x448   : > { %v6651_v38 = vrot.slane %v19006_v41, 5  ;;  %v7116_v19 = vor.u32 %v19009_v33, %v19007_v60  ;;  %v7352_v59 = vld [vmem:[#allocation3 + $0xa4] sm:$0xf]  ;;  %v7353_v36 = vld [vmem:[#allocation3 + $0xa8] sm:$0xf]  ;;  %v19013_v43 = vld [vmem:[#allocation253_spill] sm:$0xff] }
 0x449   : > { %v7109_v57 = vrot.slane %v19013_v43, 4  ;;  %7384 = vst [vmem:[#allocation2 + $0x25c] sm:$0xf] %v7352_v59  ;;  %7385 = vst [vmem:[#allocation2 + $0x280] sm:$0xf] %v7353_v36  ;;  %v7698_v46 = vshll.u32 %v17069_v1, 16 }
 0x44a   : > { %v6652_v35 = vsel %vm13897_vm10, %v6647_v37, %v6651_v38  ;;  %v6656_v31 = vor.u32 %v19012_v28, %v6651_v38  ;;  %v6331_v47 = vld [vmem:[#allocation3 + $0xb4] sm:$0xf]  ;;  %v6332_v16 = vld [vmem:[#allocation3 + $0xb8] sm:$0xf]  ;;  %6856 = vst [vmem:[#allocation2 + $0x278] sm:$0xf] %v6638_v4 }
 0x44b   : > { %6857 = vst [vmem:[#allocation2 + $0x29c] sm:$0xf] %v6652_v35  ;;  %v19014_v50 = vld [vmem:[#allocation232_spill] sm:$0xff]  ;;  %6363 = vst [vmem:[#allocation2 + $0x2e0] sm:$0xf] %v6331_v47  ;;  %v19016_v40 = vld [vmem:[#allocation259_spill] sm:$0xff]  ;;  %v7117_v23 = vsel %vm13879_vm7, %v7109_v57, %v7116_v19 }
 0x44c   : > { %v6657_v42 = vrot.slane %v6656_v31, 4  ;;  %v19015_v37 = vshll.u32 %v19014_v50, 16  ;;  %6364 = vst [vmem:[#allocation2 + $0x304] sm:$0xf] %v6332_v16  ;;  %v19017_v34 = vld [vmem:[#allocation242_spill] sm:$0xff]  ;;  %v7702_v8 = vshrl.u32 %v17069_v1, 16 }
 0x44d   : > { %v19018_v15 = vshll.u32 %v19017_v34, 16  ;;  %v13490_v32 = vld [vmem:[%s18193_s4 + $0x228] sm:$0xff]   ;;  %v6661_v24 = vrot.slane %v6659_v51, 5  ;;  %v6671_v53 = vrot.slane %v6670_v49, 4  ;;  %v13462_v30 = vld [vmem:[#allocation2 + $0x58] ss:$36 sps:$4 sm:$0xff]  }
 0x44e   : > { %v7107_v17 = vor.u32 %v19015_v37, %v19013_v43  ;;  %v11373_v21 = vrot.slane %v7097_v26, 11  ;;  %7321 = vst [vmem:[#allocation2 + $0x27c] sm:$0xf] %v7117_v23  ;;  %v6407_v41 = vld [vmem:[#allocation3 + $0xbc] sm:$0x1]  ;;  %v19020_v6 = vld [vmem:[#allocation237_spill] sm:$0xff]  ;;  %12952 = vmatprep.subr.bf16.mxu1 %v13490_v32  ;;  %9731 = vmatmul.mubr.bf16.gmra.mxu1 %v13462_v30 }
 0x44f   : > { %v7138_v13 = vor.u32 %v19018_v15, %v19016_v40  ;;  %v13599_v38 = vld [vmem:[#allocation3 + $0xb8] sm:$0xf]  ;;  %v6662_v60 = vsel %vm13897_vm10, %v6657_v42, %v6661_v24  ;;  %v6683_v9 = vshll.u32 %v6407_v41, 16  ;;  %v6899_v33 = vld [vmem:[#allocation3 + $0xb0] sm:$0x8]  ;;  %v19021_v7 = vshll.u32 %v19020_v6, 16  ;;  %12953 = vmatpush3.bf16.msra.mxu1 %v13490_v32 }
 0x450   : > { %v6673_v14 = vshll.u32 %v13599_v38, 16  ;;  %v19019_v61 = vld [vmem:[#allocation258_spill] sm:$0xff]  ;;  %v7354_v19 = vld [vmem:[#allocation3 + $0xb4] sm:$0xf]  ;;  %v19023_v28 = vld [vmem:[#allocation199_spill] sm:$0xff]  ;;  %v7108_v26 = vsel %vm13879_vm7, %v11373_v21, %v7107_v17  ;;  %v7119_v36 = vshrl.u32 %v6899_v33, 16 }
 0x451   : > { %v7131_v25 = vrot.slane %v19019_v61, 4  ;;  %v13466_v58 = vld [vmem:[#allocation2 + $0x18] ss:$36 sps:$4 sm:$0xff]   ;;  %v7129_v35 = vor.u32 %v19021_v7, %v19019_v61  ;;  %v13476_v51 = vld [vmem:[#allocation2 + $0x64] ss:$36 sps:$4 sm:$0xff]   ;;  %v17125_v57 = vrot.slane %v7689_v3, 4 }
 0x452   : > { %v19022_v49 = vld [vmem:[#allocation198_spill] sm:$0xff]  ;;  %6858 = vst [vmem:[#allocation2 + $0x2c0] sm:$0xf] %v6662_v60  ;;  %v6675_v59 = vrot.slane %v6673_v14, 5  ;;  %7386 = vst [vmem:[#allocation2 + $0x2a4] sm:$0xf] %v7354_v19  ;;  %9884 = vmatmul.mubr.bf16.vlgmr.msra.gmra.mxu0 %v13466_v58 }
 0x453   : > { %v6694_v31 = vor.u32 %v19023_v28, %v19022_v49  ;;  %v7139_v4 = vsel %vm13879_vm7, %v7131_v25, %v7138_v13  ;;  %v7355_v43 = vld [vmem:[#allocation3 + $0xb8] sm:$0xf]  ;;  %v13473_v47 = vld [vmem:[#allocation2 + $0xa4] ss:$36 sps:$4 sm:$0xff]   ;;  %7320 = vst [vmem:[#allocation2 + $0x258] sm:$0xf] %v7108_v26  ;;  %9891 = vmatprep.mubr.bf16.mxu0 %v13476_v51 }
 0x454   : > { %v13503_v48 = vld [vmem:[%s18193_s4 + $0x220] sm:$0xff]   ;;  %v6685_v16 = vrot.slane %v6683_v9, 5  ;;  %7323 = vst [vmem:[#allocation2 + $0x2c4] sm:$0xf] %v7139_v4  ;;  %7387 = vst [vmem:[#allocation2 + $0x2c8] sm:$0xf] %v7355_v43  ;;  %v6676_v42 = vsel %vm13897_vm10, %v6671_v53, %v6675_v59  ;;  %9738 = vmatprep.mubr.bf16.mxu1 %v13473_v47 }
 0x455   : > { %v19024_v50 = vld [vmem:[#allocation196_spill] sm:$0xff]  ;;  %v11374_v17 = vrot.slane %v7119_v36, 11  ;;  %v6333_v54 = vld [vmem:[#allocation3 + $0xc4] sm:$0xf]  ;;  %v17133_v40 = vrot.slane %v7692_v0, 5  ;;  %v17135_v34 = vrot.slane %v7702_v8, 4  ;;  %12954 = vmatprep.subr.bf16.mxu1 %v13503_v48 }
 0x456   : > { %v6680_v37 = vor.u32 %v19024_v50, %v6675_v59  ;;  %v6334_v3 = vld [vmem:[#allocation3 + $0xc8] sm:$0xf]  ;;  %v17140_v15 = vld [vmem:[%s18193_s4 + $0x218] sm:$0xff]   ;;  %6859 = vst [vmem:[#allocation2 + $0x2e4] sm:$0xf] %v6676_v42  ;;  %v6695_v13 = vrot.slane %v6694_v31, 4  ;;  %12955 = vmatpush3.bf16.msra.mxu1 %v13503_v48 }
 0x457   : > { %6365 = vst [vmem:[#allocation2 + $0x328] sm:$0xf] %v6333_v54  ;;  %6366 = vst [vmem:[#allocation2 + $0x34c] sm:$0xf] %v6334_v3  ;;  %v19025_v24 = vld [vmem:[#allocation246_spill] sm:$0xff]  ;;  %v7130_v8 = vsel %vm13879_vm7, %v11374_v17, %v7129_v35  ;;  %v19030_v33 = vld [vmem:[#allocation204_spill] sm:$0xff]  ;;  %12956 = vmatprep.subr.bf16.mxu1 %v17140_v15 }
 0x458   : > { %v19026_v23 = vshll.u32 %v19025_v24, 16  ;;  %v6681_v0 = vrot.slane %v6680_v37, 4  ;;  %v6410_v30 = vld [vmem:[#allocation3 + $0xcc] sm:$0x1]  ;;  %v19027_v21 = vld [vmem:[#allocation178_spill] sm:$0xff]  ;;  %v19032_v35 = vld [vmem:[#allocation201_spill] sm:$0xff] }
 0x459   : > { %v19028_v41 = vshll.u32 %v19027_v21, 16  ;;  %v6902_v14 = vld [vmem:[#allocation3 + $0xc0] sm:$0x8]  ;;  %7322 = vst [vmem:[#allocation2 + $0x2a0] sm:$0xf] %v7130_v8  ;;  %v6707_v61 = vshll.u32 %v6410_v30, 16 }
 0x45a   : > { %v7160_v53 = vor.u32 %v19026_v23, %v15903_v62  ;;  %v7141_v25 = vshrl.u32 %v6902_v14, 16  ;;  %v19029_v58 = vld [vmem:[#allocation10_spill] sm:$0xff]  ;;  %v7356_v9 = vld [vmem:[#allocation3 + $0xc4] sm:$0xf]  ;;  %v19031_v62 = vld [vmem:[#allocation205_spill] sm:$0xff]  ;;  %v6686_v32 = vsel %vm13897_vm10, %v6681_v0, %v6685_v16  ;;  %12957 = vmatpush3.bf16.msra.mxu1 %v17140_v15 }
 0x45b   : > { %v6699_v38 = vrot.slane %v19028_v41, 5  ;;  %v7153_v60 = vrot.slane %v19029_v58, 4  ;;  %v6718_v6 = vor.u32 %v19031_v62, %v19030_v33  ;;  %v7357_v49 = vld [vmem:[#allocation3 + $0xc8] sm:$0xf]  ;;  %7388 = vst [vmem:[#allocation2 + $0x2ec] sm:$0xf] %v7356_v9 }
 0x45c   : > { %v6335_v28 = vld [vmem:[#allocation3 + $0xd4] sm:$0xf]  ;;  %v6336_v31 = vld [vmem:[#allocation3 + $0xd8] sm:$0xf]  ;;  %v19033_v51 = vld [vmem:[#allocation208_spill] sm:$0xff]  ;;  %v6709_v42 = vrot.slane %v6707_v61, 5 }
 0x45d   : > { %v6700_v7 = vsel %vm13897_vm10, %v6695_v13, %v6699_v38  ;;  %v6704_v19 = vor.u32 %v19032_v35, %v6699_v38  ;;  %v19034_v26 = vld [vmem:[#allocation209_spill] sm:$0xff]  ;;  %v17159_v36 = vld [vmem:[#allocation3 + $0xe4] sm:$0xf]  ;;  %6860 = vst [vmem:[#allocation2 + $0x308] sm:$0xf] %v6686_v32  ;;  %v19035_v16 = vld [vmem:[#allocation244_spill] sm:$0xff]  ;;  %v7161_v17 = vsel %vm13879_vm7, %v7153_v60, %v7160_v53 }
 0x45e   : > { %v6742_v59 = vor.u32 %v19034_v26, %v19033_v51  ;;  %v13471_v4 = vld [vmem:[#allocation2 + $0xa0] ss:$36 sps:$4 sm:$0xff]   ;;  %v13480_v47 = vld [vmem:[#allocation2 + $0xec] ss:$36 sps:$4 sm:$0xff]   ;;  %6861 = vst [vmem:[#allocation2 + $0x32c] sm:$0xf] %v6700_v7 }
 0x45f   : > { %v13474_v43 = vld [vmem:[#allocation2 + $0x60] ss:$36 sps:$4 sm:$0xff]   ;;  %v19036_v50 = vshll.u32 %v19035_v16, 16  ;;  %7389 = vst [vmem:[#allocation2 + $0x310] sm:$0xf] %v7357_v49  ;;  %v13529_v24 = vld [vmem:[%s18193_s4 + $0x210] sm:$0xff]   ;;  %9739 = vmatmul.mubr.bf16.gmra.mxu1 %v13471_v4 }
 0x460   : > { %6367 = vst [vmem:[#allocation2 + $0x370] sm:$0xf] %v6335_v28  ;;  %6368 = vst [vmem:[#allocation2 + $0x394] sm:$0xf] %v6336_v31  ;;  %v17166_v54 = vld [vmem:[#allocation3 + $0xd8] sm:$0xf]  ;;  %9892 = vmatmul.mubr.bf16.gmra.mxu0 %v13474_v43  ;;  %9746 = vmatprep.mubr.bf16.mxu1 %v13480_v47 }
 0x461   : > { %v7151_v37 = vor.u32 %v19036_v50, %v19029_v58  ;;  %v7726_v3 = vshrl.u32 %v17166_v54, 16  ;;  %v13483_v13 = vld [vmem:[#allocation2 + $0xac] ss:$36 sps:$4 sm:$0xff]   ;;  %v6705_v23 = vrot.slane %v6704_v19, 4  ;;  %7325 = vst [vmem:[#allocation2 + $0x30c] sm:$0xf] %v7161_v17  ;;  %12958 = vmatprep.subr.bf16.mxu1 %v13529_v24 }
 0x462   : > { %v19037_v0 = vld [vmem:[#allocation262_spill] sm:$0xff]  ;;  %v19038_v8 = vld [vmem:[#allocation248_spill] sm:$0xff]  ;;  %v11375_v41 = vrot.slane %v7141_v25, 11  ;;  %v6719_v14 = vrot.slane %v6718_v6, 4  ;;  %v6905_v9 = vld [vmem:[#allocation3 + $0xd0] sm:$0x8]  ;;  %9899 = vmatprep.mubr.bf16.mxu0 %v13483_v13  ;;  %12959 = vmatpush3.bf16.msra.mxu1 %v13529_v24 }
 0x463   : > { %v19039_v30 = vshll.u32 %v19038_v8, 16  ;;  %v17175_v53 = vld [vmem:[#allocation3 + $0xe8] sm:$0xf]  ;;  %v6413_v38 = vld [vmem:[#allocation3 + $0xdc] sm:$0x1]  ;;  %v6710_v48 = vsel %vm13897_vm10, %v6705_v23, %v6709_v42  ;;  %v6743_v32 = vrot.slane %v6742_v59, 4 }
 0x464   : > { %v13601_v61 = vld [vmem:[#allocation3 + $0xd8] sm:$0xf]  ;;  %v6731_v60 = vshll.u32 %v6413_v38, 16  ;;  %v19040_v33 = vld [vmem:[#allocation260_spill] sm:$0xff]  ;;  %6862 = vst [vmem:[#allocation2 + $0x350] sm:$0xf] %v6710_v48  ;;  %v7152_v7 = vsel %vm13879_vm7, %v11375_v41, %v7151_v37 }
 0x465   : > { %v7182_v21 = vor.u32 %v19039_v30, %v19037_v0  ;;  %v6721_v58 = vshll.u32 %v13601_v61, 16  ;;  %v7175_v62 = vrot.slane %v19040_v33, 4  ;;  %v7163_v35 = vshrl.u32 %v6905_v9, 16  ;;  %v19041_v6 = vld [vmem:[#allocation247_spill] sm:$0xff]  ;;  %v7358_v28 = vld [vmem:[#allocation3 + $0xd4] sm:$0xf] }
 0x466   : > { %v19042_v19 = vshll.u32 %v19041_v6, 16  ;;  %v7359_v31 = vld [vmem:[#allocation3 + $0xd8] sm:$0xf]  ;;  %v7737_v51 = vshrl.u32 %v17159_v36, 16  ;;  %7324 = vst [vmem:[#allocation2 + $0x2e8] sm:$0xf] %v7152_v7 }
 0x467   : > { %v6723_v25 = vrot.slane %v6721_v58, 5  ;;  %v6733_v26 = vrot.slane %v6731_v60, 5  ;;  %v7183_v59 = vsel %vm13879_vm7, %v7175_v62, %v7182_v21  ;;  %7390 = vst [vmem:[#allocation2 + $0x334] sm:$0xf] %v7358_v28  ;;  %7391 = vst [vmem:[#allocation2 + $0x358] sm:$0xf] %v7359_v31 }
 0x468   : > { %v7173_v49 = vor.u32 %v19042_v19, %v19040_v33  ;;  %v13542_v4 = vld [vmem:[%s18193_s4 + $0x208] sm:$0xff]   ;;  %v19044_v47 = vld [vmem:[#allocation250_spill] sm:$0xff]  ;;  %v19046_v15 = vld [vmem:[#allocation207_spill] sm:$0xff]  ;;  %v11376_v17 = vrot.slane %v7163_v35, 11  ;;  %7327 = vst [vmem:[#allocation2 + $0x354] sm:$0xf] %v7183_v59 }
 0x469   : > { %v19043_v43 = vld [vmem:[#allocation264_spill] sm:$0xff]  ;;  %v19045_v42 = vshll.u32 %v19044_v47, 16  ;;  %v6724_v50 = vsel %vm13897_vm10, %v6719_v14, %v6723_v25  ;;  %v6728_v37 = vor.u32 %v19046_v15, %v6723_v25  ;;  %v6337_v13 = vld [vmem:[#allocation3 + $0xe4] sm:$0xf]  ;;  %v19047_v0 = vld [vmem:[#allocation185_spill] sm:$0xff]  ;;  %v7740_v41 = vshll.u32 %v17159_v36, 16  ;;  %12960 = vmatprep.subr.bf16.mxu1 %v13542_v4 }
 0x46a   : > { %v6338_v23 = vld [vmem:[#allocation3 + $0xe8] sm:$0xf]  ;;  %v19048_v8 = vshll.u32 %v19047_v0, 16  ;;  %v17201_v21 = vld [vmem:[#allocation3 + $0x104] sm:$0xf]  ;;  %v7746_v38 = vshll.u32 %v17175_v53, 16  ;;  %v7174_v25 = vsel %vm13879_vm7, %v11376_v17, %v7173_v49  ;;  %12961 = vmatpush3.bf16.msra.mxu1 %v13542_v4 }
 0x46b   : > { %v7204_v16 = vor.u32 %v19045_v42, %v19043_v43  ;;  %v13478_v61 = vld [vmem:[#allocation2 + $0xe8] ss:$36 sps:$4 sm:$0xff]   ;;  %6863 = vst [vmem:[#allocation2 + $0x374] sm:$0xf] %v6724_v50  ;;  %6369 = vst [vmem:[#allocation2 + $0x3b8] sm:$0xf] %v6337_v13 }
 0x46c   : > { %v6747_v30 = vrot.slane %v19048_v8, 5  ;;  %6370 = vst [vmem:[#allocation2 + $0x3dc] sm:$0xf] %v6338_v23  ;;  %v19049_v14 = vld [vmem:[#allocation263_spill] sm:$0xff]  ;;  %v19050_v48 = vld [vmem:[#allocation212_spill] sm:$0xff]  ;;  %v6729_v7 = vrot.slane %v6728_v37, 4  ;;  %9747 = vmatmul.mubr.bf16.gmra.mxu1 %v13478_v61 }
 0x46d   : > { %v7197_v58 = vrot.slane %v19049_v14, 4  ;;  %v19051_v60 = vld [vmem:[#allocation215_spill] sm:$0xff]  ;;  %v13481_v33 = vld [vmem:[#allocation2 + $0xa8] ss:$36 sps:$4 sm:$0xff]   ;;  %v13486_v62 = vld [vmem:[#allocation2 + $0x134] ss:$36 sps:$4 sm:$0xff]  }
 0x46e   : > { %v6766_v9 = vor.u32 %v19051_v60, %v19050_v48  ;;  %v6416_v35 = vld [vmem:[#allocation3 + $0xec] sm:$0x1]  ;;  %v6748_v6 = vsel %vm13897_vm10, %v6743_v32, %v6747_v30  ;;  %v19052_v19 = vld [vmem:[#allocation211_spill] sm:$0xff]  ;;  %v17215_v31 = vrot.slane %v7726_v3, 4  ;;  %7326 = vst [vmem:[#allocation2 + $0x330] sm:$0xf] %v7174_v25  ;;  %v6734_v49 = vsel %vm13897_vm10, %v6729_v7, %v6733_v26  ;;  %9900 = vmatmul.mubr.bf16.gmra.mxu0 %v13481_v33 }
 0x46f   : > { %v6752_v28 = vor.u32 %v19052_v19, %v6747_v30  ;;  %v6755_v59 = vshll.u32 %v6416_v35, 16  ;;  %6865 = vst [vmem:[#allocation2 + $0x3bc] sm:$0xf] %v6748_v6  ;;  %v6908_v43 = vld [vmem:[#allocation3 + $0xe0] sm:$0x8]  ;;  %v7205_v47 = vsel %vm13879_vm7, %v7197_v58, %v7204_v16  ;;  %v19053_v15 = vld [vmem:[#allocation249_spill] sm:$0xff]  ;;  %9754 = vmatprep.mubr.bf16.mxu1 %v13486_v62 }
 0x470   : > { %v7360_v42 = vld [vmem:[#allocation3 + $0xe4] sm:$0xf]  ;;  %v7185_v50 = vshrl.u32 %v6908_v43, 16  ;;  %v19054_v54 = vshll.u32 %v19053_v15, 16  ;;  %7329 = vst [vmem:[#allocation2 + $0x39c] sm:$0xf] %v7205_v47 }
 0x471   : > { %v6753_v32 = vrot.slane %v6752_v28, 4  ;;  %v7361_v24 = vld [vmem:[#allocation3 + $0xe8] sm:$0xf]  ;;  %7392 = vst [vmem:[#allocation2 + $0x37c] sm:$0xf] %v7360_v42  ;;  %v17224_v17 = vrot.slane %v7737_v51, 4 }
 0x472   : > { %v7195_v3 = vor.u32 %v19054_v54, %v19049_v14  ;;  %v6339_v37 = vld [vmem:[#allocation3 + $0xf4] sm:$0xf]  ;;  %v7750_v13 = vshrl.u32 %v17175_v53, 16  ;;  %6864 = vst [vmem:[#allocation2 + $0x398] sm:$0xf] %v6734_v49  ;;  %v6757_v23 = vrot.slane %v6755_v59, 5 }
 0x473   : > { %v13489_v16 = vld [vmem:[#allocation2 + $0xf4] ss:$36 sps:$4 sm:$0xff]   ;;  %7393 = vst [vmem:[#allocation2 + $0x3a0] sm:$0xf] %v7361_v24  ;;  %6371 = vst [vmem:[#allocation2 + $0x400] sm:$0xf] %v6339_v37 }
 0x474   : > { %v7785_v26 = vshrl.u32 %v17201_v21, 16  ;;  %v11377_v0 = vrot.slane %v7185_v50, 11  ;;  %v6767_v8 = vrot.slane %v6766_v9, 4  ;;  %v19055_v30 = vld [vmem:[#allocation17_spill] sm:$0xff]  ;;  %9907 = vmatprep.mubr.bf16.mxu0 %v13489_v16  ;;  %v6758_v51 = vsel %vm13897_vm10, %v6753_v32, %v6757_v23  ;;  %v6340_v61 = vld [vmem:[#allocation3 + $0xf8] sm:$0xf] }
 0x475   : > { %v19056_v14 = vld [vmem:[#allocation13_spill] sm:$0xff]  ;;  %v6419_v60 = vld [vmem:[#allocation3 + $0xfc] sm:$0x1]  ;;  %v13602_v7 = vld [vmem:[#allocation3 + $0xf8] sm:$0xf] }
 0x476   : > { %v19057_v58 = vshll.u32 %v19056_v14, 16  ;;  %v6769_v25 = vshll.u32 %v13602_v7, 16  ;;  %6866 = vst [vmem:[#allocation2 + $0x3e0] sm:$0xf] %v6758_v51  ;;  %v7196_v33 = vsel %vm13879_vm7, %v11377_v0, %v7195_v3  ;;  %6372 = vst [vmem:[#allocation2 + $0x424] sm:$0xf] %v6340_v61 }
 0x477   : > { %v6779_v62 = vshll.u32 %v6419_v60, 16  ;;  %v6911_v9 = vld [vmem:[#allocation3 + $0xf0] sm:$0x8]  ;;  %v19058_v35 = vld [vmem:[#allocation266_spill] sm:$0xff]  ;;  %v13555_v19 = vld [vmem:[%s18193_s4 + $0x200] sm:$0xff]  }
 0x478   : > { %v7226_v48 = vor.u32 %v19057_v58, %v19055_v30  ;;  %v7219_v6 = vrot.slane %v19058_v35, 4  ;;  %7328 = vst [vmem:[#allocation2 + $0x378] sm:$0xf] %v7196_v33  ;;  %v6771_v28 = vrot.slane %v6769_v25, 5  ;;  %v7207_v4 = vshrl.u32 %v6911_v9, 16  ;;  %v19059_v59 = vld [vmem:[#allocation254_spill] sm:$0xff]  ;;  %12962 = vmatprep.subr.bf16.mxu1 %v13555_v19 }
 0x479   : > { %v19060_v43 = vshll.u32 %v19059_v59, 16  ;;  %v7362_v42 = vld [vmem:[#allocation3 + $0xf4] sm:$0xf]  ;;  %v7363_v49 = vld [vmem:[#allocation3 + $0xf8] sm:$0xf]  ;;  %v19061_v32 = vld [vmem:[#allocation216_spill] sm:$0xff]  ;;  %12963 = vmatpush3.bf16.msra.mxu1 %v13555_v19 }
 0x47a   : > { %v19062_v50 = vld [vmem:[#allocation217_spill] sm:$0xff]  ;;  %v6781_v24 = vrot.slane %v6779_v62, 5  ;;  %v7227_v37 = vsel %vm13879_vm7, %v7219_v6, %v7226_v48  ;;  %7394 = vst [vmem:[#allocation2 + $0x3c4] sm:$0xf] %v7362_v42  ;;  %7395 = vst [vmem:[#allocation2 + $0x3e8] sm:$0xf] %v7363_v49  ;;  %v6772_v0 = vsel %vm13897_vm10, %v6767_v8, %v6771_v28 }
 0x47b   : > { %v7217_v47 = vor.u32 %v19060_v43, %v19058_v35  ;;  %v6790_v15 = vor.u32 %v19062_v50, %v19061_v32  ;;  %v13484_v54 = vld [vmem:[#allocation2 + $0x130] ss:$36 sps:$4 sm:$0xff]   ;;  %v19063_v16 = vld [vmem:[#allocation271_spill] sm:$0xff]  ;;  %v19064_v30 = vld [vmem:[#allocation20_spill] sm:$0xff]  ;;  %v11378_v58 = vrot.slane %v7207_v4, 11 }
 0x47c   : > { %v13487_v3 = vld [vmem:[#allocation2 + $0xf0] ss:$36 sps:$4 sm:$0xff]   ;;  %v7455_v23 = vor.u32 %v19063_v16, %v15998_v56  ;;  %v6776_v14 = vor.u32 %v19064_v30, %v6771_v28  ;;  %7331 = vst [vmem:[#allocation2 + $0x3e4] sm:$0xf] %v7227_v37  ;;  %v4655_v51 = vld [vmem:[#allocation3 + $0x10c] sm:$0x1]  ;;  %9755 = vmatmul.mubr.bf16.gmra.mxu1 %v13484_v54 }
 0x47d   : > { %v6341_v61 = vld [vmem:[#allocation3 + $0x104] sm:$0xf]  ;;  %v13493_v60 = vld [vmem:[#allocation2 + $0x17c] ss:$36 sps:$4 sm:$0xff]   ;;  %6867 = vst [vmem:[#allocation2 + $0x404] sm:$0xf] %v6772_v0  ;;  %v7218_v9 = vsel %vm13879_vm7, %v11378_v58, %v7217_v47  ;;  %9908 = vmatmul.mubr.bf16.gmra.mxu0 %v13487_v3 }
 0x47e   : > { %v13496_v7 = vld [vmem:[#allocation2 + $0x13c] ss:$36 sps:$4 sm:$0xff]   ;;  %v4656_v48 = vsel %vm13874_vm6, 0, %v4655_v51  ;;  %6373 = vst [vmem:[#allocation2 + $0x448] sm:$0xf] %v6341_v61  ;;  %v19065_v25 = vld [vmem:[#allocation268_spill] sm:$0xff]  ;;  %9762 = vmatprep.mubr.bf16.mxu1 %v13493_v60 }
 0x47f   : > { %v19066_v33 = vld [vmem:[#allocation257_spill] sm:$0xff]  ;;  %v6777_v8 = vrot.slane %v6776_v14, 4  ;;  %4657 = vst [vmem:[#allocation3 + $0x10c] sm:$0x1] %v4656_v48  ;;  %v6342_v35 = vld [vmem:[#allocation3 + $0x108] sm:$0xf]  ;;  %9915 = vmatprep.mubr.bf16.mxu0 %v13496_v7 }
 0x480   : > { %v19067_v56 = vshll.u32 %v19066_v33, 16  ;;  %v6791_v6 = vrot.slane %v6790_v15, 4  ;;  %v19068_v19 = vld [vmem:[#allocation190_spill] sm:$0xff]  ;;  %7330 = vst [vmem:[#allocation2 + $0x3c0] sm:$0xf] %v7218_v9  ;;  %v19070_v59 = vld [vmem:[#allocation267_spill] sm:$0xff] }
 0x481   : > { %v19069_v28 = vshll.u32 %v19068_v19, 16  ;;  %6374 = vst [vmem:[#allocation2 + $0x46c] sm:$0xf] %v6342_v35  ;;  %v6914_v12 = vld [vmem:[#allocation3 + $0x100] sm:$0x8]  ;;  %v7241_v43 = vrot.slane %v19070_v59, 4  ;;  %v6782_v32 = vsel %vm13897_vm10, %v6777_v8, %v6781_v24 }
 0x482   : > { %v7248_v62 = vor.u32 %v19067_v56, %v19065_v25  ;;  %v7364_v42 = vld [vmem:[#allocation3 + $0x104] sm:$0xf]  ;;  %v7456_v49 = vrot.slane %v7455_v23, 4  ;;  %v7229_v50 = vshrl.u32 %v6914_v12, 16  ;;  %v19071_v15 = vld [vmem:[#allocation256_spill] sm:$0xff]  ;;  %v17272_v16 = vrot.slane %v7740_v41, 5  ;;  %v12444_v23 = vpop.f32.mrf.mxu1 }
 0x483   : > { %v6795_v4 = vrot.slane %v19069_v28, 5  ;;  %v19072_v54 = vshll.u32 %v19071_v15, 16  ;;  %7396 = vst [vmem:[#allocation2 + $0x40c] sm:$0xf] %v7364_v42  ;;  %v17268_v37 = vld [vmem:[#allocation3 + $0x108] sm:$0xf] }
 0x484   : > { %6868 = vst [vmem:[#allocation2 + $0x428] sm:$0xf] %v6782_v32  ;;  %v7249_v24 = vsel %vm13879_vm7, %v7241_v43, %v7248_v62  ;;  %v19073_v0 = vld [vmem:[#allocation261_spill] sm:$0xff]  ;;  %v19076_v51 = vld [vmem:[#allocation274_spill] sm:$0xff]  ;;  %v17282_v60 = vrot.slane %v7750_v13, 4  ;;  %v19077_v36 = vld [vmem:[#allocation219_spill] sm:$0xff]  ;;  %v12445_v35 = vpop.f32.mrf.mxu1 }
 0x485   : > { %v6796_v47 = vsel %vm13897_vm10, %v6791_v6, %v6795_v4  ;;  %v7239_v3 = vor.u32 %v19072_v54, %v19070_v59  ;;  %v19074_v30 = vshll.u32 %v19073_v0, 16  ;;  %v19075_v58 = vld [vmem:[#allocation273_spill] sm:$0xff]  ;;  %v13491_v7 = vld [vmem:[#allocation2 + $0x178] ss:$36 sps:$4 sm:$0xff]   ;;  %v6800_v41 = vor.u32 %v19077_v36, %v6795_v4  ;;  %7333 = vst [vmem:[#allocation2 + $0x42c] sm:$0xf] %v7249_v24 }
 0x486   : > { %6869 = vst [vmem:[#allocation2 + $0x44c] sm:$0xf] %v6796_v47  ;;  %v7503_v61 = vor.u32 %v19076_v51, %v19075_v58  ;;  %v11379_v48 = vrot.slane %v7229_v50, 11  ;;  %v7365_v25 = vld [vmem:[#allocation3 + $0x108] sm:$0xf]  ;;  %v17294_v59 = vrot.slane %v7785_v26, 4  ;;  %v17296_v43 = vadd.f32 %v12445_v35, %v12444_v23  ;;  %v12447_v32 = vpop.f32.mrf.mxu1  ;;  %9763 = vmatmul.mubr.bf16.gmra.mxu1 %v13491_v7 }
 0x487   : > { %v7460_v14 = vrot.slane %v19074_v30, 5  ;;  %v7402_v33 = vld [vmem:[#allocation3 + $0x2c] sm:$0x1]  ;;  %v13494_v8 = vld [vmem:[#allocation2 + $0x138] ss:$36 sps:$4 sm:$0xff]   ;;  %v7788_v42 = vshll.u32 %v17201_v21, 16 }
 0x488   : > { %v19078_v56 = vld [vmem:[#allocation276_spill] sm:$0xff]  ;;  %7397 = vst [vmem:[#allocation2 + $0x430] sm:$0xf] %v7365_v25  ;;  %v7468_v28 = vshll.u32 %v7402_v33, 16  ;;  %v7504_v15 = vrot.slane %v7503_v61, 4  ;;  %v6801_v26 = vrot.slane %v6800_v41, 4  ;;  %9916 = vmatmul.mubr.bf16.gmra.mxu0 %v13494_v8 }
 0x489   : > { %v7537_v62 = vor.u32 %v19078_v56, %v16037_v63  ;;  %v13499_v9 = vld [vmem:[#allocation2 + $0x1c4] ss:$36 sps:$4 sm:$0xff]   ;;  %v7461_v6 = vsel %vm13897_vm10, %v7456_v49, %v7460_v14  ;;  %v7240_v63 = vsel %vm13879_vm7, %v11379_v48, %v7239_v3  ;;  %v6422_v49 = vld [vmem:[#allocation3 + $0x10c] sm:$0x1]  ;;  %v19081_v23 = vld [vmem:[#allocation277_spill] sm:$0xff]  ;;  %v7798_v3 = vshrl.u32 %v17268_v37, 16 }
 0x48a   : > { %v19079_v19 = vld [vmem:[#allocation272_spill] sm:$0xff]  ;;  %7864 = vst [vmem:[#allocation2 + $0x20] sm:$0xf] %v7461_v6  ;;  %7332 = vst [vmem:[#allocation2 + $0x408] sm:$0xf] %v7240_v63  ;;  %v7470_v50 = vrot.slane %v7468_v28, 5  ;;  %9770 = vmatprep.mubr.bf16.mxu1 %v13499_v9 }
 0x48b   : > { %v7465_v13 = vor.u32 %v19079_v19, %v7460_v14  ;;  %v19080_v12 = vld [vmem:[#allocation280_spill] sm:$0xff]  ;;  %v6803_v24 = vshll.u32 %v6422_v49, 16  ;;  %v19082_v0 = vld [vmem:[#allocation278_spill] sm:$0xff]  ;;  %v12448_v14 = vpop.f32.mrf.mxu1  ;;  %v19083_v61 = vld [vmem:[#allocation265_spill] sm:$0xff]  ;;  %v7538_v33 = vrot.slane %v7537_v62, 4  ;;  %v7800_v53 = vrot.slane %v7798_v3, 4 }
 0x48c   : > { %v7585_v4 = vor.u32 %v19080_v12, %v16080_v44  ;;  %v7794_v44 = vshll.u32 %v17268_v37, 16  ;;  %v13502_v54 = vld [vmem:[#allocation2 + $0x184] ss:$36 sps:$4 sm:$0xff]   ;;  %v7551_v30 = vor.u32 %v19082_v0, %v19081_v23  ;;  %v7408_v51 = vld [vmem:[#allocation3 + $0x4c] sm:$0x1]  ;;  %v19084_v7 = vshll.u32 %v19083_v61, 16 }
 0x48d   : > { %v7466_v47 = vrot.slane %v7465_v13, 4  ;;  %v7411_v41 = vld [vmem:[#allocation3 + $0x5c] sm:$0x1]  ;;  %9923 = vmatprep.mubr.bf16.mxu0 %v13502_v54  ;;  %v17311_v48 = vadd.f32 %v12448_v14, %v12447_v32  ;;  %v6805_v25 = vrot.slane %v6803_v24, 5  ;;  %v19085_v20 = vld [vmem:[#allocation281_spill] sm:$0xff]  ;;  %v19087_v9 = vld [vmem:[#allocation275_spill] sm:$0xff] }
 0x48e   : > { %v7508_v36 = vrot.slane %v19084_v7, 5  ;;  %v19086_v27 = vld [vmem:[#allocation282_spill] sm:$0xff]  ;;  %v7516_v6 = vshll.u32 %v7408_v51, 16  ;;  %v7540_v19 = vshll.u32 %v7411_v41, 16  ;;  %v13497_v13 = vld [vmem:[#allocation2 + $0x1c0] ss:$36 sps:$4 sm:$0xff]  }
 0x48f   : > { %v7471_v58 = vsel %vm13897_vm10, %v7466_v47, %v7470_v50  ;;  %v7599_v56 = vor.u32 %v19086_v27, %v19085_v20  ;;  %v6806_v28 = vsel %vm13897_vm10, %v6801_v26, %v6805_v25  ;;  %v7414_v12 = vld [vmem:[#allocation3 + $0x6c] sm:$0x1]  ;;  %v7552_v63 = vrot.slane %v7551_v30, 4  ;;  %v19088_v32 = vld [vmem:[#allocation269_spill] sm:$0xff]  ;;  %v13500_v50 = vld [vmem:[#allocation2 + $0x180] ss:$36 sps:$4 sm:$0xff]   ;;  %9771 = vmatmul.mubr.bf16.gmra.mxu1 %v13497_v13 }
 0x490   : > { %7865 = vst [vmem:[#allocation2 + $0x44] sm:$0xf] %v7471_v58  ;;  %v7509_v8 = vsel %vm13897_vm10, %v7504_v15, %v7508_v36  ;;  %v7513_v35 = vor.u32 %v19087_v9, %v7508_v36  ;;  %v19089_v49 = vshll.u32 %v19088_v32, 16  ;;  %v7647_v47 = vor.u32 %v17028_v39, %v17026_v10  ;;  %v13506_v54 = vld [vmem:[#allocation2 + $0x20c] ss:$36 sps:$4 sm:$0xff]   ;;  %v19090_v58 = vld [vmem:[#allocation279_spill] sm:$0xff]  ;;  %9924 = vmatmul.mubr.bf16.gmra.mxu0 %v13500_v50 }
 0x491   : > { %7868 = vst [vmem:[#allocation2 + $0xb0] sm:$0xf] %v7509_v8  ;;  %6870 = vst [vmem:[#allocation2 + $0x470] sm:$0xf] %v6806_v28  ;;  %v7518_v24 = vrot.slane %v7516_v6, 5  ;;  %v7542_v23 = vrot.slane %v7540_v19, 5  ;;  %9778 = vmatprep.mubr.bf16.mxu1 %v13506_v54  ;;  %v7681_v28 = vor.u32 %v17065_v29, %v16341_v18 }
 0x492   : > { %v7556_v62 = vrot.slane %v19089_v49, 5  ;;  %v7514_v15 = vrot.slane %v7513_v35, 4  ;;  %v7564_v0 = vshll.u32 %v7414_v12, 16  ;;  %v13509_v14 = vld [vmem:[#allocation2 + $0x1cc] ss:$36 sps:$4 sm:$0xff]   ;;  %v7586_v30 = vrot.slane %v7585_v4, 4 }
 0x493   : > { %v7600_v61 = vrot.slane %v7599_v56, 4  ;;  %v7543_v10 = vsel %vm13897_vm10, %v7538_v33, %v7542_v23  ;;  %v7417_v36 = vld [vmem:[#allocation3 + $0x7c] sm:$0x1]  ;;  %v7420_v9 = vld [vmem:[#allocation3 + $0x8c] sm:$0x1]  ;;  %v19093_v35 = vld [vmem:[#allocation283_spill] sm:$0xff]  ;;  %9931 = vmatprep.mubr.bf16.mxu0 %v13509_v14 }
 0x494   : > { %v7557_v26 = vsel %vm13897_vm10, %v7552_v63, %v7556_v62  ;;  %v7561_v51 = vor.u32 %v19090_v58, %v7556_v62  ;;  %v7519_v7 = vsel %vm13897_vm10, %v7514_v15, %v7518_v24  ;;  %v7566_v39 = vrot.slane %v7564_v0, 5  ;;  %v19091_v41 = vld [vmem:[#allocation270_spill] sm:$0xff]  ;;  %7871 = vst [vmem:[#allocation2 + $0x11c] sm:$0xf] %v7543_v10  ;;  %v7426_v32 = vld [vmem:[#allocation3 + $0xac] sm:$0x1] }
 0x495   : > { %7872 = vst [vmem:[#allocation2 + $0x140] sm:$0xf] %v7557_v26  ;;  %v19092_v25 = vshll.u32 %v19091_v41, 16  ;;  %7869 = vst [vmem:[#allocation2 + $0xd4] sm:$0xf] %v7519_v7  ;;  %v7588_v8 = vshll.u32 %v7417_v36, 16  ;;  %v7695_v24 = vor.u32 %v17133_v40, %v17125_v57  ;;  %v7729_v0 = vor.u32 %v17215_v31, %v16754_v5 }
 0x496   : > { %v7562_v27 = vrot.slane %v7561_v51, 4  ;;  %v7423_v4 = vld [vmem:[#allocation3 + $0x9c] sm:$0x1]  ;;  %v7612_v6 = vshll.u32 %v7420_v9, 16  ;;  %v7634_v19 = vrot.slane %v7633_v11, 4  ;;  %v7648_v50 = vrot.slane %v7647_v47, 4 }
 0x497   : > { %v7604_v20 = vrot.slane %v19092_v25, 5  ;;  %v7590_v12 = vrot.slane %v7588_v8, 5  ;;  %v7636_v63 = vshll.u32 %v7423_v4, 16  ;;  %v7652_v54 = vrot.slane %v7650_v45, 5  ;;  %v13504_v18 = vld [vmem:[#allocation2 + $0x208] ss:$36 sps:$4 sm:$0xff]  }
 0x498   : > { %v7567_v13 = vsel %vm13897_vm10, %v7562_v27, %v7566_v39  ;;  %v7614_v62 = vrot.slane %v7612_v6, 5  ;;  %v17344_v11 = vrot.slane %v7788_v42, 5  ;;  %v13507_v23 = vld [vmem:[#allocation2 + $0x1c8] ss:$36 sps:$4 sm:$0xff]   ;;  %v7660_v21 = vshll.u32 %v7426_v32, 16  ;;  %9779 = vmatmul.mubr.bf16.gmra.mxu1 %v13504_v18 }
 0x499   : > { %v7605_v56 = vsel %vm13897_vm10, %v7600_v61, %v7604_v20  ;;  %v7609_v33 = vor.u32 %v19093_v35, %v7604_v20  ;;  %7873 = vst [vmem:[#allocation2 + $0x164] sm:$0xf] %v7567_v13  ;;  %v7591_v29 = vsel %vm13897_vm10, %v7586_v30, %v7590_v12  ;;  %v7638_v15 = vrot.slane %v7636_v63, 5  ;;  %v7429_v42 = vld [vmem:[#allocation3 + $0xbc] sm:$0x1]  ;;  %9932 = vmatmul.mubr.bf16.gmra.mxu0 %v13507_v23  ;;  %v19094_v35 = vld [vmem:[#allocation23_spill] sm:$0xff] }
 0x49a   : > { %7876 = vst [vmem:[#allocation2 + $0x1d0] sm:$0xf] %v7605_v56  ;;  %7875 = vst [vmem:[#allocation2 + $0x1ac] sm:$0xf] %v7591_v29  ;;  %v7653_v55 = vsel %vm13897_vm10, %v7648_v50, %v7652_v54  ;;  %v7657_v45 = vor.u32 %v17030_v52, %v7652_v54  ;;  %v7682_v57 = vrot.slane %v7681_v28, 4  ;;  %v7684_v40 = vshll.u32 %v7429_v42, 16  ;;  %v12450_v42 = vpop.f32.mrf.mxu1 }
 0x49b   : > { %v7610_v49 = vrot.slane %v7609_v33, 4  ;;  %v7639_v14 = vsel %vm13897_vm10, %v7634_v19, %v7638_v15  ;;  %7880 = vst [vmem:[#allocation2 + $0x260] sm:$0xf] %v7653_v55  ;;  %v7432_v26 = vld [vmem:[#allocation3 + $0xcc] sm:$0x1]  ;;  %v7743_v51 = vor.u32 %v17272_v16, %v17224_v17  ;;  %v7662_v61 = vrot.slane %v7660_v21, 5 }
 0x49c   : > { %v13512_v58 = vld [vmem:[#allocation2 + $0x254] ss:$36 sps:$4 sm:$0xff]   ;;  %7879 = vst [vmem:[#allocation2 + $0x23c] sm:$0xf] %v7639_v14  ;;  %v7658_v30 = vrot.slane %v7657_v45, 4  ;;  %v7686_v7 = vrot.slane %v7684_v40, 5  ;;  %v7791_v56 = vor.u32 %v17344_v11, %v17294_v59  ;;  %v7777_v33 = vor.u32 %v19094_v35, %v18965_v22  ;;  %v12556_v14 = vpop.f32.mrf.mxu0 }
 0x49d   : > { %v7615_v47 = vsel %vm13897_vm10, %v7610_v49, %v7614_v62  ;;  %v13515_v52 = vld [vmem:[#allocation2 + $0x214] ss:$36 sps:$4 sm:$0xff]   ;;  %v7696_v10 = vrot.slane %v7695_v24, 4  ;;  %9786 = vmatprep.mubr.bf16.mxu1 %v13512_v58  ;;  %v7700_v5 = vrot.slane %v7698_v46, 5  ;;  %v7708_v31 = vshll.u32 %v7432_v26, 16 }
 0x49e   : > { %7877 = vst [vmem:[#allocation2 + $0x1f4] sm:$0xf] %v7615_v47  ;;  %v7435_v39 = vld [vmem:[#allocation3 + $0xdc] sm:$0x1]  ;;  %9939 = vmatprep.mubr.bf16.mxu0 %v13515_v52  ;;  %v7663_v36 = vsel %vm13897_vm10, %v7658_v30, %v7662_v61  ;;  %v7687_v17 = vsel %vm13897_vm10, %v7682_v57, %v7686_v7  ;;  %v7730_v16 = vrot.slane %v7729_v0, 4  ;;  %v7744_v46 = vrot.slane %v7743_v51, 4  ;;  %v12451_v57 = vpop.f32.mrf.mxu1  ;;  %v12557_v26 = vpop.f32.mrf.mxu0 }
 0x49f   : > { %v7732_v41 = vshll.u32 %v7435_v39, 16  ;;  %7881 = vst [vmem:[#allocation2 + $0x284] sm:$0xf] %v7663_v36  ;;  %7883 = vst [vmem:[#allocation2 + $0x2cc] sm:$0xf] %v7687_v17  ;;  %v7701_v25 = vsel %vm13897_vm10, %v7696_v10, %v7700_v5  ;;  %v7705_v20 = vor.u32 %v17135_v34, %v7700_v5  ;;  %v7710_v1 = vrot.slane %v7708_v31, 5 }
 0x4a0   : > { %v13510_v27 = vld [vmem:[#allocation2 + $0x250] ss:$36 sps:$4 sm:$0xff]   ;;  %7884 = vst [vmem:[#allocation2 + $0x2f0] sm:$0xf] %v7701_v25  ;;  %v7438_v9 = vld [vmem:[#allocation3 + $0xec] sm:$0x1]  ;;  %v12452_v40 = vadd.f32 %v12451_v57, %v12450_v42  ;;  %v12558_v58 = vadd.f32 %v12557_v26, %v12556_v14  ;;  %v12453_v51 = vpop.f32.mrf.mxu1  ;;  %v12559_v52 = vpop.f32.mrf.mxu0 }
 0x4a1   : > { %v7734_v8 = vrot.slane %v7732_v41, 5  ;;  %v7748_v4 = vrot.slane %v7746_v38, 5  ;;  %v13513_v6 = vld [vmem:[#allocation2 + $0x210] ss:$36 sps:$4 sm:$0xff]   ;;  %v13519_v19 = vld [vmem:[#allocation2 + $0x29c] ss:$36 sps:$4 sm:$0xff]   ;;  %9787 = vmatmul.mubr.bf16.gmra.mxu1 %v13510_v27 }
 0x4a2   : > { %v13522_v28 = vld [vmem:[#allocation2 + $0x25c] ss:$36 sps:$4 sm:$0xff]   ;;  %v7706_v13 = vrot.slane %v7705_v20, 4  ;;  %v7756_v38 = vshll.u32 %v7438_v9, 16  ;;  %v7444_v62 = vld [vmem:[#allocation3 + $0x10c] sm:$0x1]  ;;  %9940 = vmatmul.mubr.bf16.gmra.mxu0 %v13513_v6  ;;  %9794 = vmatprep.mubr.bf16.mxu1 %v13519_v19  ;;  %v17396_v61 = vadd.f32 %v12558_v58, %v17296_v43  ;;  %v12454_v2 = vpop.f32.mrf.mxu1  ;;  %v12560_v5 = vpop.f32.mrf.mxu0 }
 0x4a3   : > { %v7735_v34 = vsel %vm13897_vm10, %v7730_v16, %v7734_v8  ;;  %v7749_v12 = vsel %vm13897_vm10, %v7744_v46, %v7748_v4  ;;  %v7753_v63 = vor.u32 %v17282_v60, %v7748_v4  ;;  %v7441_v59 = vld [vmem:[#allocation3 + $0xfc] sm:$0x1]  ;;  %v7792_v50 = vrot.slane %v7791_v56, 4  ;;  %9947 = vmatprep.mubr.bf16.mxu0 %v13522_v28  ;;  %v13528_v0 = vld [vmem:[#allocation2 + $0x2a4] ss:$36 sps:$4 sm:$0xff]  }
 0x4a4   : > { %7887 = vst [vmem:[#allocation2 + $0x35c] sm:$0xf] %v7735_v34  ;;  %7888 = vst [vmem:[#allocation2 + $0x380] sm:$0xf] %v7749_v12  ;;  %v7711_v22 = vsel %vm13897_vm10, %v7706_v13, %v7710_v1  ;;  %v7780_v49 = vshll.u32 %v7441_v59, 16  ;;  %v7758_v54 = vrot.slane %v7756_v38, 5  ;;  %v12455_v10 = vadd.f32 %v12454_v2, %v12453_v51  ;;  %v12456_v36 = vpop.f32.mrf.mxu1  ;;  %v12562_v16 = vpop.f32.mrf.mxu0 }
 0x4a5   : > { %v7754_v32 = vrot.slane %v7753_v63, 4  ;;  %7885 = vst [vmem:[#allocation2 + $0x314] sm:$0xf] %v7711_v22  ;;  %v7778_v60 = vrot.slane %v7777_v33, 4  ;;  %v7796_v3 = vrot.slane %v7794_v44, 5  ;;  %v7804_v11 = vshll.u32 %v7444_v62, 16 }
 0x4a6   : > { %v7782_v29 = vrot.slane %v7780_v49, 5  ;;  %v13517_v45 = vld [vmem:[#allocation2 + $0x298] ss:$36 sps:$4 sm:$0xff]   ;;  %v13525_v44 = vld [vmem:[#allocation2 + $0x2e4] ss:$36 sps:$4 sm:$0xff]   ;;  %v12561_v39 = vadd.f32 %v12560_v5, %v12559_v52  ;;  %v12457_v25 = vpop.f32.mrf.mxu1  ;;  %v12563_v43 = vpop.f32.mrf.mxu0 }
 0x4a7   : > { %v7759_v18 = vsel %vm13897_vm10, %v7754_v32, %v7758_v54  ;;  %v7797_v15 = vsel %vm13897_vm10, %v7792_v50, %v7796_v3  ;;  %v7801_v24 = vor.u32 %v7800_v53, %v7796_v3  ;;  %v7806_v23 = vrot.slane %v7804_v11, 5  ;;  %v13520_v37 = vld [vmem:[#allocation2 + $0x258] ss:$36 sps:$4 sm:$0xff]   ;;  %v13523_v30 = vld [vmem:[#allocation2 + $0x2e0] ss:$36 sps:$4 sm:$0xff]  }
 0x4a8   : > { %7889 = vst [vmem:[#allocation2 + $0x3a4] sm:$0xf] %v7759_v18  ;;  %7892 = vst [vmem:[#allocation2 + $0x410] sm:$0xf] %v7797_v15  ;;  %v7783_v47 = vsel %vm13897_vm10, %v7778_v60, %v7782_v29  ;;  %v13526_v7 = vld [vmem:[#allocation2 + $0x2a0] ss:$36 sps:$4 sm:$0xff]   ;;  %v17399_v41 = vadd.f32 %v12561_v39, %v17311_v48  ;;  %v12458_v20 = vadd.f32 %v12457_v25, %v12456_v36  ;;  %v12459_v46 = vpop.f32.mrf.mxu1  ;;  %v12565_v27 = vpop.f32.mrf.mxu0 }
 0x4a9   : > { %v7802_v55 = vrot.slane %v7801_v24, 4  ;;  %7891 = vst [vmem:[#allocation2 + $0x3ec] sm:$0xf] %v7783_v47  ;;  %9795 = vmatmul.mubr.bf16.gmra.mxu1 %v13517_v45  ;;  %v13532_v31 = vld [vmem:[#allocation2 + $0x32c] ss:$36 sps:$4 sm:$0xff]   ;;  %v12564_v1 = vadd.f32 %v12563_v43, %v12562_v16 }
 0x4aa   : > { %9948 = vmatmul.mubr.bf16.gmra.mxu0 %v13520_v37  ;;  %9802 = vmatprep.mubr.bf16.mxu1 %v13525_v44  ;;  %v13535_v17 = vld [vmem:[#allocation2 + $0x2ec] ss:$36 sps:$4 sm:$0xff]   ;;  %v12460_v4 = vpop.f32.mrf.mxu1  ;;  %v12566_v33 = vpop.f32.mrf.mxu0  ;;  %v13538_v6 = vld [vmem:[#allocation2 + $0x374] ss:$36 sps:$4 sm:$0xff]   ;;  %v13545_v3 = vld [vmem:[#allocation2 + $0x3bc] ss:$36 sps:$4 sm:$0xff]  }
 0x4ab   : > { %v7807_v21 = vsel %vm13897_vm10, %v7802_v55, %v7806_v23  ;;  %9955 = vmatprep.mubr.bf16.mxu0 %v13528_v0  ;;  %v13530_v8 = vld [vmem:[#allocation2 + $0x328] ss:$36 sps:$4 sm:$0xff]   ;;  %v17401_v9 = vadd.f32 %v12564_v1, %v12452_v40  ;;  %v12461_v35 = vadd.f32 %v12460_v4, %v12459_v46  ;;  %v12567_v19 = vadd.f32 %v12566_v33, %v12565_v27  ;;  %v13541_v48 = vld [vmem:[#allocation2 + $0x334] ss:$36 sps:$4 sm:$0xff]   ;;  %v13548_v29 = vld [vmem:[#allocation2 + $0x37c] ss:$36 sps:$4 sm:$0xff]  }
 0x4ac   : > { %7893 = vst [vmem:[#allocation2 + $0x434] sm:$0xf] %v7807_v21  ;;  %v13533_v56 = vld [vmem:[#allocation2 + $0x2e8] ss:$36 sps:$4 sm:$0xff]   ;;  %v12462_v28 = vpop.f32.mrf.mxu1  ;;  %v12568_v13 = vpop.f32.mrf.mxu0  ;;  %v13536_v32 = vld [vmem:[#allocation2 + $0x370] ss:$36 sps:$4 sm:$0xff]  }
 0x4ad   : > { %v17403_v34 = vadd.f32 %v12567_v19, %v12455_v10  ;;  %v13539_v50 = vld [vmem:[#allocation2 + $0x330] ss:$36 sps:$4 sm:$0xff]   ;;  %v13543_v21 = vld [vmem:[#allocation2 + $0x3b8] ss:$36 sps:$4 sm:$0xff]   ;;  %v13551_v26 = vld [vmem:[#allocation2 + $0x404] ss:$36 sps:$4 sm:$0xff]  }
 0x4ae   : > { %v12463_v12 = vpop.f32.mrf.mxu1  ;;  %v12569_v53 = vpop.f32.mrf.mxu0  ;;  %v13546_v14 = vld [vmem:[#allocation2 + $0x378] ss:$36 sps:$4 sm:$0xff]   ;;  %v13554_v52 = vld [vmem:[#allocation2 + $0x3c4] ss:$36 sps:$4 sm:$0xff]   ;;  %v13558_v46 = vld [vmem:[#allocation2 + $0x44c] ss:$36 sps:$4 sm:$0xff]  }
 0x4af   : > { %v12464_v63 = vadd.f32 %v12463_v12, %v12462_v28  ;;  %v12570_v38 = vadd.f32 %v12569_v53, %v12568_v13  ;;  %v13561_v4 = vld [vmem:[#allocation2 + $0x40c] ss:$36 sps:$4 sm:$0xff]  }
 0x4b0   : > { %v12465_v59 = vpop.f32.mrf.mxu1  ;;  %v12571_v22 = vpop.f32.mrf.mxu0  ;;  %v13556_v12 = vld [vmem:[#allocation2 + $0x448] ss:$36 sps:$4 sm:$0xff]  }
 0x4b1   : > { %9803 = vmatmul.mubr.bf16.gmra.mxu1 %v13523_v30  ;;  %v17405_v49 = vadd.f32 %v12570_v38, %v12458_v20  ;;  %v13552_v20 = vld [vmem:[#allocation2 + $0x3c0] ss:$36 sps:$4 sm:$0xff]   ;;  %v13565_v38 = vld [vmem:[#allocation2 + $0x454] ss:$36 sps:$4 sm:$0xff]  }
 0x4b2   : > { %9956 = vmatmul.mubr.bf16.gmra.mxu0 %v13526_v7  ;;  %9810 = vmatprep.mubr.bf16.mxu1 %v13532_v31  ;;  %v12466_v62 = vpop.f32.mrf.mxu1  ;;  %v12572_v60 = vpop.f32.mrf.mxu0 }
 0x4b3   : > { %9963 = vmatprep.mubr.bf16.mxu0 %v13535_v17  ;;  %v12467_v54 = vadd.f32 %v12466_v62, %v12465_v59  ;;  %v12573_v11 = vadd.f32 %v12572_v60, %v12571_v22  ;;  %v13549_v17 = vld [vmem:[#allocation2 + $0x400] ss:$36 sps:$4 sm:$0xff]   ;;  %v13559_v59 = vld [vmem:[#allocation2 + $0x408] ss:$36 sps:$4 sm:$0xff]  }
 0x4b4   : > { %v12468_v18 = vpop.f32.mrf.mxu1  ;;  %v12574_v15 = vpop.f32.mrf.mxu0  ;;  %v13562_v62 = vld [vmem:[#allocation2 + $0x20] ss:$36 sps:$4 sm:$0xff]  }
 0x4b5   : > { %v17407_v24 = vadd.f32 %v12573_v11, %v12461_v35 }
 0x4b6   : > { %v12469_v23 = vpop.f32.mrf.mxu1  ;;  %v12575_v55 = vpop.f32.mrf.mxu0 }
 0x4b7   : > { %v12470_v47 = vadd.f32 %v12469_v23, %v12468_v18  ;;  %v12576_v45 = vadd.f32 %v12575_v55, %v12574_v15  ;;  %v13563_v55 = vld [vmem:[#allocation2 + $0x450] ss:$36 sps:$4 sm:$0xff]  }
 0x4b8   : > { %v12471_v37 = vpop.f32.mrf.mxu1  ;;  %v12577_v44 = vpop.f32.mrf.mxu0 }
 0x4b9   : > { %9811 = vmatmul.mubr.bf16.gmra.mxu1 %v13530_v8  ;;  %v17409_v42 = vadd.f32 %v12576_v45, %v12464_v63 }
 0x4ba   : > { %9964 = vmatmul.mubr.bf16.gmra.mxu0 %v13533_v56  ;;  %9818 = vmatprep.mubr.bf16.mxu1 %v13538_v6  ;;  %v12472_v0 = vpop.f32.mrf.mxu1  ;;  %v12578_v40 = vpop.f32.mrf.mxu0 }
 0x4bb   : > { %9971 = vmatprep.mubr.bf16.mxu0 %v13541_v48  ;;  %v12473_v57 = vadd.f32 %v12472_v0, %v12471_v37  ;;  %v12579_v58 = vadd.f32 %v12578_v40, %v12577_v44  ;;  %v13566_v44 = vld [vmem:[#allocation2 + $0x68] ss:$36 sps:$4 sm:$0xff]  }
 0x4bc   : > { %v12474_v51 = vpop.f32.mrf.mxu1  ;;  %v12580_v30 = vpop.f32.mrf.mxu0 }
 0x4bd   : > { %v17411_v2 = vadd.f32 %v12579_v58, %v12467_v54 }
 0x4be   : > { %v12475_v7 = vpop.f32.mrf.mxu1  ;;  %v12581_v5 = vpop.f32.mrf.mxu0 }
 0x4bf   : > { %v12476_v10 = vadd.f32 %v12475_v7, %v12474_v51  ;;  %v12582_v31 = vadd.f32 %v12581_v5, %v12580_v30 }
 0x4c0   : > { %v12477_v39 = vpop.f32.mrf.mxu1  ;;  %v12583_v36 = vpop.f32.mrf.mxu0 }
 0x4c1   : > { %9819 = vmatmul.mubr.bf16.gmra.mxu1 %v13536_v32  ;;  %v17413_v16 = vadd.f32 %v12582_v31, %v12470_v47 }
 0x4c2   : > { %9972 = vmatmul.mubr.bf16.gmra.mxu0 %v13539_v50  ;;  %9826 = vmatprep.mubr.bf16.mxu1 %v13545_v3  ;;  %v12478_v25 = vpop.f32.mrf.mxu1  ;;  %v12584_v1 = vpop.f32.mrf.mxu0 }
 0x4c3   : > { %9979 = vmatprep.mubr.bf16.mxu0 %v13548_v29  ;;  %v12479_v43 = vadd.f32 %v12478_v25, %v12477_v39  ;;  %v12585_v27 = vadd.f32 %v12584_v1, %v12583_v36  ;;  %v13568_v36 = vld [vmem:[#allocation2 + $0xf8] ss:$36 sps:$4 sm:$0xff]  }
 0x4c4   : > { %v12480_v8 = vpop.f32.mrf.mxu1  ;;  %v12586_v56 = vpop.f32.mrf.mxu0 }
 0x4c5   : > { %v17415_v35 = vadd.f32 %v12585_v27, %v12473_v57 }
 0x4c6   : > { %v12481_v33 = vpop.f32.mrf.mxu1  ;;  %v12587_v19 = vpop.f32.mrf.mxu0 }
 0x4c7   : > { %v12482_v6 = vadd.f32 %v12481_v33, %v12480_v8  ;;  %v12588_v28 = vadd.f32 %v12587_v19, %v12586_v56 }
 0x4c8   : > { %v12483_v48 = vpop.f32.mrf.mxu1  ;;  %v12589_v13 = vpop.f32.mrf.mxu0 }
 0x4c9   : > { %9827 = vmatmul.mubr.bf16.gmra.mxu1 %v13543_v21  ;;  %v17417_v63 = vadd.f32 %v12588_v28, %v12476_v10 }
 0x4ca   : > { %9980 = vmatmul.mubr.bf16.gmra.mxu0 %v13546_v14  ;;  %9834 = vmatprep.mubr.bf16.mxu1 %v13551_v26  ;;  %v12484_v53 = vpop.f32.mrf.mxu1  ;;  %v12590_v32 = vpop.f32.mrf.mxu0  ;;  %v13567_v14 = vld [vmem:[#allocation2 + $0xb0] ss:$36 sps:$4 sm:$0xff]  }
 0x4cb   : > { %9987 = vmatprep.mubr.bf16.mxu0 %v13554_v52  ;;  %v12485_v22 = vadd.f32 %v12484_v53, %v12483_v48  ;;  %v12591_v50 = vadd.f32 %v12590_v32, %v12589_v13  ;;  %v13570_v13 = vld [vmem:[#allocation2 + $0x188] ss:$36 sps:$4 sm:$0xff]  }
 0x4cc   : > { %v12486_v54 = vpop.f32.mrf.mxu1  ;;  %v12592_v60 = vpop.f32.mrf.mxu0 }
 0x4cd   : > { %v17419_v3 = vadd.f32 %v12591_v50, %v12479_v43 }
 0x4ce   : > { %v12487_v11 = vpop.f32.mrf.mxu1  ;;  %v12593_v29 = vpop.f32.mrf.mxu0 }
 0x4cf   : > { %v12488_v18 = vadd.f32 %v12487_v11, %v12486_v54  ;;  %v12594_v15 = vadd.f32 %v12593_v29, %v12592_v60 }
 0x4d0   : > { %v12489_v23 = vpop.f32.mrf.mxu1  ;;  %v12595_v47 = vpop.f32.mrf.mxu0 }
 0x4d1   : > { %9835 = vmatmul.mubr.bf16.gmra.mxu1 %v13549_v17  ;;  %v17421_v45 = vadd.f32 %v12594_v15, %v12482_v6 }
 0x4d2   : > { %9988 = vmatmul.mubr.bf16.gmra.mxu0 %v13552_v20  ;;  %9842 = vmatprep.mubr.bf16.mxu1 %v13558_v46  ;;  %v12490_v37 = vpop.f32.mrf.mxu1  ;;  %v12596_v0 = vpop.f32.mrf.mxu0  ;;  %v13569_v20 = vld [vmem:[#allocation2 + $0x140] ss:$36 sps:$4 sm:$0xff]  }
 0x4d3   : > { %9995 = vmatprep.mubr.bf16.mxu0 %v13561_v4  ;;  %v12491_v21 = vadd.f32 %v12490_v37, %v12489_v23  ;;  %v12597_v57 = vadd.f32 %v12596_v0, %v12595_v47  ;;  %v13572_v47 = vld [vmem:[#allocation2 + $0x218] ss:$36 sps:$4 sm:$0xff]  }
 0x4d4   : > { %v12492_v40 = vpop.f32.mrf.mxu1  ;;  %v12598_v26 = vpop.f32.mrf.mxu0 }
 0x4d5   : > { %v17423_v58 = vadd.f32 %v12597_v57, %v12485_v22 }
 0x4d6   : > { %v12493_v51 = vpop.f32.mrf.mxu1  ;;  %v12599_v30 = vpop.f32.mrf.mxu0 }
 0x4d7   : > { %v12494_v52 = vadd.f32 %v12493_v51, %v12492_v40  ;;  %v12600_v7 = vadd.f32 %v12599_v30, %v12598_v26 }
 0x4d8   : > { %v12495_v10 = vpop.f32.mrf.mxu1  ;;  %v12601_v5 = vpop.f32.mrf.mxu0 }
 0x4d9   : > { %9843 = vmatmul.mubr.bf16.gmra.mxu1 %v13556_v12  ;;  %v17425_v31 = vadd.f32 %v12600_v7, %v12488_v18 }
 0x4da   : > { %9996 = vmatmul.mubr.bf16.gmra.mxu0 %v13559_v59  ;;  %12964 = vmatprep.mubr.bf16.mxu1 %v13562_v62  ;;  %v12496_v39 = vpop.f32.mrf.mxu1  ;;  %v12602_v25 = vpop.f32.mrf.mxu0 }
 0x4db   : > { %10003 = vmatprep.mubr.bf16.mxu0 %v13565_v38  ;;  %v12497_v17 = vadd.f32 %v12496_v39, %v12495_v10  ;;  %v12603_v43 = vadd.f32 %v12602_v25, %v12601_v5  ;;  %v13571_v38 = vld [vmem:[#allocation2 + $0x1d0] ss:$36 sps:$4 sm:$0xff]   ;;  %v13574_v39 = vld [vmem:[#allocation2 + $0x2a8] ss:$36 sps:$4 sm:$0xff]  }
 0x4dc   : > { %v12498_v1 = vpop.f32.mrf.mxu1  ;;  %v12604_v46 = vpop.f32.mrf.mxu0  ;;  %v13575_v25 = vld [vmem:[#allocation2 + $0x2f0] ss:$36 sps:$4 sm:$0xff]  }
 0x4dd   : > { %v17427_v27 = vadd.f32 %v12603_v43, %v12491_v21 }
 0x4de   : > { %v12499_v8 = vpop.f32.mrf.mxu1  ;;  %v12605_v56 = vpop.f32.mrf.mxu0 }
 0x4df   : > { %v12500_v4 = vadd.f32 %v12499_v8, %v12498_v1  ;;  %v12606_v33 = vadd.f32 %v12605_v56, %v12604_v46 }
 0x4e0   : > { %v12501_v6 = vpop.f32.mrf.mxu1  ;;  %v12607_v19 = vpop.f32.mrf.mxu0 }
 0x4e1   : > { %12965 = vmatmul.mubr.bf16.vlgmr.msra.gmra.mxu1 %v13566_v44  ;;  %v17429_v28 = vadd.f32 %v12606_v33, %v12494_v52  ;;  %v13573_v44 = vld [vmem:[#allocation2 + $0x260] ss:$36 sps:$4 sm:$0xff]  }
 0x4e2   : > { %10004 = vmatmul.mubr.bf16.gmra.mxu0 %v13563_v55  ;;  %12968 = vmatprep.mubr.bf16.mxu1 %v13567_v14  ;;  %v12502_v48 = vpop.f32.mrf.mxu1  ;;  %v12608_v53 = vpop.f32.mrf.mxu0 }
 0x4e3   : > { %v12503_v12 = vadd.f32 %v12502_v48, %v12501_v6  ;;  %v12609_v59 = vadd.f32 %v12608_v53, %v12607_v19 }
 0x4e4   : > { %v12504_v22 = vpop.f32.mrf.mxu1  ;;  %v12610_v32 = vpop.f32.mrf.mxu0 }
 0x4e5   : > { %v17431_v62 = vadd.f32 %v12609_v59, %v12497_v17  ;;  %v13577_v59 = vld [vmem:[#allocation2 + $0x380] ss:$36 sps:$4 sm:$0xff]  }
 0x4e6   : > { %v12505_v50 = vpop.f32.mrf.mxu1  ;;  %v12611_v60 = vpop.f32.mrf.mxu0 }
 0x4e7   : > { %v12506_v54 = vadd.f32 %v12505_v50, %v12504_v22  ;;  %v12612_v11 = vadd.f32 %v12611_v60, %v12610_v32 }
 0x4e8   : > { %v12507_v18 = vpop.f32.mrf.mxu1  ;;  %v12613_v29 = vpop.f32.mrf.mxu0 }
 0x4e9   : > { %12969 = vmatmul.mubr.bf16.gmra.mxu1 %v13568_v36  ;;  %v17433_v15 = vadd.f32 %v12612_v11, %v12500_v4 }
 0x4ea   : > { %12972 = vmatprep.mubr.bf16.mxu1 %v13569_v20  ;;  %v12508_v23 = vpop.f32.mrf.mxu1  ;;  %v12614_v37 = vpop.f32.mrf.mxu0 }
 0x4eb   : > { %v12509_v55 = vadd.f32 %v12508_v23, %v12507_v18  ;;  %v12615_v21 = vadd.f32 %v12614_v37, %v12613_v29 }
 0x4ec   : > { %v12510_v0 = vpop.f32.mrf.mxu1  ;;  %v12616_v14 = vpop.f32.mrf.mxu0 }
 0x4ed   : > { %v17435_v57 = vadd.f32 %v12615_v21, %v12503_v12  ;;  %v13576_v12 = vld [vmem:[#allocation2 + $0x338] ss:$36 sps:$4 sm:$0xff]  }
 0x4ee   : > { %v12511_v40 = vpop.f32.mrf.mxu1  ;;  %v12617_v51 = vpop.f32.mrf.mxu0 }
 0x4ef   : > { %v12512_v26 = vadd.f32 %v12511_v40, %v12510_v0  ;;  %v12618_v52 = vadd.f32 %v12617_v51, %v12616_v14  ;;  %v13579_v14 = vld [vmem:[#allocation2 + $0x410] ss:$36 sps:$4 sm:$0xff]  }
 0x4f0   : > { %v12513_v30 = vpop.f32.mrf.mxu1  ;;  %v12619_v7 = vpop.f32.mrf.mxu0 }
 0x4f1   : > { %12973 = vmatmul.mubr.bf16.gmra.mxu1 %v13570_v13  ;;  %v17437_v10 = vadd.f32 %v12618_v52, %v12506_v54 }
 0x4f2   : > { %12976 = vmatprep.mubr.bf16.mxu1 %v13571_v38  ;;  %v12514_v5 = vpop.f32.mrf.mxu1  ;;  %v12620_v17 = vpop.f32.mrf.mxu0 }
 0x4f3   : > { %v12515_v36 = vadd.f32 %v12514_v5, %v12513_v30  ;;  %v12621_v20 = vadd.f32 %v12620_v17, %v12619_v7  ;;  %v13580_v17 = vld [vmem:[#allocation2 + $0x458] ss:$36 sps:$4 sm:$0xff]  }
 0x4f4   : > { %v12516_v43 = vpop.f32.mrf.mxu1  ;;  %v12622_v1 = vpop.f32.mrf.mxu0 }
 0x4f5   : > { %v17439_v46 = vadd.f32 %v12621_v20, %v12509_v55 }
 0x4f6   : > { %v12517_v8 = vpop.f32.mrf.mxu1  ;;  %v12623_v56 = vpop.f32.mrf.mxu0 }
 0x4f7   : > { %v12518_v4 = vadd.f32 %v12517_v8, %v12516_v43  ;;  %v12624_v33 = vadd.f32 %v12623_v56, %v12622_v1 }
 0x4f8   : > { %v12519_v6 = vpop.f32.mrf.mxu1  ;;  %v12625_v19 = vpop.f32.mrf.mxu0 }
 0x4f9   : > { %12977 = vmatmul.mubr.bf16.gmra.mxu1 %v13572_v47  ;;  %v17441_v48 = vadd.f32 %v12624_v33, %v12512_v26 }
 0x4fa   : > { %12980 = vmatprep.mubr.bf16.mxu1 %v13573_v44  ;;  %v12520_v13 = vpop.f32.mrf.mxu1  ;;  %v12626_v38 = vpop.f32.mrf.mxu0  ;;  %v13578_v44 = vld [vmem:[#allocation2 + $0x3c8] ss:$36 sps:$4 sm:$0xff]  }
 0x4fb   : > { %v12521_v53 = vadd.f32 %v12520_v13, %v12519_v6  ;;  %v12627_v22 = vadd.f32 %v12626_v38, %v12625_v19 }
 0x4fc   : > { %v12522_v32 = vpop.f32.mrf.mxu1  ;;  %v12628_v50 = vpop.f32.mrf.mxu0 }
 0x4fd   : > { %v17443_v54 = vadd.f32 %v12627_v22, %v12515_v36 }
 0x4fe   : > { %v12523_v60 = vpop.f32.mrf.mxu1  ;;  %v12629_v18 = vpop.f32.mrf.mxu0 }
 0x4ff   : > { %v12524_v11 = vadd.f32 %v12523_v60, %v12522_v32  ;;  %v12630_v29 = vadd.f32 %v12629_v18, %v12628_v50 }
 0x500   : > { %v12525_v23 = vpop.f32.mrf.mxu1  ;;  %v12631_v47 = vpop.f32.mrf.mxu0 }
 0x501   : > { %12981 = vmatmul.mubr.bf16.gmra.mxu1 %v13574_v39  ;;  %v17445_v55 = vadd.f32 %v12630_v29, %v12518_v4 }
 0x502   : > { %12984 = vmatprep.mubr.bf16.mxu1 %v13575_v25  ;;  %v12526_v37 = vpop.f32.mrf.mxu1  ;;  %v12632_v0 = vpop.f32.mrf.mxu0 }
 0x503   : > { %v12527_v21 = vadd.f32 %v12526_v37, %v12525_v23  ;;  %v12633_v40 = vadd.f32 %v12632_v0, %v12631_v47 }
 0x504   : > { %v12528_v26 = vpop.f32.mrf.mxu1  ;;  %v12634_v51 = vpop.f32.mrf.mxu0 }
 0x505   : > { %v17447_v52 = vadd.f32 %v12633_v40, %v12521_v53 }
 0x506   : > { %v12529_v30 = vpop.f32.mrf.mxu1  ;;  %v12635_v5 = vpop.f32.mrf.mxu0 }
 0x507   : > { %v12530_v7 = vadd.f32 %v12529_v30, %v12528_v26  ;;  %v12636_v39 = vadd.f32 %v12635_v5, %v12634_v51 }
 0x508   : > { %v12531_v36 = vpop.f32.mrf.mxu1  ;;  %v12637_v25 = vpop.f32.mrf.mxu0 }
 0x509   : > { %12985 = vmatmul.mubr.bf16.gmra.mxu1 %v13576_v12  ;;  %v17449_v20 = vadd.f32 %v12636_v39, %v12524_v11 }
 0x50a   : > { %12988 = vmatprep.mubr.bf16.mxu1 %v13577_v59  ;;  %v12532_v43 = vpop.f32.mrf.mxu1  ;;  %v12638_v8 = vpop.f32.mrf.mxu0 }
 0x50b   : > { %v12533_v1 = vadd.f32 %v12532_v43, %v12531_v36  ;;  %v12639_v4 = vadd.f32 %v12638_v8, %v12637_v25 }
 0x50c   : > { %v12534_v56 = vpop.f32.mrf.mxu1  ;;  %v12640_v33 = vpop.f32.mrf.mxu0 }
 0x50d   : > { %v17451_v6 = vadd.f32 %v12639_v4, %v12527_v21 }
 0x50e   : > { %v12535_v19 = vpop.f32.mrf.mxu1  ;;  %v12641_v12 = vpop.f32.mrf.mxu0 }
 0x50f   : > { %v12536_v13 = vadd.f32 %v12535_v19, %v12534_v56  ;;  %v12642_v53 = vadd.f32 %v12641_v12, %v12640_v33 }
 0x510   : > { %v12537_v38 = vpop.f32.mrf.mxu1  ;;  %v12643_v59 = vpop.f32.mrf.mxu0 }
 0x511   : > { %12989 = vmatmul.mubr.bf16.gmra.mxu1 %v13578_v44  ;;  %v17453_v22 = vadd.f32 %v12642_v53, %v12530_v7 }
 0x512   : > { %12992 = vmatprep.mubr.bf16.mxu1 %v13579_v14  ;;  %v12538_v32 = vpop.f32.mrf.mxu1  ;;  %v12644_v60 = vpop.f32.mrf.mxu0 }
 0x513   : > { %v12539_v50 = vadd.f32 %v12538_v32, %v12537_v38  ;;  %v12645_v11 = vadd.f32 %v12644_v60, %v12643_v59 }
 0x514   : > { %v12668_v18 = vpop.f32.mrf.mxu1  ;;  %v12646_v29 = vpop.f32.mrf.mxu0 }
 0x515   : > { %v17455_v23 = vadd.f32 %v12645_v11, %v12533_v1 }
 0x516   : > { %v12669_v47 = vpop.f32.mrf.mxu1  ;;  %v12647_v37 = vpop.f32.mrf.mxu0 }
 0x517   : > { %v12670_v44 = vadd.f32 %v12669_v47, %v12668_v18  ;;  %v12648_v21 = vadd.f32 %v12647_v37, %v12646_v29 }
 0x518   : > { %v12671_v0 = vpop.f32.mrf.mxu1  ;;  %v12649_v40 = vpop.f32.mrf.mxu0 }
 0x519   : > { %12993 = vmatmul.mubr.bf16.gmra.mxu1 %v13580_v17  ;;  %v9725_v14 = vadd.f32 %v12670_v44, %v17396_v61  ;;  %v17458_v26 = vadd.f32 %v12648_v21, %v12536_v13 }
 0x51a   : > { %v12672_v51 = vpop.f32.mrf.mxu1  ;;  %v12650_v30 = vpop.f32.mrf.mxu0 }
 0x51b   : > { %v12673_v7 = vadd.f32 %v12672_v51, %v12671_v0  ;;  %v12651_v5 = vadd.f32 %v12650_v30, %v12649_v40 }
 0x51c   : > { %v12674_v39 = vpop.f32.mrf.mxu1  ;;  %v12780_v17 = vpop.f32.mrf.mxu0 }
 0x51d   : > { %v17461_v36 = vadd.f32 %v12673_v7, %v17399_v41  ;;  %v17463_v25 = vadd.f32 %v12651_v5, %v12539_v50 }
 0x51e   : > { %v12675_v43 = vpop.f32.mrf.mxu1  ;;  %v12781_v8 = vpop.f32.mrf.mxu0 }
 0x51f   : > { %v12676_v1 = vadd.f32 %v12675_v43, %v12674_v39  ;;  %v12782_v4 = vadd.f32 %v12781_v8, %v12780_v17 }
 0x520   : > { %v12677_v56 = vpop.f32.mrf.mxu1  ;;  %v17468_v33 = vpop.f32.mrf.mxu0 }
 0x521   : > { %v17466_v61 = vadd.f32 %v12676_v1, %v17401_v9  ;;  %v17470_v13 = vadd.f32 %v12782_v4, %v9725_v14 }
 0x522   : > { %v12678_v19 = vpop.f32.mrf.mxu1  ;;  %v17472_v53 = vpop.f32.mrf.mxu0 }
 0x523   : > { %v12679_v12 = vadd.f32 %v12678_v19, %v12677_v56 }
 0x524   : > { %v12680_v41 = vpop.f32.mrf.mxu1  ;;  %v17477_v59 = vpop.f32.mrf.mxu0 }
 0x525   : > { %v17475_v38 = vadd.f32 %v12679_v12, %v17403_v34 }
 0x526   : > { %v12681_v32 = vpop.f32.mrf.mxu1  ;;  %v17479_v60 = vpop.f32.mrf.mxu0 }
 0x527   : > { %v12682_v50 = vadd.f32 %v12681_v32, %v12680_v41 }
 0x528   : > { %v12683_v9 = vpop.f32.mrf.mxu1  ;;  %v17484_v18 = vpop.f32.mrf.mxu0 }
 0x529   : > { %v17482_v11 = vadd.f32 %v12682_v50, %v17405_v49 }
 0x52a   : > { %v12684_v29 = vpop.f32.mrf.mxu1  ;;  %v17486_v37 = vpop.f32.mrf.mxu0 }
 0x52b   : > { %v12685_v47 = vadd.f32 %v12684_v29, %v12683_v9 }
 0x52c   : > { %v12686_v44 = vpop.f32.mrf.mxu1 }
 0x52d   : > { %v17489_v34 = vadd.f32 %v12685_v47, %v17407_v24 }
 0x52e   : > { %v17491_v21 = vpop.f32.mrf.mxu0  ;;  %v12687_v0 = vpop.f32.mrf.mxu1 }
 0x52f   : > { %v12688_v14 = vadd.f32 %v12687_v0, %v12686_v44 }
 0x530   : > { %v17493_v40 = vpop.f32.mrf.mxu0  ;;  %v12689_v51 = vpop.f32.mrf.mxu1 }
 0x531   : > { %v17496_v49 = vadd.f32 %v12688_v14, %v17409_v42 }
 0x532   : > { %v17498_v30 = vpop.f32.mrf.mxu0  ;;  %v12690_v7 = vpop.f32.mrf.mxu1 }
 0x533   : > { %v12691_v5 = vadd.f32 %v12690_v7, %v12689_v51 }
 0x534   : > { %v17500_v39 = vpop.f32.mrf.mxu0 }
 0x535   : > { %v17503_v24 = vadd.f32 %v12691_v5, %v17411_v2 }
 0x53c   : > { %v12692_v17 = vpop.f32.mrf.mxu1 }
 0x53d   : > { %v17505_v43 = vpop.f32.mrf.mxu0 }
 0x53e   : > { %v12693_v1 = vpop.f32.mrf.mxu1 }
 0x53f   : > { %v12694_v8 = vadd.f32 %v12693_v1, %v12692_v17  ;;  %v17507_v4 = vpop.f32.mrf.mxu0 }
 0x540   : > { %v12695_v56 = vpop.f32.mrf.mxu1 }
 0x541   : > { %v17510_v42 = vadd.f32 %v12694_v8, %v17413_v16  ;;  %v17512_v19 = vpop.f32.mrf.mxu0 }
 0x542   : > { %v12696_v12 = vpop.f32.mrf.mxu1 }
 0x543   : > { %v12697_v41 = vadd.f32 %v12696_v12, %v12695_v56  ;;  %v17514_v32 = vpop.f32.mrf.mxu0 }
 0x545   : > { %v17517_v2 = vadd.f32 %v12697_v41, %v17415_v35 }
 0x546   : > { %v12698_v50 = vpop.f32.mrf.mxu1 }
 0x547   : > { %19095 = vst [vmem:[#allocation7_spill] sm:$0xff] %v17517_v2 }
 0x548   : > { %v17519_v9 = vpop.f32.mrf.mxu0  ;;  %v12699_v29 = vpop.f32.mrf.mxu1 }
 0x549   : > { %v12700_v47 = vadd.f32 %v12699_v29, %v12698_v50 }
 0x54a   : > { %v17521_v44 = vpop.f32.mrf.mxu0  ;;  %v12701_v0 = vpop.f32.mrf.mxu1 }
 0x54b   : > { %v17524_v16 = vadd.f32 %v12700_v47, %v17417_v63 }
 0x54c   : > { %v17526_v14 = vpop.f32.mrf.mxu0  ;;  %v12702_v51 = vpop.f32.mrf.mxu1 }
 0x54d   : > { %19096 = vst [vmem:[#allocation25_spill] sm:$0xff] %v17524_v16  ;;  %v12703_v7 = vadd.f32 %v12702_v51, %v12701_v0 }
 0x54e   : > { %v17528_v5 = vpop.f32.mrf.mxu0 }
 0x54f   : > { %v12704_v17 = vpop.f32.mrf.mxu1  ;;  %v17531_v35 = vadd.f32 %v12703_v7, %v17419_v3 }
 0x550   : > { %v17533_v1 = vpop.f32.mrf.mxu0 }
 0x551   : > { %19097 = vst [vmem:[#allocation36_spill] sm:$0xff] %v17531_v35  ;;  %v12705_v8 = vpop.f32.mrf.mxu1 }
 0x552   : > { %v12706_v56 = vadd.f32 %v12705_v8, %v12704_v17  ;;  %v17535_v12 = vpop.f32.mrf.mxu0 }
 0x553   : > { %v12707_v41 = vpop.f32.mrf.mxu1 }
 0x554   : > { %v17538_v63 = vadd.f32 %v12706_v56, %v17421_v45  ;;  %v17540_v50 = vpop.f32.mrf.mxu0 }
 0x555   : > { %v12708_v29 = vpop.f32.mrf.mxu1 }
 0x556   : > { %19098 = vst [vmem:[#allocation21_spill] sm:$0xff] %v17538_v63  ;;  %v12709_v47 = vadd.f32 %v12708_v29, %v12707_v41  ;;  %v17542_v0 = vpop.f32.mrf.mxu0 }
 0x558   : > { %v12710_v51 = vpop.f32.mrf.mxu1  ;;  %v17545_v3 = vadd.f32 %v12709_v47, %v17423_v58 }
 0x559   : > { %v17547_v7 = vpop.f32.mrf.mxu0 }
 0x55a   : > { %19099 = vst [vmem:[#allocation108_spill] sm:$0xff] %v17545_v3  ;;  %v12711_v35 = vpop.f32.mrf.mxu1 }
 0x55b   : > { %v12712_v17 = vadd.f32 %v12711_v35, %v12710_v51  ;;  %v17549_v8 = vpop.f32.mrf.mxu0 }
 0x55c   : > { %19100 = vst [vmem:[#allocation9_spill] sm:$0xff] %v17549_v8  ;;  %v12713_v2 = vpop.f32.mrf.mxu1 }
 0x55d   : > { %v17552_v45 = vadd.f32 %v12712_v17, %v17425_v31  ;;  %v17554_v56 = vpop.f32.mrf.mxu0 }
 0x55e   : > { %v12714_v63 = vpop.f32.mrf.mxu1 }
 0x55f   : > { %19101 = vst [vmem:[#allocation8_spill] sm:$0xff] %v17552_v45  ;;  %v12715_v41 = vadd.f32 %v12714_v63, %v12713_v2  ;;  %v17556_v29 = vpop.f32.mrf.mxu0 }
 0x560   : > { %19102 = vst [vmem:[#allocation110_spill] sm:$0xff] %v17556_v29 }
 0x561   : > { %v12716_v16 = vpop.f32.mrf.mxu1  ;;  %v17559_v58 = vadd.f32 %v12715_v41, %v17427_v27 }
 0x562   : > { %v17561_v47 = vpop.f32.mrf.mxu0 }
 0x563   : > { %19103 = vst [vmem:[#allocation64_spill] sm:$0xff] %v17559_v58  ;;  %v12717_v3 = vpop.f32.mrf.mxu1 }
 0x564   : > { %v12718_v35 = vadd.f32 %v12717_v3, %v12716_v16  ;;  %v17563_v51 = vpop.f32.mrf.mxu0 }
 0x565   : > { %19104 = vst [vmem:[#allocation62_spill] sm:$0xff] %v17563_v51  ;;  %v12719_v8 = vpop.f32.mrf.mxu1 }
 0x566   : > { %v17566_v31 = vadd.f32 %v12718_v35, %v17429_v28  ;;  %v17568_v17 = vpop.f32.mrf.mxu0 }
 0x567   : > { %v12720_v45 = vpop.f32.mrf.mxu1 }
 0x568   : > { %19105 = vst [vmem:[#allocation28_spill] sm:$0xff] %v17566_v31  ;;  %v12721_v2 = vadd.f32 %v12720_v45, %v12719_v8  ;;  %v17570_v63 = vpop.f32.mrf.mxu0 }
 0x569   : > { %19106 = vst [vmem:[#allocation68_spill] sm:$0xff] %v17570_v63  ;;  %v12722_v29 = vpop.f32.mrf.mxu1 }
 0x56a   : > { %v17573_v27 = vadd.f32 %v12721_v2, %v17431_v62  ;;  %v17575_v41 = vpop.f32.mrf.mxu0 }
 0x56b   : > { %v12723_v58 = vpop.f32.mrf.mxu1 }
 0x56c   : > { %19107 = vst [vmem:[#allocation67_spill] sm:$0xff] %v17573_v27  ;;  %v12724_v16 = vadd.f32 %v12723_v58, %v12722_v29  ;;  %v17577_v3 = vpop.f32.mrf.mxu0 }
 0x56d   : > { %19108 = vst [vmem:[#allocation53_spill] sm:$0xff] %v17577_v3  ;;  %v12725_v51 = vpop.f32.mrf.mxu1 }
 0x56e   : > { %v17580_v28 = vadd.f32 %v12724_v16, %v17433_v15  ;;  %v17582_v35 = vpop.f32.mrf.mxu0 }
 0x56f   : > { %v12726_v31 = vpop.f32.mrf.mxu1 }
 0x570   : > { %19109 = vst [vmem:[#allocation113_spill] sm:$0xff] %v17580_v28  ;;  %v12727_v8 = vadd.f32 %v12726_v31, %v12725_v51  ;;  %v17584_v45 = vpop.f32.mrf.mxu0 }
 0x571   : > { %19110 = vst [vmem:[#allocation65_spill] sm:$0xff] %v17584_v45  ;;  %v12728_v63 = vpop.f32.mrf.mxu1 }
 0x572   : > { %v17587_v62 = vadd.f32 %v12727_v8, %v17435_v57  ;;  %v17589_v2 = vpop.f32.mrf.mxu0 }
 0x573   : > { %v12729_v27 = vpop.f32.mrf.mxu1 }
 0x574   : > { %19111 = vst [vmem:[#allocation69_spill] sm:$0xff] %v17587_v62  ;;  %v12730_v29 = vadd.f32 %v12729_v27, %v12728_v63  ;;  %v17591_v58 = vpop.f32.mrf.mxu0 }
 0x575   : > { %19112 = vst [vmem:[#allocation72_spill] sm:$0xff] %v17591_v58  ;;  %v12731_v3 = vpop.f32.mrf.mxu1 }
 0x576   : > { %v17594_v15 = vadd.f32 %v12730_v29, %v17437_v10  ;;  %v17596_v16 = vpop.f32.mrf.mxu0 }
 0x577   : > { %19114 = vst [vmem:[#allocation126_spill] sm:$0xff] %v17596_v16  ;;  %v12732_v28 = vpop.f32.mrf.mxu1 }
 0x578   : > { %19113 = vst [vmem:[#allocation73_spill] sm:$0xff] %v17594_v15  ;;  %v12733_v51 = vadd.f32 %v12732_v28, %v12731_v3  ;;  %v17598_v31 = vpop.f32.mrf.mxu0 }
 0x579   : > { %19115 = vst [vmem:[#allocation111_spill] sm:$0xff] %v17598_v31  ;;  %v12734_v45 = vpop.f32.mrf.mxu1 }
 0x57a   : > { %v17601_v57 = vadd.f32 %v12733_v51, %v17439_v46  ;;  %v17603_v62 = vpop.f32.mrf.mxu0 }
 0x57b   : > { %v12735_v8 = vpop.f32.mrf.mxu1 }
 0x57c   : > { %19116 = vst [vmem:[#allocation127_spill] sm:$0xff] %v17601_v57  ;;  %v12736_v63 = vadd.f32 %v12735_v8, %v12734_v45  ;;  %v17608_v29 = vpop.f32.mrf.mxu0 }
 0x57d   : > { %v12737_v27 = vpop.f32.mrf.mxu1 }
 0x57e   : > { %v17606_v58 = vadd.f32 %v12736_v63, %v17441_v48  ;;  %v17613_v31 = vpop.f32.mrf.mxu0 }
 0x57f   : > { %v12738_v10 = vpop.f32.mrf.mxu1 }
 0x580   : > { %19117 = vst [vmem:[#allocation114_spill] sm:$0xff] %v17606_v58  ;;  %v12739_v15 = vadd.f32 %v12738_v10, %v12737_v27  ;;  %v17618_v8 = vpop.f32.mrf.mxu0 }
 0x581   : > { %v12740_v16 = vpop.f32.mrf.mxu1 }
 0x582   : > { %v17611_v3 = vadd.f32 %v12739_v15, %v17443_v54  ;;  %v17623_v10 = vpop.f32.mrf.mxu0 }
 0x583   : > { %v12741_v28 = vpop.f32.mrf.mxu1 }
 0x584   : > { %19118 = vst [vmem:[#allocation70_spill] sm:$0xff] %v17611_v3  ;;  %v12742_v46 = vadd.f32 %v12741_v28, %v12740_v16  ;;  %v17628_v28 = vpop.f32.mrf.mxu0 }
 0x585   : > { %v12743_v51 = vpop.f32.mrf.mxu1 }
 0x586   : > { %v17616_v57 = vadd.f32 %v12742_v46, %v17445_v55 }
 0x587   : > { %v12744_v45 = vpop.f32.mrf.mxu1 }
 0x588   : > { %19119 = vst [vmem:[#allocation106_spill] sm:$0xff] %v17616_v57  ;;  %v12745_v48 = vadd.f32 %v12744_v45, %v12743_v51  ;;  %v17633_v45 = vpop.f32.mrf.mxu0 }
 0x589   : > { %v12746_v63 = vpop.f32.mrf.mxu1 }
 0x58a   : > { %v17621_v58 = vadd.f32 %v12745_v48, %v17447_v52 }
 0x58b   : > { %v12747_v27 = vpop.f32.mrf.mxu1 }
 0x58c   : > { %19120 = vst [vmem:[#allocation109_spill] sm:$0xff] %v17621_v58  ;;  %v12748_v54 = vadd.f32 %v12747_v27, %v12746_v63  ;;  %v17638_v27 = vpop.f32.mrf.mxu0 }
 0x58d   : > { %v12749_v15 = vpop.f32.mrf.mxu1 }
 0x58e   : > { %v17626_v3 = vadd.f32 %v12748_v54, %v17449_v20 }
 0x58f   : > { %v12750_v16 = vpop.f32.mrf.mxu1 }
 0x590   : > { %19121 = vst [vmem:[#allocation112_spill] sm:$0xff] %v17626_v3  ;;  %v12751_v55 = vadd.f32 %v12750_v16, %v12749_v15  ;;  %v17643_v16 = vpop.f32.mrf.mxu0 }
 0x591   : > { %v12752_v46 = vpop.f32.mrf.mxu1 }
 0x592   : > { %v17631_v57 = vadd.f32 %v12751_v55, %v17451_v6 }
 0x593   : > { %v12753_v51 = vpop.f32.mrf.mxu1 }
 0x594   : > { %19122 = vst [vmem:[#allocation252_spill] sm:$0xff] %v17631_v57  ;;  %v12754_v52 = vadd.f32 %v12753_v51, %v12752_v46  ;;  %v17648_v51 = vpop.f32.mrf.mxu0 }
 0x595   : > { %v12755_v48 = vpop.f32.mrf.mxu1 }
 0x596   : > { %v17636_v58 = vadd.f32 %v12754_v52, %v17453_v22 }
 0x597   : > { %v12756_v63 = vpop.f32.mrf.mxu1 }
 0x598   : > { %v12757_v20 = vadd.f32 %v12756_v63, %v12755_v48  ;;  %v12785_v48 = vadd.f32 %v17472_v53, %v17468_v33 }
 0x599   : > { %v12758_v54 = vpop.f32.mrf.mxu1 }
 0x59a   : > { %v17641_v3 = vadd.f32 %v12757_v20, %v17455_v23  ;;  %v12788_v23 = vadd.f32 %v17479_v60, %v17477_v59  ;;  %v9889_v53 = vadd.f32 %v12785_v48, %v17461_v36 }
 0x59b   : > { %v12759_v15 = vpop.f32.mrf.mxu1 }
 0x59c   : > { %v12760_v6 = vadd.f32 %v12759_v15, %v12758_v54  ;;  %v12791_v54 = vadd.f32 %v17486_v37, %v17484_v18  ;;  %v12794_v15 = vadd.f32 %v17493_v40, %v17491_v21  ;;  %v12797_v21 = vadd.f32 %v17500_v39, %v17498_v30 }
 0x59d   : > { %v12761_v55 = vpop.f32.mrf.mxu1  ;;  %v12803_v30 = vadd.f32 %v17514_v32, %v17512_v19 }
 0x59e   : > { %v17646_v57 = vadd.f32 %v12760_v6, %v17458_v26  ;;  %v17659_v26 = vpop.f32.mrf.mxu0  ;;  %v9897_v18 = vadd.f32 %v12791_v54, %v17475_v38 }
 0x59f   : > { %v12762_v46 = vpop.f32.mrf.mxu1 }
 0x5a0   : > { %v12763_v22 = vadd.f32 %v12762_v46, %v12761_v55  ;;  %v9894_v55 = vadd.f32 %v12788_v23, %v17466_v61  ;;  %v12800_v61 = vadd.f32 %v17507_v4, %v17505_v43  ;;  %v12806_v23 = vadd.f32 %v17521_v44, %v17519_v9 }
 0x5a1   : > { %v12966_v52 = vpop.f32.mrf.mxu1 }
 0x5a2   : > { %v17655_v63 = vadd.f32 %v12763_v22, %v17463_v25  ;;  %v17668_v25 = vpop.f32.mrf.mxu0  ;;  %v17670_v60 = vadd.f32 %v12966_v52, %v9894_v55 }
 0x5a3   : > { %v10046_v20 = vpop.f32.mrf.mxu1 }
 0x5a4   : > { %v17665_v33 = vadd.f32 %v10046_v20, %v17470_v13  ;;  %v9902_v13 = vadd.f32 %v12794_v15, %v17482_v11  ;;  %v17690_v52 = vpop.f32.mrf.mxu0  ;;  %v10214_v11 = vmul.f32 %v17670_v60, %v17670_v60  ;;  %v9910_v20 = vadd.f32 %v12800_v61, %v17496_v49 }
 0x5a5   : > { %v12967_v6 = vpop.f32.mrf.mxu1 }
 0x5a6   : > { %v10212_v36 = vmul.f32 %v17665_v33, %v17665_v33  ;;  %v17682_v46 = vadd.f32 %v12967_v6, %v9897_v18  ;;  %v9905_v6 = vadd.f32 %v12797_v21, %v17489_v34  ;;  %v17707_v18 = vpop.f32.mrf.mxu0  ;;  %v12812_v34 = vadd.f32 %v17535_v12, %v17533_v1  ;;  %v19123_v12 = vld [vmem:[#allocation9_spill] sm:$0xff] }
 0x5a7   : > { %v10049_v59 = vpop.f32.mrf.mxu1 }
 0x5a8   : > { %v17673_v37 = vadd.f32 %v10049_v59, %v9889_v53  ;;  %v10215_v19 = vmul.f32 %v17682_v46, %v17682_v46  ;;  %v9913_v53 = vadd.f32 %v12803_v30, %v17503_v24  ;;  %v9918_v24 = vadd.f32 %v12806_v23, %v17510_v42 }
 0x5a9   : > { %v12970_v40 = vpop.f32.mrf.mxu1  ;;  %v12815_v30 = vadd.f32 %v17542_v0, %v17540_v50 }
 0x5aa   : > { %v10175_v22 = vadd.f32 %v17673_v37, %v17665_v33  ;;  %v10213_v38 = vmul.f32 %v17673_v37, %v17673_v37  ;;  %v17704_v55 = vadd.f32 %v12970_v40, %v9910_v20 }
 0x5ab   : > { %v10062_v39 = vpop.f32.mrf.mxu1 }
 0x5ac   : > { %v10176_v43 = vadd.f32 %v10175_v22, %v17670_v60  ;;  %v10244_v4 = vadd.f32 %v10213_v38, %v10212_v36  ;;  %v17695_v48 = vadd.f32 %v10062_v39, %v9902_v13  ;;  %v12809_v13 = vadd.f32 %v17528_v5, %v17526_v14 }
 0x5ad   : > { %v12971_v54 = vpop.f32.mrf.mxu1  ;;  %v10218_v14 = vmul.f32 %v17704_v55, %v17704_v55 }
 0x5ae   : > { %v10245_v32 = vadd.f32 %v10244_v4, %v10214_v11  ;;  %v10177_v15 = vadd.f32 %v10176_v43, %v17682_v46  ;;  %v10216_v49 = vmul.f32 %v17695_v48, %v17695_v48  ;;  %v17719_v36 = vadd.f32 %v12971_v54, %v9913_v53  ;;  %v17726_v11 = vpop.f32.mrf.mxu0  ;;  %v19124_v4 = vld [vmem:[#allocation25_spill] sm:$0xff] }
 0x5af   : > { %v10065_v59 = vpop.f32.mrf.mxu1  ;;  %v12818_v43 = vadd.f32 %v19123_v12, %v17547_v7  ;;  %v9926_v23 = vadd.f32 %v12812_v34, %v19124_v4  ;;  %v19130_v12 = vld [vmem:[#allocation68_spill] sm:$0xff] }
 0x5b0   : > { %v10178_v9 = vadd.f32 %v10177_v15, %v17695_v48  ;;  %v10246_v44 = vadd.f32 %v10245_v32, %v10215_v19  ;;  %v17712_v61 = vadd.f32 %v10065_v59, %v9905_v6  ;;  %v10219_v50 = vmul.f32 %v17719_v36, %v17719_v36  ;;  %v19125_v19 = vld [vmem:[#allocation7_spill] sm:$0xff]  ;;  %v19126_v6 = vld [vmem:[#allocation36_spill] sm:$0xff] }
 0x5b1   : > { %v12974_v21 = vpop.f32.mrf.mxu1  ;;  %v9921_v32 = vadd.f32 %v12809_v13, %v19125_v19  ;;  %v9929_v53 = vadd.f32 %v12815_v30, %v19126_v6  ;;  %v19128_v13 = vld [vmem:[#allocation62_spill] sm:$0xff]  ;;  %v12827_v4 = vadd.f32 %v19130_v12, %v17568_v17  ;;  %v19132_v19 = vld [vmem:[#allocation8_spill] sm:$0xff] }
 0x5b2   : > { %v10247_v40 = vadd.f32 %v10246_v44, %v10216_v49  ;;  %v10179_v22 = vadd.f32 %v10178_v9, %v17712_v61  ;;  %v10217_v38 = vmul.f32 %v17712_v61, %v17712_v61  ;;  %v17740_v15 = vadd.f32 %v12974_v21, %v9926_v23  ;;  %v17743_v9 = vpop.f32.mrf.mxu0 }
 0x5b3   : > { %v10078_v39 = vpop.f32.mrf.mxu1  ;;  %v12824_v21 = vadd.f32 %v19128_v13, %v17561_v47 }
 0x5b4   : > { %v10180_v5 = vadd.f32 %v10179_v22, %v17704_v55  ;;  %v10248_v42 = vadd.f32 %v10247_v40, %v10217_v38  ;;  %v17731_v1 = vadd.f32 %v10078_v39, %v9918_v24  ;;  %v19127_v24 = vld [vmem:[#allocation110_spill] sm:$0xff]  ;;  %v19129_v38 = vld [vmem:[#allocation21_spill] sm:$0xff] }
 0x5b5   : > { %v12975_v20 = vpop.f32.mrf.mxu1  ;;  %v12821_v40 = vadd.f32 %v19127_v24, %v17554_v56  ;;  %v9934_v30 = vadd.f32 %v12818_v43, %v19129_v38  ;;  %v10222_v56 = vmul.f32 %v17740_v15, %v17740_v15  ;;  %v19134_v24 = vld [vmem:[#allocation64_spill] sm:$0xff] }
 0x5b6   : > { %v10249_v0 = vadd.f32 %v10248_v42, %v10218_v14  ;;  %v10181_v54 = vadd.f32 %v10180_v5, %v17719_v36  ;;  %v10220_v49 = vmul.f32 %v17731_v1, %v17731_v1  ;;  %v17755_v14 = vadd.f32 %v12975_v20, %v9929_v53  ;;  %v19131_v20 = vld [vmem:[#allocation53_spill] sm:$0xff] }
 0x5b7   : > { %v10081_v59 = vpop.f32.mrf.mxu1  ;;  %v9945_v13 = vadd.f32 %v12827_v4, %v19134_v24  ;;  %v19140_v24 = vld [vmem:[#allocation113_spill] sm:$0xff] }
 0x5b8   : > { %v10182_v7 = vadd.f32 %v10181_v54, %v17731_v1  ;;  %v10250_v44 = vadd.f32 %v10249_v0, %v10219_v50  ;;  %v17748_v34 = vadd.f32 %v10081_v59, %v9921_v32  ;;  %v17762_v50 = vpop.f32.mrf.mxu0  ;;  %v12830_v54 = vadd.f32 %v19131_v20, %v17575_v41 }
 0x5b9   : > { %v12978_v22 = vpop.f32.mrf.mxu1  ;;  %v9942_v32 = vadd.f32 %v12824_v21, %v19132_v19  ;;  %v10223_v17 = vmul.f32 %v17755_v14, %v17755_v14 }
 0x5ba   : > { %v10251_v39 = vadd.f32 %v10250_v44, %v10220_v49  ;;  %v10183_v5 = vadd.f32 %v10182_v7, %v17748_v34  ;;  %v10221_v42 = vmul.f32 %v17748_v34, %v17748_v34  ;;  %v19133_v7 = vld [vmem:[#allocation108_spill] sm:$0xff] }
 0x5bb   : > { %v10094_v23 = vpop.f32.mrf.mxu1  ;;  %v9937_v49 = vadd.f32 %v12821_v40, %v19133_v7  ;;  %v17776_v44 = vadd.f32 %v12978_v22, %v9942_v32  ;;  %v19136_v40 = vld [vmem:[#allocation72_spill] sm:$0xff]  ;;  %v19138_v32 = vld [vmem:[#allocation126_spill] sm:$0xff] }
 0x5bc   : > { %v10184_v47 = vadd.f32 %v10183_v5, %v17740_v15  ;;  %v10252_v43 = vadd.f32 %v10251_v39, %v10221_v42  ;;  %v17767_v0 = vadd.f32 %v10094_v23, %v9934_v30  ;;  %v17779_v30 = vpop.f32.mrf.mxu0  ;;  %v19135_v42 = vld [vmem:[#allocation65_spill] sm:$0xff]  ;;  %v12836_v22 = vadd.f32 %v19136_v40, %v17589_v2 }
 0x5bd   : > { %v12979_v6 = vpop.f32.mrf.mxu1  ;;  %v12833_v12 = vadd.f32 %v19135_v42, %v17582_v35  ;;  %v10226_v35 = vmul.f32 %v17776_v44, %v17776_v44  ;;  %v19141_v42 = vld [vmem:[#allocation67_spill] sm:$0xff] }
 0x5be   : > { %v10253_v53 = vadd.f32 %v10252_v43, %v10222_v56  ;;  %v10185_v59 = vadd.f32 %v10184_v47, %v17755_v14  ;;  %v10224_v21 = vmul.f32 %v17767_v0, %v17767_v0  ;;  %v19137_v56 = vld [vmem:[#allocation28_spill] sm:$0xff]  ;;  %v17791_v43 = vadd.f32 %v12979_v6, %v9945_v13  ;;  %v17798_v7 = vpop.f32.mrf.mxu0 }
 0x5bf   : > { %v10097_v38 = vpop.f32.mrf.mxu1  ;;  %v9950_v4 = vadd.f32 %v12830_v54, %v19137_v56  ;;  %v12842_v6 = vadd.f32 %v17608_v29, %v17603_v62  ;;  %v9958_v13 = vadd.f32 %v12836_v22, %v19140_v24  ;;  %v9953_v40 = vadd.f32 %v12833_v12, %v19141_v42 }
 0x5c0   : > { %v10186_v41 = vadd.f32 %v10185_v59, %v17767_v0  ;;  %v10254_v39 = vadd.f32 %v10253_v53, %v10223_v17  ;;  %v17784_v5 = vadd.f32 %v10097_v38, %v9937_v49  ;;  %v19139_v17 = vld [vmem:[#allocation111_spill] sm:$0xff]  ;;  %v12848_v12 = vadd.f32 %v17628_v28, %v17623_v10 }
 0x5c1   : > { %v12982_v23 = vpop.f32.mrf.mxu1  ;;  %v12839_v53 = vadd.f32 %v19139_v17, %v19138_v32  ;;  %v12845_v17 = vadd.f32 %v17618_v8, %v17613_v31 }
 0x5c2   : > { %v10255_v47 = vadd.f32 %v10254_v39, %v10224_v21  ;;  %v10187_v20 = vadd.f32 %v10186_v41, %v17784_v5  ;;  %v10225_v19 = vmul.f32 %v17784_v5, %v17784_v5  ;;  %v10227_v41 = vmul.f32 %v17791_v43, %v17791_v43 }
 0x5c3   : > { %v10110_v59 = vpop.f32.mrf.mxu1  ;;  %v17812_v56 = vadd.f32 %v12982_v23, %v9958_v13  ;;  %v12851_v13 = vadd.f32 %v17638_v27, %v17633_v45 }
 0x5c4   : > { %v10188_v2 = vadd.f32 %v10187_v20, %v17776_v44  ;;  %v10256_v54 = vadd.f32 %v10255_v47, %v10225_v19  ;;  %v17803_v49 = vadd.f32 %v10110_v59, %v9950_v4  ;;  %v19142_v20 = vld [vmem:[#allocation69_spill] sm:$0xff]  ;;  %v17815_v19 = vpop.f32.mrf.mxu0 }
 0x5c5   : > { %v12983_v38 = vpop.f32.mrf.mxu1  ;;  %v9961_v47 = vadd.f32 %v12839_v53, %v19142_v20  ;;  %v19143_v59 = vld [vmem:[#allocation73_spill] sm:$0xff]  ;;  %v10230_v31 = vmul.f32 %v17812_v56, %v17812_v56  ;;  %v19145_v20 = vld [vmem:[#allocation127_spill] sm:$0xff] }
 0x5c6   : > { %v10257_v21 = vadd.f32 %v10256_v54, %v10226_v35  ;;  %v10189_v39 = vadd.f32 %v10188_v2, %v17791_v43  ;;  %v10228_v29 = vmul.f32 %v17803_v49, %v17803_v49  ;;  %v9966_v53 = vadd.f32 %v12842_v6, %v19143_v59 }
 0x5c7   : > { %v10113_v4 = vpop.f32.mrf.mxu1  ;;  %v17827_v2 = vadd.f32 %v12983_v38, %v9961_v47  ;;  %v12854_v6 = vadd.f32 %v17648_v51, %v17643_v16  ;;  %v19144_v38 = vld [vmem:[#allocation114_spill] sm:$0xff]  ;;  %v9969_v47 = vadd.f32 %v12845_v17, %v19145_v20  ;;  %v12860_v17 = vadd.f32 %v17707_v18, %v17690_v52  ;;  %v19149_v20 = vld [vmem:[#allocation109_spill] sm:$0xff] }
 0x5c8   : > { %v10190_v62 = vadd.f32 %v10189_v39, %v17803_v49  ;;  %v10258_v22 = vadd.f32 %v10257_v21, %v10227_v41  ;;  %v17820_v32 = vadd.f32 %v10113_v4, %v9953_v40  ;;  %v12870_v21 = vpop.f32.mrf.mxu0  ;;  %v9974_v39 = vadd.f32 %v12848_v12, %v19144_v38 }
 0x5c9   : > { %v12986_v23 = vpop.f32.mrf.mxu1  ;;  %v10231_v40 = vmul.f32 %v17827_v2, %v17827_v2 }
 0x5ca   : > { %v10259_v35 = vadd.f32 %v10258_v22, %v10228_v29  ;;  %v10191_v54 = vadd.f32 %v10190_v62, %v17820_v32  ;;  %v10229_v24 = vmul.f32 %v17820_v32, %v17820_v32  ;;  %v17846_v4 = vadd.f32 %v12986_v23, %v9974_v39  ;;  %v19146_v62 = vld [vmem:[#allocation70_spill] sm:$0xff]  ;;  %v12871_v59 = vpop.f32.mrf.mxu0 }
 0x5cb   : > { %v10126_v41 = vpop.f32.mrf.mxu1  ;;  %v9977_v29 = vadd.f32 %v12851_v13, %v19146_v62 }
 0x5cc   : > { %v10192_v8 = vadd.f32 %v10191_v54, %v17812_v56  ;;  %v10260_v10 = vadd.f32 %v10259_v35, %v10229_v24  ;;  %v17837_v28 = vadd.f32 %v10126_v41, %v9966_v53  ;;  %v12857_v35 = vadd.f32 %v17668_v25, %v17659_v26  ;;  %v19147_v54 = vld [vmem:[#allocation106_spill] sm:$0xff]  ;;  %v12873_v39 = vpop.f32.mrf.mxu0 }
 0x5cd   : > { %v12987_v42 = vpop.f32.mrf.mxu1  ;;  %v9982_v24 = vadd.f32 %v12854_v6, %v19147_v54  ;;  %v10234_v26 = vmul.f32 %v17846_v4, %v17846_v4  ;;  %v12866_v6 = vadd.f32 %v17779_v30, %v17762_v50  ;;  %v12869_v54 = vadd.f32 %v17815_v19, %v17798_v7 }
 0x5ce   : > { %v10261_v45 = vadd.f32 %v10260_v10, %v10230_v31  ;;  %v10193_v27 = vadd.f32 %v10192_v8, %v17827_v2  ;;  %v10232_v16 = vmul.f32 %v17837_v28, %v17837_v28  ;;  %v17859_v41 = vadd.f32 %v12987_v42, %v9977_v29  ;;  %v19148_v42 = vld [vmem:[#allocation112_spill] sm:$0xff] }
 0x5cf   : > { %v10129_v22 = vpop.f32.mrf.mxu1  ;;  %v12863_v10 = vadd.f32 %v17743_v9, %v17726_v11  ;;  %v19150_v29 = vld [vmem:[#allocation252_spill] sm:$0xff] }
 0x5d0   : > { %v10194_v53 = vadd.f32 %v10193_v27, %v17837_v28  ;;  %v10262_v51 = vadd.f32 %v10261_v45, %v10231_v40  ;;  %v17852_v12 = vadd.f32 %v10129_v22, %v9969_v47  ;;  %v9990_v40 = vadd.f32 %v12860_v17, %v19148_v42 }
 0x5d1   : > { %v12990_v23 = vpop.f32.mrf.mxu1  ;;  %v10235_v27 = vmul.f32 %v17859_v41, %v17859_v41  ;;  %v9985_v47 = vadd.f32 %v12857_v35, %v19149_v20  ;;  %v9993_v22 = vadd.f32 %v12863_v10, %v19150_v29  ;;  %v9998_v35 = vadd.f32 %v12866_v6, %v17636_v58 }
 0x5d2   : > { %v10263_v13 = vadd.f32 %v10262_v51, %v10232_v16  ;;  %v10195_v31 = vadd.f32 %v10194_v53, %v17852_v12  ;;  %v10233_v8 = vmul.f32 %v17852_v12, %v17852_v12  ;;  %v17878_v62 = vadd.f32 %v12990_v23, %v9990_v40  ;;  %v12874_v16 = vpop.f32.mrf.mxu0 }
 0x5d3   : > { %v10142_v38 = vpop.f32.mrf.mxu1 }
 0x5d4   : > { %v10196_v25 = vadd.f32 %v10195_v31, %v17846_v4  ;;  %v10264_v52 = vadd.f32 %v10263_v13, %v10233_v8  ;;  %v17869_v18 = vadd.f32 %v10142_v38, %v9982_v24  ;;  %v12872_v24 = vadd.f32 %v12871_v59, %v12870_v21 }
 0x5d5   : > { %v12991_v45 = vpop.f32.mrf.mxu1  ;;  %v12875_v38 = vadd.f32 %v12874_v16, %v12873_v39  ;;  %v10001_v39 = vadd.f32 %v12869_v54, %v17641_v3 }
 0x5d6   : > { %v10265_v11 = vadd.f32 %v10264_v52, %v10234_v26  ;;  %v10197_v9 = vadd.f32 %v10196_v25, %v17859_v41  ;;  %v10236_v50 = vmul.f32 %v17869_v18, %v17869_v18  ;;  %v17889_v31 = vadd.f32 %v12991_v45, %v9993_v22 }
 0x5d7   : > { %v10145_v53 = vpop.f32.mrf.mxu1  ;;  %v10238_v25 = vmul.f32 %v17878_v62, %v17878_v62  ;;  %v10006_v58 = vadd.f32 %v12872_v24, %v17646_v57  ;;  %v10009_v45 = vadd.f32 %v12875_v38, %v17655_v63 }
 0x5d8   : > { %v10198_v51 = vadd.f32 %v10197_v9, %v17869_v18  ;;  %v10266_v30 = vadd.f32 %v10265_v11, %v10235_v27  ;;  %v17884_v17 = vadd.f32 %v10145_v53, %v9985_v47  ;;  %v10239_v59 = vmul.f32 %v17889_v31, %v17889_v31 }
 0x5d9   : > { %v12994_v13 = vpop.f32.mrf.mxu1 }
 0x5da   : > { %v10267_v23 = vadd.f32 %v10266_v30, %v10236_v50  ;;  %v10199_v8 = vadd.f32 %v10198_v51, %v17884_v17  ;;  %v10237_v10 = vmul.f32 %v17884_v17, %v17884_v17  ;;  %v17904_v40 = vadd.f32 %v12994_v13, %v10006_v58 }
 0x5db   : > { %v10158_v26 = vpop.f32.mrf.mxu1 }
 0x5dc   : > { %v10200_v52 = vadd.f32 %v10199_v8, %v17878_v62  ;;  %v10268_v7 = vadd.f32 %v10267_v23, %v10237_v10  ;;  %v17897_v19 = vadd.f32 %v10158_v26, %v9998_v35  ;;  %v10242_v63 = vmul.f32 %v17904_v40, %v17904_v40 }
 0x5dd   : > { %v12995_v21 = vpop.f32.mrf.mxu1 }
 0x5de   : > { %v10269_v6 = vadd.f32 %v10268_v7, %v10238_v25  ;;  %v10201_v42 = vadd.f32 %v10200_v52, %v17889_v31  ;;  %v10240_v9 = vmul.f32 %v17897_v19, %v17897_v19  ;;  %v17912_v29 = vadd.f32 %v12995_v21, %v10009_v45 }
 0x5df   : > { %v10161_v27 = vpop.f32.mrf.mxu1 }
 0x5e0   : > { %v10202_v11 = vadd.f32 %v10201_v42, %v17897_v19  ;;  %v10270_v57 = vadd.f32 %v10269_v6, %v10239_v59  ;;  %v17910_v20 = vadd.f32 %v10161_v27, %v10001_v39  ;;  %v10243_v51 = vmul.f32 %v17912_v29, %v17912_v29 }
 0x5e2   : > { %v10271_v47 = vadd.f32 %v10270_v57, %v10240_v9  ;;  %v10203_v22 = vadd.f32 %v10202_v11, %v17910_v20  ;;  %v10241_v3 = vmul.f32 %v17910_v20, %v17910_v20 }
 0x5e4   : > { %v10204_v53 = vadd.f32 %v10203_v22, %v17904_v40  ;;  %v10272_v16 = vadd.f32 %v10271_v47, %v10241_v3 }
 0x5e6   : > { %v10205_v50 = vadd.f32 %v10204_v53, %v17912_v29  ;;  %v10273_v30 = vadd.f32 %v10272_v16, %v10242_v63 }
 0x5e8   : > { %v10206_v54 = vrot.slane %v10205_v50, 4  ;;  %v10274_v24 = vadd.f32 %v10273_v30, %v10243_v51 }
 0x5ea   : > { %v10207_v13 = vadd.f32 %v10206_v54, %v10205_v50  ;;  %v10275_v35 = vrot.slane %v10274_v24, 4 }
 0x5ec   : > { %v10208_v23 = vrot.slane %v10207_v13, 2  ;;  %v10276_v8 = vadd.f32 %v10275_v35, %v10274_v24  ;;  %v11627_v24 = vld [vmem:[%s13852_s21 + $0x171] sm:$0xff] }
 0x5ee   : > { %v10209_v10 = vadd.f32 %v10208_v23, %v10207_v13  ;;  %v10277_v38 = vrot.slane %v10276_v8, 2 }
 0x5f0   : > { %v10210_v26 = vrot.slane %v10209_v10, 1  ;;  %v10278_v25 = vadd.f32 %v10277_v38, %v10276_v8 }
 0x5f2   : > { %v10211_v52 = vadd.f32 %v10210_v26, %v10209_v10  ;;  %v10279_v7 = vrot.slane %v10278_v25, 1 }
 0x5f4   : > { %v10280_v58 = vadd.f32 %v10279_v7, %v10278_v25  ;;  %v17923_v21 = vmul.f32 0.00390625, %v10211_v52 }
 0x5f6   : > { %v10282_v59 = vmul.f32 0.00390625, %v10280_v58  ;;  %v10283_v6 = vmul.f32 %v17923_v21, %v17923_v21  ;;  %v10317_v42 = vsub.f32 %v17910_v20, %v17923_v21  ;;  %v10297_v45 = vsub.f32 %v17748_v34, %v17923_v21 }
 0x5f7   : > { %v10300_v11 = vsub.f32 %v17767_v0, %v17923_v21  ;;  %v10301_v9 = vsub.f32 %v17784_v5, %v17923_v21  ;;  %v10302_v57 = vsub.f32 %v17776_v44, %v17923_v21  ;;  %v10303_v47 = vsub.f32 %v17791_v43, %v17923_v21 }
 0x5f8   : > { %v10284_v39 = vsub.f32 %v10282_v59, %v10283_v6  ;;  %v10304_v20 = vsub.f32 %v17803_v49, %v17923_v21  ;;  %v10305_v22 = vsub.f32 %v17820_v32, %v17923_v21  ;;  %v10306_v34 = vsub.f32 %v17812_v56, %v17923_v21 }
 0x5f9   : > { %v10307_v0 = vsub.f32 %v17827_v2, %v17923_v21  ;;  %v10308_v5 = vsub.f32 %v17837_v28, %v17923_v21  ;;  %v10309_v44 = vsub.f32 %v17852_v12, %v17923_v21  ;;  %v10310_v43 = vsub.f32 %v17846_v4, %v17923_v21 }
 0x5fa   : > { %v10285_v27 = vadd.f32 1e-05, %v10284_v39  ;;  %v10311_v49 = vsub.f32 %v17859_v41, %v17923_v21  ;;  %v10312_v32 = vsub.f32 %v17869_v18, %v17923_v21  ;;  %v10313_v56 = vsub.f32 %v17884_v17, %v17923_v21  ;;  %v10173_v18 = vld [vmem:[%s18194_s5] sm:$0x1] }
 0x5fb   : > { %v10314_v2 = vsub.f32 %v17878_v62, %v17923_v21  ;;  %v10315_v28 = vsub.f32 %v17889_v31, %v17923_v21  ;;  %v10316_v12 = vsub.f32 %v17897_v19, %v17923_v21  ;;  %v10318_v4 = vsub.f32 %v17904_v40, %v17923_v21 }
 0x5fc   : > { %13583 = vrsqrt.f32 %v10285_v27  ;;  %v10319_v41 = vsub.f32 %v17912_v29, %v17923_v21  ;;  %v10288_v62 = vsub.f32 %v17665_v33, %v17923_v21  ;;  %v10289_v31 = vsub.f32 %v17673_v37, %v17923_v21  ;;  %v19151_v29 = vld [vmem:[#allocation11_spill] sm:$0xff] }
 0x5fd   : > { %v10290_v19 = vsub.f32 %v17670_v60, %v17923_v21  ;;  %v10291_v40 = vsub.f32 %v17682_v46, %v17923_v21  ;;  %v19152_v63 = vsub.s32 0, %v19151_v29  ;;  %v10292_v16 = vsub.f32 %v17695_v48, %v17923_v21  ;;  %v17992_v60 = vld [vmem:[%s18195_s6] ss:$0 sm:$0xff] }
 0x5fe   : > { %v10293_v51 = vsub.f32 %v17712_v61, %v17923_v21  ;;  %v10294_v33 = vsub.f32 %v17704_v55, %v17923_v21  ;;  %v10295_v37 = vsub.f32 %v17719_v36, %v17923_v21  ;;  %v10296_v46 = vsub.f32 %v17731_v1, %v17923_v21 }
 0x5ff   : > { %v10298_v48 = vsub.f32 %v17740_v15, %v17923_v21  ;;  %v10299_v61 = vsub.f32 %v17755_v14, %v17923_v21 }
 0x609   : > { %v13584_v17 = vpop.eup %13583 }
 0x60a   : > { %v10287_v3 = vmul.f32 %v13584_v17, %v10173_v18 }
 0x60c   : > { %v10323_v53 = vrot.slane %v10287_v3, %v19152_v63 }
 0x60e   : > { %v10353_v55 = vmul.f32 %v10323_v53, %v10317_v42  ;;  %v10324_v50 = vmul.f32 %v10323_v53, %v10288_v62  ;;  %v10325_v30 = vmul.f32 %v10323_v53, %v10289_v31  ;;  %v10326_v54 = vmul.f32 %v10323_v53, %v10290_v19 }
 0x60f   : > { %v10327_v13 = vmul.f32 %v10323_v53, %v10291_v40  ;;  %v10328_v35 = vmul.f32 %v10323_v53, %v10292_v16  ;;  %v10329_v23 = vmul.f32 %v10323_v53, %v10293_v51  ;;  %v10330_v8 = vmul.f32 %v10323_v53, %v10294_v33  ;;  %v11599_v40 = vld [vmem:[%s13852_s21 + $0x21] sm:$0xff]  ;;  %v11602_v33 = vld [vmem:[%s13852_s21 + $0x49] sm:$0xff] }
 0x610   : > { %v10391_v36 = vadd.f32 %v17992_v60, %v10353_v55  ;;  %v10331_v1 = vmul.f32 %v10323_v53, %v10295_v37  ;;  %v10332_v10 = vmul.f32 %v10323_v53, %v10296_v46  ;;  %v10333_v38 = vmul.f32 %v10323_v53, %v10297_v45  ;;  %v11604_v51 = vld [vmem:[%s13852_s21 + $0x61] sm:$0xff]  ;;  %v11605_v37 = vld [vmem:[%s13852_s21 + $0x69] sm:$0xff]  ;;  %v11603_v46 = vld [vmem:[%s13852_s21 + $0x51] sm:$0xff] }
 0x611   : > { %v10334_v15 = vmul.f32 %v10323_v53, %v10298_v48  ;;  %v10335_v26 = vmul.f32 %v10323_v53, %v10299_v61  ;;  %v10336_v25 = vmul.f32 %v10323_v53, %v10300_v11  ;;  %v10337_v14 = vmul.f32 %v10323_v53, %v10301_v9 }
 0x612   : > { %v10455_v52 = vadd.f32 %v11627_v24, %v10391_v36  ;;  %v10338_v7 = vmul.f32 %v10323_v53, %v10302_v57  ;;  %v10339_v58 = vmul.f32 %v10323_v53, %v10303_v47  ;;  %v10340_v21 = vmul.f32 %v10323_v53, %v10304_v20  ;;  %v11609_v24 = vld [vmem:[%s13852_s21 + $0x99] sm:$0xff] }
 0x613   : > { %v10341_v59 = vmul.f32 %v10323_v53, %v10305_v22  ;;  %v10342_v6 = vmul.f32 %v10323_v53, %v10306_v34  ;;  %v10343_v42 = vmul.f32 %v10323_v53, %v10307_v0  ;;  %v10344_v39 = vmul.f32 %v10323_v53, %v10308_v5 }
 0x614   : > { %v10487_v27 = vmax.f32 %v10455_v52, 0.0  ;;  %v10345_v18 = vmul.f32 %v10323_v53, %v10309_v44  ;;  %v10346_v17 = vmul.f32 %v10323_v53, %v10310_v43  ;;  %v10347_v3 = vmul.f32 %v10323_v53, %v10311_v49  ;;  %v11611_v52 = vld [vmem:[%s13852_s21 + $0xb1] sm:$0xff] }
 0x615   : > { %v10348_v62 = vmul.f32 %v10323_v53, %v10312_v32  ;;  %v10349_v31 = vmul.f32 %v10323_v53, %v10313_v56  ;;  %v10350_v19 = vmul.f32 %v10323_v53, %v10314_v2  ;;  %v10351_v45 = vmul.f32 %v10323_v53, %v10315_v28 }
 0x616   : > { %10519 = vst [vmem:[%s18006_s29 + $0xe8] sm:$0xff] %v10487_v27  ;;  %v10352_v11 = vmul.f32 %v10323_v53, %v10316_v12  ;;  %v10354_v9 = vmul.f32 %v10323_v53, %v10318_v4  ;;  %v10355_v57 = vmul.f32 %v10323_v53, %v10319_v41  ;;  %v10362_v47 = vadd.f32 %v17992_v60, %v10324_v50  ;;  %v11600_v12 = vld [vmem:[%s13852_s21 + $0x31] sm:$0xff]  ;;  %v11598_v4 = vld [vmem:[%s13852_s21 + $0x19] sm:$0xff]  ;;  %v11615_v27 = vld [vmem:[%s13852_s21 + $0xe1] sm:$0xff] }
 0x617   : > { %v10363_v20 = vadd.f32 %v17992_v60, %v10325_v30  ;;  %v10364_v22 = vadd.f32 %v17992_v60, %v10326_v54  ;;  %v10365_v34 = vadd.f32 %v17992_v60, %v10327_v13  ;;  %v10366_v0 = vadd.f32 %v17992_v60, %v10328_v35  ;;  %v11601_v41 = vld [vmem:[%s13852_s21 + $0x39] sm:$0xff]  ;;  %v11608_v30 = vld [vmem:[%s13852_s21 + $0x91] sm:$0xff]  ;;  %v11607_v13 = vld [vmem:[%s13852_s21 + $0x81] sm:$0xff] }
 0x618   : > { %v10367_v5 = vadd.f32 %v17992_v60, %v10329_v23  ;;  %v10368_v44 = vadd.f32 %v17992_v60, %v10330_v8  ;;  %v10369_v43 = vadd.f32 %v17992_v60, %v10331_v1  ;;  %v10370_v49 = vadd.f32 %v17992_v60, %v10332_v10  ;;  %v11606_v54 = vld [vmem:[%s13852_s21 + $0x79] sm:$0xff]  ;;  %v11612_v1 = vld [vmem:[%s13852_s21 + $0xc1] sm:$0xff]  ;;  %v11610_v10 = vld [vmem:[%s13852_s21 + $0xa9] sm:$0xff] }
 0x619   : > { %v10371_v32 = vadd.f32 %v17992_v60, %v10333_v38  ;;  %v10372_v56 = vadd.f32 %v17992_v60, %v10334_v15  ;;  %v10373_v2 = vadd.f32 %v17992_v60, %v10335_v26  ;;  %v10374_v28 = vadd.f32 %v17992_v60, %v10336_v25  ;;  %v11613_v38 = vld [vmem:[%s13852_s21 + $0xc9] sm:$0xff] }
 0x61a   : > { %v10375_v29 = vadd.f32 %v17992_v60, %v10337_v14  ;;  %v10376_v63 = vadd.f32 %v17992_v60, %v10338_v7  ;;  %v10377_v53 = vadd.f32 %v17992_v60, %v10339_v58  ;;  %v10378_v16 = vadd.f32 %v17992_v60, %v10340_v21  ;;  %v11616_v7 = vld [vmem:[%s13852_s21 + $0xf1] sm:$0xff]  ;;  %v11614_v58 = vld [vmem:[%s13852_s21 + $0xd9] sm:$0xff] }
 0x61b   : > { %v10379_v48 = vadd.f32 %v17992_v60, %v10341_v59  ;;  %v10380_v61 = vadd.f32 %v17992_v60, %v10342_v6  ;;  %v10381_v55 = vadd.f32 %v17992_v60, %v10343_v42  ;;  %v10382_v50 = vadd.f32 %v17992_v60, %v10344_v39  ;;  %v11617_v39 = vld [vmem:[%s13852_s21 + $0xf9] sm:$0xff] }
 0x61c   : > { %v10383_v35 = vadd.f32 %v17992_v60, %v10345_v18  ;;  %v10384_v23 = vadd.f32 %v17992_v60, %v10346_v17  ;;  %v10385_v8 = vadd.f32 %v17992_v60, %v10347_v3  ;;  %v10386_v36 = vadd.f32 %v17992_v60, %v10348_v62  ;;  %v11620_v18 = vld [vmem:[%s13852_s21 + $0x121] sm:$0xff] }
 0x61d   : > { %v10387_v15 = vadd.f32 %v17992_v60, %v10349_v31  ;;  %v10388_v26 = vadd.f32 %v17992_v60, %v10350_v19  ;;  %v10389_v25 = vadd.f32 %v17992_v60, %v10351_v45  ;;  %v10390_v14 = vadd.f32 %v17992_v60, %v10352_v11  ;;  %v11618_v19 = vld [vmem:[%s13852_s21 + $0x109] sm:$0xff]  ;;  %v11619_v11 = vld [vmem:[%s13852_s21 + $0x111] sm:$0xff] }
 0x61e   : > { %v10392_v21 = vadd.f32 %v17992_v60, %v10354_v9  ;;  %v10393_v59 = vadd.f32 %v17992_v60, %v10355_v57  ;;  %v10426_v6 = vadd.f32 %v11598_v4, %v10362_v47  ;;  %v10427_v42 = vadd.f32 %v11599_v40, %v10363_v20  ;;  %v11621_v45 = vld [vmem:[%s13852_s21 + $0x129] sm:$0xff]  ;;  %v11624_v20 = vld [vmem:[%s13852_s21 + $0x151] sm:$0xff]  ;;  %v11622_v4 = vld [vmem:[%s13852_s21 + $0x139] sm:$0xff] }
 0x61f   : > { %v10428_v17 = vadd.f32 %v11600_v12, %v10364_v22  ;;  %v10429_v3 = vadd.f32 %v11601_v41, %v10365_v34  ;;  %v10430_v62 = vadd.f32 %v11602_v33, %v10366_v0  ;;  %v10431_v31 = vadd.f32 %v11603_v46, %v10367_v5  ;;  %v11623_v40 = vld [vmem:[%s13852_s21 + $0x141] sm:$0xff]  ;;  %v11625_v0 = vld [vmem:[%s13852_s21 + $0x159] sm:$0xff]  ;;  %v11626_v5 = vld [vmem:[%s13852_s21 + $0x169] sm:$0xff] }
 0x620   : > { %v10432_v9 = vadd.f32 %v11604_v51, %v10368_v44  ;;  %v10433_v60 = vadd.f32 %v11605_v37, %v10369_v43  ;;  %v10434_v57 = vadd.f32 %v11606_v54, %v10370_v49  ;;  %v10435_v47 = vadd.f32 %v11607_v13, %v10371_v32  ;;  %v11628_v33 = vld [vmem:[%s13852_s21 + $0x181] sm:$0xff]  ;;  %v11629_v43 = vld [vmem:[%s13852_s21 + $0x189] sm:$0xff]  ;;  %s11955_s21 = sshll.u32 %s13730_s28, 12 }
 0x621   : > { %v10436_v12 = vadd.f32 %v11608_v30, %v10372_v56  ;;  %v10437_v22 = vadd.f32 %v11609_v24, %v10373_v2  ;;  %v10438_v34 = vadd.f32 %v11610_v10, %v10374_v28  ;;  %v10439_v41 = vadd.f32 %v11611_v52, %v10375_v29  ;;  %s18127_s16 = scalar_lea.hbm %s18196_s7, %s11955_s21 }
 0x622   : > { %v10440_v46 = vadd.f32 %v11612_v1, %v10376_v63  ;;  %v10441_v44 = vadd.f32 %v11613_v38, %v10377_v53  ;;  %v10442_v51 = vadd.f32 %v11614_v58, %v10378_v16  ;;  %v10443_v37 = vadd.f32 %v11615_v27, %v10379_v48 }
 0x623   : > { %v10444_v49 = vadd.f32 %v11616_v7, %v10380_v61  ;;  %v18071_v54 = vadd.f32 %v11617_v39, %v10381_v55  ;;  %v18073_v13 = vadd.f32 %v11618_v19, %v10382_v50  ;;  %v18075_v32 = vadd.f32 %v11619_v11, %v10383_v35 }
 0x624   : > { %v18077_v30 = vadd.f32 %v11620_v18, %v10384_v23  ;;  %v18079_v56 = vadd.f32 %v11621_v45, %v10385_v8  ;;  %v18081_v2 = vadd.f32 %v11622_v4, %v10386_v36  ;;  %v18083_v28 = vadd.f32 %v11623_v40, %v10387_v15 }
 0x625   : > { %v18085_v29 = vadd.f32 %v11624_v20, %v10388_v26  ;;  %v18087_v63 = vadd.f32 %v11625_v0, %v10389_v25  ;;  %v18089_v53 = vadd.f32 %v11626_v5, %v10390_v14  ;;  %v18091_v16 = vadd.f32 %v11628_v33, %v10392_v21 }
 0x626   : > { %v18093_v48 = vadd.f32 %v11629_v43, %v10393_v59  ;;  %v10458_v61 = vmax.f32 %v10426_v6, 0.0  ;;  %v10459_v55 = vmax.f32 %v10427_v42, 0.0  ;;  %v10460_v50 = vmax.f32 %v10428_v17, 0.0 }
 0x627   : > { %v10461_v24 = vmax.f32 %v10429_v3, 0.0  ;;  %v10462_v35 = vmax.f32 %v10430_v62, 0.0  ;;  %v10463_v23 = vmax.f32 %v10431_v31, 0.0  ;;  %v10464_v8 = vmax.f32 %v10432_v9, 0.0 }
 0x628   : > { %v10465_v36 = vmax.f32 %v10433_v60, 0.0  ;;  %v10466_v1 = vmax.f32 %v10434_v57, 0.0  ;;  %v10467_v10 = vmax.f32 %v10435_v47, 0.0  ;;  %v10468_v38 = vmax.f32 %v10436_v12, 0.0  ;;  %10490 = vst [vmem:[%s18006_s29] sm:$0xff] %v10458_v61  ;;  %10491 = vst [vmem:[%s18006_s29 + $0x8] sm:$0xff] %v10459_v55 }
 0x629   : > { %10492 = vst [vmem:[%s18006_s29 + $0x10] sm:$0xff] %v10460_v50  ;;  %v10469_v15 = vmax.f32 %v10437_v22, 0.0  ;;  %v10470_v26 = vmax.f32 %v10438_v34, 0.0  ;;  %v10471_v25 = vmax.f32 %v10439_v41, 0.0  ;;  %v10472_v14 = vmax.f32 %v10440_v46, 0.0  ;;  %10493 = vst [vmem:[%s18006_s29 + $0x18] sm:$0xff] %v10461_v24 }
 0x62a   : > { %10494 = vst [vmem:[%s18006_s29 + $0x20] sm:$0xff] %v10462_v35  ;;  %10495 = vst [vmem:[%s18006_s29 + $0x28] sm:$0xff] %v10463_v23  ;;  %v10473_v52 = vmax.f32 %v10441_v44, 0.0  ;;  %v10474_v7 = vmax.f32 %v10442_v51, 0.0  ;;  %v10475_v58 = vmax.f32 %v10443_v37, 0.0  ;;  %v10476_v21 = vmax.f32 %v10444_v49, 0.0 }
 0x62b   : > { %10496 = vst [vmem:[%s18006_s29 + $0x30] sm:$0xff] %v10464_v8  ;;  %10497 = vst [vmem:[%s18006_s29 + $0x38] sm:$0xff] %v10465_v36  ;;  %v10477_v59 = vmax.f32 %v18071_v54, 0.0  ;;  %v10478_v6 = vmax.f32 %v18073_v13, 0.0  ;;  %v10479_v42 = vmax.f32 %v18075_v32, 0.0  ;;  %v10480_v39 = vmax.f32 %v18077_v30, 0.0 }
 0x62c   : > { %10498 = vst [vmem:[%s18006_s29 + $0x40] sm:$0xff] %v10466_v1  ;;  %10499 = vst [vmem:[%s18006_s29 + $0x48] sm:$0xff] %v10467_v10  ;;  %v10481_v27 = vmax.f32 %v18079_v56, 0.0  ;;  %v10482_v18 = vmax.f32 %v18081_v2, 0.0  ;;  %v10483_v17 = vmax.f32 %v18083_v28, 0.0  ;;  %v10484_v3 = vmax.f32 %v18085_v29, 0.0 }
 0x62d   : > { %10500 = vst [vmem:[%s18006_s29 + $0x50] sm:$0xff] %v10468_v38  ;;  %10501 = vst [vmem:[%s18006_s29 + $0x58] sm:$0xff] %v10469_v15  ;;  %v10485_v62 = vmax.f32 %v18087_v63, 0.0  ;;  %v10486_v31 = vmax.f32 %v18089_v53, 0.0  ;;  %v10488_v19 = vmax.f32 %v18091_v16, 0.0  ;;  %v10489_v45 = vmax.f32 %v18093_v48, 0.0 }
 0x62e   : > { %10502 = vst [vmem:[%s18006_s29 + $0x60] sm:$0xff] %v10470_v26  ;;  %10503 = vst [vmem:[%s18006_s29 + $0x68] sm:$0xff] %v10471_v25 }
 0x62f   : > { %10504 = vst [vmem:[%s18006_s29 + $0x70] sm:$0xff] %v10472_v14  ;;  %10505 = vst [vmem:[%s18006_s29 + $0x78] sm:$0xff] %v10473_v52 }
 0x630   : > { %10506 = vst [vmem:[%s18006_s29 + $0x80] sm:$0xff] %v10474_v7  ;;  %10507 = vst [vmem:[%s18006_s29 + $0x88] sm:$0xff] %v10475_v58 }
 0x631   : > { %10508 = vst [vmem:[%s18006_s29 + $0x90] sm:$0xff] %v10476_v21  ;;  %10509 = vst [vmem:[%s18006_s29 + $0x98] sm:$0xff] %v10477_v59 }
 0x632   : > { %10510 = vst [vmem:[%s18006_s29 + $0xa0] sm:$0xff] %v10478_v6  ;;  %10511 = vst [vmem:[%s18006_s29 + $0xa8] sm:$0xff] %v10479_v42 }
 0x633   : > { %10512 = vst [vmem:[%s18006_s29 + $0xb0] sm:$0xff] %v10480_v39  ;;  %10513 = vst [vmem:[%s18006_s29 + $0xb8] sm:$0xff] %v10481_v27 }
 0x634   : > { %10514 = vst [vmem:[%s18006_s29 + $0xc0] sm:$0xff] %v10482_v18  ;;  %10515 = vst [vmem:[%s18006_s29 + $0xc8] sm:$0xff] %v10483_v17 }
 0x635   : > { %10516 = vst [vmem:[%s18006_s29 + $0xd0] sm:$0xff] %v10484_v3  ;;  %10517 = vst [vmem:[%s18006_s29 + $0xd8] sm:$0xff] %v10485_v62 }
 0x636   : > { %10518 = vst [vmem:[%s18006_s29 + $0xe0] sm:$0xff] %v10486_v31  ;;  %10520 = vst [vmem:[%s18006_s29 + $0xf0] sm:$0xff] %v10488_v19 }
 0x637   : > { %10521 = vst [vmem:[%s18006_s29 + $0xf8] sm:$0xff] %v10489_v45 }
 0x638   : > { %13616 = shalt.err (!%p13613_p3)
}
 0x639   : > { %s13617_s22 = scalar_lea.hbm %s18127_s16, 4096  ;;  %s13621_s9 = scalar_lea.hbm %s18196_s7, 8192 }
 0x63a   : > { %p13618_p4 = scmp.ne.s32.totalorder %s18127_s16, %s13617_s22  ;;  %p13622_p9 = scmp.lt.s32.totalorder %s18127_s16, %s18196_s7 }
 0x63b   : > { %p13623_p10 = scmp.lt.s32.totalorder %s13621_s9, %s13617_s22 }
 0x63c   : > { %p13619_p7 = pnand %p13618_p4, %p13747_p5 }
 0x63d   : > { %p13624_p11 = por %p13623_p10, %p13622_p9 }
 0x63e   : > { %p13620_p8 = pneg %p13619_p7 }
 0x640   : > { %p13625_p12 = pnand %p13624_p11, %p13620_p8 }
 0x642   : > { %13628 = shalt.err (!%p13625_p12)
}
 0x643   : > { %s13667_s28 = smov 128   ;;  %s13668_s14 = smov 8  }
 0x644   : > { %12997 = dma.vmem_to_hbm [thread:$0]  (%p13747_p5), %s18129_s13, 4096, %s18127_s16, %s18149_s17, %s13667_s28, %s13667_s28, %s13668_s14  }
 0x645 PF: > { %p13003_p13 = scmp.ge.s32.totalorder %s13663_s27, 2  ;;  %s10551_s18 = sand.u32 1, %s13651_s24  }
 0x646   : > { %s10552_s19 = scalar_lea.sflag [#allocation5], %s10551_s18 }
 0x647   : > { %p13000_p0 = pnand %p13003_p13, %p13751_p6 }
 0x649   : > { %p13001_p1 = pneg %p13000_p0 }
 0x64b   : > { %13646 = dma.done.wait (%p13001_p1), %s10552_s19, 4096  }
 0x64c   : > { %13648 = vsyncadd (%p13001_p1), %s10552_s19, 4294963200  ;;  %p17_p2 = scmp.ge.s32.totalorder %s13734_s30, 4   ;;  %s19153_s24 = smov %s13655_s25 }
 0x64d   : > { %s19154_s25 = smov %s13659_s26  ;;  %s19155_s26 = smov %s13745_s10 }
 0x64e   : > { %s19156_s27 = smov %s13734_s30  ;;  %19 = sbr.rel (!%p17_p2) target bundleno = 3 (0x3), region = 88 }
 0x653   :  { %10557 = vsyncpa [#allocation5], 1 }
 0x654   :  { %10559 = vsyncpa [#allocation5 + $0x1], 1 }

</bundles_post_ra>
